<compile_context>
chip_gen: v6e
topology: v6e:2x2x1
jax: 0.10.0
libtpu: 0.0.40
codegen_flags: <defaults>
</compile_context>

<pallas_src>
import functools

import jax
import jax.numpy as jnp
from jax import lax
from jax.experimental import pallas as pl
from jax.experimental.pallas import tpu as pltpu

UPSCALE = 4
CHANNELS = 3


def sr_kernel(p_ref, w1_ref, b1_ref, w2_ref, b2_ref, w3_ref, b3_ref,
              w4_ref, b4_ref, out_ref, a1_ref, a2_ref, a3_ref, *, H, W):
    # p_ref:   (H*(W+2), 25*Cin)   im2col patches for the 5x5 conv
    # w1_ref:  (25*Cin, 64)        fused conv1 weights
    # w{2,3,4}_ref: (9, Cin, Cout) per-tap conv weights
    # b*_ref:  (1, Cout)
    # out_ref: (H*(W+2), Cout4)    conv4 output on the padded-width grid
    # a*_ref:  (R, C)              flattened zero-padded activation scratch
    Wp = W + 2                      # padded width (1-px left/right border)
    M = H * Wp                      # rows of the flattened conv-output grid
    R = a1_ref.shape[0]             # rows of each flattened activation scratch
    head = Wp + 1                   # first interior row of the padded image

    # Zero the never-written head/tail border strips of every activation
    # scratch.  The interior + side borders are fully rewritten below, so this
    # is cheap, idempotent, and safe under "parallel" grid scheduling.
    for ref in (a1_ref, a2_ref, a3_ref):
        c = ref.shape[1]
        ref[0:head, :] = jnp.zeros((head, c), jnp.float32)
        ref[head + M:R, :] = jnp.zeros((R - head - M, c), jnp.float32)

    # Mask for the 2 garbage columns per row of the flattened grid.  Zeroing
    # them makes the stored block double as the zero border of the next layer.
    col = lax.broadcasted_iota(jnp.int32, (M, 1), 0) % Wp
    interior = col < W

    def store_act(dst_ref, y):
        # ReLU + garbage-column masking + store into the padded interior.
        dst_ref[head:head + M, :] = jnp.where(interior,
                                              jnp.maximum(y, 0.0), 0.0)

    def conv3x3(src_ref, w_ref, b_ref):
        # 'same' 3x3 conv as 9 matmuls on contiguous row-range slices of the
        # flattened padded activation (leading-dim slices only; no relayout).
        cout = w_ref.shape[2]
        acc = jnp.zeros((M, cout), jnp.float32)
        for t in range(9):
            ky, kx = divmod(t, 3)
            s = ky * Wp + kx
            acc = acc + jnp.dot(src_ref[s:s + M, :], w_ref[t],
                                preferred_element_type=jnp.float32)
        return acc + b_ref[...]

    # conv1 (5x5, pad 2): one fused matmul on the wrapper-built im2col patches.
    y1 = jnp.dot(p_ref[...], w1_ref[...],
                 preferred_element_type=jnp.float32) + b1_ref[...]
    store_act(a1_ref, y1)                                   # + ReLU
    store_act(a2_ref, conv3x3(a1_ref, w2_ref, b2_ref))      # conv2 + ReLU
    store_act(a3_ref, conv3x3(a2_ref, w3_ref, b3_ref))      # conv3 + ReLU
    out_ref[...] = conv3x3(a3_ref, w4_ref, b4_ref).astype(out_ref.dtype)


def sr_model_forward(x_nchw, params):
    w1, b1, w2, b2, w3, b3, w4, b4 = params
    N, C, H, W = x_nchw.shape
    r = UPSCALE
    cout4 = C * r * r
    Wp = W + 2
    M = H * Wp
    # +8 tail rows so the largest tap slice (row offset 2*Wp+2) stays in-bounds
    R = (H + 2) * Wp + 8

    x_nhwc = jnp.transpose(x_nchw, (0, 2, 3, 1)).astype(jnp.float32)

    # im2col for the 5x5 'same' conv, evaluated on the (W+2)-wide padded grid
    # (the 2 extra columns per row are masked to zero inside the kernel).
    xpad = jnp.pad(x_nhwc, ((0, 0), (2, 2), (2, 4), (0, 0)))
    cols = [xpad[:, ky:ky + H, kx:kx + Wp, :]
            for ky in range(5) for kx in range(5)]
    patches = jnp.concatenate(cols, axis=-1).reshape(N, M, 25 * C)

    # Matmul-ready weights.
    w1m = w1.reshape(25 * C, 64)
    w2r = w2.reshape(9, 64, 64)
    w3r = w3.reshape(9, 64, 32)
    w4r = w4.reshape(9, 32, cout4)

    def full(a):
        return pl.BlockSpec(a.shape, lambda n, _nd=a.ndim: (0,) * _nd)

    flops = 2 * N * M * (25 * C * 64 + 9 * 64 * 64 + 9 * 64 * 32
                         + 9 * 32 * cout4)
    bytes_accessed = 4 * (N * M * 25 * C + N * M * cout4
                          + w1m.size + w2r.size + w3r.size + w4r.size
                          + b1.size + b2.size + b3.size + b4.size)

    kernel = functools.partial(sr_kernel, H=H, W=W)

    out = pl.pallas_call(
        kernel,
        out_shape=jax.ShapeDtypeStruct((N, M, cout4), jnp.float32),
        grid=(N,),
        in_specs=[
            pl.BlockSpec((None, M, 25 * C), lambda n: (n, 0, 0)),
            full(w1m), full(b1), full(w2r), full(b2),
            full(w3r), full(b3), full(w4r), full(b4),
        ],
        out_specs=pl.BlockSpec((None, M, cout4), lambda n: (n, 0, 0)),
        scratch_shapes=[
            pltpu.VMEM((R, 64), jnp.float32),
            pltpu.VMEM((R, 64), jnp.float32),
            pltpu.VMEM((R, 32), jnp.float32),
        ],
        compiler_params=pltpu.CompilerParams(
            dimension_semantics=("parallel",)),
        cost_estimate=pl.CostEstimate(flops=flops, transcendentals=0,
                                      bytes_accessed=bytes_accessed),
    )(patches, w1m, b1, w2r, b2, w3r, b3, w4r, b4)

    # Drop the 2 garbage columns per row, then depth_to_space / pixel_shuffle:
    # out[n, h, w, c*r*r + i*r + j] -> y[n, c, h*r + i, w*r + j]
    out = out.reshape(N, H, Wp, cout4)[:, :, :W, :]
    out = out.reshape(N, H, W, C, r, r)
    out = jnp.transpose(out, (0, 3, 1, 4, 2, 5))
    return out.reshape(N, C, H * r, W * r)
    # TODO(synk): for realistic SR resolutions, add H-tiled grid with a 2-row
    # halo so whole-image scratch does not exceed v7x's 64 MiB VMEM.


def sr_model_reference(x_nchw, params):
    """Pure-JAX reference (mirrors the PyTorch forward) for validation."""
    w1, b1, w2, b2, w3, b3, w4, b4 = params

    def conv(x, w, b):
        y = lax.conv_general_dilated(
            x, w, window_strides=(1, 1), padding='SAME',
            dimension_numbers=('NHWC', 'HWIO', 'NHWC'))
        return y + b.reshape(1, 1, 1, -1)

    x = jnp.transpose(x_nchw, (0, 2, 3, 1)).astype(jnp.float32)
    x = jax.nn.relu(conv(x, w1, b1))
    x = jax.nn.relu(conv(x, w2, b2))
    x = jax.nn.relu(conv(x, w3, b3))
    x = conv(x, w4, b4)
    N, H, W, _ = x.shape
    r = UPSCALE
    C = x.shape[-1] // (r * r)
    x = x.reshape(N, H, W, C, r, r)
    x = jnp.transpose(x, (0, 3, 1, 4, 2, 5))
    return x.reshape(N, C, H * r, W * r)


def init_params(key, channels=CHANNELS, upscale=UPSCALE):
    """Deterministic synthetic weights.  Conv weights in HWIO, biases (1, Cout)."""
    ks = jax.random.split(key, 8)

    def conv_params(kw, kb, k, cin, cout):
        w = jax.random.normal(kw, (k, k, cin, cout), jnp.float32)
        w = w / jnp.sqrt(float(k * k * cin))
        b = 0.01 * jax.random.normal(kb, (1, cout), jnp.float32)
        return w, b

    w1, b1 = conv_params(ks[0], ks[1], 5, channels, 64)
    w2, b2 = conv_params(ks[2], ks[3], 3, 64, 64)
    w3, b3 = conv_params(ks[4], ks[5], 3, 64, 32)
    w4, b4 = conv_params(ks[6], ks[7], 3, 32, channels * upscale ** 2)
    return (w1, b1, w2, b2, w3, b3, w4, b4)


if __name__ == "__main__":
    key = jax.random.PRNGKey(0)
    k_x, k_p = jax.random.split(key)

    N, C, H, W = 2, CHANNELS, 16, 16
    x = jax.random.normal(k_x, (N, C, H, W), jnp.float32)
    params = init_params(k_p)

    fwd = jax.jit(sr_model_forward)
    y = fwd(x, params)
    y = jax.block_until_ready(y)

    assert y.shape == (N, C, H * UPSCALE, W * UPSCALE), y.shape

    y_ref = sr_model_reference(x, params)
    assert jnp.allclose(y, y_ref, atol=1e-4, rtol=1e-4), \
        float(jnp.max(jnp.abs(y - y_ref)))

    print("KERNEL_OK")
</pallas_src>

<mosaic_0001>
module attributes {stable_mosaic.version = 11 : i64} {
  func.func @sr_kernel(%arg0: i32, %arg1: memref<1x288x75xf32, #tpu.memory_space<vmem>>, %arg2: memref<75x64xf32, #tpu.memory_space<vmem>>, %arg3: memref<1x64xf32, #tpu.memory_space<vmem>>, %arg4: memref<9x64x64xf32, #tpu.memory_space<vmem>>, %arg5: memref<1x64xf32, #tpu.memory_space<vmem>>, %arg6: memref<9x64x32xf32, #tpu.memory_space<vmem>>, %arg7: memref<1x32xf32, #tpu.memory_space<vmem>>, %arg8: memref<9x32x48xf32, #tpu.memory_space<vmem>>, %arg9: memref<1x48xf32, #tpu.memory_space<vmem>>, %arg10: memref<1x288x48xf32, #tpu.memory_space<vmem>>, %arg11: memref<332x64xf32, #tpu.memory_space<vmem>>, %arg12: memref<332x64xf32, #tpu.memory_space<vmem>>, %arg13: memref<332x32xf32, #tpu.memory_space<vmem>>) attributes {dimension_semantics = [#tpu.dimension_semantics<parallel>], iteration_bounds = array<i64: 2>, scalar_prefetch = 0 : i64, scratch_operands = 3 : i64, tpu.core_type = #tpu.core_type<tc>, window_params = [{transform_indices = @transform_0, window_bounds = array<i64: 1, 288, 75>}, {pipeline_mode = #tpu.pipeline_mode<synchronous>, transform_indices = @transform_1, window_bounds = array<i64: 75, 64>}, {pipeline_mode = #tpu.pipeline_mode<synchronous>, transform_indices = @transform_2, window_bounds = array<i64: 1, 64>}, {pipeline_mode = #tpu.pipeline_mode<synchronous>, transform_indices = @transform_3, window_bounds = array<i64: 9, 64, 64>}, {pipeline_mode = #tpu.pipeline_mode<synchronous>, transform_indices = @transform_4, window_bounds = array<i64: 1, 64>}, {pipeline_mode = #tpu.pipeline_mode<synchronous>, transform_indices = @transform_5, window_bounds = array<i64: 9, 64, 32>}, {pipeline_mode = #tpu.pipeline_mode<synchronous>, transform_indices = @transform_6, window_bounds = array<i64: 1, 32>}, {pipeline_mode = #tpu.pipeline_mode<synchronous>, transform_indices = @transform_7, window_bounds = array<i64: 9, 32, 48>}, {pipeline_mode = #tpu.pipeline_mode<synchronous>, transform_indices = @transform_8, window_bounds = array<i64: 1, 48>}, {transform_indices = @transform_9, window_bounds = array<i64: 1, 288, 48>}]} {
    %cst = arith.constant 0.000000e+00 : f32
    %0 = vector.broadcast %cst : f32 to vector<19x64xf32>
    %c0 = arith.constant 0 : index
    %c0_0 = arith.constant 0 : index
    %1 = vector.load %arg11[%c0, %c0_0] : memref<332x64xf32, #tpu.memory_space<vmem>>, vector<19x64xf32>
    tpu.vector_store %arg11[%c0, %c0_0], %0 {strides = array<i32>} : memref<332x64xf32, #tpu.memory_space<vmem>>, vector<19x64xf32>,
    %cst_1 = arith.constant 0.000000e+00 : f32
    %2 = vector.broadcast %cst_1 : f32 to vector<25x64xf32>
    %c307 = arith.constant 307 : index
    %c0_2 = arith.constant 0 : index
    %3 = vector.load %arg11[%c307, %c0_2] : memref<332x64xf32, #tpu.memory_space<vmem>>, vector<25x64xf32>
    tpu.vector_store %arg11[%c307, %c0_2], %2 {strides = array<i32>} : memref<332x64xf32, #tpu.memory_space<vmem>>, vector<25x64xf32>,
    %cst_3 = arith.constant 0.000000e+00 : f32
    %4 = vector.broadcast %cst_3 : f32 to vector<19x64xf32>
    %c0_4 = arith.constant 0 : index
    %c0_5 = arith.constant 0 : index
    %5 = vector.load %arg12[%c0_4, %c0_5] : memref<332x64xf32, #tpu.memory_space<vmem>>, vector<19x64xf32>
    tpu.vector_store %arg12[%c0_4, %c0_5], %4 {strides = array<i32>} : memref<332x64xf32, #tpu.memory_space<vmem>>, vector<19x64xf32>,
    %cst_6 = arith.constant 0.000000e+00 : f32
    %6 = vector.broadcast %cst_6 : f32 to vector<25x64xf32>
    %c307_7 = arith.constant 307 : index
    %c0_8 = arith.constant 0 : index
    %7 = vector.load %arg12[%c307_7, %c0_8] : memref<332x64xf32, #tpu.memory_space<vmem>>, vector<25x64xf32>
    tpu.vector_store %arg12[%c307_7, %c0_8], %6 {strides = array<i32>} : memref<332x64xf32, #tpu.memory_space<vmem>>, vector<25x64xf32>,
    %cst_9 = arith.constant 0.000000e+00 : f32
    %8 = vector.broadcast %cst_9 : f32 to vector<19x32xf32>
    %c0_10 = arith.constant 0 : index
    %c0_11 = arith.constant 0 : index
    %9 = vector.load %arg13[%c0_10, %c0_11] : memref<332x32xf32, #tpu.memory_space<vmem>>, vector<19x32xf32>
    tpu.vector_store %arg13[%c0_10, %c0_11], %8 {strides = array<i32>} : memref<332x32xf32, #tpu.memory_space<vmem>>, vector<19x32xf32>,
    %cst_12 = arith.constant 0.000000e+00 : f32
    %10 = vector.broadcast %cst_12 : f32 to vector<25x32xf32>
    %c307_13 = arith.constant 307 : index
    %c0_14 = arith.constant 0 : index
    %11 = vector.load %arg13[%c307_13, %c0_14] : memref<332x32xf32, #tpu.memory_space<vmem>>, vector<25x32xf32>
    tpu.vector_store %arg13[%c307_13, %c0_14], %10 {strides = array<i32>} : memref<332x32xf32, #tpu.memory_space<vmem>>, vector<25x32xf32>,
    %12 = tpu.iota {dimensions = array<i32: 0>} : vector<288x1xi32>
    %c18_i32 = arith.constant 18 : i32
    %c0_i32 = arith.constant 0 : i32
    %13 = arith.cmpi eq, %c18_i32, %c0_i32 : i32
    %c1_i32 = arith.constant 1 : i32
    %14 = arith.select %13, %c1_i32, %c18_i32 : i32
    %15 = vector.broadcast %14 : i32 to vector<288x1xi32>
    %16 = arith.remsi %12, %15 : vector<288x1xi32>
    %c0_i32_15 = arith.constant 0 : i32
    %17 = vector.broadcast %c0_i32_15 : i32 to vector<288x1xi32>
    %18 = arith.cmpi ne, %16, %17 : vector<288x1xi32>
    %c0_i32_16 = arith.constant 0 : i32
    %19 = vector.broadcast %c0_i32_16 : i32 to vector<288x1xi32>
    %20 = arith.cmpi slt, %16, %19 : vector<288x1xi32>
    %c0_i32_17 = arith.constant 0 : i32
    %21 = arith.cmpi slt, %14, %c0_i32_17 : i32
    %22 = vector.broadcast %21 : i1 to vector<288x1xi1>
    %23 = vector.broadcast %22 : vector<288x1xi1> to vector<288x1xi1>
    %24 = arith.xori %20, %23 : vector<288x1xi1>
    %25 = arith.andi %24, %18 : vector<288x1xi1>
    %26 = vector.broadcast %14 : i32 to vector<288x1xi32>
    %27 = arith.addi %16, %26 : vector<288x1xi32>
    %28 = arith.select %25, %27, %16 : vector<288x1xi1>, vector<288x1xi32>
    %c16_i32 = arith.constant 16 : i32
    %29 = vector.broadcast %c16_i32 : i32 to vector<288x1xi32>
    %30 = arith.cmpi slt, %28, %29 : vector<288x1xi32>
    %c0_18 = arith.constant 0 : index
    %c0_19 = arith.constant 0 : index
    %c0_20 = arith.constant 0 : index
    %31 = vector.load %arg1[%c0_18, %c0_19, %c0_20] : memref<1x288x75xf32, #tpu.memory_space<vmem>>, vector<1x288x75xf32>
    %32 = vector.shape_cast %31 : vector<1x288x75xf32> to vector<288x75xf32>
    %c0_21 = arith.constant 0 : index
    %c0_22 = arith.constant 0 : index
    %33 = vector.load %arg2[%c0_21, %c0_22] : memref<75x64xf32, #tpu.memory_space<vmem>>, vector<75x64xf32>
    %cst_23 = arith.constant dense<0.000000e+00> : vector<288x64xf32>
    %34 = tpu.matmul %32, %33, %cst_23 {dimension_numbers = #tpu.dot_dimension_numbers<[1], [0], [0], [1], [0, 0, 1, 1], [], []>} : vector<288x75xf32>, vector<75x64xf32>, vector<288x64xf32> -> vector<288x64xf32>
    %c0_24 = arith.constant 0 : index
    %c0_25 = arith.constant 0 : index
    %35 = vector.load %arg3[%c0_24, %c0_25] : memref<1x64xf32, #tpu.memory_space<vmem>>, vector<1x64xf32>
    %36 = vector.broadcast %35 : vector<1x64xf32> to vector<288x64xf32>
    %37 = arith.addf %34, %36 : vector<288x64xf32>
    %cst_26 = arith.constant 0.000000e+00 : f32
    %38 = vector.broadcast %cst_26 : f32 to vector<288x64xf32>
    %39 = arith.maximumf %37, %38 : vector<288x64xf32>
    %cst_27 = arith.constant 0.000000e+00 : f32
    %40 = vector.shape_cast %30 : vector<288x1xi1> to vector<288x1xi1>
    %41 = vector.broadcast %40 : vector<288x1xi1> to vector<288x64xi1>
    %42 = vector.broadcast %cst_27 : f32 to vector<288x64xf32>
    %43 = arith.select %41, %39, %42 : vector<288x64xi1>, vector<288x64xf32>
    %c19 = arith.constant 19 : index
    %c0_28 = arith.constant 0 : index
    %44 = vector.load %arg11[%c19, %c0_28] : memref<332x64xf32, #tpu.memory_space<vmem>>, vector<288x64xf32>
    tpu.vector_store %arg11[%c19, %c0_28], %43 {strides = array<i32>} : memref<332x64xf32, #tpu.memory_space<vmem>>, vector<288x64xf32>,
    %cst_29 = arith.constant 0.000000e+00 : f32
    %45 = vector.broadcast %cst_29 : f32 to vector<288x64xf32>
    %c0_30 = arith.constant 0 : index
    %c0_31 = arith.constant 0 : index
    %46 = vector.load %arg11[%c0_30, %c0_31] : memref<332x64xf32, #tpu.memory_space<vmem>>, vector<288x64xf32>
    %c0_32 = arith.constant 0 : index
    %c0_33 = arith.constant 0 : index
    %c0_34 = arith.constant 0 : index
    %47 = vector.load %arg4[%c0_32, %c0_33, %c0_34] : memref<9x64x64xf32, #tpu.memory_space<vmem>>, vector<1x64x64xf32>
    %48 = vector.shape_cast %47 : vector<1x64x64xf32> to vector<64x64xf32>
    %cst_35 = arith.constant dense<0.000000e+00> : vector<288x64xf32>
    %49 = tpu.matmul %46, %48, %cst_35 {dimension_numbers = #tpu.dot_dimension_numbers<[1], [0], [0], [1], [0, 0, 1, 1], [], []>} : vector<288x64xf32>, vector<64x64xf32>, vector<288x64xf32> -> vector<288x64xf32>
    %50 = arith.addf %45, %49 : vector<288x64xf32>
    %c1 = arith.constant 1 : index
    %c0_36 = arith.constant 0 : index
    %51 = vector.load %arg11[%c1, %c0_36] : memref<332x64xf32, #tpu.memory_space<vmem>>, vector<288x64xf32>
    %c1_37 = arith.constant 1 : index
    %c0_38 = arith.constant 0 : index
    %c0_39 = arith.constant 0 : index
    %52 = vector.load %arg4[%c1_37, %c0_38, %c0_39] : memref<9x64x64xf32, #tpu.memory_space<vmem>>, vector<1x64x64xf32>
    %53 = vector.shape_cast %52 : vector<1x64x64xf32> to vector<64x64xf32>
    %cst_40 = arith.constant dense<0.000000e+00> : vector<288x64xf32>
    %54 = tpu.matmul %51, %53, %cst_40 {dimension_numbers = #tpu.dot_dimension_numbers<[1], [0], [0], [1], [0, 0, 1, 1], [], []>} : vector<288x64xf32>, vector<64x64xf32>, vector<288x64xf32> -> vector<288x64xf32>
    %55 = arith.addf %50, %54 : vector<288x64xf32>
    %c2 = arith.constant 2 : index
    %c0_41 = arith.constant 0 : index
    %56 = vector.load %arg11[%c2, %c0_41] : memref<332x64xf32, #tpu.memory_space<vmem>>, vector<288x64xf32>
    %c2_42 = arith.constant 2 : index
    %c0_43 = arith.constant 0 : index
    %c0_44 = arith.constant 0 : index
    %57 = vector.load %arg4[%c2_42, %c0_43, %c0_44] : memref<9x64x64xf32, #tpu.memory_space<vmem>>, vector<1x64x64xf32>
    %58 = vector.shape_cast %57 : vector<1x64x64xf32> to vector<64x64xf32>
    %cst_45 = arith.constant dense<0.000000e+00> : vector<288x64xf32>
    %59 = tpu.matmul %56, %58, %cst_45 {dimension_numbers = #tpu.dot_dimension_numbers<[1], [0], [0], [1], [0, 0, 1, 1], [], []>} : vector<288x64xf32>, vector<64x64xf32>, vector<288x64xf32> -> vector<288x64xf32>
    %60 = arith.addf %55, %59 : vector<288x64xf32>
    %c18 = arith.constant 18 : index
    %c0_46 = arith.constant 0 : index
    %61 = vector.load %arg11[%c18, %c0_46] : memref<332x64xf32, #tpu.memory_space<vmem>>, vector<288x64xf32>
    %c3 = arith.constant 3 : index
    %c0_47 = arith.constant 0 : index
    %c0_48 = arith.constant 0 : index
    %62 = vector.load %arg4[%c3, %c0_47, %c0_48] : memref<9x64x64xf32, #tpu.memory_space<vmem>>, vector<1x64x64xf32>
    %63 = vector.shape_cast %62 : vector<1x64x64xf32> to vector<64x64xf32>
    %cst_49 = arith.constant dense<0.000000e+00> : vector<288x64xf32>
    %64 = tpu.matmul %61, %63, %cst_49 {dimension_numbers = #tpu.dot_dimension_numbers<[1], [0], [0], [1], [0, 0, 1, 1], [], []>} : vector<288x64xf32>, vector<64x64xf32>, vector<288x64xf32> -> vector<288x64xf32>
    %65 = arith.addf %60, %64 : vector<288x64xf32>
    %c19_50 = arith.constant 19 : index
    %c0_51 = arith.constant 0 : index
    %66 = vector.load %arg11[%c19_50, %c0_51] : memref<332x64xf32, #tpu.memory_space<vmem>>, vector<288x64xf32>
    %c4 = arith.constant 4 : index
    %c0_52 = arith.constant 0 : index
    %c0_53 = arith.constant 0 : index
    %67 = vector.load %arg4[%c4, %c0_52, %c0_53] : memref<9x64x64xf32, #tpu.memory_space<vmem>>, vector<1x64x64xf32>
    %68 = vector.shape_cast %67 : vector<1x64x64xf32> to vector<64x64xf32>
    %cst_54 = arith.constant dense<0.000000e+00> : vector<288x64xf32>
    %69 = tpu.matmul %66, %68, %cst_54 {dimension_numbers = #tpu.dot_dimension_numbers<[1], [0], [0], [1], [0, 0, 1, 1], [], []>} : vector<288x64xf32>, vector<64x64xf32>, vector<288x64xf32> -> vector<288x64xf32>
    %70 = arith.addf %65, %69 : vector<288x64xf32>
    %c20 = arith.constant 20 : index
    %c0_55 = arith.constant 0 : index
    %71 = vector.load %arg11[%c20, %c0_55] : memref<332x64xf32, #tpu.memory_space<vmem>>, vector<288x64xf32>
    %c5 = arith.constant 5 : index
    %c0_56 = arith.constant 0 : index
    %c0_57 = arith.constant 0 : index
    %72 = vector.load %arg4[%c5, %c0_56, %c0_57] : memref<9x64x64xf32, #tpu.memory_space<vmem>>, vector<1x64x64xf32>
    %73 = vector.shape_cast %72 : vector<1x64x64xf32> to vector<64x64xf32>
    %cst_58 = arith.constant dense<0.000000e+00> : vector<288x64xf32>
    %74 = tpu.matmul %71, %73, %cst_58 {dimension_numbers = #tpu.dot_dimension_numbers<[1], [0], [0], [1], [0, 0, 1, 1], [], []>} : vector<288x64xf32>, vector<64x64xf32>, vector<288x64xf32> -> vector<288x64xf32>
    %75 = arith.addf %70, %74 : vector<288x64xf32>
    %c36 = arith.constant 36 : index
    %c0_59 = arith.constant 0 : index
    %76 = vector.load %arg11[%c36, %c0_59] : memref<332x64xf32, #tpu.memory_space<vmem>>, vector<288x64xf32>
    %c6 = arith.constant 6 : index
    %c0_60 = arith.constant 0 : index
    %c0_61 = arith.constant 0 : index
    %77 = vector.load %arg4[%c6, %c0_60, %c0_61] : memref<9x64x64xf32, #tpu.memory_space<vmem>>, vector<1x64x64xf32>
    %78 = vector.shape_cast %77 : vector<1x64x64xf32> to vector<64x64xf32>
    %cst_62 = arith.constant dense<0.000000e+00> : vector<288x64xf32>
    %79 = tpu.matmul %76, %78, %cst_62 {dimension_numbers = #tpu.dot_dimension_numbers<[1], [0], [0], [1], [0, 0, 1, 1], [], []>} : vector<288x64xf32>, vector<64x64xf32>, vector<288x64xf32> -> vector<288x64xf32>
    %80 = arith.addf %75, %79 : vector<288x64xf32>
    %c37 = arith.constant 37 : index
    %c0_63 = arith.constant 0 : index
    %81 = vector.load %arg11[%c37, %c0_63] : memref<332x64xf32, #tpu.memory_space<vmem>>, vector<288x64xf32>
    %c7 = arith.constant 7 : index
    %c0_64 = arith.constant 0 : index
    %c0_65 = arith.constant 0 : index
    %82 = vector.load %arg4[%c7, %c0_64, %c0_65] : memref<9x64x64xf32, #tpu.memory_space<vmem>>, vector<1x64x64xf32>
    %83 = vector.shape_cast %82 : vector<1x64x64xf32> to vector<64x64xf32>
    %cst_66 = arith.constant dense<0.000000e+00> : vector<288x64xf32>
    %84 = tpu.matmul %81, %83, %cst_66 {dimension_numbers = #tpu.dot_dimension_numbers<[1], [0], [0], [1], [0, 0, 1, 1], [], []>} : vector<288x64xf32>, vector<64x64xf32>, vector<288x64xf32> -> vector<288x64xf32>
    %85 = arith.addf %80, %84 : vector<288x64xf32>
    %c38 = arith.constant 38 : index
    %c0_67 = arith.constant 0 : index
    %86 = vector.load %arg11[%c38, %c0_67] : memref<332x64xf32, #tpu.memory_space<vmem>>, vector<288x64xf32>
    %c8 = arith.constant 8 : index
    %c0_68 = arith.constant 0 : index
    %c0_69 = arith.constant 0 : index
    %87 = vector.load %arg4[%c8, %c0_68, %c0_69] : memref<9x64x64xf32, #tpu.memory_space<vmem>>, vector<1x64x64xf32>
    %88 = vector.shape_cast %87 : vector<1x64x64xf32> to vector<64x64xf32>
    %cst_70 = arith.constant dense<0.000000e+00> : vector<288x64xf32>
    %89 = tpu.matmul %86, %88, %cst_70 {dimension_numbers = #tpu.dot_dimension_numbers<[1], [0], [0], [1], [0, 0, 1, 1], [], []>} : vector<288x64xf32>, vector<64x64xf32>, vector<288x64xf32> -> vector<288x64xf32>
    %90 = arith.addf %85, %89 : vector<288x64xf32>
    %c0_71 = arith.constant 0 : index
    %c0_72 = arith.constant 0 : index
    %91 = vector.load %arg5[%c0_71, %c0_72] : memref<1x64xf32, #tpu.memory_space<vmem>>, vector<1x64xf32>
    %92 = vector.broadcast %91 : vector<1x64xf32> to vector<288x64xf32>
    %93 = arith.addf %90, %92 : vector<288x64xf32>
    %cst_73 = arith.constant 0.000000e+00 : f32
    %94 = vector.broadcast %cst_73 : f32 to vector<288x64xf32>
    %95 = arith.maximumf %93, %94 : vector<288x64xf32>
    %cst_74 = arith.constant 0.000000e+00 : f32
    %96 = vector.shape_cast %30 : vector<288x1xi1> to vector<288x1xi1>
    %97 = vector.broadcast %96 : vector<288x1xi1> to vector<288x64xi1>
    %98 = vector.broadcast %cst_74 : f32 to vector<288x64xf32>
    %99 = arith.select %97, %95, %98 : vector<288x64xi1>, vector<288x64xf32>
    %c19_75 = arith.constant 19 : index
    %c0_76 = arith.constant 0 : index
    %100 = vector.load %arg12[%c19_75, %c0_76] : memref<332x64xf32, #tpu.memory_space<vmem>>, vector<288x64xf32>
    tpu.vector_store %arg12[%c19_75, %c0_76], %99 {strides = array<i32>} : memref<332x64xf32, #tpu.memory_space<vmem>>, vector<288x64xf32>,
    %cst_77 = arith.constant 0.000000e+00 : f32
    %101 = vector.broadcast %cst_77 : f32 to vector<288x32xf32>
    %c0_78 = arith.constant 0 : index
    %c0_79 = arith.constant 0 : index
    %102 = vector.load %arg12[%c0_78, %c0_79] : memref<332x64xf32, #tpu.memory_space<vmem>>, vector<288x64xf32>
    %c0_80 = arith.constant 0 : index
    %c0_81 = arith.constant 0 : index
    %c0_82 = arith.constant 0 : index
    %103 = vector.load %arg6[%c0_80, %c0_81, %c0_82] : memref<9x64x32xf32, #tpu.memory_space<vmem>>, vector<1x64x32xf32>
    %104 = vector.shape_cast %103 : vector<1x64x32xf32> to vector<64x32xf32>
    %cst_83 = arith.constant dense<0.000000e+00> : vector<288x32xf32>
    %105 = tpu.matmul %102, %104, %cst_83 {dimension_numbers = #tpu.dot_dimension_numbers<[1], [0], [0], [1], [0, 0, 1, 1], [], []>} : vector<288x64xf32>, vector<64x32xf32>, vector<288x32xf32> -> vector<288x32xf32>
    %106 = arith.addf %101, %105 : vector<288x32xf32>
    %c1_84 = arith.constant 1 : index
    %c0_85 = arith.constant 0 : index
    %107 = vector.load %arg12[%c1_84, %c0_85] : memref<332x64xf32, #tpu.memory_space<vmem>>, vector<288x64xf32>
    %c1_86 = arith.constant 1 : index
    %c0_87 = arith.constant 0 : index
    %c0_88 = arith.constant 0 : index
    %108 = vector.load %arg6[%c1_86, %c0_87, %c0_88] : memref<9x64x32xf32, #tpu.memory_space<vmem>>, vector<1x64x32xf32>
    %109 = vector.shape_cast %108 : vector<1x64x32xf32> to vector<64x32xf32>
    %cst_89 = arith.constant dense<0.000000e+00> : vector<288x32xf32>
    %110 = tpu.matmul %107, %109, %cst_89 {dimension_numbers = #tpu.dot_dimension_numbers<[1], [0], [0], [1], [0, 0, 1, 1], [], []>} : vector<288x64xf32>, vector<64x32xf32>, vector<288x32xf32> -> vector<288x32xf32>
    %111 = arith.addf %106, %110 : vector<288x32xf32>
    %c2_90 = arith.constant 2 : index
    %c0_91 = arith.constant 0 : index
    %112 = vector.load %arg12[%c2_90, %c0_91] : memref<332x64xf32, #tpu.memory_space<vmem>>, vector<288x64xf32>
    %c2_92 = arith.constant 2 : index
    %c0_93 = arith.constant 0 : index
    %c0_94 = arith.constant 0 : index
    %113 = vector.load %arg6[%c2_92, %c0_93, %c0_94] : memref<9x64x32xf32, #tpu.memory_space<vmem>>, vector<1x64x32xf32>
    %114 = vector.shape_cast %113 : vector<1x64x32xf32> to vector<64x32xf32>
    %cst_95 = arith.constant dense<0.000000e+00> : vector<288x32xf32>
    %115 = tpu.matmul %112, %114, %cst_95 {dimension_numbers = #tpu.dot_dimension_numbers<[1], [0], [0], [1], [0, 0, 1, 1], [], []>} : vector<288x64xf32>, vector<64x32xf32>, vector<288x32xf32> -> vector<288x32xf32>
    %116 = arith.addf %111, %115 : vector<288x32xf32>
    %c18_96 = arith.constant 18 : index
    %c0_97 = arith.constant 0 : index
    %117 = vector.load %arg12[%c18_96, %c0_97] : memref<332x64xf32, #tpu.memory_space<vmem>>, vector<288x64xf32>
    %c3_98 = arith.constant 3 : index
    %c0_99 = arith.constant 0 : index
    %c0_100 = arith.constant 0 : index
    %118 = vector.load %arg6[%c3_98, %c0_99, %c0_100] : memref<9x64x32xf32, #tpu.memory_space<vmem>>, vector<1x64x32xf32>
    %119 = vector.shape_cast %118 : vector<1x64x32xf32> to vector<64x32xf32>
    %cst_101 = arith.constant dense<0.000000e+00> : vector<288x32xf32>
    %120 = tpu.matmul %117, %119, %cst_101 {dimension_numbers = #tpu.dot_dimension_numbers<[1], [0], [0], [1], [0, 0, 1, 1], [], []>} : vector<288x64xf32>, vector<64x32xf32>, vector<288x32xf32> -> vector<288x32xf32>
    %121 = arith.addf %116, %120 : vector<288x32xf32>
    %c19_102 = arith.constant 19 : index
    %c0_103 = arith.constant 0 : index
    %122 = vector.load %arg12[%c19_102, %c0_103] : memref<332x64xf32, #tpu.memory_space<vmem>>, vector<288x64xf32>
    %c4_104 = arith.constant 4 : index
    %c0_105 = arith.constant 0 : index
    %c0_106 = arith.constant 0 : index
    %123 = vector.load %arg6[%c4_104, %c0_105, %c0_106] : memref<9x64x32xf32, #tpu.memory_space<vmem>>, vector<1x64x32xf32>
    %124 = vector.shape_cast %123 : vector<1x64x32xf32> to vector<64x32xf32>
    %cst_107 = arith.constant dense<0.000000e+00> : vector<288x32xf32>
    %125 = tpu.matmul %122, %124, %cst_107 {dimension_numbers = #tpu.dot_dimension_numbers<[1], [0], [0], [1], [0, 0, 1, 1], [], []>} : vector<288x64xf32>, vector<64x32xf32>, vector<288x32xf32> -> vector<288x32xf32>
    %126 = arith.addf %121, %125 : vector<288x32xf32>
    %c20_108 = arith.constant 20 : index
    %c0_109 = arith.constant 0 : index
    %127 = vector.load %arg12[%c20_108, %c0_109] : memref<332x64xf32, #tpu.memory_space<vmem>>, vector<288x64xf32>
    %c5_110 = arith.constant 5 : index
    %c0_111 = arith.constant 0 : index
    %c0_112 = arith.constant 0 : index
    %128 = vector.load %arg6[%c5_110, %c0_111, %c0_112] : memref<9x64x32xf32, #tpu.memory_space<vmem>>, vector<1x64x32xf32>
    %129 = vector.shape_cast %128 : vector<1x64x32xf32> to vector<64x32xf32>
    %cst_113 = arith.constant dense<0.000000e+00> : vector<288x32xf32>
    %130 = tpu.matmul %127, %129, %cst_113 {dimension_numbers = #tpu.dot_dimension_numbers<[1], [0], [0], [1], [0, 0, 1, 1], [], []>} : vector<288x64xf32>, vector<64x32xf32>, vector<288x32xf32> -> vector<288x32xf32>
    %131 = arith.addf %126, %130 : vector<288x32xf32>
    %c36_114 = arith.constant 36 : index
    %c0_115 = arith.constant 0 : index
    %132 = vector.load %arg12[%c36_114, %c0_115] : memref<332x64xf32, #tpu.memory_space<vmem>>, vector<288x64xf32>
    %c6_116 = arith.constant 6 : index
    %c0_117 = arith.constant 0 : index
    %c0_118 = arith.constant 0 : index
    %133 = vector.load %arg6[%c6_116, %c0_117, %c0_118] : memref<9x64x32xf32, #tpu.memory_space<vmem>>, vector<1x64x32xf32>
    %134 = vector.shape_cast %133 : vector<1x64x32xf32> to vector<64x32xf32>
    %cst_119 = arith.constant dense<0.000000e+00> : vector<288x32xf32>
    %135 = tpu.matmul %132, %134, %cst_119 {dimension_numbers = #tpu.dot_dimension_numbers<[1], [0], [0], [1], [0, 0, 1, 1], [], []>} : vector<288x64xf32>, vector<64x32xf32>, vector<288x32xf32> -> vector<288x32xf32>
    %136 = arith.addf %131, %135 : vector<288x32xf32>
    %c37_120 = arith.constant 37 : index
    %c0_121 = arith.constant 0 : index
    %137 = vector.load %arg12[%c37_120, %c0_121] : memref<332x64xf32, #tpu.memory_space<vmem>>, vector<288x64xf32>
    %c7_122 = arith.constant 7 : index
    %c0_123 = arith.constant 0 : index
    %c0_124 = arith.constant 0 : index
    %138 = vector.load %arg6[%c7_122, %c0_123, %c0_124] : memref<9x64x32xf32, #tpu.memory_space<vmem>>, vector<1x64x32xf32>
    %139 = vector.shape_cast %138 : vector<1x64x32xf32> to vector<64x32xf32>
    %cst_125 = arith.constant dense<0.000000e+00> : vector<288x32xf32>
    %140 = tpu.matmul %137, %139, %cst_125 {dimension_numbers = #tpu.dot_dimension_numbers<[1], [0], [0], [1], [0, 0, 1, 1], [], []>} : vector<288x64xf32>, vector<64x32xf32>, vector<288x32xf32> -> vector<288x32xf32>
    %141 = arith.addf %136, %140 : vector<288x32xf32>
    %c38_126 = arith.constant 38 : index
    %c0_127 = arith.constant 0 : index
    %142 = vector.load %arg12[%c38_126, %c0_127] : memref<332x64xf32, #tpu.memory_space<vmem>>, vector<288x64xf32>
    %c8_128 = arith.constant 8 : index
    %c0_129 = arith.constant 0 : index
    %c0_130 = arith.constant 0 : index
    %143 = vector.load %arg6[%c8_128, %c0_129, %c0_130] : memref<9x64x32xf32, #tpu.memory_space<vmem>>, vector<1x64x32xf32>
    %144 = vector.shape_cast %143 : vector<1x64x32xf32> to vector<64x32xf32>
    %cst_131 = arith.constant dense<0.000000e+00> : vector<288x32xf32>
    %145 = tpu.matmul %142, %144, %cst_131 {dimension_numbers = #tpu.dot_dimension_numbers<[1], [0], [0], [1], [0, 0, 1, 1], [], []>} : vector<288x64xf32>, vector<64x32xf32>, vector<288x32xf32> -> vector<288x32xf32>
    %146 = arith.addf %141, %145 : vector<288x32xf32>
    %c0_132 = arith.constant 0 : index
    %c0_133 = arith.constant 0 : index
    %147 = vector.load %arg7[%c0_132, %c0_133] : memref<1x32xf32, #tpu.memory_space<vmem>>, vector<1x32xf32>
    %148 = vector.broadcast %147 : vector<1x32xf32> to vector<288x32xf32>
    %149 = arith.addf %146, %148 : vector<288x32xf32>
    %cst_134 = arith.constant 0.000000e+00 : f32
    %150 = vector.broadcast %cst_134 : f32 to vector<288x32xf32>
    %151 = arith.maximumf %149, %150 : vector<288x32xf32>
    %cst_135 = arith.constant 0.000000e+00 : f32
    %152 = vector.shape_cast %30 : vector<288x1xi1> to vector<288x1xi1>
    %153 = vector.broadcast %152 : vector<288x1xi1> to vector<288x32xi1>
    %154 = vector.broadcast %cst_135 : f32 to vector<288x32xf32>
    %155 = arith.select %153, %151, %154 : vector<288x32xi1>, vector<288x32xf32>
    %c19_136 = arith.constant 19 : index
    %c0_137 = arith.constant 0 : index
    %156 = vector.load %arg13[%c19_136, %c0_137] : memref<332x32xf32, #tpu.memory_space<vmem>>, vector<288x32xf32>
    tpu.vector_store %arg13[%c19_136, %c0_137], %155 {strides = array<i32>} : memref<332x32xf32, #tpu.memory_space<vmem>>, vector<288x32xf32>,
    %cst_138 = arith.constant 0.000000e+00 : f32
    %157 = vector.broadcast %cst_138 : f32 to vector<288x48xf32>
    %c0_139 = arith.constant 0 : index
    %c0_140 = arith.constant 0 : index
    %158 = vector.load %arg13[%c0_139, %c0_140] : memref<332x32xf32, #tpu.memory_space<vmem>>, vector<288x32xf32>
    %c0_141 = arith.constant 0 : index
    %c0_142 = arith.constant 0 : index
    %c0_143 = arith.constant 0 : index
    %159 = vector.load %arg8[%c0_141, %c0_142, %c0_143] : memref<9x32x48xf32, #tpu.memory_space<vmem>>, vector<1x32x48xf32>
    %160 = vector.shape_cast %159 : vector<1x32x48xf32> to vector<32x48xf32>
    %cst_144 = arith.constant dense<0.000000e+00> : vector<288x48xf32>
    %161 = tpu.matmul %158, %160, %cst_144 {dimension_numbers = #tpu.dot_dimension_numbers<[1], [0], [0], [1], [0, 0, 1, 1], [], []>} : vector<288x32xf32>, vector<32x48xf32>, vector<288x48xf32> -> vector<288x48xf32>
    %162 = arith.addf %157, %161 : vector<288x48xf32>
    %c1_145 = arith.constant 1 : index
    %c0_146 = arith.constant 0 : index
    %163 = vector.load %arg13[%c1_145, %c0_146] : memref<332x32xf32, #tpu.memory_space<vmem>>, vector<288x32xf32>
    %c1_147 = arith.constant 1 : index
    %c0_148 = arith.constant 0 : index
    %c0_149 = arith.constant 0 : index
    %164 = vector.load %arg8[%c1_147, %c0_148, %c0_149] : memref<9x32x48xf32, #tpu.memory_space<vmem>>, vector<1x32x48xf32>
    %165 = vector.shape_cast %164 : vector<1x32x48xf32> to vector<32x48xf32>
    %cst_150 = arith.constant dense<0.000000e+00> : vector<288x48xf32>
    %166 = tpu.matmul %163, %165, %cst_150 {dimension_numbers = #tpu.dot_dimension_numbers<[1], [0], [0], [1], [0, 0, 1, 1], [], []>} : vector<288x32xf32>, vector<32x48xf32>, vector<288x48xf32> -> vector<288x48xf32>
    %167 = arith.addf %162, %166 : vector<288x48xf32>
    %c2_151 = arith.constant 2 : index
    %c0_152 = arith.constant 0 : index
    %168 = vector.load %arg13[%c2_151, %c0_152] : memref<332x32xf32, #tpu.memory_space<vmem>>, vector<288x32xf32>
    %c2_153 = arith.constant 2 : index
    %c0_154 = arith.constant 0 : index
    %c0_155 = arith.constant 0 : index
    %169 = vector.load %arg8[%c2_153, %c0_154, %c0_155] : memref<9x32x48xf32, #tpu.memory_space<vmem>>, vector<1x32x48xf32>
    %170 = vector.shape_cast %169 : vector<1x32x48xf32> to vector<32x48xf32>
    %cst_156 = arith.constant dense<0.000000e+00> : vector<288x48xf32>
    %171 = tpu.matmul %168, %170, %cst_156 {dimension_numbers = #tpu.dot_dimension_numbers<[1], [0], [0], [1], [0, 0, 1, 1], [], []>} : vector<288x32xf32>, vector<32x48xf32>, vector<288x48xf32> -> vector<288x48xf32>
    %172 = arith.addf %167, %171 : vector<288x48xf32>
    %c18_157 = arith.constant 18 : index
    %c0_158 = arith.constant 0 : index
    %173 = vector.load %arg13[%c18_157, %c0_158] : memref<332x32xf32, #tpu.memory_space<vmem>>, vector<288x32xf32>
    %c3_159 = arith.constant 3 : index
    %c0_160 = arith.constant 0 : index
    %c0_161 = arith.constant 0 : index
    %174 = vector.load %arg8[%c3_159, %c0_160, %c0_161] : memref<9x32x48xf32, #tpu.memory_space<vmem>>, vector<1x32x48xf32>
    %175 = vector.shape_cast %174 : vector<1x32x48xf32> to vector<32x48xf32>
    %cst_162 = arith.constant dense<0.000000e+00> : vector<288x48xf32>
    %176 = tpu.matmul %173, %175, %cst_162 {dimension_numbers = #tpu.dot_dimension_numbers<[1], [0], [0], [1], [0, 0, 1, 1], [], []>} : vector<288x32xf32>, vector<32x48xf32>, vector<288x48xf32> -> vector<288x48xf32>
    %177 = arith.addf %172, %176 : vector<288x48xf32>
    %c19_163 = arith.constant 19 : index
    %c0_164 = arith.constant 0 : index
    %178 = vector.load %arg13[%c19_163, %c0_164] : memref<332x32xf32, #tpu.memory_space<vmem>>, vector<288x32xf32>
    %c4_165 = arith.constant 4 : index
    %c0_166 = arith.constant 0 : index
    %c0_167 = arith.constant 0 : index
    %179 = vector.load %arg8[%c4_165, %c0_166, %c0_167] : memref<9x32x48xf32, #tpu.memory_space<vmem>>, vector<1x32x48xf32>
    %180 = vector.shape_cast %179 : vector<1x32x48xf32> to vector<32x48xf32>
    %cst_168 = arith.constant dense<0.000000e+00> : vector<288x48xf32>
    %181 = tpu.matmul %178, %180, %cst_168 {dimension_numbers = #tpu.dot_dimension_numbers<[1], [0], [0], [1], [0, 0, 1, 1], [], []>} : vector<288x32xf32>, vector<32x48xf32>, vector<288x48xf32> -> vector<288x48xf32>
    %182 = arith.addf %177, %181 : vector<288x48xf32>
    %c20_169 = arith.constant 20 : index
    %c0_170 = arith.constant 0 : index
    %183 = vector.load %arg13[%c20_169, %c0_170] : memref<332x32xf32, #tpu.memory_space<vmem>>, vector<288x32xf32>
    %c5_171 = arith.constant 5 : index
    %c0_172 = arith.constant 0 : index
    %c0_173 = arith.constant 0 : index
    %184 = vector.load %arg8[%c5_171, %c0_172, %c0_173] : memref<9x32x48xf32, #tpu.memory_space<vmem>>, vector<1x32x48xf32>
    %185 = vector.shape_cast %184 : vector<1x32x48xf32> to vector<32x48xf32>
    %cst_174 = arith.constant dense<0.000000e+00> : vector<288x48xf32>
    %186 = tpu.matmul %183, %185, %cst_174 {dimension_numbers = #tpu.dot_dimension_numbers<[1], [0], [0], [1], [0, 0, 1, 1], [], []>} : vector<288x32xf32>, vector<32x48xf32>, vector<288x48xf32> -> vector<288x48xf32>
    %187 = arith.addf %182, %186 : vector<288x48xf32>
    %c36_175 = arith.constant 36 : index
    %c0_176 = arith.constant 0 : index
    %188 = vector.load %arg13[%c36_175, %c0_176] : memref<332x32xf32, #tpu.memory_space<vmem>>, vector<288x32xf32>
    %c6_177 = arith.constant 6 : index
    %c0_178 = arith.constant 0 : index
    %c0_179 = arith.constant 0 : index
    %189 = vector.load %arg8[%c6_177, %c0_178, %c0_179] : memref<9x32x48xf32, #tpu.memory_space<vmem>>, vector<1x32x48xf32>
    %190 = vector.shape_cast %189 : vector<1x32x48xf32> to vector<32x48xf32>
    %cst_180 = arith.constant dense<0.000000e+00> : vector<288x48xf32>
    %191 = tpu.matmul %188, %190, %cst_180 {dimension_numbers = #tpu.dot_dimension_numbers<[1], [0], [0], [1], [0, 0, 1, 1], [], []>} : vector<288x32xf32>, vector<32x48xf32>, vector<288x48xf32> -> vector<288x48xf32>
    %192 = arith.addf %187, %191 : vector<288x48xf32>
    %c37_181 = arith.constant 37 : index
    %c0_182 = arith.constant 0 : index
    %193 = vector.load %arg13[%c37_181, %c0_182] : memref<332x32xf32, #tpu.memory_space<vmem>>, vector<288x32xf32>
    %c7_183 = arith.constant 7 : index
    %c0_184 = arith.constant 0 : index
    %c0_185 = arith.constant 0 : index
    %194 = vector.load %arg8[%c7_183, %c0_184, %c0_185] : memref<9x32x48xf32, #tpu.memory_space<vmem>>, vector<1x32x48xf32>
    %195 = vector.shape_cast %194 : vector<1x32x48xf32> to vector<32x48xf32>
    %cst_186 = arith.constant dense<0.000000e+00> : vector<288x48xf32>
    %196 = tpu.matmul %193, %195, %cst_186 {dimension_numbers = #tpu.dot_dimension_numbers<[1], [0], [0], [1], [0, 0, 1, 1], [], []>} : vector<288x32xf32>, vector<32x48xf32>, vector<288x48xf32> -> vector<288x48xf32>
    %197 = arith.addf %192, %196 : vector<288x48xf32>
    %c38_187 = arith.constant 38 : index
    %c0_188 = arith.constant 0 : index
    %198 = vector.load %arg13[%c38_187, %c0_188] : memref<332x32xf32, #tpu.memory_space<vmem>>, vector<288x32xf32>
    %c8_189 = arith.constant 8 : index
    %c0_190 = arith.constant 0 : index
    %c0_191 = arith.constant 0 : index
    %199 = vector.load %arg8[%c8_189, %c0_190, %c0_191] : memref<9x32x48xf32, #tpu.memory_space<vmem>>, vector<1x32x48xf32>
    %200 = vector.shape_cast %199 : vector<1x32x48xf32> to vector<32x48xf32>
    %cst_192 = arith.constant dense<0.000000e+00> : vector<288x48xf32>
    %201 = tpu.matmul %198, %200, %cst_192 {dimension_numbers = #tpu.dot_dimension_numbers<[1], [0], [0], [1], [0, 0, 1, 1], [], []>} : vector<288x32xf32>, vector<32x48xf32>, vector<288x48xf32> -> vector<288x48xf32>
    %202 = arith.addf %197, %201 : vector<288x48xf32>
    %c0_193 = arith.constant 0 : index
    %c0_194 = arith.constant 0 : index
    %203 = vector.load %arg9[%c0_193, %c0_194] : memref<1x48xf32, #tpu.memory_space<vmem>>, vector<1x48xf32>
    %204 = vector.broadcast %203 : vector<1x48xf32> to vector<288x48xf32>
    %205 = arith.addf %202, %204 : vector<288x48xf32>
    %c0_195 = arith.constant 0 : index
    %c0_196 = arith.constant 0 : index
    %c0_197 = arith.constant 0 : index
    %206 = vector.load %arg10[%c0_195, %c0_196, %c0_197] : memref<1x288x48xf32, #tpu.memory_space<vmem>>, vector<1x288x48xf32>
    %207 = vector.shape_cast %206 : vector<1x288x48xf32> to vector<288x48xf32>
    %208 = vector.shape_cast %205 : vector<288x48xf32> to vector<1x288x48xf32>
    tpu.vector_store %arg10[%c0_195, %c0_196, %c0_197], %208 {strides = array<i32>} : memref<1x288x48xf32, #tpu.memory_space<vmem>>, vector<1x288x48xf32>,
    return
  }
  func.func @transform_0(%arg0: i32) -> (i32, i32, i32) {
    %c0_i32 = arith.constant 0 : i32
    %c0_i32_0 = arith.constant 0 : i32
    %c0_i32_1 = arith.constant 0 : i32
    return %arg0, %c0_i32, %c0_i32_0 : i32, i32, i32
  }
  func.func @transform_1(%arg0: i32) -> (i32, i32) {
    %c0_i32 = arith.constant 0 : i32
    %c0_i32_0 = arith.constant 0 : i32
    %c0_i32_1 = arith.constant 0 : i32
    return %c0_i32, %c0_i32_0 : i32, i32
  }
  func.func @transform_2(%arg0: i32) -> (i32, i32) {
    %c0_i32 = arith.constant 0 : i32
    %c0_i32_0 = arith.constant 0 : i32
    %c0_i32_1 = arith.constant 0 : i32
    return %c0_i32, %c0_i32_0 : i32, i32
  }
  func.func @transform_3(%arg0: i32) -> (i32, i32, i32) {
    %c0_i32 = arith.constant 0 : i32
    %c0_i32_0 = arith.constant 0 : i32
    %c0_i32_1 = arith.constant 0 : i32
    %c0_i32_2 = arith.constant 0 : i32
    return %c0_i32, %c0_i32_0, %c0_i32_1 : i32, i32, i32
  }
  func.func @transform_4(%arg0: i32) -> (i32, i32) {
    %c0_i32 = arith.constant 0 : i32
    %c0_i32_0 = arith.constant 0 : i32
    %c0_i32_1 = arith.constant 0 : i32
    return %c0_i32, %c0_i32_0 : i32, i32
  }
  func.func @transform_5(%arg0: i32) -> (i32, i32, i32) {
    %c0_i32 = arith.constant 0 : i32
    %c0_i32_0 = arith.constant 0 : i32
    %c0_i32_1 = arith.constant 0 : i32
    %c0_i32_2 = arith.constant 0 : i32
    return %c0_i32, %c0_i32_0, %c0_i32_1 : i32, i32, i32
  }
  func.func @transform_6(%arg0: i32) -> (i32, i32) {
    %c0_i32 = arith.constant 0 : i32
    %c0_i32_0 = arith.constant 0 : i32
    %c0_i32_1 = arith.constant 0 : i32
    return %c0_i32, %c0_i32_0 : i32, i32
  }
  func.func @transform_7(%arg0: i32) -> (i32, i32, i32) {
    %c0_i32 = arith.constant 0 : i32
    %c0_i32_0 = arith.constant 0 : i32
    %c0_i32_1 = arith.constant 0 : i32
    %c0_i32_2 = arith.constant 0 : i32
    return %c0_i32, %c0_i32_0, %c0_i32_1 : i32, i32, i32
  }
  func.func @transform_8(%arg0: i32) -> (i32, i32) {
    %c0_i32 = arith.constant 0 : i32
    %c0_i32_0 = arith.constant 0 : i32
    %c0_i32_1 = arith.constant 0 : i32
    return %c0_i32, %c0_i32_0 : i32, i32
  }
  func.func @transform_9(%arg0: i32) -> (i32, i32, i32) {
    %c0_i32 = arith.constant 0 : i32
    %c0_i32_0 = arith.constant 0 : i32
    %c0_i32_1 = arith.constant 0 : i32
    return %arg0, %c0_i32, %c0_i32_0 : i32, i32, i32
  }
}

</mosaic_0001>

<bundles_post_ra>
// kernel: sr_model_forward.1
= control target key start
LH: loop header
LB: loop body
LE: loop exit
PB: predicated region body
PF: predicated region fallthrough
CT: control target
= control target key end

     0   :  { %s17916_s30 = smov 0   ;;  %s23957_s0 = inlined_call_operand.vmem [shape: f32[2,288,75], index: 0, kind: input, shape index: {}]   ;;  %s23958_s1 = inlined_call_operand.vmem [shape: f32[75,64], index: 1, kind: input, shape index: {}]   ;;  %s23959_s2 = inlined_call_operand.vmem [shape: f32[1,64], index: 2, kind: input, shape index: {}]   ;;  %s23960_s3 = inlined_call_operand.vmem [shape: f32[9,64,64], index: 3, kind: input, shape index: {}]   ;;  %s23961_s4 = inlined_call_operand.vmem [shape: f32[1,64], index: 4, kind: input, shape index: {}]   ;;  %s23962_s5 = inlined_call_operand.vmem [shape: f32[9,64,32], index: 5, kind: input, shape index: {}]   ;;  %s23963_s6 = inlined_call_operand.vmem [shape: f32[1,32], index: 6, kind: input, shape index: {}]   ;;  %s23964_s7 = inlined_call_operand.vmem [shape: f32[9,32,48], index: 7, kind: input, shape index: {}]   ;;  %s23965_s8 = inlined_call_operand.vmem [shape: f32[1,48], index: 8, kind: input, shape index: {}]   ;;  %s23966_s9 = inlined_call_operand.vmem [shape: f32[2,288,48], index: 9, kind: output, shape index: {}]  }
   0x1 LB: > { %s13500_s10 = sadd.s32 4294967295, %s17863_s30   ;;  %p13504_p0 = scmp.ge.s32.totalorder %s17863_s30, 1  ;;  %s17863_s30 = sphi %s17916_s30, %s19_s30  }
   0x2   : > { %p287_p1 = scmp.lt.s32.totalorder %s17863_s30, 3 }
   0x4   : > { %p288_p2 = pnand %p13504_p0, %p287_p1 }
   0x6   : > { %291 = sbr.rel (%p288_p2) target bundleno = 1850 (0x73a), region = 56 }
   0xb   : > { %v1054_v0 = vld [vmem:[%s23958_s1 + $0x48] sm:$0x7]  ;;  %vm1171_vm0 = vcmask 1042432   ;;  %v1053_v1 = vld [vmem:[%s23958_s1 + $0x40] sm:$0xff]  ;;  %p323_p3 = scmp.lt.s32.totalorder %s13500_s10, 1  ;;  %v1052_v2 = vld [vmem:[%s23958_s1 + $0x38] sm:$0xff] }
   0xc   : > { %15880 = vmatprep.subr.msk.mxu0 %vm1171_vm0, %v1054_v0  ;;  %v13552_v3 = vld [vmem:[%s23960_s3 + $0x78] sm:$0xff]  ;;  %v13551_v4 = vld [vmem:[%s23960_s3 + $0x70] sm:$0xff]  ;;  %vm1062_vm1 = vcmask 613376   ;;  %v1050_v6 = vld [vmem:[%s23958_s1 + $0x28] sm:$0xff]  ;;  %vm23967_vm2 = vcmask 523264   ;;  %v23973_v55 = vmov 0.0  }
   0xd   : > { %15881 = vmatpush3.msk.msra.mxu0 %vm1171_vm0, %v1054_v0  ;;  %s25583_s10 = smov (!%p323_p3, %s13500_s10), 1  ;;  %v1051_v5 = vld [vmem:[%s23958_s1 + $0x30] sm:$0xff]  ;;  %15954 = vmatprep.subr.mxu1 %v13552_v3  ;;  %v13550_v7 = vld [vmem:[%s23960_s3 + $0x68] sm:$0xff]  ;;  %v1049_v9 = vld [vmem:[%s23958_s1 + $0x20] sm:$0xff]  ;;  %334 = vst.msk [vmem:[#allocation2] sm:$0xff] %vm23967_vm2, %v23973_v55  ;;  %vm336_vm3 = vcmask 518144  }
   0xe   : > { %15882 = vmatprep.subr.mxu0 %v1053_v1  ;;  %s17772_s23 = smul.u32 288, %s25583_s10  ;;  %15955 = vmatpush3.msra.mxu1 %v13552_v3  ;;  %v1048_v10 = vld [vmem:[%s23958_s1 + $0x18] sm:$0xff]  ;;  %v1047_v11 = vld [vmem:[%s23958_s1 + $0x10] sm:$0xff]  ;;  %v1046_v12 = vld [vmem:[%s23958_s1 + $0x8] sm:$0xff]  ;;  %335 = vst.msk [vmem:[#allocation2 + $0x8] sm:$0xff] %vm23967_vm2, %v23973_v55 }
   0xf   : > { %15883 = vmatpush3.msra.mxu0 %v1053_v1  ;;  %15956 = vmatprep.subr.mxu1 %v13551_v4  ;;  %v1045_v13 = vld [vmem:[%s23958_s1] sm:$0xff]  ;;  %v13632_v15 = vld [vmem:[%s23960_s3 + $0xb8] sm:$0xff]  ;;  %v13631_v17 = vld [vmem:[%s23960_s3 + $0xb0] sm:$0xff]  ;;  %338 = vst.msk [vmem:[#allocation2 + $0x133] sm:$0xff] %vm23967_vm2, %v23973_v55 }
  0x10   : > { %15884 = vmatprep.subr.mxu0 %v1052_v2  ;;  %s17953_s28 = scalar_lea.vmem %s23957_s0, %s17772_s23  ;;  %15957 = vmatpush3.msra.mxu1 %v13551_v4  ;;  %v13549_v50 = vld [vmem:[%s23960_s3 + $0x60] sm:$0xff]  ;;  %v13630_v51 = vld [vmem:[%s23960_s3 + $0xa8] sm:$0xff]  ;;  %v13548_v53 = vld [vmem:[%s23960_s3 + $0x58] sm:$0xff]  ;;  %339 = vst.msk [vmem:[#allocation2 + $0x13b] sm:$0xff] %vm23967_vm2, %v23973_v55  ;;  %s23778_s15 = scalar_lea.vmem %s23966_s9, %s17772_s23 }
  0x11   : > { %15885 = vmatpush3.msra.mxu0 %v1052_v2  ;;  %v1009_v8 = vld [vmem:[%s17953_s28] sm:$0xff]  ;;  %15958 = vmatprep.subr.mxu1 %v13550_v7  ;;  %v1010_v14 = vld [vmem:[%s17953_s28 + $0x8] sm:$0xff]  ;;  %v1011_v16 = vld [vmem:[%s17953_s28 + $0x10] sm:$0xff]  ;;  %340 = vst.msk [vmem:[#allocation2 + $0x143] sm:$0xff] %vm23967_vm2, %v23973_v55 }
  0x12   : > { %15886 = vmatprep.subr.mxu0 %v1051_v5  ;;  %15900 = vmatprep.mubr.msk.f32.mxu0 %vm1062_vm1, %v1009_v8  ;;  %v1012_v18 = vld [vmem:[%s17953_s28 + $0x18] sm:$0xff]  ;;  %v1013_v19 = vld [vmem:[%s17953_s28 + $0x20] sm:$0xff]  ;;  %v1014_v20 = vld [vmem:[%s17953_s28 + $0x28] sm:$0xff]  ;;  %343 = vst.msk [vmem:[#allocation3] sm:$0xff] %vm23967_vm2, %v23973_v55  ;;  %v360_v8 = vlaneseq }
  0x13   : > { %15887 = vmatpush3.msra.mxu0 %v1051_v5  ;;  %15959 = vmatpush3.msra.mxu1 %v13550_v7  ;;  %v1015_v21 = vld [vmem:[%s17953_s28 + $0x30] sm:$0xff]  ;;  %v1016_v22 = vld [vmem:[%s17953_s28 + $0x38] sm:$0xff]  ;;  %v1017_v23 = vld [vmem:[%s17953_s28 + $0x40] sm:$0xff]  ;;  %344 = vst.msk [vmem:[#allocation3 + $0x8] sm:$0xff] %vm23967_vm2, %v23973_v55 }
  0x14   : > { %15888 = vmatprep.subr.mxu0 %v1050_v6  ;;  %v1018_v24 = vld [vmem:[%s17953_s28 + $0x48] sm:$0xff]  ;;  %v1019_v25 = vld [vmem:[%s17953_s28 + $0x50] sm:$0xff]  ;;  %v1020_v26 = vld [vmem:[%s17953_s28 + $0x58] sm:$0xff]  ;;  %15960 = vmatprep.subr.mxu1 %v13549_v50  ;;  %346 = vst.msk [vmem:[#allocation3 + $0x133] sm:$0xff] %vm23967_vm2, %v23973_v55 }
  0x15   : > { %15889 = vmatpush3.msra.mxu0 %v1050_v6  ;;  %v1021_v27 = vld [vmem:[%s17953_s28 + $0x60] sm:$0xff]  ;;  %v1022_v28 = vld [vmem:[%s17953_s28 + $0x68] sm:$0xff]  ;;  %v1023_v29 = vld [vmem:[%s17953_s28 + $0x70] sm:$0xff]  ;;  %15961 = vmatpush3.msra.mxu1 %v13549_v50  ;;  %347 = vst.msk [vmem:[#allocation3 + $0x13b] sm:$0xff] %vm23967_vm2, %v23973_v55 }
  0x16   : > { %15890 = vmatprep.subr.mxu0 %v1049_v9  ;;  %v1024_v30 = vld [vmem:[%s17953_s28 + $0x78] sm:$0xff]  ;;  %v1025_v31 = vld [vmem:[%s17953_s28 + $0x80] sm:$0xff]  ;;  %v1026_v32 = vld [vmem:[%s17953_s28 + $0x88] sm:$0xff]  ;;  %348 = vst.msk [vmem:[#allocation3 + $0x143] sm:$0xff] %vm23967_vm2, %v23973_v55  ;;  %15962 = vmatprep.subr.mxu1 %v13548_v53 }
  0x17   : > { %15891 = vmatpush3.msra.mxu0 %v1049_v9  ;;  %v1027_v33 = vld [vmem:[%s17953_s28 + $0x90] sm:$0xff]  ;;  %v1028_v34 = vld [vmem:[%s17953_s28 + $0x98] sm:$0xff]  ;;  %v1029_v35 = vld [vmem:[%s17953_s28 + $0xa0] sm:$0xff]  ;;  %337 = vst.msk [vmem:[#allocation2 + $0x10] sm:$0x7] %vm336_vm3, %v23973_v55  ;;  %15963 = vmatpush3.msra.mxu1 %v13548_v53  ;;  %v18125_v9 = vshrl.u32 %v360_v8, 7 }
  0x18   : > { %15892 = vmatprep.subr.mxu0 %v1048_v10  ;;  %v1030_v36 = vld [vmem:[%s17953_s28 + $0xa8] sm:$0xff]  ;;  %v1031_v37 = vld [vmem:[%s17953_s28 + $0xb0] sm:$0xff]  ;;  %v1032_v38 = vld [vmem:[%s17953_s28 + $0xb8] sm:$0xff]  ;;  %345 = vst.msk [vmem:[#allocation3 + $0x10] sm:$0x7] %vm336_vm3, %v23973_v55  ;;  %v24155_v55 = vmov 0 }
  0x19   : > { %15893 = vmatpush3.msra.mxu0 %v1048_v10  ;;  %v1033_v39 = vld [vmem:[%s17953_s28 + $0xc0] sm:$0xff]  ;;  %v1034_v40 = vld [vmem:[%s17953_s28 + $0xc8] sm:$0xff]  ;;  %v1035_v41 = vld [vmem:[%s17953_s28 + $0xd0] sm:$0xff]  ;;  %v18264_v8 = vadd.s32 80, %v18125_v9 }
  0x1a   : > { %15894 = vmatprep.subr.mxu0 %v1047_v11  ;;  %v1036_v42 = vld [vmem:[%s17953_s28 + $0xd8] sm:$0xff]  ;;  %v1037_v43 = vld [vmem:[%s17953_s28 + $0xe0] sm:$0xff]  ;;  %v1038_v44 = vld [vmem:[%s17953_s28 + $0xe8] sm:$0xff] }
  0x1b   : > { %15895 = vmatpush3.msra.mxu0 %v1047_v11  ;;  %v1039_v45 = vld [vmem:[%s17953_s28 + $0xf0] sm:$0xff]  ;;  %v1040_v46 = vld [vmem:[%s17953_s28 + $0xf8] sm:$0xff]  ;;  %v1041_v47 = vld [vmem:[%s17953_s28 + $0x100] sm:$0xff]  ;;  %v362_v11 = vadd.s32 8, %v18125_v9 }
  0x1c   : > { %15896 = vmatprep.subr.mxu0 %v1046_v12  ;;  %v1042_v48 = vld [vmem:[%s17953_s28 + $0x108] sm:$0xff]  ;;  %v1043_v49 = vld [vmem:[%s17953_s28 + $0x110] sm:$0xff]  ;;  %v1044_v52 = vld [vmem:[%s17953_s28 + $0x118] sm:$0xff] }
  0x1d   : > { %15897 = vmatpush3.msra.mxu0 %v1046_v12  ;;  %v13629_v54 = vld [vmem:[%s23960_s3 + $0xa0] sm:$0xff]  ;;  %v13547_v56 = vld [vmem:[%s23960_s3 + $0x50] sm:$0xff]  ;;  %v13628_v57 = vld [vmem:[%s23960_s3 + $0x98] sm:$0xff]  ;;  %v18132_v12 = vadd.s32 24, %v18125_v9 }
  0x1e   : > { %15898 = vmatprep.subr.mxu0 %v1045_v13  ;;  %15964 = vmatprep.subr.mxu1 %v13547_v56  ;;  %v13546_v58 = vld [vmem:[%s23960_s3 + $0x48] sm:$0xff]  ;;  %v13627_v59 = vld [vmem:[%s23960_s3 + $0x90] sm:$0xff]  ;;  %v13545_v60 = vld [vmem:[%s23960_s3 + $0x40] sm:$0xff] }
  0x1f   : > { %15899 = vmatpush3.msra.mxu0 %v1045_v13  ;;  %15965 = vmatpush3.msra.mxu1 %v13547_v56  ;;  %v13626_v61 = vld [vmem:[%s23960_s3 + $0x88] sm:$0xff]  ;;  %v13625_v0 = vld [vmem:[%s23960_s3 + $0x80] sm:$0xff]  ;;  %v1643_v3 = vld [vmem:[%s23960_s3 + $0x38] sm:$0xff] }
  0x20   : > { %15901 = vmatmul.mubr.msk.f32.vlgmr.msra.gmra.mxu0 %vm1062_vm1, %v1010_v14  ;;  %16094 = vmatprep.subr.mxu0 %v13632_v15  ;;  %v1644_v62 = vld [vmem:[#allocation2 + $0x1] sm:$0xff]  ;;  %v1645_v63 = vld [vmem:[#allocation2 + $0x9] sm:$0xff]  ;;  %v1639_v7 = vld [vmem:[%s23960_s3 + $0x18] sm:$0xff]  ;;  %v18134_v13 = vmul.u32.u64.low 3817748708, %v362_v11  ;;  %v18135_v14 = vmul.u32.u64.high 3817748708, %v362_v11, %v18134_v13 }
  0x21   : > { %15903 = vmatprep.mubr.msk.f32.mxu0 %vm1062_vm1, %v1011_v16  ;;  %16095 = vmatpush3.msra.mxu0 %v13632_v15  ;;  %v2395_v1 = vld [vmem:[#allocation2 + $0x2] sm:$0xff]  ;;  %v2396_v2 = vld [vmem:[#allocation2 + $0xa] sm:$0xff]  ;;  %v18138_v15 = vadd.s32 16, %v18125_v9  ;;  %v13676_v50 = vld [vmem:[%s23960_s3 + $0xf8] sm:$0xff]  ;;  %v18274_v13 = vadd.s32 104, %v18125_v9 }
  0x22   : > { %16096 = vmatprep.subr.mxu0 %v13631_v17  ;;  %15966 = vmatprep.subr.mxu1 %v13546_v58  ;;  %v1642_v4 = vld [vmem:[%s23960_s3 + $0x30] sm:$0xff]  ;;  %v1641_v5 = vld [vmem:[%s23960_s3 + $0x28] sm:$0xff]  ;;  %v1640_v6 = vld [vmem:[%s23960_s3 + $0x20] sm:$0xff] }
  0x23   : > { %16097 = vmatpush3.msra.mxu0 %v13631_v17  ;;  %15967 = vmatpush3.msra.mxu1 %v13546_v58  ;;  %v1638_v10 = vld [vmem:[%s23960_s3 + $0x10] sm:$0xff]  ;;  %v18141_v16 = vmul.u32.u64.low 3817748708, %v18125_v9  ;;  %v18142_v17 = vmul.u32.u64.high 3817748708, %v18125_v9, %v18141_v16 }
  0x24   : > { %15904 = vmatmul.mubr.msk.f32.gmra.mxu0 %vm1062_vm1, %v1012_v18  ;;  %16098 = vmatprep.subr.mxu0 %v13630_v51  ;;  %v18145_v18 = vadd.s32 40, %v18125_v9 }
  0x25   : > { %15906 = vmatprep.mubr.msk.f32.mxu0 %vm1062_vm1, %v1013_v19  ;;  %16099 = vmatpush3.msra.mxu0 %v13630_v51  ;;  %v13720_v19 = vld [vmem:[%s23960_s3 + $0x138] sm:$0xff] }
  0x26   : > { %16100 = vmatprep.subr.mxu0 %v13629_v54  ;;  %15968 = vmatprep.subr.mxu1 %v13545_v60 }
  0x27   : > { %16101 = vmatpush3.msra.mxu0 %v13629_v54  ;;  %15969 = vmatpush3.msra.mxu1 %v13545_v60  ;;  %v18218_v54 = vadd.s32 72, %v18125_v9 }
  0x28   : > { %15907 = vmatmul.mubr.msk.f32.gmra.mxu0 %vm1062_vm1, %v1014_v20  ;;  %16102 = vmatprep.subr.mxu0 %v13628_v57 }
  0x29   : > { %15909 = vmatprep.mubr.msk.f32.mxu0 %vm1062_vm1, %v1015_v21  ;;  %16103 = vmatpush3.msra.mxu0 %v13628_v57  ;;  %v18151_v20 = vmul.u32.u64.low 3817748708, %v18132_v12  ;;  %v18152_v21 = vmul.u32.u64.high 3817748708, %v18132_v12, %v18151_v20 }
  0x2a   : > { %16104 = vmatprep.subr.mxu0 %v13627_v59  ;;  %15970 = vmatprep.mubr.msk.f32.mxu1 %vm23967_vm2, %v1644_v62 }
  0x2b   : > { %16105 = vmatpush3.msra.mxu0 %v13627_v59  ;;  %15971 = vmatmul.mubr.msk.f32.vlgmr.msra.gmra.mxu1 %vm23967_vm2, %v1645_v63 }
  0x2c   : > { %15910 = vmatmul.mubr.msk.f32.gmra.mxu0 %vm1062_vm1, %v1016_v22  ;;  %16106 = vmatprep.subr.mxu0 %v13626_v61 }
  0x2d   : > { %15912 = vmatprep.mubr.msk.f32.mxu0 %vm1062_vm1, %v1017_v23  ;;  %16107 = vmatpush3.msra.mxu0 %v13626_v61  ;;  %v18155_v22 = vmul.u32.u64.low 3817748708, %v18138_v15  ;;  %v18156_v23 = vmul.u32.u64.high 3817748708, %v18138_v15, %v18155_v22 }
  0x2e   : > { %16108 = vmatprep.subr.mxu0 %v13625_v0  ;;  %16024 = vmatprep.subr.mxu1 %v1643_v3  ;;  %v18300_v22 = vadd.s32 120, %v18125_v9 }
  0x2f   : > { %16109 = vmatpush3.msra.mxu0 %v13625_v0  ;;  %16025 = vmatpush3.msra.mxu1 %v1643_v3  ;;  %v18236_v63 = vmul.u32.u64.low 3817748708, %v18218_v54  ;;  %v18237_v0 = vmul.u32.u64.high 3817748708, %v18218_v54, %v18236_v63 }
  0x30   : > { %15913 = vmatmul.mubr.msk.f32.gmra.mxu0 %vm1062_vm1, %v1018_v24  ;;  %16026 = vmatprep.subr.mxu1 %v1642_v4  ;;  %v13719_v24 = vld [vmem:[%s23960_s3 + $0x130] sm:$0xff] }
  0x31   : > { %15915 = vmatprep.mubr.msk.f32.mxu0 %vm1062_vm1, %v1019_v25  ;;  %16027 = vmatpush3.msra.mxu1 %v1642_v4  ;;  %v18162_v25 = vadd.s32 32, %v18125_v9 }
  0x32   : > { %16028 = vmatprep.subr.mxu1 %v1641_v5  ;;  %16234 = vmatprep.subr.mxu0 %v13720_v19 }
  0x33   : > { %16029 = vmatpush3.msra.mxu1 %v1641_v5 }
  0x34   : > { %15916 = vmatmul.mubr.msk.f32.gmra.mxu0 %vm1062_vm1, %v1020_v26  ;;  %16030 = vmatprep.subr.mxu1 %v1640_v6  ;;  %v1637_v26 = vld [vmem:[%s23960_s3 + $0x8] sm:$0xff] }
  0x35   : > { %15918 = vmatprep.mubr.msk.f32.mxu0 %vm1062_vm1, %v1021_v27  ;;  %16031 = vmatpush3.msra.mxu1 %v1640_v6  ;;  %v18256_v6 = vadd.s32 88, %v18125_v9 }
  0x36   : > { %16032 = vmatprep.subr.mxu1 %v1639_v7 }
  0x37   : > { %16033 = vmatpush3.msra.mxu1 %v1639_v7 }
  0x38   : > { %15919 = vmatmul.mubr.msk.f32.gmra.mxu0 %vm1062_vm1, %v1022_v28  ;;  %16034 = vmatprep.subr.mxu1 %v1638_v10  ;;  %v18168_v27 = vmul.u32.u64.low 3817748708, %v18145_v18  ;;  %v18169_v28 = vmul.u32.u64.high 3817748708, %v18145_v18, %v18168_v27 }
  0x39   : > { %15921 = vmatprep.mubr.msk.f32.mxu0 %vm1062_vm1, %v1023_v29  ;;  %16035 = vmatpush3.msra.mxu1 %v1638_v10  ;;  %v13718_v29 = vld [vmem:[%s23960_s3 + $0x128] sm:$0xff] }
  0x3a   : > { %16036 = vmatprep.subr.mxu1 %v1637_v26 }
  0x3b   : > { %16037 = vmatpush3.msra.mxu1 %v1637_v26  ;;  %v18316_v26 = vmul.u32.u64.low 3817748708, %v18274_v13  ;;  %v18317_v27 = vmul.u32.u64.high 3817748708, %v18274_v13, %v18316_v26 }
  0x3c   : > { %15922 = vmatmul.mubr.msk.f32.gmra.mxu0 %vm1062_vm1, %v1024_v30  ;;  %v414_v30 = vshrl.u32 %v18135_v14, 4  ;;  %v18280_v14 = vadd.s32 96, %v18125_v9 }
  0x3d   : > { %15924 = vmatprep.mubr.msk.f32.mxu0 %vm1062_vm1, %v1025_v31  ;;  %v13717_v31 = vld [vmem:[%s23960_s3 + $0x120] sm:$0xff] }
  0x40   : > { %15925 = vmatmul.mubr.msk.f32.gmra.mxu0 %vm1062_vm1, %v1026_v32 }
  0x41   : > { %15927 = vmatprep.mubr.msk.f32.mxu0 %vm1062_vm1, %v1027_v33  ;;  %v18179_v32 = vmul.u32.u64.low 3817748708, %v18162_v25  ;;  %v18180_v33 = vmul.u32.u64.high 3817748708, %v18162_v25, %v18179_v32 }
  0x42   : > { %v24124_v32 = vmov 0 }
  0x43   : > { %v447_v53 = vshrl.u32 %v18180_v33, 4 }
  0x44   : > { %15928 = vmatmul.mubr.msk.f32.gmra.mxu0 %vm1062_vm1, %v1028_v34  ;;  %v1636_v34 = vld [vmem:[%s23960_s3] sm:$0xff] }
  0x45   : > { %15930 = vmatprep.mubr.msk.f32.mxu0 %vm1062_vm1, %v1029_v35  ;;  %v403_v35 = vshrl.u32 %v18142_v17, 4  ;;  %16038 = vmatprep.subr.mxu1 %v1636_v34  ;;  %v448_v62 = vmul.u32 18, %v447_v53 }
  0x46   : > { %16039 = vmatpush3.msra.mxu1 %v1636_v34 }
  0x47   : > { %16164 = vmatprep.subr.mxu1 %v13676_v50  ;;  %v18267_v10 = vsub.s32 %v18162_v25, %v448_v62  ;;  %v502_v25 = vshrl.u32 %v18237_v0, 4 }
  0x48   : > { %15931 = vmatmul.mubr.msk.f32.gmra.mxu0 %vm1062_vm1, %v1030_v36  ;;  %v13716_v36 = vld [vmem:[%s23960_s3 + $0x118] sm:$0xff] }
  0x49   : > { %15933 = vmatprep.mubr.msk.f32.mxu0 %vm1062_vm1, %v1031_v37  ;;  %v13715_v37 = vld [vmem:[%s23960_s3 + $0x110] sm:$0xff]  ;;  %vm797_vm0 = vcmp.ne.s32.totalorder %v18267_v10, 0  ;;  %vm833_vm3 = vcmp.lt.s32.totalorder %v18267_v10, 0 }
  0x4c   : > { %15934 = vmatmul.mubr.msk.f32.gmra.mxu0 %vm1062_vm1, %v1032_v38  ;;  %v436_v38 = vshrl.u32 %v18152_v21, 4  ;;  %v18296_v20 = vmul.u32.u64.low 3817748708, %v18264_v8  ;;  %v18297_v21 = vmul.u32.u64.high 3817748708, %v18264_v8, %v18296_v20 }
  0x4d   : > { %15936 = vmatprep.mubr.msk.f32.mxu0 %vm1062_vm1, %v1033_v39  ;;  %v18194_v39 = vadd.s32 56, %v18125_v9 }
  0x50   : > { %15937 = vmatmul.mubr.msk.f32.gmra.mxu0 %vm1062_vm1, %v1034_v40  ;;  %v415_v40 = vmul.u32 18, %v414_v30 }
  0x51   : > { %15939 = vmatprep.mubr.msk.f32.mxu0 %vm1062_vm1, %v1035_v41  ;;  %v425_v41 = vshrl.u32 %v18156_v23, 4  ;;  %v18303_v23 = vadd.s32 112, %v18125_v9 }
  0x52   : > { %v18214_v51 = vsub.s32 %v362_v11, %v415_v40 }
  0x54   : > { %15940 = vmatmul.mubr.msk.f32.gmra.mxu0 %vm1062_vm1, %v1036_v42  ;;  %v404_v42 = vmul.u32 18, %v403_v35  ;;  %vm794_vm4 = vcmp.ne.s32.totalorder %v18214_v51, 0  ;;  %vm830_vm5 = vcmp.lt.s32.totalorder %v18214_v51, 0  ;;  %v18350_v35 = vadd.s32 18, %v18267_v10 }
  0x55   : > { %15942 = vmatprep.mubr.msk.f32.mxu0 %vm1062_vm1, %v1037_v43  ;;  %v458_v43 = vshrl.u32 %v18169_v28, 4  ;;  %vm18291_vm14 = vmand %vm830_vm5, %vm794_vm4  ;;  %v24122_v28 = vmov 0 }
  0x56   : > { %v18221_v56 = vsub.s32 %v18125_v9, %v404_v42 }
  0x57   : > { %v459_v57 = vmul.u32 18, %v458_v43  ;;  %v24128_v43 = vmov 0 }
  0x58   : > { %15943 = vmatmul.mubr.msk.f32.gmra.mxu0 %vm1062_vm1, %v1038_v44  ;;  %v13714_v44 = vld [vmem:[%s23960_s3 + $0x108] sm:$0xff]  ;;  %vm793_vm6 = vcmp.ne.s32.totalorder %v18221_v56, 0  ;;  %vm829_vm7 = vcmp.lt.s32.totalorder %v18221_v56, 0  ;;  %v18251_v4 = vadd.s32 18, %v18221_v56 }
  0x59   : > { %15945 = vmatprep.mubr.msk.f32.mxu0 %vm1062_vm1, %v1039_v45  ;;  %v437_v45 = vmul.u32 18, %v436_v38  ;;  %v18248_v3 = vsub.s32 %v18145_v18, %v459_v57  ;;  %v18284_v17 = vmul.u32.u64.low 3817748708, %v18256_v6  ;;  %v18285_v18 = vmul.u32.u64.high 3817748708, %v18256_v6, %v18284_v17  ;;  %vm18309_vm15 = vmand %vm829_vm7, %vm793_vm6 }
  0x5a   : > { %v18361_v38 = vmul.u32.u64.low 3817748708, %v18300_v22  ;;  %v18362_v40 = vmul.u32.u64.high 3817748708, %v18300_v22, %v18361_v38  ;;  %vm18370_vm6 = vmand %vm833_vm3, %vm797_vm0 }
  0x5b   : > { %v18224_v58 = vsub.s32 %v18132_v12, %v437_v45  ;;  %vm798_vm12 = vcmp.ne.s32.totalorder %v18248_v3, 0  ;;  %vm834_vm13 = vcmp.lt.s32.totalorder %v18248_v3, 0  ;;  %v18347_v34 = vadd.s32 18, %v18248_v3 }
  0x5c   : > { %15946 = vmatmul.mubr.msk.f32.gmra.mxu0 %vm1062_vm1, %v1040_v46  ;;  %vm18356_vm5 = vmand %vm834_vm13, %vm798_vm12  ;;  %v24129_v43 = vsel %vm18370_vm6, 4294967295, %v24128_v43  ;;  %v503_v45 = vmul.u32 18, %v502_v25  ;;  %v524_v57 = vshrl.u32 %v18285_v18, 4  ;;  %v568_v20 = vshrl.u32 %v18362_v40, 4 }
  0x5d   : > { %15948 = vmatprep.mubr.msk.f32.mxu0 %vm1062_vm1, %v1041_v47  ;;  %v18202_v46 = vmul.u32.u64.low 3817748708, %v18194_v39  ;;  %v18203_v47 = vmul.u32.u64.high 3817748708, %v18194_v39, %v18202_v46  ;;  %vm796_vm8 = vcmp.ne.s32.totalorder %v18224_v58, 0  ;;  %vm832_vm9 = vcmp.lt.s32.totalorder %v18224_v58, 0 }
  0x5e   : > { %v18260_v7 = vadd.s32 18, %v18224_v58  ;;  %v18413_v63 = vsub.s32 %v18218_v54, %v503_v45  ;;  %v18427_v54 = vadd.s32 152, %v18125_v9 }
  0x5f   : > { %v480_v5 = vshrl.u32 %v18203_v47, 4 }
  0x60   : > { %15949 = vmatmul.mubr.msk.f32.gmra.mxu0 %vm1062_vm1, %v1042_v48  ;;  %v18206_v48 = vadd.s32 48, %v18125_v9  ;;  %vm838_vm12 = vcmp.lt.s32.totalorder %v18413_v63, 0 }
  0x61   : > { %15951 = vmatprep.mubr.msk.f32.mxu0 %vm1062_vm1, %v1043_v49  ;;  %v13713_v49 = vld [vmem:[%s23960_s3 + $0x100] sm:$0xff] }
  0x62   : > { %v18227_v59 = vmul.u32.u64.low 3817748708, %v18206_v48  ;;  %v18228_v60 = vmul.u32.u64.high 3817748708, %v18206_v48, %v18227_v59 }
  0x64   : > { %15952 = vmatmul.mubr.msk.f32.gmra.mxu0 %vm1062_vm1, %v1044_v52  ;;  %v426_v52 = vmul.u32 18, %v425_v41  ;;  %v469_v16 = vshrl.u32 %v18228_v60, 4  ;;  %vm18323_vm1 = vmand %vm832_vm9, %vm796_vm8  ;;  %v18365_v41 = vmul.u32.u64.low 3817748708, %v18303_v23  ;;  %v18366_v42 = vmul.u32.u64.high 3817748708, %v18303_v23, %v18365_v41 }
  0x65   : > { %16110 = vmatprep.mubr.msk.f32.mxu0 %vm23967_vm2, %v2395_v1  ;;  %v18240_v1 = vadd.s32 64, %v18125_v9  ;;  %v24123_v28 = vsel %vm18323_vm1, 4294967295, %v24122_v28  ;;  %v24160_v60 = vmov 0 }
  0x66   : > { %v18233_v61 = vsub.s32 %v18138_v15, %v426_v52  ;;  %v481_v15 = vmul.u32 18, %v480_v5  ;;  %v546_v5 = vshrl.u32 %v18317_v27, 4  ;;  %v18439_v27 = vadd.s32 144, %v18125_v9 }
  0x67   : > { %v18270_v11 = vmul.u32.u64.low 3817748708, %v18240_v1  ;;  %v18271_v12 = vmul.u32.u64.high 3817748708, %v18240_v1, %v18270_v11 }
  0x68   : > { %16111 = vmatmul.mubr.msk.f32.vlgmr.msra.gmra.mxu0 %vm23967_vm2, %v2396_v2  ;;  %v18243_v2 = vadd.s32 18, %v18214_v51  ;;  %vm795_vm10 = vcmp.ne.s32.totalorder %v18233_v61, 0  ;;  %vm831_vm11 = vcmp.lt.s32.totalorder %v18233_v61, 0  ;;  %v18344_v33 = vadd.s32 18, %v18233_v61 }
  0x69   : > { %16235 = vmatpush3.msra.mxu0 %v13720_v19  ;;  %vm18339_vm4 = vmand %vm831_vm11, %vm795_vm10  ;;  %v491_v46 = vshrl.u32 %v18271_v12, 4  ;;  %vm802_vm11 = vcmp.ne.s32.totalorder %v18413_v63, 0  ;;  %v547_v26 = vmul.u32 18, %v546_v5  ;;  %v24164_v19 = vmov 0 }
  0x6a   : > { %16236 = vmatprep.subr.mxu0 %v13719_v24  ;;  %v24125_v32 = vsel %vm18339_vm4, 4294967295, %v24124_v32  ;;  %v938_v47 = vsel %vm18291_vm14, %v18243_v2, %v18214_v51  ;;  %vm18511_vm13 = vmand %vm838_vm12, %vm802_vm11  ;;  %v18682_v2 = vld [vmem:[%s23959_s2] ss:$0 sm:$0xff] }
  0x6b   : > { %16237 = vmatpush3.msra.mxu0 %v13719_v24  ;;  %v492_v0 = vmul.u32 18, %v491_v46  ;;  %v569_v46 = vmul.u32 18, %v568_v20  ;;  %v18662_v24 = vadd.s32 176, %v18125_v9 }
  0x6c   : > { %16238 = vmatprep.subr.mxu0 %v13718_v29 }
  0x6d   : > { %16239 = vmatpush3.msra.mxu0 %v13718_v29  ;;  %v18329_v29 = vmul.u32.u64.low 3817748708, %v18280_v14  ;;  %v18330_v30 = vmul.u32.u64.high 3817748708, %v18280_v14, %v18329_v29  ;;  %v18436_v25 = vsub.s32 %v18240_v1, %v492_v0 }
  0x6e   : > { %16240 = vmatprep.subr.mxu0 %v13717_v31  ;;  %v18451_v41 = vmul.u32.u64.low 3817748708, %v18427_v54  ;;  %v18452_v1 = vmul.u32.u64.high 3817748708, %v18427_v54, %v18451_v41 }
  0x6f   : > { %16241 = vmatpush3.msra.mxu0 %v13717_v31  ;;  %v18333_v31 = vadd.s32 136, %v18125_v9  ;;  %v535_v12 = vshrl.u32 %v18330_v30, 4 }
  0x70   : > { %16242 = vmatprep.subr.mxu0 %v13716_v36 }
  0x71   : > { %16243 = vmatpush3.msra.mxu0 %v13716_v36  ;;  %v470_v36 = vmul.u32 18, %v469_v16  ;;  %v525_v16 = vmul.u32 18, %v524_v57 }
  0x72   : > { %16244 = vmatprep.subr.mxu0 %v13715_v37  ;;  %v536_v29 = vmul.u32 18, %v535_v12  ;;  %v18489_v12 = vadd.s32 168, %v18125_v9 }
  0x73   : > { %16245 = vmatpush3.msra.mxu0 %v13715_v37  ;;  %v24126_v37 = vmov 0  ;;  %v18395_v53 = vsub.s32 %v18206_v48, %v470_v36  ;;  %v513_v48 = vshrl.u32 %v18297_v21, 4  ;;  %v557_v21 = vshrl.u32 %v18366_v42, 4 }
  0x74   : > { %16246 = vmatprep.subr.mxu0 %v13714_v44  ;;  %v24127_v37 = vsel %vm18356_vm5, 4294967295, %v24126_v37  ;;  %v18448_v40 = vsub.s32 %v18256_v6, %v525_v16  ;;  %v18455_v42 = vadd.s32 18, %v18413_v63  ;;  %v18473_v0 = vsub.s32 %v18280_v14, %v536_v29 }
  0x75   : > { %16247 = vmatpush3.msra.mxu0 %v13714_v44  ;;  %v18375_v44 = vsub.s32 %v18194_v39, %v481_v15  ;;  %v18422_v15 = vadd.s32 128, %v18125_v9  ;;  %vm799_vm9 = vcmp.ne.s32.totalorder %v18395_v53, 0  ;;  %vm835_vm10 = vcmp.lt.s32.totalorder %v18395_v53, 0 }
  0x76   : > { %16248 = vmatprep.subr.mxu0 %v13713_v49  ;;  %v18430_v17 = vadd.s32 18, %v18395_v53  ;;  %v514_v18 = vmul.u32 18, %v513_v48  ;;  %v18465_v6 = vmul.u32.u64.low 3817748708, %v18439_v27  ;;  %v18466_v57 = vmul.u32.u64.high 3817748708, %v18439_v27, %v18465_v6  ;;  %vm18495_vm0 = vmand %vm835_vm10, %vm799_vm9 }
  0x77   : > { %16249 = vmatpush3.msra.mxu0 %v13713_v49  ;;  %v18383_v49 = vmul.u32.u64.low 3817748708, %v18333_v31  ;;  %v18384_v50 = vmul.u32.u64.high 3817748708, %v18333_v31, %v18383_v49  ;;  %vm800_vm7 = vcmp.ne.s32.totalorder %v18375_v44, 0  ;;  %vm836_vm8 = vcmp.lt.s32.totalorder %v18375_v44, 0 }
  0x78   : > { %v18418_v11 = vadd.s32 18, %v18375_v44  ;;  %v18443_v36 = vmul.u32.u64.low 3817748708, %v18422_v15  ;;  %v18444_v38 = vmul.u32.u64.high 3817748708, %v18422_v15, %v18443_v36  ;;  %v18458_v45 = vsub.s32 %v18264_v8, %v514_v18  ;;  %vm18479_vm3 = vmand %vm836_vm8, %vm800_vm7 }
  0x79   : > { %v590_v30 = vshrl.u32 %v18384_v50, 4  ;;  %v558_v49 = vmul.u32 18, %v557_v21  ;;  %v18462_v50 = vsub.s32 %v18274_v13, %v547_v26  ;;  %v18470_v48 = vadd.s32 18, %v18436_v25 }
  0x7a   : > { %v18486_v5 = vadd.s32 18, %v18448_v40  ;;  %v18502_v16 = vsub.s32 %v18300_v22, %v569_v46  ;;  %v18516_v21 = vadd.s32 18, %v18458_v45  ;;  %v18521_v22 = vadd.s32 160, %v18125_v9 }
  0x7b   : > { %v591_v8 = vmul.u32 18, %v590_v30  ;;  %v18505_v18 = vsub.s32 %v18303_v23, %v558_v49  ;;  %vm24136_vm8 = vcmp.ne.s32.totalorder %v18436_v25, 0  ;;  %vm24137_vm7 = vcmp.lt.s32.totalorder %v18436_v25, 0 }
  0x7c   : > { %vm18527_vm2 = vmand %vm24137_vm7, %vm24136_vm8  ;;  %v579_v29 = vshrl.u32 %v18444_v38, 4  ;;  %vm24141_vm10 = vcmp.ne.s32.totalorder %v18448_v40, 0  ;;  %vm24142_vm9 = vcmp.lt.s32.totalorder %v18448_v40, 0  ;;  %v612_v36 = vshrl.u32 %v18452_v1, 4 }
  0x7d   : > { %v18534_v26 = vsub.s32 %v18333_v31, %v591_v8  ;;  %vm18541_vm6 = vmand %vm24142_vm9, %vm24141_vm10  ;;  %v18547_v41 = vmul.u32.u64.low 3817748708, %v18489_v12  ;;  %v18548_v46 = vmul.u32.u64.high 3817748708, %v18489_v12, %v18547_v41  ;;  %v18551_v49 = vadd.s32 184, %v18125_v9 }
  0x7e   : > { %vm24145_vm7 = vcmp.ne.s32.totalorder %v18458_v45, 0  ;;  %vm24146_vm8 = vcmp.lt.s32.totalorder %v18458_v45, 0  ;;  %v24147_v31 = vmov 0  ;;  %v18562_v38 = vadd.s32 18, %v18462_v50 }
  0x7f   : > { %24140 = vst [vmem:[#allocation5_spill] sm:$0xff] %v18534_v26  ;;  %vm18557_vm12 = vmand %vm24146_vm8, %vm24145_vm7  ;;  %vm808_vm9 = vcmp.ne.s32.totalorder %v18502_v16, 0  ;;  %vm844_vm10 = vcmp.lt.s32.totalorder %v18502_v16, 0  ;;  %vm24149_vm5 = vcmp.ne.s32.totalorder %v18462_v50, 0  ;;  %vm24150_vm4 = vcmp.lt.s32.totalorder %v18462_v50, 0 }
  0x80   : > { %v24148_v31 = vsel %vm18557_vm12, 4294967295, %v24147_v31  ;;  %vm18571_vm1 = vmand %vm24150_vm4, %vm24149_vm5  ;;  %v24151_v1 = vmov 0  ;;  %v601_v6 = vshrl.u32 %v18466_v57, 4  ;;  %vm24153_vm8 = vcmp.ne.s32.totalorder %v18473_v0, 0 }
  0x81   : > { %v24152_v1 = vsel %vm18571_vm1, 4294967295, %v24151_v1  ;;  %v18578_v8 = vmul.u32.u64.low 3817748708, %v18521_v22  ;;  %v18579_v41 = vmul.u32.u64.high 3817748708, %v18521_v22, %v18578_v8  ;;  %vm24154_vm11 = vcmp.lt.s32.totalorder %v18473_v0, 0 }
  0x82   : > { %vm18585_vm12 = vmand %vm24154_vm11, %vm24153_vm8  ;;  %v18590_v62 = vadd.s32 18, %v18473_v0  ;;  %vm810_vm4 = vcmp.ne.s32.totalorder %v18534_v26, 0  ;;  %vm846_vm5 = vcmp.lt.s32.totalorder %v18534_v26, 0  ;;  %v580_v57 = vmul.u32 18, %v579_v29 }
  0x83   : > { %v24156_v55 = vsel %vm18585_vm12, 4294967295, %v24155_v55  ;;  %vm18599_vm7 = vcmp.lt.s32.totalorder %v938_v47, 16  ;;  %v24157_v8 = vmov 0  ;;  %vm18603_vm11 = vmand %vm844_vm10, %vm808_vm9  ;;  %v18608_v59 = vadd.s32 18, %v18502_v16 }
  0x84   : > { %v24158_v8 = vsel %vm18599_vm7, 4294967295, %v24157_v8  ;;  %v24161_v60 = vsel %vm18603_vm11, 4294967295, %v24160_v60  ;;  %v613_v39 = vmul.u32 18, %v612_v36  ;;  %v944_v51 = vsel %vm18479_vm3, %v18418_v11, %v18375_v44  ;;  %vm18657_vm8 = vmand %vm846_vm5, %vm810_vm4 }
  0x85   : > { %24159 = vst [vmem:[#allocation6_spill] sm:$0xff] %v24158_v8  ;;  %v18611_v52 = vmul.u32.u64.low 3817748708, %v18551_v49  ;;  %v18612_v29 = vmul.u32.u64.high 3817748708, %v18551_v49, %v18611_v52  ;;  %vm24162_vm14 = vcmp.ne.s32.totalorder %v18505_v18, 0  ;;  %vm24163_vm9 = vcmp.lt.s32.totalorder %v18505_v18, 0 }
  0x86   : > { %vm18626_vm10 = vmand %vm24163_vm9, %vm24162_vm14  ;;  %v18631_v47 = vadd.s32 18, %v18505_v18  ;;  %v18634_v52 = vadd.s32 18, %v18534_v26  ;;  %v24167_v44 = vsel %vm18309_vm15, %v18251_v4, %v18221_v56  ;;  %v24168_v11 = vmov 0 }
  0x87   : > { %v24165_v19 = vsel %vm18626_vm10, 4294967295, %v24164_v19  ;;  %vm18641_vm3 = vcmp.lt.s32.totalorder %v24167_v44, 16  ;;  %v24171_v56 = vmov 0  ;;  %v602_v4 = vmul.u32 18, %v601_v6 }
  0x88   : > { %24166 = vst [vmem:[#allocation7_spill] sm:$0xff] %v18634_v52  ;;  %v24169_v11 = vsel %vm18641_vm3, 4294967295, %v24168_v11  ;;  %v24172_v56 = vsel %vm18657_vm8, 4294967295, %v24171_v56  ;;  %v18677_v6 = vsub.s32 %v18422_v15, %v580_v57  ;;  %vm24175_vm4 = vnez %v24123_v28 }
  0x89   : > { %24170 = vst [vmem:[#allocation8_spill] sm:$0xff] %v24169_v11  ;;  %24173 = vst [vmem:[#allocation9_spill] sm:$0xff] %v24172_v56  ;;  %v24176_v44 = vsel %vm24175_vm4, %v18260_v7, %v18224_v58  ;;  %v24177_v36 = vmov 0  ;;  %v18702_v13 = vsub.s32 %v18427_v54, %v613_v39  ;;  %v634_v28 = vshrl.u32 %v18548_v46, 4 }
  0x8a   : > { %vm18689_vm5 = vcmp.lt.s32.totalorder %v24176_v44, 16  ;;  %v18714_v44 = vadd.s32 200, %v18125_v9  ;;  %v18717_v57 = vadd.s32 192, %v18125_v9  ;;  %vm24180_vm14 = vnez %v24125_v32 }
  0x8b   : > { %v24178_v36 = vsel %vm18689_vm5, 4294967295, %v24177_v36  ;;  %v24181_v54 = vsel %vm24180_vm14, %v18344_v33, %v18233_v61  ;;  %v24182_v46 = vmov 0  ;;  %v18729_v58 = vsub.s32 %v18439_v27, %v602_v4 }
  0x8c   : > { %24179 = vst [vmem:[#allocation10_spill] sm:$0xff] %v24178_v36  ;;  %vm18724_vm9 = vcmp.lt.s32.totalorder %v24181_v54, 16  ;;  %v623_v7 = vshrl.u32 %v18579_v41, 4  ;;  %v18733_v15 = vmul.u32.u64.low 3817748708, %v18662_v24  ;;  %v18734_v26 = vmul.u32.u64.high 3817748708, %v18662_v24, %v18733_v15 }
  0x8d   : > { %v24183_v46 = vsel %vm18724_vm9, 4294967295, %v24182_v46  ;;  %v18740_v61 = vadd.s32 18, %v18677_v6  ;;  %vm24185_vm14 = vnez %v24127_v37  ;;  %v24187_v27 = vmov 0 }
  0x8e   : > { %24184 = vst [vmem:[#allocation11_spill] sm:$0xff] %v24183_v46  ;;  %v24186_v33 = vsel %vm24185_vm14, %v18347_v34, %v18248_v3  ;;  %v635_v41 = vmul.u32 18, %v634_v28  ;;  %v656_v4 = vshrl.u32 %v18612_v29, 4  ;;  %v18754_v15 = vadd.s32 216, %v18125_v9 }
  0x8f   : > { %vm18747_vm10 = vcmp.lt.s32.totalorder %v24186_v33, 16  ;;  %v18759_v37 = vadd.s32 18, %v18702_v13  ;;  %vm24190_vm14 = vnez %v24129_v43  ;;  %v24192_v28 = vmov 0 }
  0x90   : > { %v24188_v27 = vsel %vm18747_vm10, 4294967295, %v24187_v27  ;;  %v24191_v34 = vsel %vm24190_vm14, %v18350_v35, %v18267_v10  ;;  %v624_v29 = vmul.u32 18, %v623_v7  ;;  %vm24195_vm14 = vcmask 523264  }
  0x91   : > { %24189 = vst [vmem:[#allocation12_spill] sm:$0xff] %v24188_v27  ;;  %vm18766_vm11 = vcmp.lt.s32.totalorder %v24191_v34, 16  ;;  %vm18780_vm12 = vcmp.lt.s32.totalorder %v944_v51, 16  ;;  %v24196_v35 = vmov 0  ;;  %vm24199_vm4 = vcmp.ne.s32.totalorder %v18677_v6, 0 }
  0x92   : > { %v24193_v28 = vsel %vm18766_vm11, 4294967295, %v24192_v28  ;;  %v24197_v35 = vsel %vm18780_vm12, 4294967295, %v24196_v35  ;;  %vm24200_vm1 = vcmp.lt.s32.totalorder %v18677_v6, 0  ;;  %vm24207_vm8 = vcmask 523264  }
  0x93   : > { %24194 = vst [vmem:[#allocation13_spill] sm:$0xff] %v24193_v28  ;;  %24198 = vst [vmem:[#allocation14_spill] sm:$0xff] %v24197_v35  ;;  %v645_v14 = vshrl.u32 %v18734_v26, 4  ;;  %v24217_v26 = vsel %vm18511_vm13, %v18455_v42, %v18413_v63 }
  0x94   : > { %vm18788_vm15 = vmand %vm24200_vm1, %vm24199_vm4  ;;  %vm24204_vm1 = vcmp.lt.s32.totalorder %v18702_v13, 0 }
  0x95   : > { %v953_v11 = vsel %vm18788_vm15, %v18740_v61, %v18677_v6 }
  0xe0   : > { %v15902_v39 = vpop.f32.mrf.mxu0 }
  0xe1   : > { %v1247_v52 = vadd.f32 %v15902_v39, %v18682_v2 }
  0xe2   : > { %v1241_v32 = vpop.f32.mrf.mxu0 }
  0xe3   : > { %v1421_v39 = vmax.f32 %v1247_v52, 0.0  ;;  %v1242_v54 = vadd.f32 %v18682_v2, %v1241_v32  ;;  %v18772_v52 = vmul.u32.u64.low 3817748708, %v18714_v44  ;;  %v18773_v32 = vmul.u32.u64.high 3817748708, %v18714_v44, %v18772_v52 }
  0xe4   : > { %v15905_v3 = vpop.f32.mrf.mxu0 }
  0xe5   : > { %v1529_v33 = vsel %vm18599_vm7, %v1421_v39, 0.0  ;;  %v1420_v56 = vmax.f32 %v1242_v54, 0.0  ;;  %v1257_v43 = vadd.f32 %v15905_v3, %v18682_v2  ;;  %v18793_v39 = vsub.s32 %v18489_v12, %v635_v41 }
  0xe6   : > { %1565 = vst.msk [vmem:[#allocation2 + $0x1b] sm:$0xff] %vm24195_vm14, %v1529_v33  ;;  %v1251_v10 = vpop.f32.mrf.mxu0  ;;  %v657_v54 = vmul.u32 18, %v656_v4  ;;  %v18796_v3 = vmul.u32.u64.low 3817748708, %v18717_v57  ;;  %v18797_v34 = vmul.u32.u64.high 3817748708, %v18717_v57, %v18796_v3  ;;  %vm24203_vm14 = vcmp.ne.s32.totalorder %v18702_v13, 0 }
  0xe7   : > { %v1528_v51 = vsel %vm18641_vm3, %v1420_v56, 0.0  ;;  %v1423_v52 = vmax.f32 %v1257_v43, 0.0  ;;  %v1252_v33 = vadd.f32 %v18682_v2, %v1251_v10  ;;  %vm18806_vm4 = vmand %vm24204_vm1, %vm24203_vm14  ;;  %v18811_v12 = vadd.s32 18, %v18729_v58 }
  0xe8   : > { %1564 = vst.msk [vmem:[#allocation2 + $0x13] sm:$0xff] %vm24207_vm8, %v1528_v51  ;;  %v15908_v41 = vpop.f32.mrf.mxu0  ;;  %v24208_v56 = vsel %vm18495_vm0, %v18430_v17, %v18395_v53  ;;  %v24209_v4 = vmov 0  ;;  %vm24212_vm14 = vcmp.ne.s32.totalorder %v18729_v58, 0  ;;  %vm24213_vm1 = vcmp.lt.s32.totalorder %v18729_v58, 0  ;;  %vm24216_vm0 = vmmov %vm24207_vm8 }
  0xe9   : > { %vm18819_vm3 = vcmp.lt.s32.totalorder %v24208_v56, 16  ;;  %vm18827_vm7 = vmand %vm24213_vm1, %vm24212_vm14  ;;  %v18832_v10 = vsub.s32 %v18521_v22, %v624_v29  ;;  %v18836_v3 = vmul.u32.u64.low 3817748708, %v18754_v15  ;;  %v18837_v53 = vmul.u32.u64.high 3817748708, %v18754_v15, %v18836_v3 }
  0xea   : > { %v24210_v4 = vsel %vm18819_vm3, 4294967295, %v24209_v4  ;;  %v1531_v17 = vsel %vm18689_vm5, %v1423_v52, 0.0  ;;  %v1422_v51 = vmax.f32 %v1252_v33, 0.0  ;;  %v1267_v56 = vadd.f32 %v15908_v41, %v18682_v2  ;;  %v1261_v22 = vpop.f32.mrf.mxu0  ;;  %vm24221_vm13 = vmmov %vm24216_vm0 }
  0xeb   : > { %24211 = vst [vmem:[#allocation15_spill] sm:$0xff] %v24210_v4  ;;  %1567 = vst.msk [vmem:[#allocation2 + $0x2b] sm:$0xff] %vm24216_vm0, %v1531_v17  ;;  %vm18852_vm8 = vcmp.lt.s32.totalorder %v24217_v26, 16  ;;  %v24218_v29 = vmov 0  ;;  %v18863_v33 = vsub.s32 %v18551_v49, %v657_v54  ;;  %v1262_v42 = vadd.f32 %v18682_v2, %v1261_v22 }
  0xec   : > { %v24219_v29 = vsel %vm18852_vm8, 4294967295, %v24218_v29  ;;  %v1530_v20 = vsel %vm18724_vm9, %v1422_v51, 0.0  ;;  %v1425_v63 = vmax.f32 %v1267_v56, 0.0  ;;  %v15911_v3 = vpop.f32.mrf.mxu0  ;;  %v24222_v49 = vsel %vm18527_vm2, %v18470_v48, %v18436_v25 }
  0xed   : > { %24220 = vst [vmem:[#allocation16_spill] sm:$0xff] %v24219_v29  ;;  %1566 = vst.msk [vmem:[#allocation2 + $0x23] sm:$0xff] %vm24221_vm13, %v1530_v20  ;;  %vm18878_vm0 = vcmp.lt.s32.totalorder %v24222_v49, 16  ;;  %v24223_v54 = vmov 0  ;;  %v18883_v17 = vadd.s32 18, %v18793_v39  ;;  %v646_v51 = vmul.u32 18, %v645_v14 }
  0xee   : > { %v24224_v54 = vsel %vm18878_vm0, 4294967295, %v24223_v54  ;;  %v1533_v56 = vsel %vm18747_vm10, %v1425_v63, 0.0  ;;  %v1424_v22 = vmax.f32 %v1262_v42, 0.0  ;;  %v1277_v23 = vadd.f32 %v15911_v3, %v18682_v2  ;;  %v18902_v14 = vld [vmem:[%s23960_s3 + $0x1b8] sm:$0xff]  ;;  %v1271_v26 = vpop.f32.mrf.mxu0 }
  0xef   : > { %24225 = vst [vmem:[#allocation17_spill] sm:$0xff] %v24224_v54  ;;  %vm24226_vm2 = vcmp.ne.s32.totalorder %v18793_v39, 0  ;;  %vm24227_vm13 = vcmp.lt.s32.totalorder %v18793_v39, 0  ;;  %v24228_v25 = vmov 0  ;;  %v678_v48 = vshrl.u32 %v18773_v32, 4  ;;  %16374 = vmatprep.subr.mxu0 %v18902_v14  ;;  %v2397_v49 = vld [vmem:[#allocation2 + $0x12] sm:$0xff] }
  0xf0   : > { %vm18894_vm9 = vmand %vm24227_vm13, %vm24226_vm2  ;;  %vm24230_vm14 = vcmask 523264   ;;  %v24231_v20 = vsel %vm18541_vm6, %v18486_v5, %v18448_v40  ;;  %v24232_v63 = vmov 0  ;;  %v667_v32 = vshrl.u32 %v18797_v34, 4  ;;  %v1646_v5 = vld [vmem:[#allocation2 + $0x11] sm:$0xff]  ;;  %v15914_v34 = vpop.f32.mrf.mxu0  ;;  %v2398_v41 = vld [vmem:[#allocation2 + $0x1a] sm:$0xff] }
  0xf1   : > { %v24229_v25 = vsel %vm18894_vm9, 4294967295, %v24228_v25  ;;  %1569 = vst.msk [vmem:[#allocation2 + $0x3b] sm:$0xff] %vm24230_vm14, %v1533_v56  ;;  %vm18910_vm1 = vcmp.lt.s32.totalorder %v24231_v20, 16  ;;  %v18918_v42 = vadd.s32 208, %v18125_v9  ;;  %v1532_v30 = vsel %vm18766_vm11, %v1424_v22, 0.0  ;;  %v1647_v56 = vld [vmem:[#allocation2 + $0x19] sm:$0xff]  ;;  %vm24235_vm6 = vmmov %vm24230_vm14 }
  0xf2   : > { %v24233_v63 = vsel %vm18910_vm1, 4294967295, %v24232_v63  ;;  %v1427_v3 = vmax.f32 %v1277_v23, 0.0  ;;  %v1272_v40 = vadd.f32 %v18682_v2, %v1271_v26  ;;  %v18925_v20 = vadd.s32 18, %v18832_v10  ;;  %1568 = vst.msk [vmem:[#allocation2 + $0x33] sm:$0xff] %vm24235_vm6, %v1532_v30  ;;  %vm24236_vm14 = vmmov %vm24235_vm6 }
  0xf3   : > { %24234 = vst [vmem:[#allocation18_spill] sm:$0xff] %v24233_v63  ;;  %15973 = vmatprep.mubr.msk.f32.mxu1 %vm24236_vm14, %v1646_v5  ;;  %vm24237_vm13 = vmmov %vm24235_vm6  ;;  %vm24238_vm2 = vnez %v24148_v31  ;;  %v24240_v23 = vmov 0  ;;  %vm24243_vm6 = vcmp.ne.s32.totalorder %v18832_v10, 0  ;;  %vm24244_vm14 = vcmp.lt.s32.totalorder %v18832_v10, 0 }
  0xf4   : > { %16113 = vmatprep.mubr.msk.f32.mxu0 %vm24237_vm13, %v2397_v49  ;;  %v24239_v22 = vsel %vm24238_vm2, %v18516_v21, %v18458_v45  ;;  %vm18947_vm13 = vmand %vm24244_vm14, %vm24243_vm6  ;;  %v18952_v31 = vadd.s32 18, %v18863_v33  ;;  %v18955_v45 = vsub.s32 %v18662_v24, %v646_v51  ;;  %v700_v21 = vshrl.u32 %v18837_v53, 4  ;;  %v1281_v53 = vpop.f32.mrf.mxu0  ;;  %v1648_v52 = vld [vmem:[#allocation2 + $0x21] sm:$0xff] }
  0xf5   : > { %vm18935_vm11 = vcmp.lt.s32.totalorder %v24239_v22, 16  ;;  %v1535_v5 = vsel %vm18780_vm12, %v1427_v3, 0.0  ;;  %v1426_v49 = vmax.f32 %v1272_v40, 0.0  ;;  %v1287_v22 = vadd.f32 %v15914_v34, %v18682_v2  ;;  %v4999_v46 = vld [vmem:[#allocation2 + $0x26] sm:$0xff]  ;;  %v3698_v36 = vld [vmem:[#allocation2 + $0x1c] sm:$0xff] }
  0xf6   : > { %v24241_v23 = vsel %vm18935_vm11, 4294967295, %v24240_v23  ;;  %vm24247_vm2 = vcmask 523264   ;;  %vm24249_vm14 = vcmp.ne.s32.totalorder %v18863_v33, 0  ;;  %vm24250_vm10 = vcmp.lt.s32.totalorder %v18863_v33, 0 }
  0xf7   : > { %24242 = vst [vmem:[#allocation19_spill] sm:$0xff] %v24241_v23  ;;  %15974 = vmatmul.mubr.msk.f32.gmra.mxu1 %vm24247_vm2, %v1647_v56  ;;  %vm24248_vm6 = vmmov %vm24247_vm2  ;;  %v24251_v26 = vmov 0  ;;  %v679_v24 = vmul.u32 18, %v678_v48  ;;  %vm24254_vm12 = vnez %v24152_v1  ;;  %v24256_v3 = vmov 0  ;;  %v4165_v23 = vld [vmem:[#allocation2 + $0x134] sm:$0xff] }
  0xf8   : > { %16114 = vmatmul.mubr.msk.f32.gmra.mxu0 %vm24248_vm6, %v2398_v41  ;;  %vm18967_vm5 = vmand %vm24250_vm10, %vm24249_vm14  ;;  %v24255_v51 = vsel %vm24254_vm12, %v18562_v38, %v18462_v50  ;;  %v668_v41 = vmul.u32 18, %v667_v32  ;;  %v18982_v40 = vmul.u32.u64.low 3817748708, %v18918_v42  ;;  %v18983_v56 = vmul.u32.u64.high 3817748708, %v18918_v42, %v18982_v40  ;;  %v2399_v50 = vld [vmem:[#allocation2 + $0x22] sm:$0xff] }
  0xf9   : > { %v24252_v26 = vsel %vm18967_vm5, 4294967295, %v24251_v26  ;;  %vm24253_vm9 = vmmov %vm24247_vm2  ;;  %vm18977_vm2 = vcmp.lt.s32.totalorder %v24255_v51, 16  ;;  %v18986_v34 = vadd.s32 232, %v18125_v9  ;;  %v1534_v48 = vsel %vm18819_vm3, %v1426_v49, 0.0  ;;  %v1649_v38 = vld [vmem:[#allocation2 + $0x29] sm:$0xff]  ;;  %v15917_v51 = vpop.f32.mrf.mxu0 }
  0xfa   : > { %1571 = vst.msk [vmem:[#allocation2 + $0x4b] sm:$0xff] %vm24253_vm9, %v1535_v5  ;;  %v24257_v3 = vsel %vm18977_vm2, 4294967295, %v24256_v3  ;;  %v1429_v5 = vmax.f32 %v1287_v22, 0.0  ;;  %v1282_v1 = vadd.f32 %v18682_v2, %v1281_v53  ;;  %vm24259_vm12 = vmmov %vm24248_vm6  ;;  %v2400_v40 = vld [vmem:[#allocation2 + $0x2a] sm:$0xff]  ;;  %v24264_v22 = vmov 0 }
  0xfb   : > { %24258 = vst [vmem:[#allocation20_spill] sm:$0xff] %v24257_v3  ;;  %1570 = vst.msk [vmem:[#allocation2 + $0x43] sm:$0xff] %vm24259_vm12, %v1534_v48  ;;  %vm24269_vm12 = vnez %v24161_v60  ;;  %v24288_v53 = vmov 0  ;;  %v24303_v61 = vsel %vm18806_vm4, %v18759_v37, %v18702_v13  ;;  %v19158_v32 = vadd.s32 256, %v18125_v9 }
  0xfc   : > { %vm24260_vm10 = vmmov %vm24248_vm6  ;;  %v1428_v48 = vmax.f32 %v1282_v1, 0.0  ;;  %v19032_v1 = vadd.s32 18, %v18955_v45 }
  0xfd   : > { %15976 = vmatprep.mubr.msk.f32.mxu1 %vm24260_vm10, %v1648_v52  ;;  %vm24261_vm9 = vmmov %vm24248_vm6  ;;  %vm24262_vm6 = vnez %v24156_v55  ;;  %v701_v52 = vmul.u32 18, %v700_v21  ;;  %v1537_v55 = vsel %vm18852_vm8, %v1429_v5, 0.0  ;;  %v24270_v21 = vsel %vm24269_vm12, %v18608_v59, %v18502_v16  ;;  %v1650_v16 = vld [vmem:[#allocation2 + $0x31] sm:$0xff] }
  0xfe   : > { %16116 = vmatprep.mubr.msk.f32.mxu0 %vm24261_vm9, %v2399_v50  ;;  %v24263_v49 = vsel %vm24262_vm6, %v18590_v62, %v18473_v0  ;;  %v1297_v62 = vadd.f32 %v15917_v51, %v18682_v2  ;;  %15977 = vmatmul.mubr.msk.f32.gmra.mxu1 %vm24261_vm9, %v1649_v38  ;;  %vm24267_vm6 = vmmov %vm24261_vm9  ;;  %v19019_v0 = vsub.s32 %v18714_v44, %v679_v24  ;;  %v1291_v50 = vpop.f32.mrf.mxu0  ;;  %vm19027_vm10 = vcmp.lt.s32.totalorder %v24270_v21, 16 }
  0xff   : > { %vm19003_vm14 = vcmp.lt.s32.totalorder %v24263_v49, 16  ;;  %16117 = vmatmul.mubr.msk.f32.gmra.mxu0 %vm24267_vm6, %v2400_v40  ;;  %vm24268_vm3 = vmmov %vm24267_vm6  ;;  %v24271_v5 = vmov 0  ;;  %v19035_v38 = vsub.s32 %v18717_v57, %v668_v41  ;;  %v1536_v60 = vsel %vm18878_vm0, %v1428_v48, 0.0  ;;  %v2401_v40 = vld [vmem:[#allocation2 + $0x32] sm:$0xff]  ;;  %v2402_v41 = vld [vmem:[#allocation2 + $0x3a] sm:$0xff] }
 0x100   : > { %v24265_v22 = vsel %vm19003_vm14, 4294967295, %v24264_v22  ;;  %1573 = vst.msk [vmem:[#allocation2 + $0x5b] sm:$0xff] %vm24268_vm3, %v1537_v55  ;;  %v24272_v5 = vsel %vm19027_vm10, 4294967295, %v24271_v5  ;;  %v19038_v44 = vmul.u32.u64.low 3817748708, %v18986_v34  ;;  %v19039_v24 = vmul.u32.u64.high 3817748708, %v18986_v34, %v19038_v44  ;;  %v1651_v49 = vld [vmem:[#allocation2 + $0x39] sm:$0xff]  ;;  %v15920_v57 = vpop.f32.mrf.mxu0  ;;  %vm24274_vm12 = vmmov %vm24268_vm3 }
 0x101   : > { %24266 = vst [vmem:[#allocation21_spill] sm:$0xff] %v24265_v22  ;;  %24273 = vst [vmem:[#allocation22_spill] sm:$0xff] %v24272_v5  ;;  %v1431_v51 = vmax.f32 %v1297_v62, 0.0  ;;  %v1292_v59 = vadd.f32 %v18682_v2, %v1291_v50  ;;  %v19045_v55 = vadd.s32 224, %v18125_v9  ;;  %15979 = vmatprep.mubr.msk.f32.mxu1 %vm24274_vm12, %v1650_v16  ;;  %vm24276_vm6 = vnez %v24165_v19  ;;  %v24285_v16 = vld [vmem:[#allocation7_spill] sm:$0xff] }
 0x102   : > { %1572 = vst.msk [vmem:[#allocation2 + $0x53] sm:$0xff] %vm24268_vm3, %v1536_v60  ;;  %vm24275_vm9 = vmmov %vm24268_vm3  ;;  %v24277_v48 = vsel %vm24276_vm6, %v18631_v47, %v18505_v18  ;;  %v24278_v62 = vmov 0  ;;  %v19060_v50 = vsub.s32 %v18754_v15, %v701_v52  ;;  %v19063_v21 = vadd.s32 248, %v18125_v9  ;;  %15980 = vmatmul.mubr.msk.f32.gmra.mxu1 %vm24268_vm3, %v1651_v49  ;;  %v1301_v15 = vpop.f32.mrf.mxu0  ;;  %v24283_v52 = vld [vmem:[#allocation9_spill] sm:$0xff] }
 0x103   : > { %16119 = vmatprep.mubr.msk.f32.mxu0 %vm24275_vm9, %v2401_v40  ;;  %vm19055_vm0 = vcmp.lt.s32.totalorder %v24277_v48, 16  ;;  %v19066_v44 = vadd.s32 240, %v18125_v9  ;;  %v19069_v60 = vadd.s32 264, %v18125_v9  ;;  %v1539_v19 = vsel %vm18910_vm1, %v1431_v51, 0.0  ;;  %vm24281_vm12 = vmmov %vm24268_vm3  ;;  %v24286_v40 = vld [vmem:[#allocation5_spill] sm:$0xff] }
 0x104   : > { %v24279_v62 = vsel %vm19055_vm0, 4294967295, %v24278_v62  ;;  %v1430_v18 = vmax.f32 %v1292_v59, 0.0  ;;  %v1307_v47 = vadd.f32 %v15920_v57, %v18682_v2  ;;  %16120 = vmatmul.mubr.msk.f32.gmra.mxu0 %vm24281_vm12, %v2402_v41  ;;  %vm24282_vm6 = vmmov %vm24268_vm3  ;;  %vm24284_vm8 = vnez %v24283_v52  ;;  %v2403_v52 = vld [vmem:[#allocation2 + $0x42] sm:$0xff] }
 0x105   : > { %24280 = vst [vmem:[#allocation23_spill] sm:$0xff] %v24279_v62  ;;  %1575 = vst.msk [vmem:[#allocation2 + $0x6b] sm:$0xff] %vm24282_vm6, %v1539_v19  ;;  %v24287_v48 = vsel %vm24284_vm8, %v24285_v16, %v24286_v40  ;;  %v19089_v51 = vadd.s32 18, %v19019_v0  ;;  %v689_v59 = vshrl.u32 %v18983_v56, 4  ;;  %v1302_v41 = vadd.f32 %v18682_v2, %v1301_v15  ;;  %v1652_v19 = vld [vmem:[#allocation2 + $0x41] sm:$0xff]  ;;  %v1653_v16 = vld [vmem:[#allocation2 + $0x49] sm:$0xff]  ;;  %v15923_v40 = vpop.f32.mrf.mxu0 }
 0x106   : > { %vm19083_vm5 = vcmp.lt.s32.totalorder %v24287_v48, 16  ;;  %v1538_v49 = vsel %vm18935_vm11, %v1430_v18, 0.0  ;;  %v1433_v57 = vmax.f32 %v1307_v47, 0.0  ;;  %vm24291_vm12 = vmmov %vm24268_vm3  ;;  %v2404_v48 = vld [vmem:[#allocation2 + $0x4a] sm:$0xff]  ;;  %v24294_v56 = vmov 0 }
 0x107   : > { %v24289_v53 = vsel %vm19083_vm5, 4294967295, %v24288_v53  ;;  %1574 = vst.msk [vmem:[#allocation2 + $0x63] sm:$0xff] %vm24291_vm12, %v1538_v49  ;;  %vm24292_vm6 = vmmov %vm24268_vm3  ;;  %v19110_v18 = vadd.s32 18, %v19035_v38  ;;  %v19114_v47 = vmul.u32.u64.low 3817748708, %v19045_v55  ;;  %v19115_v15 = vmul.u32.u64.high 3817748708, %v19045_v55, %v19114_v47  ;;  %v1311_v6 = vpop.f32.mrf.mxu0 }
 0x108   : > { %24290 = vst [vmem:[#allocation9_spill] sm:$0xff] %v24289_v53  ;;  %15982 = vmatprep.mubr.msk.f32.mxu1 %vm24292_vm6, %v1652_v19  ;;  %vm24293_vm1 = vmmov %vm24268_vm3  ;;  %vm19105_vm3 = vcmp.lt.s32.totalorder %v953_v11, 16  ;;  %v1541_v49 = vsel %vm18977_vm2, %v1433_v57, 0.0  ;;  %v1432_v7 = vmax.f32 %v1302_v41, 0.0  ;;  %v1317_v19 = vadd.f32 %v15923_v40, %v18682_v2 }
 0x109   : > { %16122 = vmatprep.mubr.msk.f32.mxu0 %vm24293_vm1, %v2403_v52  ;;  %v24295_v56 = vsel %vm19105_vm3, 4294967295, %v24294_v56  ;;  %vm24297_vm15 = vmmov %vm24293_vm1  ;;  %vm24298_vm6 = vcmp.ne.s32.totalorder %v18955_v45, 0  ;;  %vm24299_vm8 = vcmp.lt.s32.totalorder %v18955_v45, 0  ;;  %v24304_v57 = vmov 0  ;;  %v1654_v47 = vld [vmem:[#allocation2 + $0x51] sm:$0xff] }
 0x10a   : > { %24296 = vst [vmem:[#allocation7_spill] sm:$0xff] %v24295_v56  ;;  %15983 = vmatmul.mubr.msk.f32.gmra.mxu1 %vm24297_vm15, %v1653_v16  ;;  %16123 = vmatmul.mubr.msk.f32.gmra.mxu0 %vm24293_vm1, %v2404_v48  ;;  %vm19126_vm9 = vmand %vm24299_vm8, %vm24298_vm6  ;;  %vm19137_vm15 = vcmp.lt.s32.totalorder %v24303_v61, 16  ;;  %vm24308_vm8 = vcmp.lt.s32.totalorder %v19019_v0, 0  ;;  %v690_v52 = vmul.u32 18, %v689_v59  ;;  %v722_v16 = vshrl.u32 %v19039_v24, 4  ;;  %v1655_v61 = vld [vmem:[#allocation2 + $0x59] sm:$0xff]  ;;  %v15926_v59 = vpop.f32.mrf.mxu0 }
 0x10b   : > { %vm24302_vm11 = vmmov %vm24293_vm1  ;;  %v24305_v57 = vsel %vm19137_vm15, 4294967295, %v24304_v57  ;;  %vm24307_vm1 = vcmp.ne.s32.totalorder %v19019_v0, 0  ;;  %v19151_v8 = vmul.u32.u64.low 3817748708, %v19063_v21  ;;  %v19152_v40 = vmul.u32.u64.high 3817748708, %v19063_v21, %v19151_v8  ;;  %v2406_v24 = vld [vmem:[#allocation2 + $0x5a] sm:$0xff] }
 0x10c   : > { %1577 = vst.msk [vmem:[#allocation2 + $0x7b] sm:$0xff] %vm24302_vm11, %v1541_v49  ;;  %24306 = vst [vmem:[#allocation5_spill] sm:$0xff] %v24305_v57  ;;  %v1540_v13 = vsel %vm19003_vm14, %v1432_v7, 0.0  ;;  %v1435_v37 = vmax.f32 %v1317_v19, 0.0  ;;  %v1312_v48 = vadd.f32 %v18682_v2, %v1311_v6  ;;  %v2405_v49 = vld [vmem:[#allocation2 + $0x52] sm:$0xff]  ;;  %v24313_v7 = vsel %vm18827_vm7, %v18811_v12, %v18729_v58 }
 0x10d   : > { %vm19145_vm6 = vmand %vm24308_vm8, %vm24307_vm1  ;;  %1576 = vst.msk [vmem:[#allocation2 + $0x73] sm:$0xff] %vm24302_vm11, %v1540_v13  ;;  %vm19168_vm8 = vcmp.lt.s32.totalorder %v24313_v7, 16  ;;  %v24314_v19 = vmov 0  ;;  %vm24317_vm12 = vcmp.ne.s32.totalorder %v19035_v38, 0  ;;  %vm24318_vm14 = vcmp.lt.s32.totalorder %v19035_v38, 0 }
 0x10e   : > { %vm24311_vm4 = vmmov %vm24302_vm11  ;;  %v24315_v19 = vsel %vm19168_vm8, 4294967295, %v24314_v19  ;;  %v19181_v8 = vmul.u32.u64.low 3817748708, %v19066_v44  ;;  %v19182_v13 = vmul.u32.u64.high 3817748708, %v19066_v44, %v19181_v8  ;;  %v1543_v58 = vsel %vm19027_vm10, %v1435_v37, 0.0 }
 0x10f   : > { %15985 = vmatprep.mubr.msk.f32.mxu1 %vm24311_vm4, %v1654_v47  ;;  %vm24312_vm1 = vmmov %vm24311_vm4  ;;  %24316 = vst [vmem:[#allocation24_spill] sm:$0xff] %v24315_v19  ;;  %v19185_v43 = vmul.u32.u64.low 3817748708, %v19069_v60  ;;  %v19186_v47 = vmul.u32.u64.high 3817748708, %v19069_v60, %v19185_v43  ;;  %v1434_v12 = vmax.f32 %v1312_v48, 0.0  ;;  %v19194_v7 = vadd.s32 18, %v19060_v50  ;;  %v1321_v8 = vpop.f32.mrf.mxu0 }
 0x110   : > { %16125 = vmatprep.mubr.msk.f32.mxu0 %vm24312_vm1, %v2405_v49  ;;  %vm19176_vm11 = vmand %vm24318_vm14, %vm24317_vm12  ;;  %v1327_v49 = vadd.f32 %v15926_v59, %v18682_v2  ;;  %vm24324_vm4 = vnez %v24229_v25  ;;  %v24326_v37 = vmov 0  ;;  %v959_v48 = vsel %vm19126_vm9, %v19032_v1, %v18955_v45  ;;  %v1656_v59 = vld [vmem:[#allocation2 + $0x61] sm:$0xff] }
 0x111   : > { %vm24321_vm7 = vmmov %vm24312_vm1  ;;  %v24325_v43 = vsel %vm24324_vm4, %v18883_v17, %v18793_v39  ;;  %v19223_v17 = vsub.s32 %v18918_v42, %v690_v52  ;;  %v723_v25 = vmul.u32 18, %v722_v16  ;;  %v1542_v45 = vsel %vm19055_vm0, %v1434_v12, 0.0  ;;  %v2408_v42 = vld [vmem:[#allocation2 + $0x6a] sm:$0xff] }
 0x112   : > { %15986 = vmatmul.mubr.msk.f32.gmra.mxu1 %vm24321_vm7, %v1655_v61  ;;  %vm24322_vm14 = vmmov %vm24312_vm1  ;;  %vm24329_vm7 = vcmp.ne.s32.totalorder %v19060_v50, 0  ;;  %v1437_v1 = vmax.f32 %v1327_v49, 0.0  ;;  %v1322_v11 = vadd.f32 %v18682_v2, %v1321_v8  ;;  %vm24333_vm9 = vcmask 523264   ;;  %v15929_v61 = vpop.f32.mrf.mxu0 }
 0x113   : > { %16126 = vmatmul.mubr.msk.f32.gmra.mxu0 %vm24322_vm14, %v2406_v24  ;;  %vm24323_vm12 = vmmov %vm24312_vm1  ;;  %vm19202_vm1 = vcmp.lt.s32.totalorder %v24325_v43, 16  ;;  %vm24330_vm14 = vcmp.lt.s32.totalorder %v19060_v50, 0  ;;  %v2407_v24 = vld [vmem:[#allocation2 + $0x62] sm:$0xff]  ;;  %v961_v43 = vsel %vm19176_vm11, %v19110_v18, %v19035_v38  ;;  %1578 = vst.msk [vmem:[#allocation2 + $0x83] sm:$0xff] %vm24333_vm9, %v1542_v45  ;;  %v24336_v52 = vsel %vm18947_vm13, %v18925_v20, %v18832_v10 }
 0x114   : > { %1579 = vst.msk [vmem:[#allocation2 + $0x8b] sm:$0xff] %vm24323_vm12, %v1543_v58  ;;  %v24327_v37 = vsel %vm19202_vm1, 4294967295, %v24326_v37  ;;  %vm19218_vm12 = vmand %vm24330_vm14, %vm24329_vm7  ;;  %v1657_v58 = vld [vmem:[#allocation2 + $0x69] sm:$0xff]  ;;  %vm19240_vm14 = vcmp.lt.s32.totalorder %v24336_v52, 16  ;;  %v24337_v16 = vmov 0  ;;  %v711_v12 = vshrl.u32 %v19115_v15, 4  ;;  %v1331_v20 = vpop.f32.mrf.mxu0 }
 0x115   : > { %24328 = vst [vmem:[#allocation25_spill] sm:$0xff] %v24327_v37  ;;  %vm24334_vm4 = vmmov %vm24333_vm9  ;;  %v24338_v16 = vsel %vm19240_vm14, 4294967295, %v24337_v16  ;;  %v19246_v49 = vmul.u32.u64.low 3817748708, %v19158_v32  ;;  %v19247_v8 = vmul.u32.u64.high 3817748708, %v19158_v32, %v19246_v49  ;;  %v19250_v45 = vadd.s32 280, %v18125_v9  ;;  %v1659_v52 = vld [vmem:[#allocation2 + $0x79] sm:$0xff] }
 0x116   : > { %15988 = vmatprep.mubr.msk.f32.mxu1 %vm24334_vm4, %v1656_v59  ;;  %vm24335_vm7 = vmmov %vm24334_vm4  ;;  %24339 = vst [vmem:[#allocation26_spill] sm:$0xff] %v24338_v16  ;;  %v1545_v59 = vsel %vm19083_vm5, %v1437_v1, 0.0  ;;  %v1436_v30 = vmax.f32 %v1322_v11, 0.0  ;;  %v964_v10 = vsel %vm19218_vm12, %v19194_v7, %v19060_v50  ;;  %v24344_v1 = vmov 0 }
 0x117   : > { %16128 = vmatprep.mubr.msk.f32.mxu0 %vm24335_vm7, %v2407_v24  ;;  %v1337_v24 = vadd.f32 %v15929_v61, %v18682_v2  ;;  %vm24340_vm13 = vmmov %vm24334_vm4  ;;  %1581 = vst.msk [vmem:[#allocation2 + $0x9b] sm:$0xff] %vm24334_vm4, %v1545_v59  ;;  %vm24342_vm7 = vnez %v24252_v26  ;;  %v19274_v61 = vsub.s32 %v18986_v34, %v723_v25  ;;  %v19277_v11 = vadd.s32 272, %v18125_v9  ;;  %v15932_v59 = vpop.f32.mrf.mxu0  ;;  %v2410_v9 = vld [vmem:[#allocation2 + $0x7a] sm:$0xff] }
 0x118   : > { %15989 = vmatmul.mubr.msk.f32.gmra.mxu1 %vm24340_vm13, %v1657_v58  ;;  %vm24341_vm9 = vmmov %vm24334_vm4  ;;  %v24343_v15 = vsel %vm24342_vm7, %v18952_v31, %v18863_v33  ;;  %v1544_v26 = vsel %vm19105_vm3, %v1436_v30, 0.0  ;;  %v1332_v33 = vadd.f32 %v18682_v2, %v1331_v20  ;;  %v1658_v31 = vld [vmem:[#allocation2 + $0x71] sm:$0xff]  ;;  %v744_v49 = vshrl.u32 %v19152_v40, 4 }
 0x119   : > { %16129 = vmatmul.mubr.msk.f32.gmra.mxu0 %vm24341_vm9, %v2408_v42  ;;  %vm19267_vm5 = vcmp.lt.s32.totalorder %v24343_v15, 16  ;;  %v1439_v58 = vmax.f32 %v1337_v24, 0.0  ;;  %v2409_v42 = vld [vmem:[#allocation2 + $0x72] sm:$0xff]  ;;  %1580 = vst.msk [vmem:[#allocation2 + $0x93] sm:$0xff] %vm24334_vm4, %v1544_v26  ;;  %vm24347_vm7 = vmmov %vm24334_vm4  ;;  %vm19286_vm13 = vcmp.lt.s32.totalorder %v959_v48, 16  ;;  %v24349_v34 = vmov 0 }
 0x11a   : > { %v24345_v1 = vsel %vm19267_vm5, 4294967295, %v24344_v1  ;;  %15991 = vmatprep.mubr.msk.f32.mxu1 %vm24347_vm7, %v1658_v31  ;;  %vm24348_vm9 = vmmov %vm24334_vm4  ;;  %v24350_v34 = vsel %vm19286_vm13, 4294967295, %v24349_v34  ;;  %v712_v25 = vmul.u32 18, %v711_v12  ;;  %v733_v30 = vshrl.u32 %v19182_v13, 4  ;;  %v1341_v12 = vpop.f32.mrf.mxu0 }
 0x11b   : > { %24346 = vst [vmem:[#allocation27_spill] sm:$0xff] %v24345_v1  ;;  %16131 = vmatprep.mubr.msk.f32.mxu0 %vm24348_vm9, %v2409_v42  ;;  %24351 = vst [vmem:[#allocation28_spill] sm:$0xff] %v24350_v34  ;;  %v19292_v24 = vmul.u32.u64.low 3817748708, %v19250_v45  ;;  %v19293_v20 = vmul.u32.u64.high 3817748708, %v19250_v45, %v19292_v24  ;;  %v1547_v40 = vsel %vm19137_vm15, %v1439_v58, 0.0  ;;  %v1438_v15 = vmax.f32 %v1332_v33, 0.0 }
 0x11c   : > { %v1347_v26 = vadd.f32 %v15932_v59, %v18682_v2  ;;  %15992 = vmatmul.mubr.msk.f32.gmra.mxu1 %vm24334_vm4, %v1659_v52  ;;  %vm24352_vm9 = vmmov %vm24334_vm4  ;;  %v766_v48 = vshrl.u32 %v19186_v47, 4  ;;  %v19305_v13 = vmul.u32.u64.low 3817748708, %v19277_v11  ;;  %v19306_v31 = vmul.u32.u64.high 3817748708, %v19277_v11, %v19305_v13  ;;  %v1660_v52 = vld [vmem:[#allocation2 + $0x81] sm:$0xff]  ;;  %v1661_v47 = vld [vmem:[#allocation2 + $0x89] sm:$0xff]  ;;  %v15935_v24 = vpop.f32.mrf.mxu0 }
 0x11d   : > { %16132 = vmatmul.mubr.msk.f32.gmra.mxu0 %vm24352_vm9, %v2410_v9  ;;  %vm24353_vm7 = vmmov %vm24334_vm4  ;;  %v1546_v58 = vsel %vm19168_vm8, %v1438_v15, 0.0  ;;  %v1342_v42 = vadd.f32 %v18682_v2, %v1341_v12  ;;  %v2411_v59 = vld [vmem:[#allocation2 + $0x82] sm:$0xff]  ;;  %v19312_v9 = vadd.s32 18, %v19223_v17  ;;  %v24356_v15 = vsel %vm19145_vm6, %v19089_v51, %v19019_v0 }
 0x11e   : > { %1583 = vst.msk [vmem:[#allocation2 + $0xab] sm:$0xff] %vm24353_vm7, %v1547_v40  ;;  %v1441_v33 = vmax.f32 %v1347_v26, 0.0  ;;  %vm24354_vm9 = vmmov %vm24334_vm4  ;;  %v2412_v40 = vld [vmem:[#allocation2 + $0x8a] sm:$0xff]  ;;  %vm19322_vm0 = vcmp.lt.s32.totalorder %v24356_v15, 16  ;;  %v24357_v26 = vmov 0  ;;  %vm24360_vm3 = vcmp.ne.s32.totalorder %v19223_v17, 0 }
 0x11f   : > { %1582 = vst.msk [vmem:[#allocation2 + $0xa3] sm:$0xff] %vm24334_vm4, %v1546_v58  ;;  %15994 = vmatprep.mubr.msk.f32.mxu1 %vm24354_vm9, %v1660_v52  ;;  %vm24355_vm7 = vmmov %vm24334_vm4  ;;  %v24358_v26 = vsel %vm19322_vm0, 4294967295, %v24357_v26  ;;  %vm24361_vm8 = vcmp.lt.s32.totalorder %v19223_v17, 0  ;;  %v19335_v13 = vadd.s32 18, %v19274_v61  ;;  %v19338_v41 = vsub.s32 %v19045_v55, %v712_v25 }
 0x120   : > { %16134 = vmatprep.mubr.msk.f32.mxu0 %vm24355_vm7, %v2411_v59  ;;  %24359 = vst [vmem:[#allocation29_spill] sm:$0xff] %v24358_v26  ;;  %vm19330_vm4 = vmand %vm24361_vm8, %vm24360_vm3  ;;  %v745_v58 = vmul.u32 18, %v744_v49  ;;  %v1549_v0 = vsel %vm19202_vm1, %v1441_v33, 0.0  ;;  %v1440_v51 = vmax.f32 %v1342_v42, 0.0  ;;  %v1357_v52 = vadd.f32 %v15935_v24, %v18682_v2  ;;  %v1351_v49 = vpop.f32.mrf.mxu0  ;;  %v1663_v24 = vld [vmem:[#allocation2 + $0x99] sm:$0xff] }
 0x121   : > { %vm24364_vm6 = vmmov %vm24355_vm7  ;;  %vm24366_vm3 = vcmp.ne.s32.totalorder %v19274_v61, 0  ;;  %vm24367_vm8 = vcmp.lt.s32.totalorder %v19274_v61, 0  ;;  %v734_v55 = vmul.u32 18, %v733_v30  ;;  %v24371_v25 = vmov 0  ;;  %v2414_v39 = vld [vmem:[#allocation2 + $0x9a] sm:$0xff] }
 0x122   : > { %15995 = vmatmul.mubr.msk.f32.gmra.mxu1 %vm24364_vm6, %v1661_v47  ;;  %vm24365_vm9 = vmmov %vm24364_vm6  ;;  %v24374_v33 = vmov 0  ;;  %v767_v30 = vmul.u32 18, %v766_v48  ;;  %v755_v42 = vshrl.u32 %v19247_v8, 4  ;;  %v1548_v6 = vsel %vm19240_vm14, %v1440_v51, 0.0  ;;  %v2413_v47 = vld [vmem:[#allocation2 + $0x92] sm:$0xff]  ;;  %v15938_v7 = vpop.f32.mrf.mxu0 }
 0x123   : > { %16135 = vmatmul.mubr.msk.f32.gmra.mxu0 %vm24365_vm9, %v2412_v40  ;;  %vm19349_vm7 = vmand %vm24367_vm8, %vm24366_vm3  ;;  %vm19368_vm9 = vcmp.lt.s32.totalorder %v964_v10, 16  ;;  %v1443_v38 = vmax.f32 %v1357_v52, 0.0  ;;  %v1352_v18 = vadd.f32 %v18682_v2, %v1351_v49  ;;  %v963_v50 = vsel %vm19330_vm4, %v19312_v9, %v19223_v17 }
 0x124   : > { %vm24370_vm15 = vmmov %vm24364_vm6  ;;  %vm19359_vm6 = vcmp.lt.s32.totalorder %v961_v43, 16  ;;  %v24375_v33 = vsel %vm19368_vm9, 4294967295, %v24374_v33  ;;  %v1662_v43 = vld [vmem:[#allocation2 + $0x91] sm:$0xff]  ;;  %v966_v8 = vsel %vm19349_vm7, %v19335_v13, %v19274_v61  ;;  %vm821_vm3 = vcmp.ne.s32.totalorder %v19338_v41, 0  ;;  %v1361_v61 = vpop.f32.mrf.mxu0 }
 0x125   : > { %1585 = vst.msk [vmem:[#allocation2 + $0xbb] sm:$0xff] %vm24370_vm15, %v1549_v0  ;;  %v24372_v25 = vsel %vm19359_vm6, 4294967295, %v24371_v25  ;;  %24376 = vst [vmem:[#allocation31_spill] sm:$0xff] %v24375_v33  ;;  %v19389_v10 = vsub.s32 %v19063_v21, %v745_v58  ;;  %v788_v17 = vshrl.u32 %v19293_v20, 4  ;;  %v1551_v48 = vsel %vm19267_vm5, %v1443_v38, 0.0 }
 0x126   : > { %24373 = vst [vmem:[#allocation30_spill] sm:$0xff] %v24372_v25  ;;  %1584 = vst.msk [vmem:[#allocation2 + $0xb3] sm:$0xff] %vm24370_vm15, %v1548_v6  ;;  %v1442_v9 = vmax.f32 %v1352_v18, 0.0  ;;  %v1367_v40 = vadd.f32 %v15938_v7, %v18682_v2  ;;  %v19398_v15 = vsub.s32 %v19066_v44, %v734_v55  ;;  %v19403_v21 = vsub.s32 %v19069_v60, %v767_v30  ;;  %v1664_v51 = vld [vmem:[#allocation2 + $0xa1] sm:$0xff]  ;;  %v1665_v52 = vld [vmem:[#allocation2 + $0xa9] sm:$0xff]  ;;  %v15941_v55 = vpop.f32.mrf.mxu0 }
 0x127   : > { %vm24377_vm11 = vmmov %vm24370_vm15  ;;  %v756_v20 = vmul.u32 18, %v755_v42  ;;  %v777_v12 = vshrl.u32 %v19306_v31, 4  ;;  %v1362_v0 = vadd.f32 %v18682_v2, %v1361_v61  ;;  %v2415_v44 = vld [vmem:[#allocation2 + $0xa2] sm:$0xff]  ;;  %v929_v59 = vadd.s32 18, %v19338_v41  ;;  %v2416_v60 = vld [vmem:[#allocation2 + $0xaa] sm:$0xff] }
 0x128   : > { %15997 = vmatprep.mubr.msk.f32.mxu1 %vm24377_vm11, %v1662_v43  ;;  %vm24378_vm12 = vmmov %vm24377_vm11  ;;  %v1550_v13 = vsel %vm19286_vm13, %v1442_v9, 0.0  ;;  %v1445_v58 = vmax.f32 %v1367_v40, 0.0  ;;  %v19416_v31 = vadd.s32 18, %v19389_v10  ;;  %v789_v49 = vmul.u32 18, %v788_v17  ;;  %v1371_v38 = vpop.f32.mrf.mxu0 }
 0x129   : > { %16137 = vmatprep.mubr.msk.f32.mxu0 %vm24378_vm12, %v2413_v47  ;;  %vm24379_vm4 = vmmov %vm24377_vm11  ;;  %v1444_v42 = vmax.f32 %v1362_v0, 0.0  ;;  %v1377_v6 = vadd.f32 %v15941_v55, %v18682_v2  ;;  %v19436_v43 = vsub.s32 %v19158_v32, %v756_v20  ;;  %v778_v47 = vmul.u32 18, %v777_v12 }
 0x12a   : > { %15998 = vmatmul.mubr.msk.f32.gmra.mxu1 %vm24379_vm4, %v1663_v24  ;;  %vm24380_vm8 = vmmov %vm24379_vm4  ;;  %v1553_v30 = vsel %vm19322_vm0, %v1445_v58, 0.0  ;;  %v24391_v40 = vmov 0  ;;  %v24394_v32 = vmov 0  ;;  %v15944_v61 = vpop.f32.mrf.mxu0  ;;  %v19468_v12 = vsub.s32 %v19250_v45, %v789_v49 }
 0x12b   : > { %16138 = vmatmul.mubr.msk.f32.gmra.mxu0 %vm24380_vm8, %v2414_v39  ;;  %vm24381_vm7 = vmmov %vm24379_vm4  ;;  %v1552_v24 = vsel %vm19359_vm6, %v1444_v42, 0.0  ;;  %v1447_v7 = vmax.f32 %v1377_v6, 0.0  ;;  %v1372_v39 = vadd.f32 %v18682_v2, %v1371_v38  ;;  %v1387_v0 = vadd.f32 %v15944_v61, %v18682_v2 }
 0x12c   : > { %1587 = vst.msk [vmem:[#allocation2 + $0xcb] sm:$0xff] %vm24381_vm7, %v1551_v48  ;;  %vm24382_vm11 = vmmov %vm24379_vm4  ;;  %16140 = vmatprep.mubr.msk.f32.mxu0 %vm24379_vm4, %v2415_v44  ;;  %v1381_v44 = vpop.f32.mrf.mxu0  ;;  %vm24408_vm6 = vcmp.lt.s32.totalorder %v19403_v21, 0 }
 0x12d   : > { %1586 = vst.msk [vmem:[#allocation2 + $0xc3] sm:$0xff] %vm24382_vm11, %v1550_v13  ;;  %vm24383_vm12 = vmmov %vm24379_vm4  ;;  %v1666_v17 = vld [vmem:[#allocation2 + $0xb1] sm:$0xff]  ;;  %v1667_v9 = vld [vmem:[#allocation2 + $0xb9] sm:$0xff]  ;;  %v1555_v13 = vsel %vm19368_vm9, %v1447_v7, 0.0  ;;  %v1446_v58 = vmax.f32 %v1372_v39, 0.0  ;;  %v1382_v49 = vadd.f32 %v18682_v2, %v1381_v44 }
 0x12e   : > { %16000 = vmatprep.mubr.msk.f32.mxu1 %vm24383_vm12, %v1664_v51  ;;  %vm24384_vm11 = vmmov %vm24379_vm4  ;;  %v19441_v48 = vld [vmem:[#allocation2 + $0xb2] sm:$0xff]  ;;  %v19456_v20 = vld [vmem:[#allocation2 + $0xba] sm:$0xff]  ;;  %v15947_v18 = vpop.f32.mrf.mxu0 }
 0x12f   : > { %16001 = vmatmul.mubr.msk.f32.gmra.mxu1 %vm24384_vm11, %v1665_v52  ;;  %vm24385_vm12 = vmmov %vm24379_vm4  ;;  %vm823_vm4 = vcmp.ne.s32.totalorder %v19398_v15, 0  ;;  %v1448_v7 = vmax.f32 %v1382_v49, 0.0  ;;  %v1397_v39 = vadd.f32 %v15947_v18, %v18682_v2 }
 0x130   : > { %16141 = vmatmul.mubr.msk.f32.gmra.mxu0 %vm24385_vm12, %v2416_v60  ;;  %vm24386_vm15 = vmmov %vm24381_vm7  ;;  %vm24387_vm7 = vcmp.lt.s32.totalorder %v19338_v41, 0  ;;  %16003 = vmatprep.mubr.msk.f32.mxu1 %vm24385_vm12, %v1666_v17  ;;  %v1449_v60 = vmax.f32 %v1387_v0, 0.0  ;;  %v24421_v17 = vmov 0 }
 0x131   : > { %1589 = vst.msk [vmem:[#allocation2 + $0xdb] sm:$0xff] %vm24386_vm15, %v1553_v30  ;;  %vm19429_vm8 = vmand %vm24387_vm7, %vm821_vm3  ;;  %vm19445_vm7 = vcmp.lt.s32.totalorder %v963_v50, 16  ;;  %vm24398_vm3 = vcmp.ne.s32.totalorder %v19389_v10, 0  ;;  %v936_v50 = vadd.s32 18, %v19468_v12 }
 0x132   : > { %vm24390_vm15 = vmmov %vm24384_vm11  ;;  %v24392_v40 = vsel %vm19445_vm7, 4294967295, %v24391_v40  ;;  %vm19449_vm11 = vcmp.lt.s32.totalorder %v966_v8, 16  ;;  %v931_v8 = vadd.s32 18, %v19398_v15  ;;  %v965_v51 = vsel %vm19429_vm8, %v929_v59, %v19338_v41 }
 0x133   : > { %1588 = vst.msk [vmem:[#allocation2 + $0xd3] sm:$0xff] %vm24390_vm15, %v1552_v24  ;;  %24393 = vst [vmem:[#allocation32_spill] sm:$0xff] %v24392_v40  ;;  %v24395_v32 = vsel %vm19449_vm11, 4294967295, %v24394_v32  ;;  %vm24399_vm15 = vcmp.lt.s32.totalorder %v19389_v10, 0  ;;  %v934_v41 = vadd.s32 18, %v19403_v21  ;;  %vm825_vm8 = vcmp.ne.s32.totalorder %v19436_v43, 0 }
 0x134   : > { %24396 = vst [vmem:[#allocation33_spill] sm:$0xff] %v24395_v32  ;;  %vm24397_vm13 = vmmov %vm24385_vm12  ;;  %v19500_v59 = vsub.s32 %v19277_v11, %v778_v47  ;;  %v1554_v55 = vsel %vm19445_vm7, %v1446_v58, 0.0  ;;  %v1668_v42 = vld [vmem:[#allocation2 + $0xc1] sm:$0xff]  ;;  %v1669_v38 = vld [vmem:[#allocation2 + $0xc9] sm:$0xff]  ;;  %v24412_v11 = vmov 0  ;;  %v1557_v24 = vsel %vm19449_vm11, %v1449_v60, 0.0 }
 0x135   : > { %16143 = vmatprep.mubr.msk.f32.mxu0 %vm24397_vm13, %v19441_v48  ;;  %vm19462_vm0 = vmand %vm24399_vm15, %vm24398_vm3  ;;  %vm24403_vm3 = vcmp.lt.s32.totalorder %v19398_v15, 0  ;;  %v19509_v6 = vld [vmem:[#allocation2 + $0xc2] sm:$0xff]  ;;  %v19519_v47 = vld [vmem:[#allocation2 + $0xca] sm:$0xff] }
 0x136   : > { %vm24402_vm13 = vmmov %vm24385_vm12  ;;  %16144 = vmatmul.mubr.msk.f32.gmra.mxu0 %vm24385_vm12, %v19456_v20  ;;  %v968_v30 = vsel %vm19462_vm0, %v19416_v31, %v19389_v10  ;;  %v933_v31 = vadd.s32 18, %v19436_v43  ;;  %v19944_v32 = vld [vmem:[#allocation2 + $0xb4] sm:$0xff]  ;;  %v19949_v40 = vld [vmem:[#allocation2 + $0xbc] sm:$0xff] }
 0x137   : > { %16004 = vmatmul.mubr.msk.f32.gmra.mxu1 %vm24402_vm13, %v1667_v9  ;;  %vm19483_vm15 = vmand %vm24403_vm3, %vm823_vm4  ;;  %vm24407_vm13 = vcmp.ne.s32.totalorder %v19403_v21, 0  ;;  %vm861_vm4 = vcmp.lt.s32.totalorder %v19436_v43, 0  ;;  %vm19542_vm11 = vcmp.lt.s32.totalorder %v968_v30, 16  ;;  %v1391_v9 = vpop.f32.mrf.mxu0 }
 0x138   : > { %vm24406_vm9 = vmmov %vm24385_vm12  ;;  %v967_v10 = vsel %vm19483_vm15, %v931_v8, %v19398_v15  ;;  %v24422_v17 = vsel %vm19542_vm11, 4294967295, %v24421_v17  ;;  %v1392_v58 = vadd.f32 %v18682_v2, %v1391_v9 }
 0x139   : > { %1591 = vst.msk [vmem:[#allocation2 + $0xeb] sm:$0xff] %vm24406_vm9, %v1555_v13  ;;  %vm19492_vm12 = vmand %vm24408_vm6, %vm24407_vm13  ;;  %v1451_v13 = vmax.f32 %v1397_v39, 0.0  ;;  %v15950_v44 = vpop.f32.mrf.mxu0 }
 0x13a   : > { %vm24411_vm6 = vmmov %vm24406_vm9  ;;  %vm19512_vm9 = vcmp.lt.s32.totalorder %v965_v51, 16  ;;  %24423 = vst [vmem:[#allocation35_spill] sm:$0xff] %v24422_v17  ;;  %v970_v61 = vsel %vm19492_vm12, %v934_v41, %v19403_v21  ;;  %v1670_v0 = vld [vmem:[#allocation2 + $0xd1] sm:$0xff]  ;;  %v1671_v45 = vld [vmem:[#allocation2 + $0xd9] sm:$0xff]  ;;  %v24424_v21 = vmov 0  ;;  %v1450_v49 = vmax.f32 %v1392_v58, 0.0 }
 0x13b   : > { %1590 = vst.msk [vmem:[#allocation2 + $0xe3] sm:$0xff] %vm24411_vm6, %v1554_v55  ;;  %v24413_v11 = vsel %vm19512_vm9, 4294967295, %v24412_v11  ;;  %vm24415_vm3 = vmmov %vm24411_vm6  ;;  %v1556_v8 = vsel %vm19512_vm9, %v1448_v7, 0.0  ;;  %v19554_v51 = vld [vmem:[#allocation2 + $0xd2] sm:$0xff]  ;;  %v19565_v52 = vld [vmem:[#allocation2 + $0xda] sm:$0xff]  ;;  %v1559_v60 = vsel %vm19542_vm11, %v1451_v13, 0.0  ;;  %v1407_v30 = vadd.f32 %v15950_v44, %v18682_v2 }
 0x13c   : > { %24414 = vst [vmem:[#allocation34_spill] sm:$0xff] %v24413_v11  ;;  %16006 = vmatprep.mubr.msk.f32.mxu1 %vm24415_vm3, %v1668_v42  ;;  %vm24416_vm13 = vmmov %vm24415_vm3  ;;  %v24434_v42 = vmov 0  ;;  %v19928_v17 = vld [vmem:[%s23960_s3 + $0x1f8] sm:$0xff]  ;;  %v19933_v11 = vld [vmem:[#allocation2 + $0xa4] sm:$0xff] }
 0x13d   : > { %16146 = vmatprep.mubr.msk.f32.mxu0 %vm24416_vm13, %v19509_v6  ;;  %vm24417_vm6 = vmmov %vm24415_vm3  ;;  %vm864_vm13 = vcmp.lt.s32.totalorder %v19468_v12, 0 }
 0x13e   : > { %16007 = vmatmul.mubr.msk.f32.gmra.mxu1 %vm24417_vm6, %v1669_v38  ;;  %16147 = vmatmul.mubr.msk.f32.gmra.mxu0 %vm24415_vm3, %v19519_v47  ;;  %vm19536_vm15 = vmand %vm861_vm4, %vm825_vm8  ;;  %vm19558_vm6 = vcmp.lt.s32.totalorder %v967_v10, 16  ;;  %vm24429_vm4 = vcmp.ne.s32.totalorder %v19468_v12, 0  ;;  %vm19586_vm8 = vcmp.lt.s32.totalorder %v970_v61, 16  ;;  %v1401_v38 = vpop.f32.mrf.mxu0  ;;  %v24442_v61 = vmov 0 }
 0x13f   : > { %vm24420_vm0 = vmmov %vm24415_vm3  ;;  %v24425_v21 = vsel %vm19558_vm6, 4294967295, %v24424_v21  ;;  %v969_v41 = vsel %vm19536_vm15, %v933_v31, %v19436_v43  ;;  %v935_v43 = vadd.s32 18, %v19500_v59  ;;  %v24435_v42 = vsel %vm19586_vm8, 4294967295, %v24434_v42 }
 0x140   : > { %1593 = vst.msk [vmem:[#allocation2 + $0xfb] sm:$0xff] %vm24420_vm0, %v1557_v24  ;;  %1592 = vst.msk [vmem:[#allocation2 + $0xf3] sm:$0xff] %vm24420_vm0, %v1556_v8  ;;  %v1558_v10 = vsel %vm19558_vm6, %v1450_v49, 0.0  ;;  %v1453_v31 = vmax.f32 %v1407_v30, 0.0  ;;  %v1402_v24 = vadd.f32 %v18682_v2, %v1401_v38  ;;  %v15953_v8 = vpop.f32.mrf.mxu0 }
 0x141   : > { %24426 = vst [vmem:[#allocation36_spill] sm:$0xff] %v24425_v21  ;;  %vm24427_vm12 = vmmov %vm24420_vm0  ;;  %v1417_v58 = vadd.f32 %v15953_v8, %v18682_v2  ;;  %v19915_v21 = vld [vmem:[#allocation2 + $0x94] sm:$0xff] }
 0x142   : > { %16009 = vmatprep.mubr.msk.f32.mxu1 %vm24427_vm12, %v1670_v0  ;;  %vm24428_vm3 = vmmov %vm24420_vm0  ;;  %24436 = vst [vmem:[#allocation37_spill] sm:$0xff] %v24435_v42  ;;  %v1672_v39 = vld [vmem:[#allocation2 + $0xe1] sm:$0xff]  ;;  %v1673_v9 = vld [vmem:[#allocation2 + $0xe9] sm:$0xff]  ;;  %v1411_v44 = vpop.f32.mrf.mxu0 }
 0x143   : > { %16149 = vmatprep.mubr.msk.f32.mxu0 %vm24428_vm3, %v19554_v51  ;;  %vm19574_vm0 = vmand %vm864_vm13, %vm24429_vm4  ;;  %vm24437_vm13 = vcmp.ne.s32.totalorder %v19500_v59, 0  ;;  %vm24438_vm4 = vcmp.lt.s32.totalorder %v19500_v59, 0  ;;  %v19604_v15 = vld [vmem:[#allocation2 + $0xe2] sm:$0xff]  ;;  %v19614_v13 = vld [vmem:[#allocation2 + $0xea] sm:$0xff]  ;;  %v1455_v55 = vmax.f32 %v1417_v58, 0.0 }
 0x144   : > { %vm24432_vm12 = vmmov %vm24428_vm3  ;;  %16150 = vmatmul.mubr.msk.f32.gmra.mxu0 %vm24428_vm3, %v19565_v52  ;;  %v972_v7 = vsel %vm19574_vm0, %v936_v50, %v19468_v12  ;;  %v1561_v12 = vsel %vm19586_vm8, %v1453_v31, 0.0  ;;  %v1452_v50 = vmax.f32 %v1402_v24, 0.0  ;;  %v13890_v42 = vld [vmem:[%s23960_s3 + $0x208] sm:$0xff] }
 0x145   : > { %16010 = vmatmul.mubr.msk.f32.gmra.mxu1 %vm24432_vm12, %v1671_v45  ;;  %vm24433_vm15 = vmmov %vm24428_vm3  ;;  %v24450_v45 = vmov 0 }
 0x146   : > { %1595 = vst.msk [vmem:[#allocation2 + $0x10b] sm:$0xff] %vm24433_vm15, %v1559_v60  ;;  %vm19594_vm11 = vmand %vm24438_vm4, %vm24437_vm13  ;;  %v1412_v60 = vadd.f32 %v18682_v2, %v1411_v44  ;;  %v1601_v44 = vld [vmem:[#allocation2 + $0x8] sm:$0xff] }
 0x147   : > { %vm24441_vm12 = vmmov %vm24428_vm3  ;;  %vm19607_vm3 = vcmp.lt.s32.totalorder %v969_v41, 16  ;;  %v971_v0 = vsel %vm19594_vm11, %v935_v43, %v19500_v59  ;;  %v1674_v49 = vld [vmem:[#allocation2 + $0xf1] sm:$0xff]  ;;  %v1675_v38 = vld [vmem:[#allocation2 + $0xf9] sm:$0xff]  ;;  %v24454_v59 = vmov 0 }
 0x148   : > { %1594 = vst.msk [vmem:[#allocation2 + $0x103] sm:$0xff] %vm24441_vm12, %v1558_v10  ;;  %v24443_v61 = vsel %vm19607_vm3, 4294967295, %v24442_v61  ;;  %vm24445_vm15 = vmmov %vm24441_vm12  ;;  %v1560_v41 = vsel %vm19607_vm3, %v1452_v50, 0.0  ;;  %v19633_v30 = vld [vmem:[#allocation2 + $0xf2] sm:$0xff]  ;;  %vm19636_vm11 = vcmp.lt.s32.totalorder %v971_v0, 16  ;;  %v19643_v43 = vld [vmem:[#allocation2 + $0xfa] sm:$0xff] }
 0x149   : > { %24444 = vst [vmem:[#allocation38_spill] sm:$0xff] %v24443_v61  ;;  %16012 = vmatprep.mubr.msk.f32.mxu1 %vm24445_vm15, %v1672_v39  ;;  %vm24446_vm13 = vmmov %vm24441_vm12  ;;  %vm19626_vm15 = vcmp.lt.s32.totalorder %v972_v7, 16  ;;  %v24455_v59 = vsel %vm19636_vm11, 4294967295, %v24454_v59  ;;  %v1454_v18 = vmax.f32 %v1412_v60, 0.0  ;;  %v3263_v0 = vld [vmem:[#allocation2 + $0x13] sm:$0xff]  ;;  %v19899_v61 = vld [vmem:[#allocation2 + $0x84] sm:$0xff] }
 0x14a   : > { %16152 = vmatprep.mubr.msk.f32.mxu0 %vm24446_vm13, %v19604_v15  ;;  %vm24447_vm0 = vmmov %vm24441_vm12  ;;  %v24451_v45 = vsel %vm19626_vm15, 4294967295, %v24450_v45  ;;  %24456 = vst [vmem:[#allocation40_spill] sm:$0xff] %v24455_v59  ;;  %v1563_v2 = vsel %vm19626_vm15, %v1455_v55, 0.0  ;;  %v13675_v55 = vld [vmem:[%s23960_s3 + $0xf0] sm:$0xff] }
 0x14b   : > { %16013 = vmatmul.mubr.msk.f32.gmra.mxu1 %vm24447_vm0, %v1673_v9  ;;  %vm24448_vm4 = vmmov %vm24447_vm0  ;;  %24452 = vst [vmem:[#allocation39_spill] sm:$0xff] %v24451_v45  ;;  %v1562_v10 = vsel %vm19636_vm11, %v1454_v18, 0.0  ;;  %v1600_v9 = vld [vmem:[#allocation2] sm:$0xff]  ;;  %v1602_v60 = vld [vmem:[#allocation2 + $0x10] sm:$0xff] }
 0x14c   : > { %16153 = vmatmul.mubr.msk.f32.gmra.mxu0 %vm24448_vm4, %v19614_v13  ;;  %vm24449_vm12 = vmmov %vm24447_vm0  ;;  %16015 = vmatprep.mubr.msk.f32.mxu1 %vm24447_vm0, %v1674_v49  ;;  %1598 = vst.msk [vmem:[#allocation2 + $0x123] sm:$0xff] %vm24447_vm0, %v1562_v10  ;;  %v17854_v49 = vld [vmem:[%s23960_s3 + $0xf8] sm:$0xff]  ;;  %v3266_v10 = vld [vmem:[#allocation2 + $0x2b] sm:$0xff] }
 0x14d   : > { %1597 = vst.msk [vmem:[#allocation2 + $0x11b] sm:$0xff] %vm24449_vm12, %v1561_v12  ;;  %vm24453_vm13 = vmmov %vm24447_vm0  ;;  %v1603_v18 = vld [vmem:[#allocation2 + $0x18] sm:$0xff]  ;;  %v13891_v45 = vld [vmem:[%s23960_s3 + $0x210] sm:$0xff] }
 0x14e   : > { %1596 = vst.msk [vmem:[#allocation2 + $0x113] sm:$0xff] %vm24453_vm13, %v1560_v41  ;;  %vm24457_vm4 = vmmov %vm24447_vm0  ;;  %v3264_v41 = vld [vmem:[#allocation2 + $0x1b] sm:$0xff]  ;;  %v19988_v33 = vld [vmem:[#allocation2 + $0xec] sm:$0xff] }
 0x14f   : > { %16155 = vmatprep.mubr.msk.f32.mxu0 %vm24457_vm4, %v19633_v30  ;;  %vm24458_vm12 = vmmov %vm24447_vm0  ;;  %v1676_v31 = vld [vmem:[#allocation2 + $0x101] sm:$0xff]  ;;  %v1677_v7 = vld [vmem:[#allocation2 + $0x109] sm:$0xff] }
 0x150   : > { %16016 = vmatmul.mubr.msk.f32.gmra.mxu1 %vm24458_vm12, %v1675_v38  ;;  %vm24459_vm3 = vmmov %vm24447_vm0  ;;  %v19653_v24 = vld [vmem:[#allocation2 + $0x102] sm:$0xff]  ;;  %v19659_v39 = vld [vmem:[#allocation2 + $0x10a] sm:$0xff] }
 0x151   : > { %16156 = vmatmul.mubr.msk.f32.gmra.mxu0 %vm24459_vm3, %v19643_v43  ;;  %vm24460_vm13 = vmmov %vm24447_vm0  ;;  %v3265_v38 = vld [vmem:[#allocation2 + $0x23] sm:$0xff]  ;;  %v19883_v59 = vld [vmem:[#allocation2 + $0x74] sm:$0xff] }
 0x152   : > { %1599 = vst.msk [vmem:[#allocation2 + $0x12b] sm:$0xff] %vm24460_vm13, %v1563_v2  ;;  %vm24461_vm4 = vmmov %vm24447_vm0  ;;  %v13674_v2 = vld [vmem:[%s23960_s3 + $0xe8] sm:$0xff]  ;;  %v20004_v26 = vld [vmem:[#allocation2 + $0xfc] sm:$0xff] }
 0x153   : > { %16018 = vmatprep.mubr.msk.f32.mxu1 %vm24461_vm4, %v1676_v31  ;;  %vm24462_vm15 = vmmov %vm24447_vm0  ;;  %v13807_v31 = vld [vmem:[%s23960_s3 + $0x1b0] sm:$0xff]  ;;  %v20014_v1 = vld [vmem:[#allocation2 + $0x104] sm:$0xff] }
 0x154   : > { %16158 = vmatprep.mubr.msk.f32.mxu0 %vm24462_vm15, %v19653_v24  ;;  %vm24463_vm12 = vmmov %vm24447_vm0  ;;  %v20046_v62 = vld [vmem:[#allocation2 + $0x11c] sm:$0xff] }
 0x155   : > { %16019 = vmatmul.mubr.msk.f32.gmra.mxu1 %vm24463_vm12, %v1677_v7  ;;  %vm24464_vm3 = vmmov %vm24447_vm0  ;;  %v1678_v8 = vld [vmem:[#allocation2 + $0x111] sm:$0xff]  ;;  %v1679_v50 = vld [vmem:[#allocation2 + $0x119] sm:$0xff] }
 0x156   : > { %16159 = vmatmul.mubr.msk.f32.gmra.mxu0 %vm24464_vm3, %v19659_v39  ;;  %v19664_v12 = vld [vmem:[#allocation2 + $0x112] sm:$0xff]  ;;  %vm24465_vm13 = vmmov %vm24447_vm0  ;;  %v19669_v58 = vld [vmem:[#allocation2 + $0x11a] sm:$0xff] }
 0x157   : > { %16021 = vmatprep.mubr.msk.f32.mxu1 %vm24465_vm13, %v1678_v8  ;;  %16161 = vmatprep.mubr.msk.f32.mxu0 %vm24447_vm0, %v19664_v12  ;;  %vm24466_vm15 = vmmov %vm24447_vm0  ;;  %v1604_v7 = vld [vmem:[#allocation2 + $0x20] sm:$0xff]  ;;  %v20024_v37 = vld [vmem:[#allocation2 + $0x10c] sm:$0xff] }
 0x158   : > { %vm24467_vm4 = vmmov %vm24447_vm0  ;;  %v13673_v8 = vld [vmem:[%s23960_s3 + $0xe0] sm:$0xff] }
 0x159   : > { %16022 = vmatmul.mubr.msk.f32.gmra.mxu1 %vm24466_vm15, %v1679_v50  ;;  %vm24468_vm12 = vmmov %vm24447_vm0  ;;  %v3268_v50 = vld [vmem:[#allocation2 + $0x3b] sm:$0xff]  ;;  %v20044_v53 = vld [vmem:[#allocation2 + $0x124] sm:$0xff] }
 0x15a   : > { %16162 = vmatmul.mubr.msk.f32.gmra.mxu0 %vm24467_vm4, %v19669_v58  ;;  %vm24469_vm3 = vmmov %vm24447_vm0  ;;  %v2864_v35 = vld [vmem:[#allocation2 + $0x12a] sm:$0xff] }
 0x15b   : > { %16250 = vmatprep.mubr.msk.f32.mxu0 %vm24468_vm12, %v3263_v0  ;;  %16040 = vmatprep.mubr.msk.f32.mxu1 %vm24469_vm3, %v1600_v9  ;;  %vm24470_vm13 = vmmov %vm24447_vm0  ;;  %v3267_v9 = vld [vmem:[#allocation2 + $0x33] sm:$0xff]  ;;  %v13806_v0 = vld [vmem:[%s23960_s3 + $0x1a8] sm:$0xff] }
 0x15c   : > { %vm24471_vm15 = vmmov %vm24447_vm0 }
 0x15d   : > { %16041 = vmatmul.mubr.msk.f32.vlgmr.msra.gmra.mxu1 %vm24470_vm13, %v1601_v44  ;;  %vm24472_vm4 = vmmov %vm24447_vm0  ;;  %v1606_v44 = vld [vmem:[#allocation2 + $0x30] sm:$0xff] }
 0x15e   : > { %16251 = vmatmul.mubr.msk.f32.vlgmr.msra.gmra.mxu0 %vm24447_vm0, %v3264_v41  ;;  %16165 = vmatpush3.msra.mxu1 %v17854_v49  ;;  %vm24473_vm12 = vmmov %vm24447_vm0  ;;  %v3269_v41 = vld [vmem:[#allocation2 + $0x43] sm:$0xff]  ;;  %v3270_v49 = vld [vmem:[#allocation2 + $0x4b] sm:$0xff] }
 0x15f   : > { %16043 = vmatprep.mubr.msk.f32.mxu1 %vm24471_vm15, %v1602_v60  ;;  %16253 = vmatprep.mubr.msk.f32.mxu0 %vm24472_vm4, %v3265_v38  ;;  %vm24474_vm3 = vmmov %vm24447_vm0  ;;  %v1607_v60 = vld [vmem:[#allocation2 + $0x38] sm:$0xff]  ;;  %v13805_v38 = vld [vmem:[%s23960_s3 + $0x1a0] sm:$0xff] }
 0x160   : > { %16166 = vmatprep.subr.mxu1 %v13675_v55  ;;  %16375 = vmatpush3.msra.mxu0 %v18902_v14  ;;  %vm24475_vm13 = vmmov %vm24447_vm0  ;;  %v1605_v14 = vld [vmem:[#allocation2 + $0x28] sm:$0xff] }
 0x161   : > { %16167 = vmatpush3.msra.mxu1 %v13675_v55  ;;  %16376 = vmatprep.subr.mxu0 %v13807_v31  ;;  %vm24476_vm15 = vmmov %vm24447_vm0  ;;  %v13672_v55 = vld [vmem:[%s23960_s3 + $0xd8] sm:$0xff] }
 0x162   : > { %16044 = vmatmul.mubr.msk.f32.gmra.mxu1 %vm24473_vm12, %v1603_v18  ;;  %16254 = vmatmul.mubr.msk.f32.gmra.mxu0 %vm24474_vm3, %v3266_v10  ;;  %vm24477_vm4 = vmmov %vm24447_vm0  ;;  %v3271_v18 = vld [vmem:[#allocation2 + $0x53] sm:$0xff] }
 0x163   : > { %16046 = vmatprep.mubr.msk.f32.mxu1 %vm24475_vm13, %v1604_v7  ;;  %16256 = vmatprep.mubr.msk.f32.mxu0 %vm24447_vm0, %v3267_v9  ;;  %vm24478_vm12 = vmmov %vm24447_vm0  ;;  %v13671_v10 = vld [vmem:[%s23960_s3 + $0xd0] sm:$0xff]  ;;  %v3272_v7 = vld [vmem:[#allocation2 + $0x5b] sm:$0xff] }
 0x164   : > { %16168 = vmatprep.subr.mxu1 %v13674_v2  ;;  %16377 = vmatpush3.msra.mxu0 %v13807_v31  ;;  %vm24479_vm3 = vmmov %vm24447_vm0  ;;  %v1609_v31 = vld [vmem:[#allocation2 + $0x48] sm:$0xff]  ;;  %v13804_v9 = vld [vmem:[%s23960_s3 + $0x198] sm:$0xff] }
 0x165   : > { %16169 = vmatpush3.msra.mxu1 %v13674_v2  ;;  %16378 = vmatprep.subr.mxu0 %v13806_v0  ;;  %vm24480_vm13 = vmmov %vm24447_vm0  ;;  %v1608_v2 = vld [vmem:[#allocation2 + $0x40] sm:$0xff] }
 0x166   : > { %16047 = vmatmul.mubr.msk.f32.gmra.mxu1 %vm24476_vm15, %v1605_v14  ;;  %16257 = vmatmul.mubr.msk.f32.gmra.mxu0 %vm24477_vm4, %v3268_v50  ;;  %vm24481_vm15 = vmmov %vm24447_vm0  ;;  %v3273_v14 = vld [vmem:[#allocation2 + $0x63] sm:$0xff] }
 0x167   : > { %16049 = vmatprep.mubr.msk.f32.mxu1 %vm24478_vm12, %v1606_v44  ;;  %16259 = vmatprep.mubr.msk.f32.mxu0 %vm24479_vm3, %v3269_v41  ;;  %vm24482_vm4 = vmmov %vm24447_vm0  ;;  %v13670_v50 = vld [vmem:[%s23960_s3 + $0xc8] sm:$0xff]  ;;  %v13803_v41 = vld [vmem:[%s23960_s3 + $0x190] sm:$0xff] }
 0x168   : > { %16170 = vmatprep.subr.mxu1 %v13673_v8  ;;  %16379 = vmatpush3.msra.mxu0 %v13806_v0  ;;  %vm24483_vm12 = vmmov %vm24447_vm0  ;;  %v1611_v0 = vld [vmem:[#allocation2 + $0x58] sm:$0xff]  ;;  %v3274_v44 = vld [vmem:[#allocation2 + $0x6b] sm:$0xff] }
 0x169   : > { %16171 = vmatpush3.msra.mxu1 %v13673_v8  ;;  %16380 = vmatprep.subr.mxu0 %v13805_v38  ;;  %vm24484_vm3 = vmmov %vm24447_vm0  ;;  %v1610_v8 = vld [vmem:[#allocation2 + $0x50] sm:$0xff] }
 0x16a   : > { %16050 = vmatmul.mubr.msk.f32.gmra.mxu1 %vm24480_vm13, %v1607_v60  ;;  %16260 = vmatmul.mubr.msk.f32.gmra.mxu0 %vm24447_vm0, %v3270_v49  ;;  %vm24485_vm13 = vmmov %vm24447_vm0  ;;  %v3275_v60 = vld [vmem:[#allocation2 + $0x73] sm:$0xff]  ;;  %v13669_v49 = vld [vmem:[%s23960_s3 + $0xc0] sm:$0xff] }
 0x16b   : > { %16052 = vmatprep.mubr.msk.f32.mxu1 %vm24481_vm15, %v1608_v2  ;;  %16262 = vmatprep.mubr.msk.f32.mxu0 %vm24482_vm4, %v3271_v18  ;;  %vm24486_vm15 = vmmov %vm24447_vm0  ;;  %v3276_v2 = vld [vmem:[#allocation2 + $0x7b] sm:$0xff]  ;;  %v13802_v18 = vld [vmem:[%s23960_s3 + $0x188] sm:$0xff] }
 0x16c   : > { %16172 = vmatprep.subr.mxu1 %v13672_v55  ;;  %16381 = vmatpush3.msra.mxu0 %v13805_v38  ;;  %vm24487_vm4 = vmmov %vm24447_vm0  ;;  %v1613_v38 = vld [vmem:[#allocation2 + $0x68] sm:$0xff] }
 0x16d   : > { %16173 = vmatpush3.msra.mxu1 %v13672_v55  ;;  %16382 = vmatprep.subr.mxu0 %v13804_v9  ;;  %v1612_v55 = vld [vmem:[#allocation2 + $0x60] sm:$0xff]  ;;  %vm24501_vm11 = vmmov %vm24447_vm0 }
 0x16e   : > { %16053 = vmatmul.mubr.msk.f32.gmra.mxu1 %vm24483_vm12, %v1609_v31  ;;  %16263 = vmatmul.mubr.msk.f32.gmra.mxu0 %vm24484_vm3, %v3272_v7  ;;  %vm24488_vm12 = vmmov %vm24447_vm0  ;;  %v3277_v31 = vld [vmem:[#allocation2 + $0x83] sm:$0xff] }
 0x16f   : > { %16055 = vmatprep.mubr.msk.f32.mxu1 %vm24485_vm13, %v1610_v8  ;;  %16265 = vmatprep.mubr.msk.f32.mxu0 %vm24447_vm0, %v3273_v14  ;;  %vm24489_vm3 = vmmov %vm24447_vm0  ;;  %v13801_v7 = vld [vmem:[%s23960_s3 + $0x180] sm:$0xff]  ;;  %v3278_v8 = vld [vmem:[#allocation2 + $0x8b] sm:$0xff] }
 0x170   : > { %16174 = vmatprep.subr.mxu1 %v13671_v10  ;;  %16383 = vmatpush3.msra.mxu0 %v13804_v9  ;;  %vm24490_vm13 = vmmov %vm24447_vm0  ;;  %v1615_v9 = vld [vmem:[#allocation2 + $0x78] sm:$0xff] }
 0x171   : > { %16175 = vmatpush3.msra.mxu1 %v13671_v10  ;;  %16384 = vmatprep.subr.mxu0 %v13803_v41  ;;  %v1614_v10 = vld [vmem:[#allocation2 + $0x70] sm:$0xff]  ;;  %v19753_v14 = vld [vmem:[%s23960_s3 + $0x178] sm:$0xff]  ;;  %vm24506_vm8 = vmmov %vm24447_vm0 }
 0x172   : > { %16056 = vmatmul.mubr.msk.f32.gmra.mxu1 %vm24486_vm15, %v1611_v0  ;;  %16266 = vmatmul.mubr.msk.f32.gmra.mxu0 %vm24487_vm4, %v3274_v44  ;;  %vm24491_vm15 = vmmov %vm24447_vm0  ;;  %v3279_v0 = vld [vmem:[#allocation2 + $0x93] sm:$0xff]  ;;  %v1617_v44 = vld [vmem:[#allocation2 + $0x88] sm:$0xff] }
 0x173   : > { %16058 = vmatprep.mubr.msk.f32.mxu1 %vm24488_vm12, %v1612_v55  ;;  %16268 = vmatprep.mubr.msk.f32.mxu0 %vm24489_vm3, %v3275_v60  ;;  %vm24492_vm4 = vmmov %vm24447_vm0  ;;  %v19763_v55 = vld [vmem:[%s23960_s3 + $0x238] sm:$0xff]  ;;  %v1618_v60 = vld [vmem:[#allocation2 + $0x90] sm:$0xff] }
 0x174   : > { %16176 = vmatprep.subr.mxu1 %v13670_v50  ;;  %16385 = vmatpush3.msra.mxu0 %v13803_v41  ;;  %vm24493_vm12 = vmmov %vm24447_vm0  ;;  %v3280_v41 = vld [vmem:[#allocation2 + $0x9b] sm:$0xff] }
 0x175   : > { %16177 = vmatpush3.msra.mxu1 %v13670_v50  ;;  %16386 = vmatprep.subr.mxu0 %v13802_v18  ;;  %vm24494_vm3 = vmmov %vm24447_vm0  ;;  %v1616_v50 = vld [vmem:[#allocation2 + $0x80] sm:$0xff] }
 0x176   : > { %16059 = vmatmul.mubr.msk.f32.gmra.mxu1 %vm24490_vm13, %v1613_v38  ;;  %16269 = vmatmul.mubr.msk.f32.gmra.mxu0 %vm24447_vm0, %v3276_v2  ;;  %vm24495_vm13 = vmmov %vm24447_vm0  ;;  %v1619_v38 = vld [vmem:[#allocation2 + $0x98] sm:$0xff]  ;;  %v3282_v2 = vld [vmem:[#allocation2 + $0xab] sm:$0xff] }
 0x177   : > { %16061 = vmatprep.mubr.msk.f32.mxu1 %vm24491_vm15, %v1614_v10  ;;  %16271 = vmatprep.mubr.msk.f32.mxu0 %vm24492_vm4, %v3277_v31  ;;  %vm24496_vm15 = vmmov %vm24447_vm0  ;;  %v3283_v10 = vld [vmem:[#allocation2 + $0xb3] sm:$0xff]  ;;  %v1621_v31 = vld [vmem:[#allocation2 + $0xa8] sm:$0xff] }
 0x178   : > { %16178 = vmatprep.subr.mxu1 %v13669_v49  ;;  %16387 = vmatpush3.msra.mxu0 %v13802_v18  ;;  %vm24497_vm4 = vmmov %vm24447_vm0  ;;  %v1620_v18 = vld [vmem:[#allocation2 + $0xa0] sm:$0xff] }
 0x179   : > { %16179 = vmatpush3.msra.mxu1 %v13669_v49  ;;  %16388 = vmatprep.subr.mxu0 %v13801_v7  ;;  %v3281_v49 = vld [vmem:[#allocation2 + $0xa3] sm:$0xff] }
 0x17a   : > { %16062 = vmatmul.mubr.msk.f32.gmra.mxu1 %vm24493_vm12, %v1615_v9  ;;  %16272 = vmatmul.mubr.msk.f32.gmra.mxu0 %vm24494_vm3, %v3278_v8  ;;  %vm24498_vm12 = vmmov %vm24447_vm0  ;;  %v1622_v9 = vld [vmem:[#allocation2 + $0xb0] sm:$0xff]  ;;  %v3285_v8 = vld [vmem:[#allocation2 + $0xc3] sm:$0xff] }
 0x17b   : > { %16064 = vmatprep.mubr.msk.f32.mxu1 %vm24495_vm13, %v1616_v50  ;;  %16274 = vmatprep.mubr.msk.f32.mxu0 %vm24447_vm0, %v3279_v0  ;;  %vm24499_vm3 = vmmov %vm24447_vm0  ;;  %v1623_v50 = vld [vmem:[#allocation2 + $0xb8] sm:$0xff]  ;;  %v3286_v0 = vld [vmem:[#allocation2 + $0xcb] sm:$0xff] }
 0x17c   : > { %16304 = vmatprep.subr.mxu1 %v19753_v14  ;;  %16389 = vmatpush3.msra.mxu0 %v13801_v7  ;;  %vm24500_vm13 = vmmov %vm24447_vm0  ;;  %v3284_v7 = vld [vmem:[#allocation2 + $0xbb] sm:$0xff] }
 0x17d   : > { %16514 = vmatprep.subr.mxu0 %v19763_v55 }
 0x17e   : > { %16065 = vmatmul.mubr.msk.f32.gmra.mxu1 %vm24496_vm15, %v1617_v44  ;;  %16275 = vmatmul.mubr.msk.f32.gmra.mxu0 %vm24497_vm4, %v3280_v41  ;;  %vm24502_vm15 = vmmov %vm24447_vm0  ;;  %v1624_v44 = vld [vmem:[#allocation2 + $0xc0] sm:$0xff]  ;;  %v3287_v41 = vld [vmem:[#allocation2 + $0xd3] sm:$0xff] }
 0x17f   : > { %16067 = vmatprep.mubr.msk.f32.mxu1 %vm24498_vm12, %v1618_v60  ;;  %16277 = vmatprep.mubr.msk.f32.mxu0 %vm24499_vm3, %v3281_v49  ;;  %vm24503_vm4 = vmmov %vm24447_vm0  ;;  %v1625_v60 = vld [vmem:[#allocation2 + $0xc8] sm:$0xff]  ;;  %v3288_v49 = vld [vmem:[#allocation2 + $0xdb] sm:$0xff] }
 0x180   : > { %vm24504_vm12 = vmmov %vm24447_vm0 }
 0x181   : > { %vm24505_vm3 = vmmov %vm24447_vm0 }
 0x182   : > { %16068 = vmatmul.mubr.msk.f32.gmra.mxu1 %vm24500_vm13, %v1619_v38  ;;  %16278 = vmatmul.mubr.msk.f32.gmra.mxu0 %vm24447_vm0, %v3282_v2  ;;  %vm24507_vm13 = vmmov %vm24447_vm0  ;;  %v1626_v38 = vld [vmem:[#allocation2 + $0xd0] sm:$0xff]  ;;  %v3289_v2 = vld [vmem:[#allocation2 + $0xe3] sm:$0xff] }
 0x183   : > { %16070 = vmatprep.mubr.msk.f32.mxu1 %vm24501_vm11, %v1620_v18  ;;  %16280 = vmatprep.mubr.msk.f32.mxu0 %vm24502_vm15, %v3283_v10  ;;  %vm24508_vm11 = vmmov %vm24447_vm0  ;;  %v1627_v18 = vld [vmem:[#allocation2 + $0xd8] sm:$0xff]  ;;  %v3290_v10 = vld [vmem:[#allocation2 + $0xeb] sm:$0xff] }
 0x184   : > { %vm24509_vm15 = vmmov %vm24447_vm0 }
 0x186   : > { %16071 = vmatmul.mubr.msk.f32.gmra.mxu1 %vm24503_vm4, %v1621_v31  ;;  %16281 = vmatmul.mubr.msk.f32.gmra.mxu0 %vm24504_vm12, %v3284_v7  ;;  %vm24510_vm4 = vmmov %vm24447_vm0  ;;  %v1628_v31 = vld [vmem:[#allocation2 + $0xe0] sm:$0xff]  ;;  %v3291_v7 = vld [vmem:[#allocation2 + $0xf3] sm:$0xff] }
 0x187   : > { %16073 = vmatprep.mubr.msk.f32.mxu1 %vm24505_vm3, %v1622_v9  ;;  %16283 = vmatprep.mubr.msk.f32.mxu0 %vm24506_vm8, %v3285_v8  ;;  %vm24511_vm12 = vmmov %vm24447_vm0  ;;  %v1629_v9 = vld [vmem:[#allocation2 + $0xe8] sm:$0xff]  ;;  %v3292_v8 = vld [vmem:[#allocation2 + $0xfb] sm:$0xff] }
 0x188   : > { %vm24512_vm8 = vmmov %vm24447_vm0 }
 0x189   : > { %vm24513_vm3 = vmmov %vm24447_vm0 }
 0x18a   : > { %16074 = vmatmul.mubr.msk.f32.gmra.mxu1 %vm24507_vm13, %v1623_v50  ;;  %16284 = vmatmul.mubr.msk.f32.gmra.mxu0 %vm24447_vm0, %v3286_v0  ;;  %vm24514_vm13 = vmmov %vm24447_vm0  ;;  %v1630_v50 = vld [vmem:[#allocation2 + $0xf0] sm:$0xff]  ;;  %v3293_v0 = vld [vmem:[#allocation2 + $0x103] sm:$0xff] }
 0x18b   : > { %16076 = vmatprep.mubr.msk.f32.mxu1 %vm24508_vm11, %v1624_v44  ;;  %16286 = vmatprep.mubr.msk.f32.mxu0 %vm24509_vm15, %v3287_v41  ;;  %vm24515_vm11 = vmmov %vm24447_vm0  ;;  %v1631_v44 = vld [vmem:[#allocation2 + $0xf8] sm:$0xff]  ;;  %v3294_v41 = vld [vmem:[#allocation2 + $0x10b] sm:$0xff] }
 0x18c   : > { %vm24516_vm15 = vmmov %vm24447_vm0 }
 0x18e   : > { %16077 = vmatmul.mubr.msk.f32.gmra.mxu1 %vm24510_vm4, %v1625_v60  ;;  %16287 = vmatmul.mubr.msk.f32.gmra.mxu0 %vm24511_vm12, %v3288_v49  ;;  %vm24517_vm4 = vmmov %vm24447_vm0  ;;  %v1632_v60 = vld [vmem:[#allocation2 + $0x100] sm:$0xff]  ;;  %v3295_v49 = vld [vmem:[#allocation2 + $0x113] sm:$0xff] }
 0x18f   : > { %16079 = vmatprep.mubr.msk.f32.mxu1 %vm24512_vm8, %v1626_v38  ;;  %16289 = vmatprep.mubr.msk.f32.mxu0 %vm24513_vm3, %v3289_v2  ;;  %vm24518_vm12 = vmmov %vm24447_vm0  ;;  %v3297_v38 = vld [vmem:[#allocation2 + $0x123] sm:$0xff] }
 0x190   : > { %vm24519_vm8 = vmmov %vm24447_vm0  ;;  %v1633_v2 = vld [vmem:[#allocation2 + $0x108] sm:$0xff] }
 0x191   : > { %vm24520_vm3 = vmmov %vm24447_vm0 }
 0x192   : > { %16080 = vmatmul.mubr.msk.f32.gmra.mxu1 %vm24514_vm13, %v1627_v18  ;;  %16290 = vmatmul.mubr.msk.f32.gmra.mxu0 %vm24447_vm0, %v3290_v10  ;;  %vm24521_vm13 = vmmov %vm24447_vm0  ;;  %v3296_v18 = vld [vmem:[#allocation2 + $0x11b] sm:$0xff]  ;;  %v1634_v10 = vld [vmem:[#allocation2 + $0x110] sm:$0xff] }
 0x193   : > { %16082 = vmatprep.mubr.msk.f32.mxu1 %vm24515_vm11, %v1628_v31  ;;  %16292 = vmatprep.mubr.msk.f32.mxu0 %vm24516_vm15, %v3291_v7  ;;  %vm24522_vm11 = vmmov %vm24447_vm0  ;;  %v3298_v31 = vld [vmem:[#allocation2 + $0x12b] sm:$0xff]  ;;  %v1635_v7 = vld [vmem:[#allocation2 + $0x118] sm:$0xff] }
 0x194   : > { %vm24523_vm15 = vmmov %vm24447_vm0 }
 0x196   : > { %16083 = vmatmul.mubr.msk.f32.gmra.mxu1 %vm24517_vm4, %v1629_v9  ;;  %16293 = vmatmul.mubr.msk.f32.gmra.mxu0 %vm24518_vm12, %v3292_v8  ;;  %vm24524_vm4 = vmmov %vm24447_vm0  ;;  %v2829_v9 = vld [vmem:[#allocation2 + $0x12] sm:$0xff]  ;;  %v19804_v8 = vld [vmem:[#allocation2 + $0x24] sm:$0xff] }
 0x197   : > { %16085 = vmatprep.mubr.msk.f32.mxu1 %vm24519_vm8, %v1630_v50  ;;  %16295 = vmatprep.mubr.msk.f32.mxu0 %vm24520_vm3, %v3293_v0  ;;  %vm24525_vm12 = vmmov %vm24447_vm0  ;;  %v2830_v50 = vld [vmem:[#allocation2 + $0x1a] sm:$0xff]  ;;  %v19809_v0 = vld [vmem:[#allocation2 + $0x2c] sm:$0xff] }
 0x198   : > { %vm24526_vm8 = vmmov %vm24447_vm0 }
 0x199   : > { %vm24527_vm3 = vmmov %vm24447_vm0 }
 0x19a   : > { %16086 = vmatmul.mubr.msk.f32.gmra.mxu1 %vm24521_vm13, %v1631_v44  ;;  %16296 = vmatmul.mubr.msk.f32.gmra.mxu0 %vm24447_vm0, %v3294_v41  ;;  %vm24528_vm13 = vmmov %vm24447_vm0  ;;  %v13763_v44 = vld [vmem:[%s23960_s3 + $0x170] sm:$0xff]  ;;  %v2831_v41 = vld [vmem:[#allocation2 + $0x22] sm:$0xff] }
 0x19b   : > { %16088 = vmatprep.mubr.msk.f32.mxu1 %vm24522_vm11, %v1632_v60  ;;  %16298 = vmatprep.mubr.msk.f32.mxu0 %vm24523_vm15, %v3295_v49  ;;  %vm24529_vm11 = vmmov %vm24447_vm0  ;;  %v19819_v60 = vld [vmem:[#allocation2 + $0x34] sm:$0xff]  ;;  %v2832_v49 = vld [vmem:[#allocation2 + $0x2a] sm:$0xff] }
 0x19c   : > { %vm24530_vm15 = vmmov %vm24447_vm0 }
 0x19e   : > { %16089 = vmatmul.mubr.msk.f32.gmra.mxu1 %vm24524_vm4, %v1633_v2  ;;  %16299 = vmatmul.mubr.msk.f32.gmra.mxu0 %vm24525_vm12, %v3296_v18  ;;  %vm24531_vm4 = vmmov %vm24447_vm0  ;;  %v13762_v2 = vld [vmem:[%s23960_s3 + $0x168] sm:$0xff]  ;;  %v2833_v18 = vld [vmem:[#allocation2 + $0x32] sm:$0xff] }
 0x19f   : > { %16091 = vmatprep.mubr.msk.f32.mxu1 %vm24526_vm8, %v1634_v10  ;;  %16301 = vmatprep.mubr.msk.f32.mxu0 %vm24527_vm3, %v3297_v38  ;;  %vm24532_vm12 = vmmov %vm24447_vm0  ;;  %v19823_v38 = vld [vmem:[#allocation2 + $0x3c] sm:$0xff]  ;;  %v19835_v10 = vld [vmem:[#allocation2 + $0x44] sm:$0xff] }
 0x1a0   : > { %vm24533_vm8 = vmmov %vm24447_vm0 }
 0x1a1   : > { %vm24534_vm3 = vmmov %vm24447_vm0 }
 0x1a2   : > { %16092 = vmatmul.mubr.msk.f32.gmra.mxu1 %vm24528_vm13, %v1635_v7  ;;  %16302 = vmatmul.mubr.msk.f32.gmra.mxu0 %vm24447_vm0, %v3298_v31  ;;  %vm24535_vm13 = vmmov %vm24447_vm0  ;;  %v2834_v31 = vld [vmem:[#allocation2 + $0x3a] sm:$0xff] }
 0x1a3   : > { %16180 = vmatprep.mubr.msk.f32.mxu1 %vm24529_vm11, %v2829_v9  ;;  %16390 = vmatprep.mubr.msk.f32.mxu0 %vm24530_vm15, %v19804_v8  ;;  %vm24536_vm11 = vmmov %vm24447_vm0  ;;  %v13761_v7 = vld [vmem:[%s23960_s3 + $0x160] sm:$0xff]  ;;  %v13894_v9 = vld [vmem:[%s23960_s3 + $0x228] sm:$0xff] }
 0x1a4   : > { %vm24537_vm15 = vmmov %vm24447_vm0 }
 0x1a6   : > { %16181 = vmatmul.mubr.msk.f32.vlgmr.msra.gmra.mxu1 %vm24531_vm4, %v2830_v50  ;;  %16391 = vmatmul.mubr.msk.f32.vlgmr.msra.gmra.mxu0 %vm24532_vm12, %v19809_v0  ;;  %vm24538_vm4 = vmmov %vm24447_vm0  ;;  %v2835_v50 = vld [vmem:[#allocation2 + $0x42] sm:$0xff] }
 0x1a7   : > { %16305 = vmatpush3.msra.mxu1 %v19753_v14  ;;  %16183 = vmatprep.mubr.msk.f32.mxu1 %vm24533_vm8, %v2831_v41  ;;  %v13895_v14 = vld [vmem:[%s23960_s3 + $0x230] sm:$0xff]  ;;  %vm24539_vm12 = vmmov %vm24447_vm0 }
 0x1a8   : > { %16393 = vmatprep.mubr.msk.f32.mxu0 %vm24534_vm3, %v19819_v60  ;;  %16306 = vmatprep.subr.mxu1 %v13763_v44  ;;  %vm24540_vm8 = vmmov %vm24447_vm0  ;;  %v2836_v41 = vld [vmem:[#allocation2 + $0x4a] sm:$0xff] }
 0x1a9   : > { %16307 = vmatpush3.msra.mxu1 %v13763_v44  ;;  %16515 = vmatpush3.msra.mxu0 %v19763_v55  ;;  %v19840_v55 = vld [vmem:[#allocation2 + $0x4c] sm:$0xff]  ;;  %v19851_v44 = vld [vmem:[#allocation2 + $0x54] sm:$0xff]  ;;  %vm24541_vm3 = vmmov %vm24447_vm0 }
 0x1aa   : > { %16184 = vmatmul.mubr.msk.f32.gmra.mxu1 %vm24535_vm13, %v2832_v49  ;;  %16394 = vmatmul.mubr.msk.f32.gmra.mxu0 %vm24447_vm0, %v19823_v38  ;;  %v19856_v49 = vld [vmem:[#allocation2 + $0x5c] sm:$0xff]  ;;  %vm24542_vm13 = vmmov %vm24447_vm0 }
 0x1ab   : > { %16186 = vmatprep.mubr.msk.f32.mxu1 %vm24536_vm11, %v2833_v18  ;;  %16396 = vmatprep.mubr.msk.f32.mxu0 %vm24537_vm15, %v19835_v10  ;;  %v2837_v18 = vld [vmem:[#allocation2 + $0x52] sm:$0xff]  ;;  %vm24543_vm11 = vmmov %vm24447_vm0 }
 0x1ac   : > { %16308 = vmatprep.subr.mxu1 %v13762_v2  ;;  %16516 = vmatprep.subr.mxu0 %v13895_v14  ;;  %vm24544_vm15 = vmmov %vm24447_vm0 }
 0x1ad   : > { %16309 = vmatpush3.msra.mxu1 %v13762_v2  ;;  %16517 = vmatpush3.msra.mxu0 %v13895_v14  ;;  %v13760_v2 = vld [vmem:[%s23960_s3 + $0x158] sm:$0xff]  ;;  %v13893_v14 = vld [vmem:[%s23960_s3 + $0x220] sm:$0xff] }
 0x1ae   : > { %16187 = vmatmul.mubr.msk.f32.gmra.mxu1 %vm24538_vm4, %v2834_v31  ;;  %16397 = vmatmul.mubr.msk.f32.gmra.mxu0 %vm24539_vm12, %v19840_v55  ;;  %v19867_v31 = vld [vmem:[#allocation2 + $0x64] sm:$0xff]  ;;  %vm24545_vm4 = vmmov %vm24447_vm0 }
 0x1af   : > { %16189 = vmatprep.mubr.msk.f32.mxu1 %vm24540_vm8, %v2835_v50  ;;  %16399 = vmatprep.mubr.msk.f32.mxu0 %vm24541_vm3, %v19851_v44  ;;  %v13759_v50 = vld [vmem:[%s23960_s3 + $0x150] sm:$0xff]  ;;  %vm24546_vm12 = vmmov %vm24447_vm0 }
 0x1b0   : > { %16310 = vmatprep.subr.mxu1 %v13761_v7  ;;  %16518 = vmatprep.subr.mxu0 %v13894_v9  ;;  %vm24547_vm8 = vmmov %vm24447_vm0 }
 0x1b1   : > { %16311 = vmatpush3.msra.mxu1 %v13761_v7  ;;  %16519 = vmatpush3.msra.mxu0 %v13894_v9  ;;  %v2838_v7 = vld [vmem:[#allocation2 + $0x5a] sm:$0xff]  ;;  %v19872_v9 = vld [vmem:[#allocation2 + $0x6c] sm:$0xff]  ;;  %vm24548_vm3 = vmmov %vm24447_vm0 }
 0x1b2   : > { %16190 = vmatmul.mubr.msk.f32.gmra.mxu1 %vm24542_vm13, %v2836_v41  ;;  %16400 = vmatmul.mubr.msk.f32.gmra.mxu0 %vm24447_vm0, %v19856_v49  ;;  %v13892_v41 = vld [vmem:[%s23960_s3 + $0x218] sm:$0xff]  ;;  %vm24549_vm13 = vmmov %vm24447_vm0 }
 0x1b3   : > { %16192 = vmatprep.mubr.msk.f32.mxu1 %vm24543_vm11, %v2837_v18  ;;  %16402 = vmatprep.mubr.msk.f32.mxu0 %vm24544_vm15, %v19867_v31  ;;  %v2839_v18 = vld [vmem:[#allocation2 + $0x62] sm:$0xff]  ;;  %vm24550_vm11 = vmmov %vm24447_vm0 }
 0x1b4   : > { %16312 = vmatprep.subr.mxu1 %v13760_v2  ;;  %16520 = vmatprep.subr.mxu0 %v13893_v14  ;;  %vm24551_vm15 = vmmov %vm24447_vm0 }
 0x1b5   : > { %16313 = vmatpush3.msra.mxu1 %v13760_v2  ;;  %16521 = vmatpush3.msra.mxu0 %v13893_v14  ;;  %v2840_v2 = vld [vmem:[#allocation2 + $0x6a] sm:$0xff]  ;;  %v19888_v14 = vld [vmem:[#allocation2 + $0x7c] sm:$0xff] }
 0x1b6   : > { %16193 = vmatmul.mubr.msk.f32.gmra.mxu1 %vm24545_vm4, %v2838_v7  ;;  %16403 = vmatmul.mubr.msk.f32.gmra.mxu0 %vm24546_vm12, %v19872_v9  ;;  %v13758_v7 = vld [vmem:[%s23960_s3 + $0x148] sm:$0xff]  ;;  %vm24552_vm4 = vmmov %vm24447_vm0 }
 0x1b7   : > { %16195 = vmatprep.mubr.msk.f32.mxu1 %vm24547_vm8, %v2839_v18  ;;  %16405 = vmatprep.mubr.msk.f32.mxu0 %vm24548_vm3, %v19883_v59  ;;  %v2841_v18 = vld [vmem:[#allocation2 + $0x72] sm:$0xff]  ;;  %vm24553_vm12 = vmmov %vm24447_vm0 }
 0x1b8   : > { %16314 = vmatprep.subr.mxu1 %v13759_v50  ;;  %16522 = vmatprep.subr.mxu0 %v13892_v41  ;;  %vm24554_vm8 = vmmov %vm24447_vm0 }
 0x1b9   : > { %16315 = vmatpush3.msra.mxu1 %v13759_v50  ;;  %16523 = vmatpush3.msra.mxu0 %v13892_v41  ;;  %v2842_v50 = vld [vmem:[#allocation2 + $0x7a] sm:$0xff]  ;;  %v19904_v41 = vld [vmem:[#allocation2 + $0x8c] sm:$0xff]  ;;  %vm24555_vm3 = vmmov %vm24447_vm0 }
 0x1ba   : > { %16196 = vmatmul.mubr.msk.f32.gmra.mxu1 %vm24549_vm13, %v2840_v2  ;;  %16406 = vmatmul.mubr.msk.f32.gmra.mxu0 %vm24447_vm0, %v19888_v14  ;;  %v13757_v2 = vld [vmem:[%s23960_s3 + $0x140] sm:$0xff]  ;;  %vm24556_vm13 = vmmov %vm24447_vm0 }
 0x1bb   : > { %16198 = vmatprep.mubr.msk.f32.mxu1 %vm24550_vm11, %v2841_v18  ;;  %16408 = vmatprep.mubr.msk.f32.mxu0 %vm24551_vm15, %v19899_v61  ;;  %v2843_v18 = vld [vmem:[#allocation2 + $0x82] sm:$0xff]  ;;  %vm24557_vm11 = vmmov %vm24447_vm0 }
 0x1bc   : > { %16316 = vmatprep.subr.mxu1 %v13758_v7  ;;  %16524 = vmatprep.subr.mxu0 %v13891_v45  ;;  %vm24558_vm15 = vmmov %vm24447_vm0 }
 0x1bd   : > { %16317 = vmatpush3.msra.mxu1 %v13758_v7  ;;  %16525 = vmatpush3.msra.mxu0 %v13891_v45  ;;  %v2844_v7 = vld [vmem:[#allocation2 + $0x8a] sm:$0xff]  ;;  %v19920_v45 = vld [vmem:[#allocation2 + $0x9c] sm:$0xff] }
 0x1be   : > { %16199 = vmatmul.mubr.msk.f32.gmra.mxu1 %vm24552_vm4, %v2842_v50  ;;  %16409 = vmatmul.mubr.msk.f32.gmra.mxu0 %vm24553_vm12, %v19904_v41  ;;  %v13889_v50 = vld [vmem:[%s23960_s3 + $0x200] sm:$0xff]  ;;  %vm24559_vm4 = vmmov %vm24447_vm0 }
 0x1bf   : > { %16201 = vmatprep.mubr.msk.f32.mxu1 %vm24554_vm8, %v2843_v18  ;;  %16411 = vmatprep.mubr.msk.f32.mxu0 %vm24555_vm3, %v19915_v21  ;;  %v2845_v18 = vld [vmem:[#allocation2 + $0x92] sm:$0xff]  ;;  %vm24560_vm12 = vmmov %vm24447_vm0 }
 0x1c0   : > { %16318 = vmatprep.subr.mxu1 %v13757_v2  ;;  %16526 = vmatprep.subr.mxu0 %v13890_v42  ;;  %vm24561_vm8 = vmmov %vm24447_vm0 }
 0x1c1   : > { %16319 = vmatpush3.msra.mxu1 %v13757_v2  ;;  %16527 = vmatpush3.msra.mxu0 %v13890_v42  ;;  %v2846_v42 = vld [vmem:[#allocation2 + $0x9a] sm:$0xff]  ;;  %v19939_v2 = vld [vmem:[#allocation2 + $0xac] sm:$0xff]  ;;  %vm24562_vm3 = vmmov %vm24447_vm0 }
 0x1c2   : > { %16202 = vmatmul.mubr.msk.f32.gmra.mxu1 %vm24556_vm13, %v2844_v7  ;;  %16412 = vmatmul.mubr.msk.f32.gmra.mxu0 %vm24447_vm0, %v19920_v45  ;;  %v2847_v7 = vld [vmem:[#allocation2 + $0xa2] sm:$0xff]  ;;  %vm24563_vm13 = vmmov %vm24447_vm0 }
 0x1c3   : > { %16204 = vmatprep.mubr.msk.f32.mxu1 %vm24557_vm11, %v2845_v18  ;;  %16414 = vmatprep.mubr.msk.f32.mxu0 %vm24558_vm15, %v19933_v11  ;;  %v2848_v18 = vld [vmem:[#allocation2 + $0xaa] sm:$0xff]  ;;  %vm24564_vm11 = vmmov %vm24447_vm0 }
 0x1c4   : > { %16528 = vmatprep.subr.mxu0 %v13889_v50  ;;  %16444 = vmatprep.subr.mxu1 %v19928_v17  ;;  %vm24565_vm15 = vmmov %vm24447_vm0 }
 0x1c5   : > { %16529 = vmatpush3.msra.mxu0 %v13889_v50  ;;  %v19954_v50 = vld [vmem:[#allocation2 + $0xc4] sm:$0xff] }
 0x1c6   : > { %16205 = vmatmul.mubr.msk.f32.gmra.mxu1 %vm24559_vm4, %v2846_v42  ;;  %16415 = vmatmul.mubr.msk.f32.gmra.mxu0 %vm24560_vm12, %v19939_v2  ;;  %v19960_v42 = vld [vmem:[#allocation2 + $0xcc] sm:$0xff]  ;;  %vm24566_vm4 = vmmov %vm24447_vm0 }
 0x1c7   : > { %16207 = vmatprep.mubr.msk.f32.mxu1 %vm24561_vm8, %v2847_v7  ;;  %16417 = vmatprep.mubr.msk.f32.mxu0 %vm24562_vm3, %v19944_v32  ;;  %vm24567_vm12 = vmmov %vm24447_vm0  ;;  %v19966_v7 = vld [vmem:[#allocation2 + $0xd4] sm:$0xff] }
 0x1c8   : > { %vm24568_vm8 = vmmov %vm24447_vm0 }
 0x1c9   : > { %vm24569_vm3 = vmmov %vm24447_vm0 }
 0x1ca   : > { %16208 = vmatmul.mubr.msk.f32.gmra.mxu1 %vm24563_vm13, %v2848_v18  ;;  %16418 = vmatmul.mubr.msk.f32.gmra.mxu0 %vm24447_vm0, %v19949_v40  ;;  %vm24570_vm13 = vmmov %vm24447_vm0  ;;  %v19980_v18 = vpop.f32.mrf.mxu0 }
 0x1cb   : > { %16210 = vmatprep.mubr.msk.f32.mxu1 %vm24564_vm11, %v19441_v48  ;;  %16420 = vmatprep.mubr.msk.f32.mxu0 %vm24565_vm15, %v19954_v50  ;;  %v19972_v48 = vld [vmem:[#allocation2 + $0xdc] sm:$0xff]  ;;  %vm24571_vm11 = vmmov %vm24447_vm0 }
 0x1cc   : > { %vm24572_vm15 = vmmov %vm24447_vm0  ;;  %v19996_v25 = vpop.f32.mrf.mxu0 }
 0x1cd   : > { %24575 = vst [vmem:[#allocation41_spill] sm:$0xff] %v19996_v25  ;;  %v4570_v25 = vld [vmem:[#allocation2 + $0x4d] sm:$0xff] }
 0x1ce   : > { %16211 = vmatmul.mubr.msk.f32.gmra.mxu1 %vm24566_vm4, %v19456_v20  ;;  %16421 = vmatmul.mubr.msk.f32.gmra.mxu0 %vm24567_vm12, %v19960_v42  ;;  %v19978_v20 = vld [vmem:[#allocation2 + $0xe4] sm:$0xff]  ;;  %vm24573_vm4 = vmmov %vm24447_vm0 }
 0x1cf   : > { %16213 = vmatprep.mubr.msk.f32.mxu1 %vm24568_vm8, %v19509_v6  ;;  %16423 = vmatprep.mubr.msk.f32.mxu0 %vm24569_vm3, %v19966_v7  ;;  %v19986_v6 = vpop.f32.mrf.mxu1  ;;  %vm24574_vm12 = vmmov %vm24447_vm0 }
 0x1d0   : > { %vm24576_vm8 = vmmov %vm24447_vm0 }
 0x1d1   : > { %vm24577_vm3 = vmmov %vm24447_vm0 }
 0x1d2   : > { %16214 = vmatmul.mubr.msk.f32.gmra.mxu1 %vm24570_vm13, %v19519_v47  ;;  %16424 = vmatmul.mubr.msk.f32.gmra.mxu0 %vm24447_vm0, %v19972_v48  ;;  %v19994_v47 = vld [vmem:[#allocation2 + $0xf4] sm:$0xff]  ;;  %vm24579_vm13 = vmmov %vm24447_vm0 }
 0x1d3   : > { %16216 = vmatprep.mubr.msk.f32.mxu1 %vm24571_vm11, %v19554_v51  ;;  %16426 = vmatprep.mubr.msk.f32.mxu0 %vm24572_vm15, %v19978_v20  ;;  %v20002_v51 = vpop.f32.mrf.mxu1  ;;  %vm24580_vm11 = vmmov %vm24447_vm0 }
 0x1d4   : > { %24578 = vst [vmem:[#allocation42_spill] sm:$0xff] %v20002_v51  ;;  %vm24581_vm15 = vmmov %vm24447_vm0  ;;  %v4574_v51 = vld [vmem:[#allocation2 + $0x6d] sm:$0xff] }
 0x1d5   : > { %v20006_v34 = vpop.f32.mrf.mxu1 }
 0x1d6   : > { %16217 = vmatmul.mubr.msk.f32.gmra.mxu1 %vm24573_vm4, %v19565_v52  ;;  %16427 = vmatmul.mubr.msk.f32.gmra.mxu0 %vm24574_vm12, %v19988_v33  ;;  %v20008_v52 = vpop.f32.mrf.mxu0  ;;  %vm24584_vm4 = vmmov %vm24447_vm0 }
 0x1d7   : > { %16219 = vmatprep.mubr.msk.f32.mxu1 %vm24576_vm8, %v19604_v15  ;;  %16429 = vmatprep.mubr.msk.f32.mxu0 %vm24577_vm3, %v19994_v47  ;;  %v20020_v15 = vpop.f32.mrf.mxu1  ;;  %vm24585_vm12 = vmmov %vm24447_vm0 }
 0x1d8   : > { %24582 = vst [vmem:[#allocation43_spill] sm:$0xff] %v20020_v15  ;;  %v20022_v16 = vpop.f32.mrf.mxu0  ;;  %vm24586_vm8 = vmmov %vm24447_vm0 }
 0x1d9   : > { %24583 = vst [vmem:[#allocation44_spill] sm:$0xff] %v20022_v16  ;;  %v20026_v19 = vpop.f32.mrf.mxu1  ;;  %vm24587_vm3 = vmmov %vm24447_vm0 }
 0x1da   : > { %16220 = vmatmul.mubr.msk.f32.gmra.mxu1 %vm24579_vm13, %v19614_v13  ;;  %16430 = vmatmul.mubr.msk.f32.gmra.mxu0 %vm24447_vm0, %v20004_v26  ;;  %v20028_v13 = vpop.f32.mrf.mxu0  ;;  %vm24590_vm13 = vmmov %vm24447_vm0 }
 0x1db   : > { %16222 = vmatprep.mubr.msk.f32.mxu1 %vm24580_vm11, %v19633_v30  ;;  %16432 = vmatprep.mubr.msk.f32.mxu0 %vm24581_vm15, %v20014_v1  ;;  %v20034_v30 = vld [vmem:[#allocation2 + $0x114] sm:$0xff]  ;;  %v20040_v57 = vpop.f32.mrf.mxu1  ;;  %vm24591_vm11 = vmmov %vm24447_vm0 }
 0x1dc   : > { %24588 = vst [vmem:[#allocation45_spill] sm:$0xff] %v20040_v57  ;;  %v20042_v56 = vpop.f32.mrf.mxu0  ;;  %vm24592_vm15 = vmmov %vm24447_vm0 }
 0x1dd   : > { %24589 = vst [vmem:[#allocation46_spill] sm:$0xff] %v20042_v56 }
 0x1de   : > { %16223 = vmatmul.mubr.msk.f32.gmra.mxu1 %vm24584_vm4, %v19643_v43  ;;  %16433 = vmatmul.mubr.msk.f32.gmra.mxu0 %vm24585_vm12, %v20024_v37  ;;  %v20048_v43 = vpop.f32.mrf.mxu1  ;;  %v20050_v5 = vpop.f32.mrf.mxu0  ;;  %vm24595_vm4 = vmmov %vm24447_vm0 }
 0x1df   : > { %16225 = vmatprep.mubr.msk.f32.mxu1 %vm24586_vm8, %v19653_v24  ;;  %16435 = vmatprep.mubr.msk.f32.mxu0 %vm24587_vm3, %v20034_v30  ;;  %v20060_v24 = vld [vmem:[#allocation2 + $0x12c] sm:$0xff]  ;;  %vm24596_vm12 = vmmov %vm24447_vm0 }
 0x1e0   : > { %v20062_v22 = vpop.f32.mrf.mxu1  ;;  %v20064_v3 = vpop.f32.mrf.mxu0  ;;  %vm24597_vm8 = vmmov %vm24447_vm0 }
 0x1e1   : > { %24593 = vst [vmem:[#allocation47_spill] sm:$0xff] %v20062_v22  ;;  %24594 = vst [vmem:[#allocation48_spill] sm:$0xff] %v20064_v3  ;;  %v13851_v3 = vld [vmem:[%s23960_s3 + $0x1f0] sm:$0xff] }
 0x1e2   : > { %16226 = vmatmul.mubr.msk.f32.gmra.mxu1 %vm24590_vm13, %v19659_v39  ;;  %16436 = vmatmul.mubr.msk.f32.gmra.mxu0 %vm24447_vm0, %v20046_v62  ;;  %v20066_v63 = vpop.f32.mrf.mxu1  ;;  %v20068_v54 = vpop.f32.mrf.mxu0  ;;  %v2863_v39 = vld [vmem:[#allocation2 + $0x122] sm:$0xff]  ;;  %vm24598_vm3 = vmmov %vm24447_vm0 }
 0x1e3   : > { %16228 = vmatprep.mubr.msk.f32.mxu1 %vm24591_vm11, %v19664_v12  ;;  %16438 = vmatprep.mubr.msk.f32.mxu0 %vm24592_vm15, %v20044_v53  ;;  %v4166_v12 = vld [vmem:[#allocation2 + $0x13c] sm:$0xff]  ;;  %vm24601_vm13 = vmmov %vm24447_vm0 }
 0x1e4   : > { %v20076_v29 = vpop.f32.mrf.mxu1  ;;  %v20078_v4 = vpop.f32.mrf.mxu0  ;;  %vm24602_vm11 = vmmov %vm24447_vm0 }
 0x1e5   : > { %24599 = vst [vmem:[#allocation49_spill] sm:$0xff] %v20076_v29  ;;  %24600 = vst [vmem:[#allocation50_spill] sm:$0xff] %v20078_v4  ;;  %v5000_v4 = vld [vmem:[#allocation2 + $0x2e] sm:$0xff] }
 0x1e6   : > { %16229 = vmatmul.mubr.msk.f32.gmra.mxu1 %vm24595_vm4, %v19669_v58  ;;  %16439 = vmatmul.mubr.msk.f32.gmra.mxu0 %vm24596_vm12, %v20060_v24  ;;  %v20080_v28 = vpop.f32.mrf.mxu1  ;;  %v20082_v27 = vpop.f32.mrf.mxu0  ;;  %v3697_v58 = vld [vmem:[#allocation2 + $0x14] sm:$0xff]  ;;  %vm24603_vm15 = vmmov %vm24447_vm0 }
 0x1e7   : > { %16231 = vmatprep.mubr.msk.f32.mxu1 %vm24597_vm8, %v2863_v39  ;;  %16441 = vmatprep.mubr.msk.f32.mxu0 %vm24598_vm3, %v4165_v23  ;;  %vm24606_vm4 = vmmov %vm24447_vm0 }
 0x1e8   : > { %v20088_v23 = vpop.f32.mrf.mxu1  ;;  %v20090_v39 = vpop.f32.mrf.mxu0  ;;  %vm24607_vm12 = vmmov %vm24447_vm0 }
 0x1e9   : > { %24604 = vst [vmem:[#allocation51_spill] sm:$0xff] %v20088_v23  ;;  %24605 = vst [vmem:[#allocation52_spill] sm:$0xff] %v20090_v39  ;;  %v5002_v39 = vld [vmem:[#allocation2 + $0x3e] sm:$0xff] }
 0x1ea   : > { %16232 = vmatmul.mubr.msk.f32.gmra.mxu1 %vm24601_vm13, %v2864_v35  ;;  %16442 = vmatmul.mubr.msk.f32.gmra.mxu0 %vm24447_vm0, %v4166_v12  ;;  %v20095_v56 = vpop.f32.mrf.mxu1  ;;  %v20097_v35 = vpop.f32.mrf.mxu0  ;;  %vm24608_vm8 = vmmov %vm24447_vm0 }
 0x1eb   : > { %16320 = vmatprep.mubr.msk.f32.mxu1 %vm24602_vm11, %v3697_v58  ;;  %16530 = vmatprep.mubr.msk.f32.mxu0 %vm24603_vm15, %v4999_v46  ;;  %v5001_v46 = vld [vmem:[#allocation2 + $0x36] sm:$0xff]  ;;  %vm24609_vm3 = vmmov %vm24447_vm0 }
 0x1ec   : > { %v20105_v12 = vpop.f32.mrf.mxu1  ;;  %v20107_v58 = vpop.f32.mrf.mxu0  ;;  %vm24612_vm13 = vmmov %vm24447_vm0 }
 0x1ed   : > { %24610 = vst [vmem:[#allocation53_spill] sm:$0xff] %v20105_v12  ;;  %24611 = vst [vmem:[#allocation54_spill] sm:$0xff] %v20107_v58  ;;  %v5004_v58 = vld [vmem:[#allocation2 + $0x4e] sm:$0xff]  ;;  %v13849_v12 = vld [vmem:[%s23960_s3 + $0x1e0] sm:$0xff] }
 0x1ee   : > { %16321 = vmatmul.mubr.msk.f32.vlgmr.msra.gmra.mxu1 %vm24606_vm4, %v3698_v36  ;;  %16531 = vmatmul.mubr.msk.f32.vlgmr.msra.gmra.mxu0 %vm24607_vm12, %v5000_v4  ;;  %v13850_v36 = vld [vmem:[%s23960_s3 + $0x1e8] sm:$0xff]  ;;  %v20112_v4 = vpop.f32.mrf.mxu1  ;;  %vm24613_vm11 = vmmov %vm24447_vm0 }
 0x1ef   : > { %16445 = vmatpush3.msra.mxu1 %v19928_v17  ;;  %16323 = vmatprep.mubr.msk.f32.mxu1 %vm24608_vm8, %v19804_v8  ;;  %v20114_v17 = vpop.f32.mrf.mxu0  ;;  %v5003_v8 = vld [vmem:[#allocation2 + $0x46] sm:$0xff]  ;;  %vm24614_vm15 = vmmov %vm24447_vm0 }
 0x1f0   : > { %16533 = vmatprep.mubr.msk.f32.mxu0 %vm24609_vm3, %v5001_v46  ;;  %16446 = vmatprep.subr.mxu1 %v13851_v3  ;;  %vm24617_vm4 = vmmov %vm24447_vm0 }
 0x1f1   : > { %16447 = vmatpush3.msra.mxu1 %v13851_v3  ;;  %v20122_v3 = vpop.f32.mrf.mxu1  ;;  %v20124_v46 = vpop.f32.mrf.mxu0  ;;  %vm24618_vm12 = vmmov %vm24447_vm0 }
 0x1f2   : > { %16324 = vmatmul.mubr.msk.f32.gmra.mxu1 %vm24612_vm13, %v19809_v0  ;;  %16534 = vmatmul.mubr.msk.f32.gmra.mxu0 %vm24447_vm0, %v5002_v39  ;;  %24615 = vst [vmem:[#allocation55_spill] sm:$0xff] %v20122_v3  ;;  %24616 = vst [vmem:[#allocation56_spill] sm:$0xff] %v20124_v46  ;;  %v5006_v46 = vld [vmem:[#allocation2 + $0x5e] sm:$0xff] }
 0x1f3   : > { %16326 = vmatprep.mubr.msk.f32.mxu1 %vm24613_vm11, %v19819_v60  ;;  %16536 = vmatprep.mubr.msk.f32.mxu0 %vm24614_vm15, %v5003_v8  ;;  %v20129_v0 = vpop.f32.mrf.mxu1  ;;  %v20131_v39 = vpop.f32.mrf.mxu0  ;;  %v5005_v60 = vld [vmem:[#allocation2 + $0x56] sm:$0xff]  ;;  %vm24619_vm8 = vmmov %vm24447_vm0 }
 0x1f4   : > { %16448 = vmatprep.subr.mxu1 %v13850_v36  ;;  %vm24620_vm3 = vmmov %vm24447_vm0  ;;  %v13848_v3 = vld [vmem:[%s23960_s3 + $0x1d8] sm:$0xff] }
 0x1f5   : > { %16449 = vmatpush3.msra.mxu1 %v13850_v36  ;;  %v20139_v36 = vpop.f32.mrf.mxu1  ;;  %v20141_v8 = vpop.f32.mrf.mxu0  ;;  %vm24623_vm13 = vmmov %vm24447_vm0 }
 0x1f6   : > { %16327 = vmatmul.mubr.msk.f32.gmra.mxu1 %vm24617_vm4, %v19823_v38  ;;  %16537 = vmatmul.mubr.msk.f32.gmra.mxu0 %vm24618_vm12, %v5004_v58  ;;  %24621 = vst [vmem:[#allocation57_spill] sm:$0xff] %v20139_v36  ;;  %24622 = vst [vmem:[#allocation58_spill] sm:$0xff] %v20141_v8  ;;  %v5008_v8 = vld [vmem:[#allocation2 + $0x6e] sm:$0xff] }
 0x1f7   : > { %16329 = vmatprep.mubr.msk.f32.mxu1 %vm24619_vm8, %v19835_v10  ;;  %16539 = vmatprep.mubr.msk.f32.mxu0 %vm24620_vm3, %v5005_v60  ;;  %v20146_v38 = vpop.f32.mrf.mxu1  ;;  %v20148_v58 = vpop.f32.mrf.mxu0  ;;  %v5007_v10 = vld [vmem:[#allocation2 + $0x66] sm:$0xff]  ;;  %vm24624_vm11 = vmmov %vm24447_vm0  ;;  %v13847_v36 = vld [vmem:[%s23960_s3 + $0x1d0] sm:$0xff] }
 0x1f8   : > { %16450 = vmatprep.subr.mxu1 %v13849_v12  ;;  %vm24625_vm15 = vmmov %vm24447_vm0 }
 0x1f9   : > { %16451 = vmatpush3.msra.mxu1 %v13849_v12  ;;  %v20156_v12 = vpop.f32.mrf.mxu1  ;;  %v20158_v60 = vpop.f32.mrf.mxu0  ;;  %vm24628_vm4 = vmmov %vm24447_vm0 }
 0x1fa   : > { %16330 = vmatmul.mubr.msk.f32.gmra.mxu1 %vm24623_vm13, %v19840_v55  ;;  %16540 = vmatmul.mubr.msk.f32.gmra.mxu0 %vm24447_vm0, %v5006_v46  ;;  %24626 = vst [vmem:[#allocation59_spill] sm:$0xff] %v20156_v12  ;;  %24627 = vst [vmem:[#allocation60_spill] sm:$0xff] %v20158_v60  ;;  %v5010_v60 = vld [vmem:[#allocation2 + $0x7e] sm:$0xff]  ;;  %v13846_v12 = vld [vmem:[%s23960_s3 + $0x1c8] sm:$0xff] }
 0x1fb   : > { %16332 = vmatprep.mubr.msk.f32.mxu1 %vm24624_vm11, %v19851_v44  ;;  %16542 = vmatprep.mubr.msk.f32.mxu0 %vm24625_vm15, %v5007_v10  ;;  %v20163_v55 = vpop.f32.mrf.mxu1  ;;  %v20165_v46 = vpop.f32.mrf.mxu0  ;;  %vm24629_vm12 = vmmov %vm24447_vm0  ;;  %v5009_v44 = vld [vmem:[#allocation2 + $0x76] sm:$0xff] }
 0x1fc   : > { %16452 = vmatprep.subr.mxu1 %v13848_v3  ;;  %vm24630_vm8 = vmmov %vm24447_vm0 }
 0x1fd   : > { %16453 = vmatpush3.msra.mxu1 %v13848_v3  ;;  %vm24631_vm3 = vmmov %vm24447_vm0  ;;  %v20173_v3 = vpop.f32.mrf.mxu1  ;;  %v20175_v10 = vpop.f32.mrf.mxu0 }
 0x1fe   : > { %16333 = vmatmul.mubr.msk.f32.gmra.mxu1 %vm24628_vm4, %v19856_v49  ;;  %16543 = vmatmul.mubr.msk.f32.gmra.mxu0 %vm24629_vm12, %v5008_v8  ;;  %24632 = vst [vmem:[#allocation61_spill] sm:$0xff] %v20173_v3  ;;  %24633 = vst [vmem:[#allocation62_spill] sm:$0xff] %v20175_v10  ;;  %v5012_v10 = vld [vmem:[#allocation2 + $0x8e] sm:$0xff]  ;;  %v13845_v3 = vld [vmem:[%s23960_s3 + $0x1c0] sm:$0xff] }
 0x1ff   : > { %16335 = vmatprep.mubr.msk.f32.mxu1 %vm24630_vm8, %v19867_v31  ;;  %16545 = vmatprep.mubr.msk.f32.mxu0 %vm24631_vm3, %v5009_v44  ;;  %v20180_v49 = vpop.f32.mrf.mxu1  ;;  %v20182_v8 = vpop.f32.mrf.mxu0  ;;  %vm24634_vm13 = vmmov %vm24447_vm0  ;;  %v5011_v31 = vld [vmem:[#allocation2 + $0x86] sm:$0xff] }
 0x200   : > { %16454 = vmatprep.subr.mxu1 %v13847_v36  ;;  %vm24635_vm11 = vmmov %vm24447_vm0 }
 0x201   : > { %16455 = vmatpush3.msra.mxu1 %v13847_v36  ;;  %vm24636_vm15 = vmmov %vm24447_vm0  ;;  %v20190_v36 = vpop.f32.mrf.mxu1  ;;  %v20192_v44 = vpop.f32.mrf.mxu0 }
 0x202   : > { %16336 = vmatmul.mubr.msk.f32.gmra.mxu1 %vm24634_vm13, %v19872_v9  ;;  %16546 = vmatmul.mubr.msk.f32.gmra.mxu0 %vm24447_vm0, %v5010_v60  ;;  %24637 = vst [vmem:[#allocation63_spill] sm:$0xff] %v20190_v36  ;;  %24638 = vst [vmem:[#allocation64_spill] sm:$0xff] %v20192_v44  ;;  %v5014_v44 = vld [vmem:[#allocation2 + $0x9e] sm:$0xff] }
 0x203   : > { %16338 = vmatprep.mubr.msk.f32.mxu1 %vm24635_vm11, %v19883_v59  ;;  %16548 = vmatprep.mubr.msk.f32.mxu0 %vm24636_vm15, %v5011_v31  ;;  %v20197_v9 = vpop.f32.mrf.mxu1  ;;  %v20199_v60 = vpop.f32.mrf.mxu0  ;;  %vm24639_vm4 = vmmov %vm24447_vm0  ;;  %v5013_v59 = vld [vmem:[#allocation2 + $0x96] sm:$0xff] }
 0x204   : > { %16456 = vmatprep.subr.mxu1 %v13846_v12  ;;  %vm24640_vm12 = vmmov %vm24447_vm0 }
 0x205   : > { %16457 = vmatpush3.msra.mxu1 %v13846_v12  ;;  %vm24641_vm8 = vmmov %vm24447_vm0  ;;  %v20207_v12 = vpop.f32.mrf.mxu1  ;;  %v20209_v31 = vpop.f32.mrf.mxu0 }
 0x206   : > { %16339 = vmatmul.mubr.msk.f32.gmra.mxu1 %vm24639_vm4, %v19888_v14  ;;  %16549 = vmatmul.mubr.msk.f32.gmra.mxu0 %vm24640_vm12, %v5012_v10  ;;  %vm24642_vm3 = vmmov %vm24447_vm0  ;;  %24643 = vst [vmem:[#allocation65_spill] sm:$0xff] %v20207_v12  ;;  %v5015_v14 = vld [vmem:[#allocation2 + $0xa6] sm:$0xff] }
 0x207   : > { %16341 = vmatprep.mubr.msk.f32.mxu1 %vm24641_vm8, %v19899_v61  ;;  %16551 = vmatprep.mubr.msk.f32.mxu0 %vm24642_vm3, %v5013_v59  ;;  %24644 = vst [vmem:[#allocation66_spill] sm:$0xff] %v20209_v31  ;;  %v20211_v36 = vpop.f32.mrf.mxu1  ;;  %v20213_v23 = vpop.f32.mrf.mxu0  ;;  %vm24645_vm13 = vmmov %vm24447_vm0 }
 0x208   : > { %16458 = vmatprep.subr.mxu1 %v13845_v3  ;;  %vm24646_vm11 = vmmov %vm24447_vm0 }
 0x209   : > { %16459 = vmatpush3.msra.mxu1 %v13845_v3  ;;  %vm24647_vm15 = vmmov %vm24447_vm0  ;;  %v20221_v61 = vpop.f32.mrf.mxu1  ;;  %v20223_v10 = vpop.f32.mrf.mxu0  ;;  %v5016_v3 = vld [vmem:[#allocation2 + $0xae] sm:$0xff] }
 0x20a   : > { %16342 = vmatmul.mubr.msk.f32.gmra.mxu1 %vm24645_vm13, %v19904_v41  ;;  %16552 = vmatmul.mubr.msk.f32.gmra.mxu0 %vm24447_vm0, %v5014_v44  ;;  %24648 = vst [vmem:[#allocation67_spill] sm:$0xff] %v20221_v61  ;;  %24649 = vst [vmem:[#allocation68_spill] sm:$0xff] %v20223_v10  ;;  %v5017_v41 = vld [vmem:[#allocation2 + $0xb6] sm:$0xff] }
 0x20b   : > { %16344 = vmatprep.mubr.msk.f32.mxu1 %vm24646_vm11, %v19915_v21  ;;  %16554 = vmatprep.mubr.msk.f32.mxu0 %vm24647_vm15, %v5015_v14  ;;  %v20225_v59 = vpop.f32.mrf.mxu1  ;;  %vm24650_vm4 = vmmov %vm24447_vm0  ;;  %v5018_v14 = vld [vmem:[#allocation2 + $0xbe] sm:$0xff] }
 0x20c   : > { %v20227_v31 = vpop.f32.mrf.mxu0  ;;  %vm24651_vm12 = vmmov %vm24447_vm0 }
 0x20d   : > { %vm24652_vm8 = vmmov %vm24447_vm0  ;;  %v20235_v21 = vpop.f32.mrf.mxu1 }
 0x20e   : > { %16345 = vmatmul.mubr.msk.f32.gmra.mxu1 %vm24650_vm4, %v19920_v45  ;;  %16555 = vmatmul.mubr.msk.f32.gmra.mxu0 %vm24651_vm12, %v5016_v3  ;;  %vm24653_vm3 = vmmov %vm24447_vm0  ;;  %24654 = vst [vmem:[#allocation69_spill] sm:$0xff] %v20235_v21  ;;  %v20237_v44 = vpop.f32.mrf.mxu0  ;;  %v5019_v45 = vld [vmem:[#allocation2 + $0xc6] sm:$0xff] }
 0x20f   : > { %16347 = vmatprep.mubr.msk.f32.mxu1 %vm24652_vm8, %v19933_v11  ;;  %16557 = vmatprep.mubr.msk.f32.mxu0 %vm24653_vm3, %v5017_v41  ;;  %24655 = vst [vmem:[#allocation70_spill] sm:$0xff] %v20237_v44  ;;  %vm24656_vm13 = vmmov %vm24447_vm0  ;;  %v5020_v41 = vld [vmem:[#allocation2 + $0xce] sm:$0xff] }
 0x210   : > { %v20239_v10 = vpop.f32.mrf.mxu1  ;;  %vm24657_vm11 = vmmov %vm24447_vm0 }
 0x211   : > { %v20241_v61 = vpop.f32.mrf.mxu0  ;;  %vm24658_vm15 = vmmov %vm24447_vm0 }
 0x212   : > { %16348 = vmatmul.mubr.msk.f32.gmra.mxu1 %vm24656_vm13, %v19939_v2  ;;  %16558 = vmatmul.mubr.msk.f32.gmra.mxu0 %vm24447_vm0, %v5018_v14  ;;  %v20249_v11 = vpop.f32.mrf.mxu1  ;;  %vm24661_vm4 = vmmov %vm24447_vm0  ;;  %v5021_v2 = vld [vmem:[#allocation2 + $0xd6] sm:$0xff] }
 0x213   : > { %16350 = vmatprep.mubr.msk.f32.mxu1 %vm24657_vm11, %v19944_v32  ;;  %16560 = vmatprep.mubr.msk.f32.mxu0 %vm24658_vm15, %v5019_v45  ;;  %24659 = vst [vmem:[#allocation71_spill] sm:$0xff] %v20249_v11  ;;  %v20251_v3 = vpop.f32.mrf.mxu0  ;;  %vm24662_vm12 = vmmov %vm24447_vm0  ;;  %v5022_v45 = vld [vmem:[#allocation2 + $0xde] sm:$0xff] }
 0x214   : > { %24660 = vst [vmem:[#allocation72_spill] sm:$0xff] %v20251_v3  ;;  %vm24663_vm8 = vmmov %vm24447_vm0 }
 0x215   : > { %v20253_v44 = vpop.f32.mrf.mxu1  ;;  %vm24664_vm3 = vmmov %vm24447_vm0 }
 0x216   : > { %v20255_v21 = vpop.f32.mrf.mxu0  ;;  %16351 = vmatmul.mubr.msk.f32.gmra.mxu1 %vm24661_vm4, %v19949_v40  ;;  %16561 = vmatmul.mubr.msk.f32.gmra.mxu0 %vm24662_vm12, %v5020_v41  ;;  %vm24667_vm13 = vmmov %vm24447_vm0  ;;  %v5023_v40 = vld [vmem:[#allocation2 + $0xe6] sm:$0xff] }
 0x217   : > { %16353 = vmatprep.mubr.msk.f32.mxu1 %vm24663_vm8, %v19954_v50  ;;  %16563 = vmatprep.mubr.msk.f32.mxu0 %vm24664_vm3, %v5021_v2  ;;  %v20263_v32 = vpop.f32.mrf.mxu1  ;;  %vm24668_vm11 = vmmov %vm24447_vm0  ;;  %v5024_v2 = vld [vmem:[#allocation2 + $0xee] sm:$0xff] }
 0x218   : > { %24665 = vst [vmem:[#allocation73_spill] sm:$0xff] %v20263_v32  ;;  %v20265_v14 = vpop.f32.mrf.mxu0  ;;  %vm24669_vm15 = vmmov %vm24447_vm0 }
 0x219   : > { %24666 = vst [vmem:[#allocation74_spill] sm:$0xff] %v20265_v14  ;;  %v20267_v3 = vpop.f32.mrf.mxu1  ;;  %vm24672_vm4 = vmmov %vm24447_vm0 }
 0x21a   : > { %v20269_v11 = vpop.f32.mrf.mxu0  ;;  %16354 = vmatmul.mubr.msk.f32.gmra.mxu1 %vm24667_vm13, %v19960_v42  ;;  %16564 = vmatmul.mubr.msk.f32.gmra.mxu0 %vm24447_vm0, %v5022_v45  ;;  %vm24673_vm12 = vmmov %vm24447_vm0  ;;  %v5025_v42 = vld [vmem:[#allocation2 + $0xf6] sm:$0xff] }
 0x21b   : > { %16356 = vmatprep.mubr.msk.f32.mxu1 %vm24668_vm11, %v19966_v7  ;;  %16566 = vmatprep.mubr.msk.f32.mxu0 %vm24669_vm15, %v5023_v40  ;;  %v20277_v50 = vpop.f32.mrf.mxu1  ;;  %vm24674_vm8 = vmmov %vm24447_vm0  ;;  %v5026_v40 = vld [vmem:[#allocation2 + $0xfe] sm:$0xff] }
 0x21c   : > { %24670 = vst [vmem:[#allocation75_spill] sm:$0xff] %v20277_v50  ;;  %v20279_v41 = vpop.f32.mrf.mxu0  ;;  %vm24675_vm3 = vmmov %vm24447_vm0 }
 0x21d   : > { %24671 = vst [vmem:[#allocation76_spill] sm:$0xff] %v20279_v41  ;;  %v20281_v14 = vpop.f32.mrf.mxu1  ;;  %vm24679_vm13 = vmmov %vm24447_vm0 }
 0x21e   : > { %v20283_v32 = vpop.f32.mrf.mxu0  ;;  %16357 = vmatmul.mubr.msk.f32.gmra.mxu1 %vm24672_vm4, %v19972_v48  ;;  %16567 = vmatmul.mubr.msk.f32.gmra.mxu0 %vm24673_vm12, %v5024_v2  ;;  %v5027_v48 = vld [vmem:[#allocation2 + $0x106] sm:$0xff]  ;;  %vm24680_vm11 = vmmov %vm24447_vm0 }
 0x21f   : > { %16359 = vmatprep.mubr.msk.f32.mxu1 %vm24674_vm8, %v19978_v20  ;;  %16569 = vmatprep.mubr.msk.f32.mxu0 %vm24675_vm3, %v5025_v42  ;;  %v20291_v7 = vpop.f32.mrf.mxu1  ;;  %vm24681_vm15 = vmmov %vm24447_vm0  ;;  %v5028_v42 = vld [vmem:[#allocation2 + $0x10e] sm:$0xff] }
 0x220   : > { %24676 = vst [vmem:[#allocation77_spill] sm:$0xff] %v20291_v7  ;;  %v20293_v45 = vpop.f32.mrf.mxu0  ;;  %vm24685_vm4 = vmmov %vm24447_vm0 }
 0x221   : > { %24677 = vst [vmem:[#allocation78_spill] sm:$0xff] %v20293_v45  ;;  %vm24686_vm12 = vmmov %vm24447_vm0 }
 0x222   : > { %v20295_v41 = vpop.f32.mrf.mxu1  ;;  %v20297_v50 = vpop.f32.mrf.mxu0  ;;  %16360 = vmatmul.mubr.msk.f32.gmra.mxu1 %vm24679_vm13, %v19988_v33  ;;  %16570 = vmatmul.mubr.msk.f32.gmra.mxu0 %vm24447_vm0, %v5026_v40  ;;  %v5029_v33 = vld [vmem:[#allocation2 + $0x116] sm:$0xff]  ;;  %vm24687_vm8 = vmmov %vm24447_vm0 }
 0x223   : > { %24678 = vst [vmem:[#allocation79_spill] sm:$0xff] %v20297_v50  ;;  %16362 = vmatprep.mubr.msk.f32.mxu1 %vm24680_vm11, %v19994_v47  ;;  %16572 = vmatprep.mubr.msk.f32.mxu0 %vm24681_vm15, %v5027_v48  ;;  %vm24688_vm3 = vmmov %vm24447_vm0  ;;  %v5030_v48 = vld [vmem:[#allocation2 + $0x11e] sm:$0xff] }
 0x224   : > { %v20305_v20 = vpop.f32.mrf.mxu1  ;;  %v20307_v2 = vpop.f32.mrf.mxu0  ;;  %vm24692_vm13 = vmmov %vm24447_vm0 }
 0x225   : > { %24682 = vst [vmem:[#allocation80_spill] sm:$0xff] %v20305_v20  ;;  %24683 = vst [vmem:[#allocation81_spill] sm:$0xff] %v20307_v2 }
 0x226   : > { %v20309_v12 = vpop.f32.mrf.mxu1  ;;  %v20311_v45 = vpop.f32.mrf.mxu0  ;;  %16363 = vmatmul.mubr.msk.f32.gmra.mxu1 %vm24685_vm4, %v20004_v26  ;;  %16573 = vmatmul.mubr.msk.f32.gmra.mxu0 %vm24686_vm12, %v5028_v42  ;;  %v5031_v26 = vld [vmem:[#allocation2 + $0x126] sm:$0xff]  ;;  %vm24693_vm11 = vmmov %vm24447_vm0 }
 0x227   : > { %24684 = vst [vmem:[#allocation82_spill] sm:$0xff] %v20311_v45  ;;  %16365 = vmatprep.mubr.msk.f32.mxu1 %vm24687_vm8, %v20014_v1  ;;  %16575 = vmatprep.mubr.msk.f32.mxu0 %vm24688_vm3, %v5029_v33  ;;  %vm24694_vm15 = vmmov %vm24447_vm0  ;;  %v5033_v33 = vld [vmem:[#allocation2 + $0x136] sm:$0xff] }
 0x228   : > { %v20319_v47 = vpop.f32.mrf.mxu1  ;;  %v20321_v40 = vpop.f32.mrf.mxu0  ;;  %vm24698_vm4 = vmmov %vm24447_vm0  ;;  %v4587_v45 = vld [vmem:[#allocation2 + $0xd5] sm:$0xff] }
 0x229   : > { %24689 = vst [vmem:[#allocation83_spill] sm:$0xff] %v20319_v47  ;;  %24690 = vst [vmem:[#allocation84_spill] sm:$0xff] %v20321_v40  ;;  %v5032_v40 = vld [vmem:[#allocation2 + $0x12e] sm:$0xff] }
 0x22a   : > { %v20323_v2 = vpop.f32.mrf.mxu1  ;;  %v20325_v29 = vpop.f32.mrf.mxu0  ;;  %16366 = vmatmul.mubr.msk.f32.gmra.mxu1 %vm24692_vm13, %v20024_v37  ;;  %16576 = vmatmul.mubr.msk.f32.gmra.mxu0 %vm24447_vm0, %v5030_v48  ;;  %vm24699_vm12 = vmmov %vm24447_vm0  ;;  %v5034_v37 = vld [vmem:[#allocation2 + $0x13e] sm:$0xff] }
 0x22b   : > { %24691 = vst [vmem:[#allocation85_spill] sm:$0xff] %v20325_v29  ;;  %16368 = vmatprep.mubr.msk.f32.mxu1 %vm24693_vm11, %v20034_v30  ;;  %16578 = vmatprep.mubr.msk.f32.mxu0 %vm24694_vm15, %v5031_v26  ;;  %vm24700_vm8 = vmmov %vm24447_vm0 }
 0x22c   : > { %v20333_v1 = vpop.f32.mrf.mxu1  ;;  %v20335_v42 = vpop.f32.mrf.mxu0  ;;  %vm24701_vm3 = vmmov %vm24447_vm0 }
 0x22d   : > { %24695 = vst [vmem:[#allocation86_spill] sm:$0xff] %v20333_v1  ;;  %24696 = vst [vmem:[#allocation87_spill] sm:$0xff] %v20335_v42  ;;  %v4567_v1 = vld [vmem:[#allocation2 + $0x35] sm:$0xff] }
 0x22e   : > { %v20337_v16 = vpop.f32.mrf.mxu1  ;;  %v20339_v22 = vpop.f32.mrf.mxu0  ;;  %16369 = vmatmul.mubr.msk.f32.gmra.mxu1 %vm24698_vm4, %v20046_v62  ;;  %16579 = vmatmul.mubr.msk.f32.gmra.mxu0 %vm24699_vm12, %v5032_v40  ;;  %vm24705_vm13 = vmmov %vm24447_vm0  ;;  %v4565_v62 = vld [vmem:[#allocation2 + $0x25] sm:$0xff] }
 0x22f   : > { %24697 = vst [vmem:[#allocation88_spill] sm:$0xff] %v20339_v22  ;;  %16371 = vmatprep.mubr.msk.f32.mxu1 %vm24700_vm8, %v20044_v53  ;;  %16581 = vmatprep.mubr.msk.f32.mxu0 %vm24701_vm3, %v5033_v33  ;;  %vm24706_vm11 = vmmov %vm24447_vm0  ;;  %v4566_v33 = vld [vmem:[#allocation2 + $0x2d] sm:$0xff]  ;;  %v4583_v22 = vld [vmem:[#allocation2 + $0xb5] sm:$0xff] }
 0x230   : > { %v20347_v30 = vpop.f32.mrf.mxu1  ;;  %v20349_v48 = vpop.f32.mrf.mxu0  ;;  %vm24710_vm15 = vmmov %vm24447_vm0 }
 0x231   : > { %24702 = vst [vmem:[#allocation89_spill] sm:$0xff] %v20347_v30  ;;  %24703 = vst [vmem:[#allocation90_spill] sm:$0xff] %v20349_v48 }
 0x232   : > { %v20351_v26 = vpop.f32.mrf.mxu1  ;;  %v20353_v42 = vpop.f32.mrf.mxu0  ;;  %16372 = vmatmul.mubr.msk.f32.gmra.mxu1 %vm24705_vm13, %v20060_v24  ;;  %16582 = vmatmul.mubr.msk.f32.gmra.mxu0 %vm24447_vm0, %v5034_v37  ;;  %vm24711_vm4 = vmmov %vm24447_vm0  ;;  %v4568_v37 = vld [vmem:[#allocation2 + $0x3d] sm:$0xff] }
 0x233   : > { %24704 = vst [vmem:[#allocation91_spill] sm:$0xff] %v20353_v42  ;;  %16460 = vmatprep.mubr.msk.f32.mxu1 %vm24706_vm11, %v4565_v62  ;;  %vm24715_vm12 = vmmov %vm24447_vm0 }
 0x234   : > { %v20359_v53 = vpop.f32.mrf.mxu1  ;;  %v20361_v40 = vpop.f32.mrf.mxu0  ;;  %vm24716_vm8 = vmmov %vm24447_vm0 }
 0x235   : > { %24707 = vst [vmem:[#allocation92_spill] sm:$0xff] %v20359_v53  ;;  %24708 = vst [vmem:[#allocation93_spill] sm:$0xff] %v20361_v40  ;;  %v4569_v40 = vld [vmem:[#allocation2 + $0x45] sm:$0xff] }
 0x236   : > { %v20363_v30 = vpop.f32.mrf.mxu1  ;;  %v20365_v48 = vpop.f32.mrf.mxu0  ;;  %16461 = vmatmul.mubr.msk.f32.vlgmr.msra.gmra.mxu1 %vm24710_vm15, %v4566_v33  ;;  %vm24720_vm3 = vmmov %vm24447_vm0 }
 0x237   : > { %24709 = vst [vmem:[#allocation94_spill] sm:$0xff] %v20365_v48  ;;  %16463 = vmatprep.mubr.msk.f32.mxu1 %vm24711_vm4, %v4567_v1  ;;  %vm24721_vm13 = vmmov %vm24447_vm0  ;;  %v4580_v48 = vld [vmem:[#allocation2 + $0x9d] sm:$0xff] }
 0x238   : > { %v20369_v24 = vpop.f32.mrf.mxu1  ;;  %v20371_v47 = vpop.f32.mrf.mxu0  ;;  %vm24725_vm11 = vmmov %vm24447_vm0 }
 0x239   : > { %24712 = vst [vmem:[#allocation95_spill] sm:$0xff] %v20369_v24  ;;  %24713 = vst [vmem:[#allocation96_spill] sm:$0xff] %v20371_v47  ;;  %v4571_v47 = vld [vmem:[#allocation2 + $0x55] sm:$0xff] }
 0x23a   : > { %v20373_v62 = vpop.f32.mrf.mxu1  ;;  %v20375_v53 = vpop.f32.mrf.mxu0  ;;  %16464 = vmatmul.mubr.msk.f32.gmra.mxu1 %vm24715_vm12, %v4568_v37  ;;  %v13941_v37 = vld [vmem:[%s23962_s5 + $0x78] sm:$0xff]  ;;  %vm24729_vm15 = vmmov %vm24447_vm0 }
 0x23b   : > { %24714 = vst [vmem:[#allocation97_spill] sm:$0xff] %v20375_v53  ;;  %16466 = vmatprep.mubr.msk.f32.mxu1 %vm24716_vm8, %v4569_v40  ;;  %16584 = vmatprep.subr.mxu1 %v13941_v37  ;;  %vm24730_vm4 = vmmov %vm24447_vm0  ;;  %v4578_v53 = vld [vmem:[#allocation2 + $0x8d] sm:$0xff] }
 0x23c   : > { %v20379_v57 = vpop.f32.mrf.mxu1  ;;  %v20381_v33 = vpop.f32.mrf.mxu0  ;;  %16585 = vmatpush3.msra.mxu1 %v13941_v37  ;;  %v4575_v37 = vld [vmem:[#allocation2 + $0x75] sm:$0xff]  ;;  %vm24734_vm12 = vmmov %vm24447_vm0 }
 0x23d   : > { %24717 = vst [vmem:[#allocation98_spill] sm:$0xff] %v20379_v57  ;;  %24718 = vst [vmem:[#allocation99_spill] sm:$0xff] %v20381_v33  ;;  %v4572_v33 = vld [vmem:[#allocation2 + $0x5d] sm:$0xff] }
 0x23e   : > { %v20383_v1 = vpop.f32.mrf.mxu1  ;;  %v20385_v24 = vpop.f32.mrf.mxu0  ;;  %16467 = vmatmul.mubr.msk.f32.gmra.mxu1 %vm24720_vm3, %v4570_v25  ;;  %v4573_v25 = vld [vmem:[#allocation2 + $0x65] sm:$0xff]  ;;  %vm24735_vm8 = vmmov %vm24447_vm0 }
 0x23f   : > { %24719 = vst [vmem:[#allocation100_spill] sm:$0xff] %v20385_v24  ;;  %16469 = vmatprep.mubr.msk.f32.mxu1 %vm24721_vm13, %v4571_v47  ;;  %vm24739_vm3 = vmmov %vm24447_vm0 }
 0x240   : > { %v20392_v20 = vpop.f32.mrf.mxu1  ;;  %v20394_v40 = vpop.f32.mrf.mxu0  ;;  %vm24740_vm13 = vmmov %vm24447_vm0 }
 0x241   : > { %24722 = vst [vmem:[#allocation101_spill] sm:$0xff] %v20392_v20  ;;  %24723 = vst [vmem:[#allocation102_spill] sm:$0xff] %v20394_v40 }
 0x242   : > { %v20396_v57 = vpop.f32.mrf.mxu1  ;;  %v20398_v15 = vpop.f32.mrf.mxu0  ;;  %16470 = vmatmul.mubr.msk.f32.gmra.mxu1 %vm24447_vm0, %v4572_v33  ;;  %v13940_v33 = vld [vmem:[%s23962_s5 + $0x70] sm:$0xff] }
 0x243   : > { %24724 = vst [vmem:[#allocation103_spill] sm:$0xff] %v20398_v15  ;;  %16472 = vmatprep.mubr.msk.f32.mxu1 %vm24725_vm11, %v4573_v25  ;;  %16586 = vmatprep.subr.mxu1 %v13940_v33  ;;  %vm24744_vm11 = vmmov %vm24447_vm0 }
 0x244   : > { %v20402_v47 = vpop.f32.mrf.mxu1  ;;  %v20404_v7 = vpop.f32.mrf.mxu0  ;;  %16587 = vmatpush3.msra.mxu1 %v13940_v33  ;;  %v4579_v33 = vld [vmem:[#allocation2 + $0x95] sm:$0xff] }
 0x245   : > { %24726 = vst [vmem:[#allocation104_spill] sm:$0xff] %v20402_v47  ;;  %24727 = vst [vmem:[#allocation105_spill] sm:$0xff] %v20404_v7  ;;  %v4576_v7 = vld [vmem:[#allocation2 + $0x7d] sm:$0xff] }
 0x246   : > { %v20406_v20 = vpop.f32.mrf.mxu1  ;;  %v20408_v40 = vpop.f32.mrf.mxu0  ;;  %16473 = vmatmul.mubr.msk.f32.gmra.mxu1 %vm24729_vm15, %v4574_v51  ;;  %v4577_v51 = vld [vmem:[#allocation2 + $0x85] sm:$0xff]  ;;  %vm24748_vm15 = vmmov %vm24447_vm0 }
 0x247   : > { %24728 = vst [vmem:[#allocation106_spill] sm:$0xff] %v20408_v40  ;;  %16475 = vmatprep.mubr.msk.f32.mxu1 %vm24730_vm4, %v4575_v37  ;;  %vm24749_vm4 = vmmov %vm24447_vm0 }
 0x248   : > { %v20415_v15 = vpop.f32.mrf.mxu1  ;;  %v20417_v25 = vpop.f32.mrf.mxu0 }
 0x249   : > { %24731 = vst [vmem:[#allocation107_spill] sm:$0xff] %v20415_v15  ;;  %24732 = vst [vmem:[#allocation108_spill] sm:$0xff] %v20417_v25 }
 0x24a   : > { %v20419_v47 = vpop.f32.mrf.mxu1  ;;  %v20421_v24 = vpop.f32.mrf.mxu0  ;;  %16476 = vmatmul.mubr.msk.f32.gmra.mxu1 %vm24734_vm12, %v4576_v7  ;;  %vm24753_vm12 = vmmov %vm24447_vm0 }
 0x24b   : > { %24733 = vst [vmem:[#allocation109_spill] sm:$0xff] %v20421_v24  ;;  %16478 = vmatprep.mubr.msk.f32.mxu1 %vm24735_vm8, %v4577_v51  ;;  %v13939_v51 = vld [vmem:[%s23962_s5 + $0x68] sm:$0xff]  ;;  %vm24754_vm8 = vmmov %vm24447_vm0 }
 0x24c   : > { %v20425_v37 = vpop.f32.mrf.mxu1  ;;  %v20427_v40 = vpop.f32.mrf.mxu0  ;;  %16588 = vmatprep.subr.mxu1 %v13939_v51 }
 0x24d   : > { %24736 = vst [vmem:[#allocation110_spill] sm:$0xff] %v20425_v37  ;;  %24737 = vst [vmem:[#allocation111_spill] sm:$0xff] %v20427_v40  ;;  %16589 = vmatpush3.msra.mxu1 %v13939_v51  ;;  %v13938_v51 = vld [vmem:[%s23962_s5 + $0x60] sm:$0xff] }
 0x24e   : > { %v20429_v15 = vpop.f32.mrf.mxu1  ;;  %v20431_v25 = vpop.f32.mrf.mxu0  ;;  %16479 = vmatmul.mubr.msk.f32.gmra.mxu1 %vm24739_vm3, %v4578_v53  ;;  %16590 = vmatprep.subr.mxu1 %v13938_v51  ;;  %vm24758_vm3 = vmmov %vm24447_vm0 }
 0x24f   : > { %24738 = vst [vmem:[#allocation112_spill] sm:$0xff] %v20431_v25  ;;  %16481 = vmatprep.mubr.msk.f32.mxu1 %vm24740_vm13, %v4579_v33  ;;  %v4581_v25 = vld [vmem:[#allocation2 + $0xa5] sm:$0xff]  ;;  %16591 = vmatpush3.msra.mxu1 %v13938_v51  ;;  %vm24759_vm13 = vmmov %vm24447_vm0  ;;  %v4588_v51 = vld [vmem:[#allocation2 + $0xdd] sm:$0xff] }
 0x250   : > { %v20435_v24 = vpop.f32.mrf.mxu1  ;;  %v20437_v7 = vpop.f32.mrf.mxu0 }
 0x251   : > { %24741 = vst [vmem:[#allocation113_spill] sm:$0xff] %v20435_v24  ;;  %24742 = vst [vmem:[#allocation114_spill] sm:$0xff] %v20437_v7  ;;  %v4582_v7 = vld [vmem:[#allocation2 + $0xad] sm:$0xff] }
 0x252   : > { %v20442_v40 = vpop.f32.mrf.mxu1  ;;  %v20444_v37 = vpop.f32.mrf.mxu0  ;;  %16482 = vmatmul.mubr.msk.f32.gmra.mxu1 %vm24447_vm0, %v4580_v48 }
 0x253   : > { %24743 = vst [vmem:[#allocation115_spill] sm:$0xff] %v20444_v37  ;;  %16484 = vmatprep.mubr.msk.f32.mxu1 %vm24744_vm11, %v4581_v25  ;;  %v4584_v25 = vld [vmem:[#allocation2 + $0xbd] sm:$0xff]  ;;  %vm24763_vm11 = vmmov %vm24447_vm0 }
 0x254   : > { %v20448_v53 = vpop.f32.mrf.mxu1  ;;  %v20450_v33 = vpop.f32.mrf.mxu0 }
 0x255   : > { %24745 = vst [vmem:[#allocation116_spill] sm:$0xff] %v20448_v53  ;;  %24746 = vst [vmem:[#allocation117_spill] sm:$0xff] %v20450_v33 }
 0x256   : > { %v20452_v24 = vpop.f32.mrf.mxu1  ;;  %v20454_v42 = vpop.f32.mrf.mxu0  ;;  %16485 = vmatmul.mubr.msk.f32.gmra.mxu1 %vm24748_vm15, %v4582_v7  ;;  %vm24766_vm15 = vmmov %vm24447_vm0 }
 0x257   : > { %24747 = vst [vmem:[#allocation118_spill] sm:$0xff] %v20454_v42  ;;  %16487 = vmatprep.mubr.msk.f32.mxu1 %vm24749_vm4, %v4583_v22  ;;  %v4585_v42 = vld [vmem:[#allocation2 + $0xc5] sm:$0xff]  ;;  %vm24767_vm4 = vmmov %vm24447_vm0 }
 0x258   : > { %v20458_v48 = vpop.f32.mrf.mxu1  ;;  %v20460_v37 = vpop.f32.mrf.mxu0 }
 0x259   : > { %24750 = vst [vmem:[#allocation119_spill] sm:$0xff] %v20458_v48  ;;  %24751 = vst [vmem:[#allocation120_spill] sm:$0xff] %v20460_v37  ;;  %v4586_v37 = vld [vmem:[#allocation2 + $0xcd] sm:$0xff] }
 0x25a   : > { %v20465_v33 = vpop.f32.mrf.mxu1  ;;  %v20467_v53 = vpop.f32.mrf.mxu0  ;;  %16488 = vmatmul.mubr.msk.f32.gmra.mxu1 %vm24753_vm12, %v4584_v25  ;;  %vm24769_vm12 = vmmov %vm24447_vm0 }
 0x25b   : > { %24752 = vst [vmem:[#allocation121_spill] sm:$0xff] %v20467_v53  ;;  %16490 = vmatprep.mubr.msk.f32.mxu1 %vm24754_vm8, %v4585_v42  ;;  %v2222_v42 = vadd.f32 %v20281_v14, %v19986_v6  ;;  %v2232_v6 = vadd.f32 %v20295_v41, %v20006_v34  ;;  %v2242_v34 = vadd.f32 %v20309_v12, %v20026_v19  ;;  %v4592_v41 = vld [vmem:[#allocation2 + $0xfd] sm:$0xff]  ;;  %vm24770_vm8 = vmmov %vm24447_vm0 }
 0x25c   : > { %v20471_v22 = vpop.f32.mrf.mxu1  ;;  %v20473_v7 = vpop.f32.mrf.mxu0 }
 0x25d   : > { %24755 = vst [vmem:[#allocation122_spill] sm:$0xff] %v20471_v22  ;;  %24756 = vst [vmem:[#allocation123_spill] sm:$0xff] %v20473_v7  ;;  %v2794_v14 = vadd.f32 %v19980_v18, %v2222_v42  ;;  %v2796_v18 = vadd.f32 %v20008_v52, %v2232_v6  ;;  %v2252_v52 = vadd.f32 %v20323_v2, %v20048_v43  ;;  %v4594_v6 = vld [vmem:[#allocation2 + $0x10d] sm:$0xff]  ;;  %v4596_v2 = vld [vmem:[#allocation2 + $0x11d] sm:$0xff] }
 0x25e   : > { %v20475_v48 = vpop.f32.mrf.mxu1  ;;  %v20477_v29 = vpop.f32.mrf.mxu0  ;;  %16491 = vmatmul.mubr.msk.f32.gmra.mxu1 %vm24758_vm3, %v4586_v37  ;;  %v2798_v12 = vadd.f32 %v20028_v13, %v2242_v34  ;;  %vm24772_vm3 = vmmov %vm24447_vm0  ;;  %v2262_v43 = vadd.f32 %v20337_v16, %v20066_v63  ;;  %v2272_v63 = vadd.f32 %v20351_v26, %v20080_v28  ;;  %v4598_v16 = vld [vmem:[#allocation2 + $0x12d] sm:$0xff]  ;;  %v4600_v28 = vld [vmem:[#allocation2 + $0x13d] sm:$0xff] }
 0x25f   : > { %24757 = vst [vmem:[#allocation124_spill] sm:$0xff] %v20477_v29  ;;  %16493 = vmatprep.mubr.msk.f32.mxu1 %vm24759_vm13, %v4587_v45  ;;  %v4589_v29 = vld [vmem:[#allocation2 + $0xe5] sm:$0xff]  ;;  %v13937_v45 = vld [vmem:[%s23962_s5 + $0x58] sm:$0xff]  ;;  %vm24773_vm13 = vmmov %vm24447_vm0  ;;  %v2800_v13 = vadd.f32 %v20050_v5, %v2252_v52 }
 0x260   : > { %v20481_v25 = vpop.f32.mrf.mxu1  ;;  %v20483_v53 = vpop.f32.mrf.mxu0  ;;  %16592 = vmatprep.subr.mxu1 %v13937_v45  ;;  %v2802_v5 = vadd.f32 %v20068_v54, %v2262_v43  ;;  %v13935_v52 = vld [vmem:[%s23962_s5 + $0x48] sm:$0xff]  ;;  %v2282_v43 = vadd.f32 %v20363_v30, %v20095_v56 }
 0x261   : > { %24760 = vst [vmem:[#allocation125_spill] sm:$0xff] %v20481_v25  ;;  %24761 = vst [vmem:[#allocation126_spill] sm:$0xff] %v20483_v53  ;;  %v4590_v25 = vld [vmem:[#allocation2 + $0xed] sm:$0xff]  ;;  %16593 = vmatpush3.msra.mxu1 %v13937_v45 }
 0x262   : > { %v20487_v22 = vpop.f32.mrf.mxu1  ;;  %v20489_v7 = vpop.f32.mrf.mxu0  ;;  %16494 = vmatmul.mubr.msk.f32.gmra.mxu1 %vm24447_vm0, %v4588_v51 }
 0x263   : > { %24762 = vst [vmem:[#allocation127_spill] sm:$0xff] %v20489_v7  ;;  %16496 = vmatprep.mubr.msk.f32.mxu1 %vm24763_vm11, %v4589_v29  ;;  %v4591_v29 = vld [vmem:[#allocation2 + $0xf5] sm:$0xff]  ;;  %vm24775_vm11 = vmmov %vm24447_vm0 }
 0x264   : > { %v20496_v37 = vpop.f32.mrf.mxu1  ;;  %v20498_v53 = vpop.f32.mrf.mxu0 }
 0x265   : > { %24764 = vst [vmem:[#allocation128_spill] sm:$0xff] %v20496_v37  ;;  %24765 = vst [vmem:[#allocation129_spill] sm:$0xff] %v20498_v53 }
 0x266   : > { %v16182_v51 = vpop.f32.mrf.mxu1  ;;  %v20503_v7 = vpop.f32.mrf.mxu0  ;;  %16497 = vmatmul.mubr.msk.f32.gmra.mxu1 %vm24766_vm15, %v4590_v25  ;;  %v4593_v25 = vld [vmem:[#allocation2 + $0x105] sm:$0xff]  ;;  %vm24778_vm15 = vmmov %vm24447_vm0 }
 0x267   : > { %v20506_v50 = vadd.f32 %v16182_v51, %v2794_v14  ;;  %16499 = vmatprep.mubr.msk.f32.mxu1 %vm24767_vm4, %v4591_v29  ;;  %v13936_v51 = vld [vmem:[%s23962_s5 + $0x50] sm:$0xff]  ;;  %vm24779_vm4 = vmmov %vm24447_vm0 }
 0x268   : > { %v20509_v37 = vpop.f32.mrf.mxu1  ;;  %v20511_v53 = vpop.f32.mrf.mxu0  ;;  %16594 = vmatprep.subr.mxu1 %v13936_v51 }
 0x269   : > { %16595 = vmatpush3.msra.mxu1 %v13936_v51 }
 0x26a   : > { %v16185_v42 = vpop.f32.mrf.mxu1  ;;  %v20516_v45 = vpop.f32.mrf.mxu0  ;;  %16500 = vmatmul.mubr.msk.f32.gmra.mxu1 %vm24769_vm12, %v4592_v41  ;;  %16596 = vmatprep.subr.mxu1 %v13935_v52  ;;  %vm24781_vm12 = vmmov %vm24447_vm0 }
 0x26b   : > { %24768 = vst [vmem:[#allocation130_spill] sm:$0xff] %v20516_v45  ;;  %v20519_v14 = vadd.f32 %v16185_v42, %v2796_v18  ;;  %16502 = vmatprep.mubr.msk.f32.mxu1 %vm24770_vm8, %v4593_v25  ;;  %v4595_v42 = vld [vmem:[#allocation2 + $0x115] sm:$0xff]  ;;  %16597 = vmatpush3.msra.mxu1 %v13935_v52  ;;  %vm24791_vm8 = vmmov %vm24447_vm0 }
 0x26c   : > { %v20525_v29 = vpop.f32.mrf.mxu1  ;;  %v20527_v19 = vpop.f32.mrf.mxu0 }
 0x26d   : > { %24771 = vst [vmem:[#allocation131_spill] sm:$0xff] %v20527_v19 }
 0x26e   : > { %v16188_v18 = vpop.f32.mrf.mxu1  ;;  %v20532_v41 = vpop.f32.mrf.mxu0  ;;  %16503 = vmatmul.mubr.msk.f32.gmra.mxu1 %vm24772_vm3, %v4594_v6  ;;  %v4597_v6 = vld [vmem:[#allocation2 + $0x125] sm:$0xff]  ;;  %vm24794_vm3 = vmmov %vm24447_vm0 }
 0x26f   : > { %v20535_v25 = vadd.f32 %v16188_v18, %v2798_v12  ;;  %16505 = vmatprep.mubr.msk.f32.mxu1 %vm24773_vm13, %v4595_v42  ;;  %vm24795_vm13 = vmmov %vm24447_vm0 }
 0x270   : > { %v20538_v45 = vpop.f32.mrf.mxu1  ;;  %v20540_v19 = vpop.f32.mrf.mxu0 }
 0x271   : > { %24774 = vst [vmem:[#allocation132_spill] sm:$0xff] %v20540_v19  ;;  %v4599_v19 = vld [vmem:[#allocation2 + $0x135] sm:$0xff] }
 0x272   : > { %v16191_v34 = vpop.f32.mrf.mxu1  ;;  %v20545_v51 = vpop.f32.mrf.mxu0  ;;  %16506 = vmatmul.mubr.msk.f32.gmra.mxu1 %vm24447_vm0, %v4596_v2 }
 0x273   : > { %v20548_v12 = vadd.f32 %v16191_v34, %v2800_v13  ;;  %16508 = vmatprep.mubr.msk.f32.mxu1 %vm24775_vm11, %v4597_v6  ;;  %v5627_v13 = vld [vmem:[%s23962_s5 + $0x38] sm:$0xff] }
 0x274   : > { %v20551_v18 = vpop.f32.mrf.mxu1  ;;  %v20553_v42 = vpop.f32.mrf.mxu0  ;;  %16654 = vmatprep.subr.mxu0 %v5627_v13 }
 0x275   : > { %24776 = vst [vmem:[#allocation133_spill] sm:$0xff] %v20553_v42  ;;  %v2804_v42 = vadd.f32 %v20082_v27, %v2272_v63  ;;  %16655 = vmatpush3.msra.mxu0 %v5627_v13 }
 0x276   : > { %v16194_v2 = vpop.f32.mrf.mxu1  ;;  %v20564_v34 = vpop.f32.mrf.mxu0  ;;  %16509 = vmatmul.mubr.msk.f32.gmra.mxu1 %vm24778_vm15, %v4598_v16  ;;  %vm24924_vm15 = vmmov %vm24447_vm0 }
 0x277   : > { %24777 = vst [vmem:[#allocation134_spill] sm:$0xff] %v20564_v34  ;;  %v20567_v6 = vadd.f32 %v16194_v2, %v2802_v5  ;;  %16511 = vmatprep.mubr.msk.f32.mxu1 %vm24779_vm4, %v4599_v19  ;;  %v2292_v2 = vadd.f32 %v20373_v62, %v20112_v4 }
 0x278   : > { %v20570_v54 = vpop.f32.mrf.mxu1  ;;  %v20572_v26 = vpop.f32.mrf.mxu0 }
 0x279   : > { %24780 = vst [vmem:[#allocation135_spill] sm:$0xff] %v20572_v26  ;;  %v2806_v26 = vadd.f32 %v20097_v35, %v2282_v43  ;;  %v2808_v4 = vadd.f32 %v20114_v17, %v2292_v2  ;;  %v5624_v17 = vld [vmem:[%s23962_s5 + $0x20] sm:$0xff] }
 0x27a   : > { %v16197_v34 = vpop.f32.mrf.mxu1  ;;  %v20577_v16 = vpop.f32.mrf.mxu0  ;;  %16512 = vmatmul.mubr.msk.f32.gmra.mxu1 %vm24781_vm12, %v4600_v28  ;;  %v5625_v28 = vld [vmem:[%s23962_s5 + $0x28] sm:$0xff]  ;;  %vm24928_vm12 = vmmov %vm24447_vm0 }
 0x27b   : > { %v20580_v5 = vadd.f32 %v16197_v34, %v2804_v42  ;;  %v5626_v42 = vld [vmem:[%s23962_s5 + $0x30] sm:$0xff]  ;;  %v2302_v34 = vadd.f32 %v20383_v1, %v20129_v0  ;;  %v2312_v0 = vadd.f32 %v20396_v57, %v20146_v38  ;;  %v2322_v38 = vadd.f32 %v20406_v20, %v20163_v55 }
 0x27c   : > { %v20582_v19 = vpop.f32.mrf.mxu1  ;;  %v20584_v52 = vpop.f32.mrf.mxu0  ;;  %16656 = vmatprep.subr.mxu0 %v5626_v42  ;;  %v2332_v20 = vadd.f32 %v20419_v47, %v20180_v49  ;;  %v2342_v49 = vadd.f32 %v20429_v15, %v20197_v9 }
 0x27d   : > { %16657 = vmatpush3.msra.mxu0 %v5626_v42  ;;  %v2810_v1 = vadd.f32 %v20131_v39, %v2302_v34  ;;  %v2812_v34 = vadd.f32 %v20148_v58, %v2312_v0  ;;  %v5620_v58 = vld [vmem:[%s23962_s5] sm:$0xff]  ;;  %v2814_v0 = vadd.f32 %v20165_v46, %v2322_v38  ;;  %v14021_v46 = vld [vmem:[%s23962_s5 + $0xb8] sm:$0xff] }
 0x27e   : > { %v16200_v56 = vpop.f32.mrf.mxu1  ;;  %v20589_v30 = vpop.f32.mrf.mxu0  ;;  %16658 = vmatprep.subr.mxu0 %v5625_v28  ;;  %v2816_v47 = vadd.f32 %v20182_v8, %v2332_v20  ;;  %v2818_v15 = vadd.f32 %v20199_v60, %v2342_v49 }
 0x27f   : > { %24782 = vst [vmem:[#allocation136_spill] sm:$0xff] %v20589_v30  ;;  %v20591_v27 = vadd.f32 %v16200_v56, %v2806_v26  ;;  %16659 = vmatpush3.msra.mxu0 %v5625_v28 }
 0x280   : > { %v20593_v63 = vpop.f32.mrf.mxu1  ;;  %v20595_v13 = vpop.f32.mrf.mxu0  ;;  %16660 = vmatprep.subr.mxu0 %v5624_v17 }
 0x281   : > { %24783 = vst [vmem:[#allocation137_spill] sm:$0xff] %v20595_v13  ;;  %16661 = vmatpush3.msra.mxu0 %v5624_v17  ;;  %v5622_v17 = vld [vmem:[%s23962_s5 + $0x10] sm:$0xff] }
 0x282   : > { %v16203_v35 = vpop.f32.mrf.mxu1  ;;  %v20603_v62 = vpop.f32.mrf.mxu0 }
 0x283   : > { %24784 = vst [vmem:[#allocation138_spill] sm:$0xff] %v20603_v62  ;;  %v20608_v26 = vadd.f32 %v16203_v35, %v2808_v4  ;;  %v13934_v4 = vld [vmem:[%s23962_s5 + $0x40] sm:$0xff]  ;;  %v5623_v35 = vld [vmem:[%s23962_s5 + $0x18] sm:$0xff] }
 0x284   : > { %v20610_v43 = vpop.f32.mrf.mxu1  ;;  %v20612_v56 = vpop.f32.mrf.mxu0  ;;  %16598 = vmatprep.subr.mxu1 %v13934_v4  ;;  %16662 = vmatprep.subr.mxu0 %v5623_v35 }
 0x285   : > { %24785 = vst [vmem:[#allocation139_spill] sm:$0xff] %v20612_v56  ;;  %16599 = vmatpush3.msra.mxu1 %v13934_v4  ;;  %16663 = vmatpush3.msra.mxu0 %v5623_v35 }
 0x286   : > { %v16206_v2 = vpop.f32.mrf.mxu1  ;;  %v20620_v42 = vpop.f32.mrf.mxu0  ;;  %16664 = vmatprep.subr.mxu0 %v5622_v17  ;;  %16724 = vmatprep.subr.mxu1 %v14021_v46 }
 0x287   : > { %24786 = vst [vmem:[#allocation140_spill] sm:$0xff] %v20620_v42  ;;  %v20628_v28 = vadd.f32 %v16206_v2, %v2810_v1  ;;  %v5621_v2 = vld [vmem:[%s23962_s5 + $0x8] sm:$0xff]  ;;  %16665 = vmatpush3.msra.mxu0 %v5622_v17  ;;  %v5629_v17 = vld [vmem:[#allocation3 + $0x9] sm:$0xff] }
 0x288   : > { %v20630_v57 = vpop.f32.mrf.mxu1  ;;  %v20632_v39 = vpop.f32.mrf.mxu0  ;;  %16666 = vmatprep.subr.mxu0 %v5621_v2 }
 0x289   : > { %24787 = vst [vmem:[#allocation141_spill] sm:$0xff] %v20632_v39  ;;  %16667 = vmatpush3.msra.mxu0 %v5621_v2 }
 0x28a   : > { %v16209_v42 = vpop.f32.mrf.mxu1  ;;  %v20640_v1 = vpop.f32.mrf.mxu0  ;;  %16668 = vmatprep.subr.mxu0 %v5620_v58 }
 0x28b   : > { %24788 = vst [vmem:[#allocation142_spill] sm:$0xff] %v20640_v1  ;;  %v20645_v39 = vadd.f32 %v16209_v42, %v2812_v34  ;;  %v5628_v42 = vld [vmem:[#allocation3 + $0x1] sm:$0xff]  ;;  %16669 = vmatpush3.msra.mxu0 %v5620_v58 }
 0x28c   : > { %v20647_v4 = vpop.f32.mrf.mxu1  ;;  %v20649_v55 = vpop.f32.mrf.mxu0  ;;  %v5584_v34 = vld [vmem:[#allocation3] sm:$0xff]  ;;  %16600 = vmatprep.mubr.msk.f32.mxu1 %vm24791_vm8, %v5628_v42  ;;  %v2352_v42 = vadd.f32 %v20442_v40, %v20211_v36 }
 0x28d   : > { %24789 = vst [vmem:[#allocation143_spill] sm:$0xff] %v20649_v55  ;;  %v5585_v55 = vld [vmem:[#allocation3 + $0x8] sm:$0xff]  ;;  %16670 = vmatprep.mubr.msk.f32.mxu0 %vm24794_vm3, %v5584_v34  ;;  %16601 = vmatmul.mubr.msk.f32.vlgmr.msra.gmra.mxu1 %vm24795_vm13, %v5629_v17  ;;  %v14020_v17 = vld [vmem:[%s23962_s5 + $0xb0] sm:$0xff]  ;;  %vm24932_vm3 = vmmov %vm24447_vm0 }
 0x28e   : > { %v16212_v35 = vpop.f32.mrf.mxu1  ;;  %v20657_v1 = vpop.f32.mrf.mxu0  ;;  %16671 = vmatmul.mubr.msk.f32.vlgmr.msra.gmra.mxu0 %vm24447_vm0, %v5585_v55  ;;  %16725 = vmatpush3.msra.mxu1 %v14021_v46  ;;  %v2362_v46 = vadd.f32 %v20452_v24, %v20225_v59  ;;  %v2820_v36 = vadd.f32 %v20213_v23, %v2352_v42 }
 0x28f   : > { %24790 = vst [vmem:[#allocation144_spill] sm:$0xff] %v20657_v1  ;;  %v20659_v56 = vadd.f32 %v16212_v35, %v2814_v0  ;;  %16726 = vmatprep.subr.mxu1 %v14020_v17 }
 0x290   : > { %v20662_v62 = vpop.f32.mrf.mxu1  ;;  %v20664_v13 = vpop.f32.mrf.mxu0  ;;  %16727 = vmatpush3.msra.mxu1 %v14020_v17  ;;  %v2382_v17 = vadd.f32 %v20475_v48, %v20253_v44  ;;  %v2392_v44 = vadd.f32 %v20487_v22, %v20267_v3  ;;  %v14018_v3 = vld [vmem:[%s23962_s5 + $0xa0] sm:$0xff] }
 0x291   : > { %24792 = vst [vmem:[#allocation145_spill] sm:$0xff] %v20662_v62  ;;  %24793 = vst [vmem:[#allocation146_spill] sm:$0xff] %v20664_v13  ;;  %v24837_v62 = vld [vmem:[#allocation109_spill] sm:$0xff] }
 0x292   : > { %v16215_v38 = vpop.f32.mrf.mxu1  ;;  %v20675_v2 = vpop.f32.mrf.mxu0 }
 0x293   : > { %24796 = vst [vmem:[#allocation147_spill] sm:$0xff] %v20675_v2  ;;  %v20677_v58 = vadd.f32 %v16215_v38, %v2816_v47 }
 0x294   : > { %v20679_v0 = vpop.f32.mrf.mxu1  ;;  %v20681_v35 = vpop.f32.mrf.mxu0 }
 0x295   : > { %24797 = vst [vmem:[#allocation148_spill] sm:$0xff] %v20679_v0  ;;  %24798 = vst [vmem:[#allocation149_spill] sm:$0xff] %v20681_v35  ;;  %v24824_v35 = vld [vmem:[#allocation97_spill] sm:$0xff] }
 0x296   : > { %v16218_v9 = vpop.f32.mrf.mxu1  ;;  %v20686_v8 = vpop.f32.mrf.mxu0  ;;  %v3676_v2 = vadd.f32 %v24824_v35, %v20608_v26  ;;  %v14061_v26 = vld [vmem:[%s23962_s5 + $0xd8] sm:$0xff]  ;;  %v24827_v35 = vld [vmem:[#allocation100_spill] sm:$0xff] }
 0x297   : > { %24799 = vst [vmem:[#allocation150_spill] sm:$0xff] %v20686_v8  ;;  %v20688_v55 = vadd.f32 %v16218_v9, %v2818_v15  ;;  %v2372_v15 = vadd.f32 %v20465_v33, %v20239_v10  ;;  %v2822_v9 = vadd.f32 %v20227_v31, %v2362_v46  ;;  %v14019_v31 = vld [vmem:[%s23962_s5 + $0xa8] sm:$0xff] }
 0x298   : > { %v20690_v20 = vpop.f32.mrf.mxu1  ;;  %v20692_v34 = vpop.f32.mrf.mxu0  ;;  %16728 = vmatprep.subr.mxu1 %v14019_v31 }
 0x299   : > { %24800 = vst [vmem:[#allocation151_spill] sm:$0xff] %v20690_v20  ;;  %24801 = vst [vmem:[#allocation152_spill] sm:$0xff] %v20692_v34  ;;  %16729 = vmatpush3.msra.mxu1 %v14019_v31 }
 0x29a   : > { %v16221_v60 = vpop.f32.mrf.mxu1  ;;  %v20700_v40 = vpop.f32.mrf.mxu0  ;;  %16730 = vmatprep.subr.mxu1 %v14018_v3 }
 0x29b   : > { %24802 = vst [vmem:[#allocation153_spill] sm:$0xff] %v20700_v40  ;;  %v20702_v49 = vadd.f32 %v16221_v60, %v2820_v36  ;;  %v2824_v36 = vadd.f32 %v20241_v61, %v2372_v15  ;;  %v2826_v61 = vadd.f32 %v20255_v21, %v2382_v17  ;;  %16731 = vmatpush3.msra.mxu1 %v14018_v3 }
 0x29c   : > { %v20704_v47 = vpop.f32.mrf.mxu1  ;;  %v20706_v38 = vpop.f32.mrf.mxu0  ;;  %v3662_v17 = vadd.f32 %v20283_v32, %v20506_v50  ;;  %v14017_v32 = vld [vmem:[%s23962_s5 + $0x98] sm:$0xff] }
 0x29d   : > { %24803 = vst [vmem:[#allocation154_spill] sm:$0xff] %v20704_v47  ;;  %24804 = vst [vmem:[#allocation155_spill] sm:$0xff] %v20706_v38  ;;  %v24818_v50 = vld [vmem:[#allocation82_spill] sm:$0xff]  ;;  %16732 = vmatprep.subr.mxu1 %v14017_v32 }
 0x29e   : > { %v16224_v34 = vpop.f32.mrf.mxu1  ;;  %v20711_v59 = vpop.f32.mrf.mxu0  ;;  %v3666_v3 = vadd.f32 %v24818_v50, %v20535_v25  ;;  %16733 = vmatpush3.msra.mxu1 %v14017_v32  ;;  %v14016_v25 = vld [vmem:[%s23962_s5 + $0x90] sm:$0xff]  ;;  %v24820_v32 = vld [vmem:[#allocation88_spill] sm:$0xff] }
 0x29f   : > { %24805 = vst [vmem:[#allocation156_spill] sm:$0xff] %v20711_v59  ;;  %v20713_v23 = vadd.f32 %v16224_v34, %v2822_v9  ;;  %v3670_v50 = vadd.f32 %v24820_v32, %v20567_v6  ;;  %16734 = vmatprep.subr.mxu1 %v14016_v25  ;;  %v24822_v6 = vld [vmem:[#allocation94_spill] sm:$0xff] }
 0x2a0   : > { %v20715_v24 = vpop.f32.mrf.mxu1  ;;  %v20717_v42 = vpop.f32.mrf.mxu0  ;;  %16735 = vmatpush3.msra.mxu1 %v14016_v25  ;;  %v3674_v32 = vadd.f32 %v24822_v6, %v20591_v27  ;;  %v14015_v25 = vld [vmem:[%s23962_s5 + $0x88] sm:$0xff]  ;;  %v14014_v27 = vld [vmem:[%s23962_s5 + $0x80] sm:$0xff] }
 0x2a1   : > { %24806 = vst [vmem:[#allocation157_spill] sm:$0xff] %v20715_v24  ;;  %24807 = vst [vmem:[#allocation158_spill] sm:$0xff] %v20717_v42  ;;  %16736 = vmatprep.subr.mxu1 %v14015_v25  ;;  %v14063_v6 = vld [vmem:[%s23962_s5 + $0xe8] sm:$0xff] }
 0x2a2   : > { %v16227_v60 = vpop.f32.mrf.mxu1  ;;  %v20722_v38 = vpop.f32.mrf.mxu0  ;;  %16737 = vmatpush3.msra.mxu1 %v14015_v25 }
 0x2a3   : > { %24808 = vst [vmem:[#allocation159_spill] sm:$0xff] %v20722_v38  ;;  %v20727_v10 = vadd.f32 %v16227_v60, %v2824_v36  ;;  %v2828_v60 = vadd.f32 %v20269_v11, %v2392_v44  ;;  %16738 = vmatprep.subr.mxu1 %v14014_v27 }
 0x2a4   : > { %v20729_v33 = vpop.f32.mrf.mxu1  ;;  %v20731_v34 = vpop.f32.mrf.mxu0  ;;  %16739 = vmatpush3.msra.mxu1 %v14014_v27  ;;  %v3678_v27 = vadd.f32 %v24827_v35, %v20628_v28  ;;  %v14059_v28 = vld [vmem:[%s23962_s5 + $0xc8] sm:$0xff]  ;;  %v24830_v35 = vld [vmem:[#allocation103_spill] sm:$0xff] }
 0x2a5   : > { %24809 = vst [vmem:[#allocation160_spill] sm:$0xff] %v20729_v33  ;;  %24810 = vst [vmem:[#allocation161_spill] sm:$0xff] %v20731_v34  ;;  %v3680_v47 = vadd.f32 %v24830_v35, %v20645_v39 }
 0x2a6   : > { %v16230_v48 = vpop.f32.mrf.mxu1  ;;  %v20736_v46 = vpop.f32.mrf.mxu0 }
 0x2a7   : > { %24811 = vst [vmem:[#allocation162_spill] sm:$0xff] %v20736_v46  ;;  %v20738_v15 = vadd.f32 %v16230_v48, %v2826_v61  ;;  %v24817_v48 = vld [vmem:[#allocation79_spill] sm:$0xff] }
 0x2a8   : > { %v20740_v9 = vpop.f32.mrf.mxu1  ;;  %v20742_v36 = vpop.f32.mrf.mxu0 }
 0x2a9   : > { %24812 = vst [vmem:[#allocation163_spill] sm:$0xff] %v20740_v9  ;;  %24813 = vst [vmem:[#allocation164_spill] sm:$0xff] %v20742_v36 }
 0x2aa   : > { %v16233_v38 = vpop.f32.mrf.mxu1  ;;  %v20745_v42 = vpop.f32.mrf.mxu0 }
 0x2ab   : > { %24814 = vst [vmem:[#allocation165_spill] sm:$0xff] %v20745_v42  ;;  %v20750_v22 = vadd.f32 %v16233_v38, %v2828_v60  ;;  %v3664_v42 = vadd.f32 %v24817_v48, %v20519_v14 }
 0x2ac   : > { %v20752_v21 = vpop.f32.mrf.mxu1  ;;  %v20756_v31 = vpop.f32.mrf.mxu0 }
 0x2ad   : > { %24815 = vst [vmem:[#allocation166_spill] sm:$0xff] %v20752_v21  ;;  %24816 = vst [vmem:[#allocation167_spill] sm:$0xff] %v20756_v31 }
 0x2ae   : > { %v16322_v61 = vpop.f32.mrf.mxu1  ;;  %v20764_v36 = vpop.f32.mrf.mxu0 }
 0x2af   : > { %v20758_v11 = vadd.f32 %v16322_v61, %v3662_v17 }
 0x2b0   : > { %v20760_v44 = vpop.f32.mrf.mxu1  ;;  %v20775_v17 = vpop.f32.mrf.mxu0 }
 0x2b2   : > { %v16325_v38 = vpop.f32.mrf.mxu1  ;;  %v20783_v31 = vpop.f32.mrf.mxu0 }
 0x2b3   : > { %v20766_v60 = vadd.f32 %v16325_v38, %v3664_v42  ;;  %v24819_v42 = vld [vmem:[#allocation85_spill] sm:$0xff] }
 0x2b4   : > { %v20768_v46 = vpop.f32.mrf.mxu1  ;;  %v3668_v38 = vadd.f32 %v24819_v42, %v20548_v12 }
 0x2b6   : > { %v16328_v61 = vpop.f32.mrf.mxu1 }
 0x2b7   : > { %v20777_v14 = vadd.f32 %v16328_v61, %v3666_v3  ;;  %v20794_v3 = vpop.f32.mrf.mxu0 }
 0x2b8   : > { %v20779_v48 = vpop.f32.mrf.mxu1 }
 0x2b9   : > { %v20802_v9 = vpop.f32.mrf.mxu0 }
 0x2ba   : > { %v16331_v34 = vpop.f32.mrf.mxu1 }
 0x2bb   : > { %v20785_v21 = vadd.f32 %v16331_v34, %v3668_v38  ;;  %v24821_v34 = vld [vmem:[#allocation91_spill] sm:$0xff] }
 0x2bc   : > { %v20787_v59 = vpop.f32.mrf.mxu1  ;;  %v3672_v38 = vadd.f32 %v24821_v34, %v20580_v5  ;;  %v14065_v5 = vld [vmem:[%s23962_s5 + $0xf8] sm:$0xff] }
 0x2bd   : > { %16794 = vmatprep.subr.mxu0 %v14065_v5 }
 0x2be   : > { %v16334_v61 = vpop.f32.mrf.mxu1  ;;  %16795 = vmatpush3.msra.mxu0 %v14065_v5 }
 0x2bf   : > { %v20796_v12 = vadd.f32 %v16334_v61, %v3670_v50  ;;  %v20813_v50 = vpop.f32.mrf.mxu0 }
 0x2c0   : > { %v20798_v42 = vpop.f32.mrf.mxu1 }
 0x2c2   : > { %v16337_v40 = vpop.f32.mrf.mxu1 }
 0x2c3   : > { %v20804_v8 = vadd.f32 %v16337_v40, %v3672_v38  ;;  %v14064_v40 = vld [vmem:[%s23962_s5 + $0xf0] sm:$0xff] }
 0x2c4   : > { %v20806_v33 = vpop.f32.mrf.mxu1  ;;  %16796 = vmatprep.subr.mxu0 %v14064_v40 }
 0x2c5   : > { %16797 = vmatpush3.msra.mxu0 %v14064_v40  ;;  %v14109_v40 = vld [vmem:[%s23962_s5 + $0x138] sm:$0xff] }
 0x2c6   : > { %v16340_v61 = vpop.f32.mrf.mxu1  ;;  %16798 = vmatprep.subr.mxu0 %v14063_v6  ;;  %16864 = vmatprep.subr.mxu1 %v14109_v40 }
 0x2c7   : > { %v20821_v34 = vadd.f32 %v16340_v61, %v3674_v32  ;;  %v20833_v32 = vpop.f32.mrf.mxu0  ;;  %v14062_v61 = vld [vmem:[%s23962_s5 + $0xe0] sm:$0xff]  ;;  %16799 = vmatpush3.msra.mxu0 %v14063_v6  ;;  %v14060_v6 = vld [vmem:[%s23962_s5 + $0xd0] sm:$0xff] }
 0x2c8   : > { %v20826_v38 = vpop.f32.mrf.mxu1  ;;  %16800 = vmatprep.subr.mxu0 %v14062_v61 }
 0x2c9   : > { %24823 = vst [vmem:[#allocation79_spill] sm:$0xff] %v20821_v34  ;;  %v20850_v13 = vpop.f32.mrf.mxu0  ;;  %16801 = vmatpush3.msra.mxu0 %v14062_v61 }
 0x2ca   : > { %v16343_v25 = vpop.f32.mrf.mxu1  ;;  %16802 = vmatprep.subr.mxu0 %v14061_v26 }
 0x2cb   : > { %v20838_v24 = vadd.f32 %v16343_v25, %v3676_v2  ;;  %16803 = vmatpush3.msra.mxu0 %v14061_v26  ;;  %v20864_v61 = vpop.f32.mrf.mxu0 }
 0x2cc   : > { %v20840_v5 = vpop.f32.mrf.mxu1  ;;  %16804 = vmatprep.subr.mxu0 %v14060_v6 }
 0x2cd   : > { %24825 = vst [vmem:[#allocation82_spill] sm:$0xff] %v20838_v24  ;;  %24826 = vst [vmem:[#allocation85_spill] sm:$0xff] %v20840_v5  ;;  %16805 = vmatpush3.msra.mxu0 %v14060_v6  ;;  %v20875_v39 = vpop.f32.mrf.mxu0  ;;  %v24867_v5 = vld [vmem:[#allocation86_spill] sm:$0xff] }
 0x2ce   : > { %v16346_v2 = vpop.f32.mrf.mxu1  ;;  %16806 = vmatprep.subr.mxu0 %v14059_v28  ;;  %24834 = vst [vmem:[#allocation100_spill] sm:$0xff] %v20875_v39  ;;  %v24887_v39 = vld [vmem:[#allocation48_spill] sm:$0xff] }
 0x2cf   : > { %v20855_v25 = vadd.f32 %v16346_v2, %v3678_v27  ;;  %v14058_v27 = vld [vmem:[%s23962_s5 + $0xc0] sm:$0xff]  ;;  %16807 = vmatpush3.msra.mxu0 %v14059_v28  ;;  %v24833_v2 = vld [vmem:[#allocation106_spill] sm:$0xff] }
 0x2d0   : > { %v20857_v1 = vpop.f32.mrf.mxu1  ;;  %16808 = vmatprep.subr.mxu0 %v14058_v27 }
 0x2d1   : > { %24828 = vst [vmem:[#allocation88_spill] sm:$0xff] %v20855_v25  ;;  %24829 = vst [vmem:[#allocation91_spill] sm:$0xff] %v20857_v1  ;;  %v3682_v25 = vadd.f32 %v24833_v2, %v20659_v56  ;;  %16809 = vmatpush3.msra.mxu0 %v14058_v27  ;;  %v24841_v56 = vld [vmem:[#allocation112_spill] sm:$0xff] }
 0x2d2   : > { %v16349_v20 = vpop.f32.mrf.mxu1  ;;  %v3686_v2 = vadd.f32 %v24841_v56, %v20688_v55 }
 0x2d3   : > { %v20869_v40 = vadd.f32 %v16349_v20, %v3680_v47  ;;  %v3684_v20 = vadd.f32 %v24837_v62, %v20677_v58  ;;  %v20883_v47 = vpop.f32.mrf.mxu0 }
 0x2d4   : > { %v20871_v26 = vpop.f32.mrf.mxu1  ;;  %24838 = vst [vmem:[#allocation109_spill] sm:$0xff] %v20883_v47 }
 0x2d5   : > { %24831 = vst [vmem:[#allocation94_spill] sm:$0xff] %v20869_v40  ;;  %24832 = vst [vmem:[#allocation97_spill] sm:$0xff] %v20871_v26  ;;  %v20891_v24 = vpop.f32.mrf.mxu0 }
 0x2d6   : > { %v16352_v35 = vpop.f32.mrf.mxu1  ;;  %24842 = vst [vmem:[#allocation112_spill] sm:$0xff] %v20891_v24 }
 0x2d7   : > { %v20877_v0 = vadd.f32 %v16352_v35, %v3682_v25  ;;  %v20899_v58 = vpop.f32.mrf.mxu0 }
 0x2d8   : > { %v20879_v6 = vpop.f32.mrf.mxu1 }
 0x2d9   : > { %24835 = vst [vmem:[#allocation103_spill] sm:$0xff] %v20877_v0  ;;  %24836 = vst [vmem:[#allocation106_spill] sm:$0xff] %v20879_v6  ;;  %v24845_v0 = vld [vmem:[#allocation115_spill] sm:$0xff]  ;;  %v20907_v56 = vpop.f32.mrf.mxu0 }
 0x2da   : > { %v16355_v40 = vpop.f32.mrf.mxu1  ;;  %v3688_v62 = vadd.f32 %v24845_v0, %v20702_v49  ;;  %24846 = vst [vmem:[#allocation115_spill] sm:$0xff] %v20899_v58  ;;  %v24855_v0 = vld [vmem:[#allocation121_spill] sm:$0xff] }
 0x2db   : > { %v20885_v26 = vadd.f32 %v16355_v40, %v3684_v20  ;;  %v3692_v49 = vadd.f32 %v24855_v0, %v20727_v10 }
 0x2dc   : > { %v20887_v28 = vpop.f32.mrf.mxu1 }
 0x2dd   : > { %24839 = vst [vmem:[#allocation168_spill] sm:$0xff] %v20885_v26  ;;  %24840 = vst [vmem:[#allocation169_spill] sm:$0xff] %v20887_v28  ;;  %v24849_v26 = vld [vmem:[#allocation118_spill] sm:$0xff] }
 0x2de   : > { %v16358_v27 = vpop.f32.mrf.mxu1  ;;  %v3690_v55 = vadd.f32 %v24849_v26, %v20713_v23  ;;  %24850 = vst [vmem:[#allocation118_spill] sm:$0xff] %v20907_v56  ;;  %v24859_v23 = vld [vmem:[#allocation41_spill] sm:$0xff] }
 0x2df   : > { %v20893_v25 = vadd.f32 %v16358_v27, %v3686_v2  ;;  %v24851_v2 = vld [vmem:[#allocation42_spill] sm:$0xff]  ;;  %v24852_v27 = vld [vmem:[#allocation77_spill] sm:$0xff] }
 0x2e0   : > { %v20895_v35 = vpop.f32.mrf.mxu1 }
 0x2e1   : > { %24843 = vst [vmem:[#allocation170_spill] sm:$0xff] %v20893_v25  ;;  %24844 = vst [vmem:[#allocation171_spill] sm:$0xff] %v20895_v35  ;;  %v2217_v25 = vadd.f32 %v24852_v27, %v24851_v2  ;;  %v24863_v27 = vld [vmem:[#allocation45_spill] sm:$0xff] }
 0x2e2   : > { %v16361_v6 = vpop.f32.mrf.mxu1 }
 0x2e3   : > { %v20901_v40 = vadd.f32 %v16361_v6, %v3688_v62  ;;  %v20917_v6 = vpop.f32.mrf.mxu0  ;;  %v2793_v26 = vadd.f32 %v24859_v23, %v2217_v25  ;;  %v24871_v23 = vld [vmem:[#allocation89_spill] sm:$0xff] }
 0x2e4   : > { %v20903_v20 = vpop.f32.mrf.mxu1  ;;  %24856 = vst [vmem:[#allocation121_spill] sm:$0xff] %v20917_v6  ;;  %v24866_v6 = vld [vmem:[#allocation47_spill] sm:$0xff] }
 0x2e5   : > { %24847 = vst [vmem:[#allocation172_spill] sm:$0xff] %v20901_v40  ;;  %24848 = vst [vmem:[#allocation173_spill] sm:$0xff] %v20903_v20  ;;  %v24857_v40 = vld [vmem:[#allocation43_spill] sm:$0xff]  ;;  %v24858_v20 = vld [vmem:[#allocation80_spill] sm:$0xff]  ;;  %v20931_v0 = vpop.f32.mrf.mxu0 }
 0x2e6   : > { %v16364_v28 = vpop.f32.mrf.mxu1  ;;  %v2227_v58 = vadd.f32 %v24858_v20, %v24857_v40  ;;  %24865 = vst [vmem:[#allocation41_spill] sm:$0xff] %v20931_v0  ;;  %v2247_v40 = vadd.f32 %v24867_v5, %v24866_v6  ;;  %v24868_v20 = vld [vmem:[#allocation44_spill] sm:$0xff]  ;;  %v24878_v0 = vld [vmem:[#allocation98_spill] sm:$0xff] }
 0x2e7   : > { %v20911_v35 = vadd.f32 %v16364_v28, %v3690_v55  ;;  %v3227_v28 = vadd.f32 %v20509_v37, %v2793_v26  ;;  %v24862_v55 = vld [vmem:[#allocation124_spill] sm:$0xff]  ;;  %v24872_v37 = vld [vmem:[#allocation51_spill] sm:$0xff]  ;;  %v24879_v6 = vld [vmem:[#allocation78_spill] sm:$0xff] }
 0x2e8   : > { %v20913_v1 = vpop.f32.mrf.mxu1  ;;  %v3694_v2 = vadd.f32 %v24862_v55, %v20738_v15  ;;  %v2795_v25 = vadd.f32 %v24868_v20, %v2227_v58  ;;  %v24873_v26 = vld [vmem:[#allocation92_spill] sm:$0xff]  ;;  %v24874_v15 = vld [vmem:[#allocation53_spill] sm:$0xff]  ;;  %v24875_v55 = vld [vmem:[#allocation95_spill] sm:$0xff] }
 0x2e9   : > { %24853 = vst [vmem:[#allocation42_spill] sm:$0xff] %v20911_v35  ;;  %24854 = vst [vmem:[#allocation77_spill] sm:$0xff] %v20913_v1  ;;  %v24864_v35 = vld [vmem:[#allocation83_spill] sm:$0xff]  ;;  %v2277_v47 = vadd.f32 %v24875_v55, %v24874_v15  ;;  %v3661_v58 = vadd.f32 %v24879_v6, %v3227_v28  ;;  %v24881_v20 = vld [vmem:[#allocation57_spill] sm:$0xff] }
 0x2ea   : > { %v16367_v62 = vpop.f32.mrf.mxu1  ;;  %v2237_v10 = vadd.f32 %v24864_v35, %v24863_v27  ;;  %v24877_v27 = vld [vmem:[#allocation55_spill] sm:$0xff]  ;;  %v3229_v5 = vadd.f32 %v20525_v29, %v2795_v25  ;;  %v24890_v6 = vld [vmem:[#allocation52_spill] sm:$0xff] }
 0x2eb   : > { %v20922_v56 = vadd.f32 %v16367_v62, %v3692_v49  ;;  %v24870_v62 = vld [vmem:[#allocation49_spill] sm:$0xff]  ;;  %v2287_v30 = vadd.f32 %v24878_v0, %v24877_v27  ;;  %v24885_v55 = vld [vmem:[#allocation59_spill] sm:$0xff]  ;;  %v2799_v0 = vadd.f32 %v24887_v39, %v2247_v40  ;;  %v4095_v29 = vadd.f32 %v20760_v44, %v3661_v58 }
 0x2ec   : > { %v20924_v24 = vpop.f32.mrf.mxu1  ;;  %v24895_v44 = vld [vmem:[#allocation81_spill] sm:$0xff]  ;;  %v24896_v58 = vld [vmem:[#allocation63_spill] sm:$0xff] }
 0x2ed   : > { %24860 = vst [vmem:[#allocation43_spill] sm:$0xff] %v20922_v56  ;;  %24861 = vst [vmem:[#allocation80_spill] sm:$0xff] %v20924_v24  ;;  %v2257_v56 = vadd.f32 %v24871_v23, %v24870_v62  ;;  %v2267_v24 = vadd.f32 %v24873_v26, %v24872_v37  ;;  %v24882_v62 = vld [vmem:[#allocation101_spill] sm:$0xff]  ;;  %v20955_v26 = vpop.f32.mrf.mxu0  ;;  %v3663_v40 = vadd.f32 %v24895_v44, %v3229_v5 }
 0x2ee   : > { %v16370_v1 = vpop.f32.mrf.mxu1  ;;  %v2297_v23 = vadd.f32 %v24882_v62, %v24881_v20  ;;  %24884 = vst [vmem:[#allocation83_spill] sm:$0xff] %v20955_v26  ;;  %v24891_v20 = vld [vmem:[#allocation54_spill] sm:$0xff]  ;;  %v24892_v62 = vld [vmem:[#allocation61_spill] sm:$0xff]  ;;  %v24893_v26 = vld [vmem:[#allocation107_spill] sm:$0xff] }
 0x2ef   : > { %v20936_v49 = vadd.f32 %v16370_v1, %v3694_v2  ;;  %v24880_v1 = vld [vmem:[#allocation127_spill] sm:$0xff]  ;;  %v24904_v44 = vld [vmem:[#allocation69_spill] sm:$0xff] }
 0x2f0   : > { %v20944_v35 = vpop.f32.mrf.mxu1  ;;  %v3696_v2 = vadd.f32 %v24880_v1, %v20750_v22  ;;  %v24889_v22 = vld [vmem:[#allocation50_spill] sm:$0xff]  ;;  %v2803_v1 = vadd.f32 %v24890_v6, %v2267_v24  ;;  %v24898_v24 = vld [vmem:[#allocation65_spill] sm:$0xff] }
 0x2f1   : > { %24869 = vst [vmem:[#allocation124_spill] sm:$0xff] %v20936_v49  ;;  %24876 = vst [vmem:[#allocation45_spill] sm:$0xff] %v20944_v35  ;;  %v24883_v49 = vld [vmem:[#allocation46_spill] sm:$0xff]  ;;  %v24886_v35 = vld [vmem:[#allocation104_spill] sm:$0xff]  ;;  %v2801_v27 = vadd.f32 %v24889_v22, %v2257_v56 }
 0x2f2   : > { %v2797_v37 = vadd.f32 %v24883_v49, %v2237_v10  ;;  %v16373_v15 = vpop.f32.mrf.mxu1  ;;  %v2307_v34 = vadd.f32 %v24886_v35, %v24885_v55  ;;  %v20967_v10 = vadd.f32 %v24891_v20, %v2277_v47  ;;  %v2317_v35 = vadd.f32 %v24893_v26, %v24892_v62  ;;  %v24894_v55 = vld [vmem:[#allocation56_spill] sm:$0xff]  ;;  %v24897_v56 = vld [vmem:[#allocation110_spill] sm:$0xff]  ;;  %v20988_v26 = vpop.f32.mrf.mxu0 }
 0x2f3   : > { %v20961_v25 = vadd.f32 %v16373_v15, %v3696_v2  ;;  %v20974_v39 = vadd.f32 %v24894_v55, %v2287_v30  ;;  %v2327_v2 = vadd.f32 %v24897_v56, %v24896_v58  ;;  %v24900_v15 = vld [vmem:[#allocation67_spill] sm:$0xff]  ;;  %v24901_v22 = vld [vmem:[#allocation116_spill] sm:$0xff]  ;;  %v24902_v20 = vld [vmem:[#allocation58_spill] sm:$0xff]  ;;  %v4529_v55 = vadd.f32 %v20511_v53, %v4095_v29 }
 0x2f4   : > { %v3231_v28 = vadd.f32 %v20538_v45, %v2797_v37  ;;  %v20969_v49 = vpop.f32.mrf.mxu1  ;;  %v4530_v45 = vadd.f32 %v20503_v7, %v20758_v11  ;;  %v24899_v37 = vld [vmem:[#allocation113_spill] sm:$0xff]  ;;  %v2347_v6 = vadd.f32 %v24901_v22, %v24900_v15  ;;  %v24903_v62 = vld [vmem:[#allocation60_spill] sm:$0xff]  ;;  %v4097_v7 = vadd.f32 %v20768_v46, %v3663_v40  ;;  %v24905_v58 = vld [vmem:[#allocation119_spill] sm:$0xff] }
 0x2f5   : > { %24888 = vst [vmem:[#allocation47_spill] sm:$0xff] %v20961_v25  ;;  %v2337_v47 = vadd.f32 %v24899_v37, %v24898_v24  ;;  %v20986_v25 = vadd.f32 %v24902_v20, %v2297_v23  ;;  %v20991_v5 = vadd.f32 %v24903_v62, %v2307_v34  ;;  %v2357_v56 = vadd.f32 %v24905_v58, %v24904_v44  ;;  %v24906_v24 = vld [vmem:[#allocation71_spill] sm:$0xff]  ;;  %v24907_v37 = vld [vmem:[#allocation122_spill] sm:$0xff]  ;;  %v24908_v22 = vld [vmem:[#allocation84_spill] sm:$0xff] }
 0x2f6   : > { %v16462_v30 = vpop.f32.mrf.mxu1  ;;  %v2367_v15 = vadd.f32 %v24907_v37, %v24906_v24  ;;  %v3233_v23 = vadd.f32 %v20551_v18, %v2799_v0  ;;  %v3665_v20 = vadd.f32 %v24908_v22, %v3231_v28  ;;  %v21004_v34 = vld [vmem:[%s23961_s4] ss:$0 sm:$0xff]  ;;  %v24909_v46 = vld [vmem:[#allocation62_spill] sm:$0xff]  ;;  %v24911_v44 = vld [vmem:[#allocation64_spill] sm:$0xff]  ;;  %v21022_v22 = vpop.f32.mrf.mxu0 }
 0x2f7   : > { %v4964_v11 = vadd.f32 %v16462_v30, %v4530_v45  ;;  %v21007_v40 = vadd.f32 %v24909_v46, %v2317_v35  ;;  %v24910_v45 = vld [vmem:[#allocation130_spill] sm:$0xff]  ;;  %v21013_v58 = vadd.f32 %v24911_v44, %v2327_v2  ;;  %v24913_v28 = vld [vmem:[#allocation68_spill] sm:$0xff]  ;;  %v3235_v2 = vadd.f32 %v20570_v54, %v2801_v27  ;;  %v24917_v44 = vld [vmem:[#allocation87_spill] sm:$0xff] }
 0x2f8   : > { %v4784_v62 = vpop.f32.mrf.mxu1  ;;  %v4532_v30 = vadd.f32 %v24910_v45, %v20766_v60  ;;  %v24912_v18 = vld [vmem:[#allocation66_spill] sm:$0xff]  ;;  %v21019_v24 = vadd.f32 %v24913_v28, %v2347_v6  ;;  %v4099_v37 = vadd.f32 %v20779_v48, %v3665_v20  ;;  %v24914_v60 = vld [vmem:[#allocation131_spill] sm:$0xff]  ;;  %v24916_v45 = vld [vmem:[#allocation72_spill] sm:$0xff]  ;;  %v3667_v48 = vadd.f32 %v24917_v44, %v3233_v23  ;;  %v21039_v54 = vpop.f32.mrf.mxu0 }
 0x2f9   : > { %v5398_v53 = vadd.f32 %v20764_v36, %v4964_v11  ;;  %v4963_v29 = vadd.f32 %v4784_v62, %v4529_v55  ;;  %v21016_v0 = vadd.f32 %v24912_v18, %v2337_v47  ;;  %v4531_v62 = vadd.f32 %v24914_v60, %v4097_v7  ;;  %v24915_v46 = vld [vmem:[#allocation70_spill] sm:$0xff] }
 0x2fa   : > { %v16465_v35 = vpop.f32.mrf.mxu1  ;;  %v21029_v47 = vadd.f32 %v24915_v46, %v2357_v56  ;;  %v21032_v6 = vadd.f32 %v24916_v45, %v2367_v15  ;;  %v4101_v7 = vadd.f32 %v20787_v59, %v3667_v48  ;;  %v4534_v27 = vadd.f32 %v20532_v41, %v20777_v14  ;;  %v24918_v15 = vld [vmem:[#allocation132_spill] sm:$0xff]  ;;  %v24919_v23 = vld [vmem:[#allocation6_spill] sm:$0xff] }
 0x2fb   : > { %v5441_v36 = vadd.f32 %v21004_v34, %v5398_v53  ;;  %v5397_v11 = vadd.f32 %v20775_v17, %v4963_v29  ;;  %v4966_v55 = vadd.f32 %v16465_v35, %v4532_v30  ;;  %v3237_v29 = vadd.f32 %v20582_v19, %v2803_v1  ;;  %v24922_v19 = vld [vmem:[#allocation125_spill] sm:$0xff]  ;;  %v24923_v59 = vld [vmem:[#allocation90_spill] sm:$0xff] }
 0x2fc   : > { %v4794_v20 = vpop.f32.mrf.mxu1  ;;  %v4533_v30 = vadd.f32 %v24918_v15, %v4099_v37  ;;  %vm24920_vm11 = vnez %v24919_v23  ;;  %v3669_v60 = vadd.f32 %v24923_v59, %v3235_v2  ;;  %v4536_v14 = vadd.f32 %v20545_v51, %v20785_v21  ;;  %v24925_v37 = vld [vmem:[#allocation8_spill] sm:$0xff]  ;;  %v21060_v2 = vpop.f32.mrf.mxu0  ;;  %v24929_v51 = vld [vmem:[#allocation133_spill] sm:$0xff] }
 0x2fd   : > { %v5477_v18 = vmax.f32 %v5441_v36, 0.0  ;;  %v5440_v28 = vadd.f32 %v21004_v34, %v5397_v11  ;;  %v5400_v53 = vadd.f32 %v20783_v31, %v4966_v55  ;;  %v4965_v17 = vadd.f32 %v4794_v20, %v4531_v62  ;;  %v24921_v55 = vld [vmem:[#allocation73_spill] sm:$0xff] }
 0x2fe   : > { %v16468_v56 = vpop.f32.mrf.mxu1  ;;  %v2377_v1 = vadd.f32 %v24922_v19, %v24921_v55  ;;  %vm24926_vm4 = vnez %v24925_v37  ;;  %v24927_v20 = vld [vmem:[#allocation93_spill] sm:$0xff]  ;;  %v4535_v21 = vadd.f32 %v24929_v51, %v4101_v7  ;;  %v24936_v19 = vld [vmem:[#allocation74_spill] sm:$0xff] }
 0x2ff   : > { %v5513_v35 = vsel %vm24920_vm11, %v5477_v18, 0.0  ;;  %v5476_v36 = vmax.f32 %v5440_v28, 0.0  ;;  %v5443_v11 = vadd.f32 %v21004_v34, %v5400_v53  ;;  %v5399_v31 = vadd.f32 %v20794_v3, %v4965_v17  ;;  %v24930_v17 = vld [vmem:[#allocation10_spill] sm:$0xff] }
 0x300   : > { %5549 = vst.msk [vmem:[#allocation3 + $0x1b] sm:$0xff] %vm24924_vm15, %v5513_v35  ;;  %v4968_v62 = vadd.f32 %v16468_v56, %v4534_v27  ;;  %v4804_v41 = vpop.f32.mrf.mxu1  ;;  %v3239_v3 = vadd.f32 %v20593_v63, %v20967_v10  ;;  %v3671_v18 = vadd.f32 %v24927_v20, %v3237_v29  ;;  %vm24931_vm8 = vnez %v24930_v17  ;;  %v24933_v35 = vld [vmem:[#allocation134_spill] sm:$0xff] }
 0x301   : > { %v5512_v46 = vsel %vm24926_vm4, %v5476_v36, 0.0  ;;  %v5479_v45 = vmax.f32 %v5443_v11, 0.0  ;;  %v5442_v44 = vadd.f32 %v21004_v34, %v5399_v31  ;;  %v4967_v48 = vadd.f32 %v4804_v41, %v4533_v30  ;;  %v24934_v36 = vld [vmem:[#allocation11_spill] sm:$0xff] }
 0x302   : > { %5548 = vst.msk [vmem:[#allocation3 + $0x13] sm:$0xff] %vm24928_vm12, %v5512_v46  ;;  %v5402_v28 = vadd.f32 %v20802_v9, %v4968_v62  ;;  %v16471_v53 = vpop.f32.mrf.mxu1  ;;  %v3241_v63 = vadd.f32 %v20610_v43, %v20974_v39  ;;  %v4103_v10 = vadd.f32 %v20798_v42, %v3669_v60  ;;  %v4538_v7 = vadd.f32 %v24933_v35, %v20796_v12  ;;  %v24937_v39 = vld [vmem:[#allocation96_spill] sm:$0xff]  ;;  %v21084_v60 = vpop.f32.mrf.mxu0  ;;  %vm24942_vm12 = vmmov %vm24447_vm0 }
 0x303   : > { %v5515_v27 = vsel %vm24931_vm8, %v5479_v45, 0.0  ;;  %v5478_v56 = vmax.f32 %v5442_v44, 0.0  ;;  %v5401_v15 = vadd.f32 %v20813_v50, %v4967_v48  ;;  %v4970_v30 = vadd.f32 %v16471_v53, %v4536_v14  ;;  %v24938_v45 = vld [vmem:[#allocation99_spill] sm:$0xff]  ;;  %vm24950_vm8 = vmmov %vm24447_vm0 }
 0x304   : > { %5551 = vst.msk [vmem:[#allocation3 + $0x2b] sm:$0xff] %vm24932_vm3, %v5515_v27  ;;  %v5445_v29 = vadd.f32 %v21004_v34, %v5402_v28  ;;  %v4814_v9 = vpop.f32.mrf.mxu1  ;;  %vm24935_vm13 = vnez %v24934_v36  ;;  %v21080_v43 = vadd.f32 %v24936_v19, %v2377_v1  ;;  %v4105_v42 = vadd.f32 %v20806_v33, %v3671_v18  ;;  %v24939_v1 = vld [vmem:[#allocation12_spill] sm:$0xff]  ;;  %v24941_v33 = vld [vmem:[#allocation135_spill] sm:$0xff]  ;;  %v21098_v28 = vld [vmem:[%s23962_s5 + $0x178] sm:$0xff] }
 0x305   : > { %v5514_v11 = vsel %vm24935_vm13, %v5478_v56, 0.0  ;;  %v5444_v31 = vadd.f32 %v21004_v34, %v5401_v15  ;;  %v5404_v50 = vadd.f32 %v20833_v32, %v4970_v30  ;;  %v4969_v55 = vadd.f32 %v4814_v9, %v4535_v21  ;;  %16934 = vmatprep.subr.mxu0 %v21098_v28  ;;  %v24947_v9 = vld [vmem:[#allocation14_spill] sm:$0xff]  ;;  %vm24949_vm13 = vmmov %vm24447_vm0 }
 0x306   : > { %v3673_v59 = vadd.f32 %v24937_v39, %v3239_v3  ;;  %5550 = vst.msk [vmem:[#allocation3 + $0x23] sm:$0xff] %vm24447_vm0, %v5514_v11  ;;  %v5481_v12 = vmax.f32 %v5445_v29, 0.0  ;;  %v16474_v62 = vpop.f32.mrf.mxu1  ;;  %v3675_v44 = vadd.f32 %v24938_v45, %v3241_v63  ;;  %vm24940_vm15 = vnez %v24939_v1  ;;  %v24954_v39 = vld [vmem:[#allocation136_spill] sm:$0xff] }
 0x307   : > { %v5480_v41 = vmax.f32 %v5444_v31, 0.0  ;;  %v5447_v14 = vadd.f32 %v21004_v34, %v5404_v50  ;;  %v5403_v46 = vadd.f32 %v20850_v13, %v4969_v55  ;;  %v4972_v32 = vadd.f32 %v16474_v62, %v4538_v7  ;;  %v24943_v13 = vld [vmem:[#allocation13_spill] sm:$0xff] }
 0x308   : > { %v5517_v48 = vsel %vm24940_vm15, %v5481_v12, 0.0  ;;  %v4537_v20 = vadd.f32 %v24941_v33, %v4103_v10  ;;  %v4824_v3 = vpop.f32.mrf.mxu1  ;;  %v4540_v18 = vadd.f32 %v20577_v16, %v20804_v8  ;;  %vm24944_vm3 = vnez %v24943_v13  ;;  %v21107_v8 = vpop.f32.mrf.mxu0  ;;  %v24955_v12 = vld [vmem:[#allocation15_spill] sm:$0xff] }
 0x309   : > { %5553 = vst.msk [vmem:[#allocation3 + $0x3b] sm:$0xff] %vm24942_vm12, %v5517_v48  ;;  %v5516_v53 = vsel %vm24944_vm3, %v5480_v41, 0.0  ;;  %v5483_v51 = vmax.f32 %v5447_v14, 0.0  ;;  %v5446_v21 = vadd.f32 %v21004_v34, %v5403_v46  ;;  %v5406_v27 = vadd.f32 %v20864_v61, %v4972_v32  ;;  %v5630_v56 = vld [vmem:[#allocation3 + $0x11] sm:$0xff]  ;;  %v5631_v30 = vld [vmem:[#allocation3 + $0x19] sm:$0xff]  ;;  %vm24945_vm12 = vmmov %vm24447_vm0 }
 0x30a   : > { %v5586_v15 = vld [vmem:[#allocation3 + $0x10] sm:$0xff]  ;;  %v4107_v16 = vadd.f32 %v20826_v38, %v3673_v59  ;;  %5552 = vst.msk [vmem:[#allocation3 + $0x33] sm:$0xff] %vm24447_vm0, %v5516_v53  ;;  %v4971_v63 = vadd.f32 %v4824_v3, %v4537_v20  ;;  %v16477_v10 = vpop.f32.mrf.mxu1  ;;  %16603 = vmatprep.mubr.msk.f32.mxu1 %vm24945_vm12, %v5630_v56  ;;  %vm24946_vm3 = vmmov %vm24447_vm0  ;;  %v5587_v29 = vld [vmem:[#allocation3 + $0x18] sm:$0xff]  ;;  %v4539_v61 = vadd.f32 %v20584_v52, %v4105_v42 }
 0x30b   : > { %16673 = vmatprep.mubr.msk.f32.mxu0 %vm24946_vm3, %v5586_v15  ;;  %vm24948_vm15 = vnez %v24947_v9  ;;  %v5482_v7 = vmax.f32 %v5446_v21, 0.0  ;;  %v5449_v11 = vadd.f32 %v21004_v34, %v5406_v27  ;;  %v4974_v38 = vadd.f32 %v16477_v10, %v4540_v18  ;;  %16604 = vmatmul.mubr.msk.f32.gmra.mxu1 %vm24949_vm13, %v5631_v30  ;;  %vm24951_vm3 = vmmov %vm24447_vm0  ;;  %v24952_v52 = vld [vmem:[#allocation100_spill] sm:$0xff]  ;;  %v24953_v42 = vld [vmem:[#allocation79_spill] sm:$0xff] }
 0x30c   : > { %v5519_v35 = vsel %vm24948_vm15, %v5483_v51, 0.0  ;;  %16674 = vmatmul.mubr.msk.f32.gmra.mxu0 %vm24950_vm8, %v5587_v29  ;;  %v3243_v31 = vadd.f32 %v20630_v57, %v20986_v25  ;;  %v3245_v50 = vadd.f32 %v20647_v4, %v20991_v5  ;;  %v5405_v55 = vadd.f32 %v24952_v52, %v4971_v63  ;;  %v4834_v19 = vpop.f32.mrf.mxu1  ;;  %v24957_v14 = vld [vmem:[#allocation109_spill] sm:$0xff]  ;;  %v21130_v5 = vpop.f32.mrf.mxu0  ;;  %vm24959_vm8 = vmmov %vm24951_vm3  ;;  %v24963_v51 = vld [vmem:[#allocation16_spill] sm:$0xff] }
 0x30d   : > { %5555 = vst.msk [vmem:[#allocation3 + $0x4b] sm:$0xff] %vm24951_vm3, %v5519_v35  ;;  %v4542_v59 = vadd.f32 %v24954_v39, %v24953_v42  ;;  %vm24956_vm0 = vnez %v24955_v12  ;;  %v5485_v41 = vmax.f32 %v5449_v11, 0.0  ;;  %v5408_v46 = vadd.f32 %v24957_v14, %v4974_v38  ;;  %v5632_v45 = vld [vmem:[#allocation3 + $0x21] sm:$0xff]  ;;  %v5633_v25 = vld [vmem:[#allocation3 + $0x29] sm:$0xff]  ;;  %vm24960_vm13 = vmmov %vm24951_vm3 }
 0x30e   : > { %v5518_v62 = vsel %vm24956_vm0, %v5482_v7, 0.0  ;;  %v4973_v32 = vadd.f32 %v4834_v19, %v4539_v61  ;;  %v5588_v57 = vld [vmem:[#allocation3 + $0x20] sm:$0xff]  ;;  %v5448_v33 = vadd.f32 %v21004_v34, %v5405_v55  ;;  %v16480_v20 = vpop.f32.mrf.mxu1  ;;  %16606 = vmatprep.mubr.msk.f32.mxu1 %vm24960_vm13, %v5632_v45  ;;  %vm24961_vm12 = vmmov %vm24951_vm3  ;;  %v5589_v3 = vld [vmem:[#allocation3 + $0x28] sm:$0xff]  ;;  %vm24964_vm3 = vnez %v24963_v51 }
 0x30f   : > { %v24958_v48 = vld [vmem:[#allocation85_spill] sm:$0xff]  ;;  %5554 = vst.msk [vmem:[#allocation3 + $0x43] sm:$0xff] %vm24959_vm8, %v5518_v62  ;;  %16676 = vmatprep.mubr.msk.f32.mxu0 %vm24961_vm12, %v5588_v57  ;;  %v5521_v21 = vsel %vm24964_vm3, %v5485_v41, 0.0  ;;  %v5451_v27 = vadd.f32 %v21004_v34, %v5408_v46  ;;  %v4976_v15 = vadd.f32 %v16480_v20, %v4542_v59  ;;  %vm24966_vm0 = vmmov %vm24959_vm8  ;;  %v24968_v30 = vld [vmem:[#allocation75_spill] sm:$0xff]  ;;  %v21153_v46 = vpop.f32.mrf.mxu0 }
 0x310   : > { %v4109_v4 = vadd.f32 %v24958_v48, %v3675_v44  ;;  %v24962_v18 = vld [vmem:[#allocation137_spill] sm:$0xff]  ;;  %v24965_v44 = vld [vmem:[#allocation112_spill] sm:$0xff]  ;;  %16607 = vmatmul.mubr.msk.f32.gmra.mxu1 %vm24966_vm0, %v5633_v25  ;;  %vm24967_vm8 = vmmov %vm24966_vm0  ;;  %v5484_v7 = vmax.f32 %v5448_v33, 0.0  ;;  %v4844_v11 = vpop.f32.mrf.mxu1 }
 0x311   : > { %v4541_v53 = vadd.f32 %v24962_v18, %v4107_v16  ;;  %v5407_v56 = vadd.f32 %v24965_v44, %v4973_v32  ;;  %16677 = vmatmul.mubr.msk.f32.gmra.mxu0 %vm24967_vm8, %v5589_v3  ;;  %v24969_v63 = vld [vmem:[#allocation128_spill] sm:$0xff]  ;;  %v24970_v29 = vld [vmem:[#allocation102_spill] sm:$0xff]  ;;  %v24971_v35 = vld [vmem:[#allocation105_spill] sm:$0xff]  ;;  %v5487_v38 = vmax.f32 %v5451_v27, 0.0 }
 0x312   : > { %v21145_v10 = vadd.f32 %v24969_v63, %v24968_v30  ;;  %v3677_v61 = vadd.f32 %v24970_v29, %v3243_v31  ;;  %v3679_v16 = vadd.f32 %v24971_v35, %v3245_v50  ;;  %vm24972_vm13 = vmmov %vm24966_vm0  ;;  %v24973_v55 = vld [vmem:[#allocation115_spill] sm:$0xff]  ;;  %v5635_v62 = vld [vmem:[#allocation3 + $0x39] sm:$0xff]  ;;  %v16483_v25 = vpop.f32.mrf.mxu1 }
 0x313   : > { %5557 = vst.msk [vmem:[#allocation3 + $0x5b] sm:$0xff] %vm24972_vm13, %v5521_v21  ;;  %v5450_v52 = vadd.f32 %v21004_v34, %v5407_v56  ;;  %v5410_v19 = vadd.f32 %v24973_v55, %v4976_v15  ;;  %v4975_v42 = vadd.f32 %v4844_v11, %v4541_v53  ;;  %v5634_v39 = vld [vmem:[#allocation3 + $0x31] sm:$0xff]  ;;  %v24975_v31 = vld [vmem:[#allocation17_spill] sm:$0xff]  ;;  %v24977_v32 = vld [vmem:[#allocation82_spill] sm:$0xff] }
 0x314   : > { %v5590_v59 = vld [vmem:[#allocation3 + $0x30] sm:$0xff]  ;;  %vm24976_vm0 = vnez %v24975_v31  ;;  %v24978_v45 = vld [vmem:[#allocation138_spill] sm:$0xff]  ;;  %vm24979_vm12 = vmmov %vm24967_vm8  ;;  %v4854_v29 = vpop.f32.mrf.mxu1 }
 0x315   : > { %v24974_v41 = vld [vmem:[#allocation91_spill] sm:$0xff]  ;;  %v5520_v50 = vsel %vm24976_vm0, %v5484_v7, 0.0  ;;  %v4544_v57 = vadd.f32 %v24978_v45, %v24977_v32  ;;  %16609 = vmatprep.mubr.msk.f32.mxu1 %vm24979_vm12, %v5634_v39  ;;  %16679 = vmatprep.mubr.msk.f32.mxu0 %vm24967_vm8, %v5590_v59  ;;  %v5591_v48 = vld [vmem:[#allocation3 + $0x38] sm:$0xff]  ;;  %vm24981_vm13 = vmmov %vm24967_vm8  ;;  %v5486_v53 = vmax.f32 %v5450_v52, 0.0  ;;  %v5453_v21 = vadd.f32 %v21004_v34, %v5410_v19 }
 0x316   : > { %v4111_v14 = vadd.f32 %v24974_v41, %v3677_v61  ;;  %v24980_v33 = vld [vmem:[#allocation139_spill] sm:$0xff]  ;;  %5556 = vst.msk [vmem:[#allocation3 + $0x53] sm:$0xff] %vm24981_vm13, %v5520_v50  ;;  %v24982_v3 = vld [vmem:[#allocation18_spill] sm:$0xff]  ;;  %vm24985_vm0 = vmmov %vm24967_vm8  ;;  %v16486_v32 = vpop.f32.mrf.mxu1 }
 0x317   : > { %v4543_v20 = vadd.f32 %v24980_v33, %v4109_v4  ;;  %vm24983_vm3 = vnez %v24982_v3  ;;  %v24984_v27 = vld [vmem:[#allocation118_spill] sm:$0xff]  ;;  %16610 = vmatmul.mubr.msk.f32.gmra.mxu1 %vm24985_vm0, %v5635_v62  ;;  %vm24986_vm15 = vmmov %vm24985_vm0  ;;  %v24987_v56 = vld [vmem:[#allocation145_spill] sm:$0xff]  ;;  %v4978_v63 = vadd.f32 %v16483_v25, %v4544_v57  ;;  %v5489_v52 = vmax.f32 %v5453_v21, 0.0  ;;  %v21181_v62 = vpop.f32.mrf.mxu0 }
 0x318   : > { %v5523_v18 = vsel %vm24983_vm3, %v5487_v38, 0.0  ;;  %v5409_v44 = vadd.f32 %v24984_v27, %v4975_v42  ;;  %16680 = vmatmul.mubr.msk.f32.gmra.mxu0 %vm24986_vm15, %v5591_v48  ;;  %v3247_v15 = vadd.f32 %v24987_v56, %v21007_v40  ;;  %v24988_v30 = vld [vmem:[#allocation148_spill] sm:$0xff]  ;;  %vm24989_vm12 = vmmov %vm24985_vm0  ;;  %v24992_v11 = vld [vmem:[#allocation19_spill] sm:$0xff] }
 0x319   : > { %v3249_v4 = vadd.f32 %v24988_v30, %v21013_v58  ;;  %5559 = vst.msk [vmem:[#allocation3 + $0x6b] sm:$0xff] %vm24989_vm12, %v5523_v18  ;;  %v24990_v61 = vld [vmem:[#allocation88_spill] sm:$0xff]  ;;  %vm24993_vm8 = vnez %v24992_v11  ;;  %v4977_v19 = vadd.f32 %v4854_v29, %v4543_v20  ;;  %v5636_v42 = vld [vmem:[#allocation3 + $0x41] sm:$0xff]  ;;  %v5637_v40 = vld [vmem:[#allocation3 + $0x49] sm:$0xff]  ;;  %v5525_v33 = vsel %vm18977_vm2, %v5489_v52, 0.0 }
 0x31a   : > { %v24991_v35 = vld [vmem:[#allocation140_spill] sm:$0xff]  ;;  %v5522_v38 = vsel %vm24993_vm8, %v5486_v53, 0.0  ;;  %v5452_v55 = vadd.f32 %v21004_v34, %v5409_v44  ;;  %v5592_v39 = vld [vmem:[#allocation3 + $0x40] sm:$0xff]  ;;  %v24994_v59 = vld [vmem:[#allocation151_spill] sm:$0xff]  ;;  %16612 = vmatprep.mubr.msk.f32.mxu1 %vm24985_vm0, %v5636_v42  ;;  %5561 = vst.msk [vmem:[#allocation3 + $0x7b] sm:$0xff] %vm24985_vm0, %v5525_v33 }
 0x31b   : > { %v4546_v7 = vadd.f32 %v24991_v35, %v24990_v61  ;;  %v3251_v58 = vadd.f32 %v24994_v59, %v21016_v0  ;;  %vm24995_vm15 = vmmov %vm24985_vm0  ;;  %v24996_v41 = vld [vmem:[#allocation121_spill] sm:$0xff]  ;;  %v5593_v45 = vld [vmem:[#allocation3 + $0x48] sm:$0xff] }
 0x31c   : > { %5558 = vst.msk [vmem:[#allocation3 + $0x63] sm:$0xff] %vm24995_vm15, %v5522_v38  ;;  %v5412_v50 = vadd.f32 %v24996_v41, %v4978_v63  ;;  %vm24997_vm13 = vmmov %vm24985_vm0  ;;  %v24998_v57 = vld [vmem:[#allocation141_spill] sm:$0xff]  ;;  %v5488_v20 = vmax.f32 %v5452_v55, 0.0  ;;  %v25004_v44 = vld [vmem:[#allocation108_spill] sm:$0xff]  ;;  %v21206_v41 = vpop.f32.mrf.mxu0 }
 0x31d   : > { %16682 = vmatprep.mubr.msk.f32.mxu0 %vm24997_vm13, %v5592_v39  ;;  %v4545_v25 = vadd.f32 %v24998_v57, %v4111_v14  ;;  %v25000_v18 = vld [vmem:[#allocation41_spill] sm:$0xff]  ;;  %v4980_v53 = vadd.f32 %v16486_v32, %v4546_v7  ;;  %vm25001_vm12 = vmmov %vm24985_vm0  ;;  %v3681_v56 = vadd.f32 %v25004_v44, %v3247_v15  ;;  %v4864_v14 = vpop.f32.mrf.mxu1  ;;  %v25005_v63 = vld [vmem:[#allocation94_spill] sm:$0xff] }
 0x31e   : > { %v5411_v0 = vadd.f32 %v25000_v18, %v4977_v19  ;;  %16613 = vmatmul.mubr.msk.f32.gmra.mxu1 %vm25001_vm12, %v5637_v40  ;;  %vm25002_vm15 = vmmov %vm24985_vm0  ;;  %v25003_v21 = vld [vmem:[#allocation97_spill] sm:$0xff]  ;;  %v5455_v30 = vadd.f32 %v21004_v34, %v5412_v50  ;;  %v25006_v29 = vld [vmem:[#allocation142_spill] sm:$0xff] }
 0x31f   : > { %16683 = vmatmul.mubr.msk.f32.gmra.mxu0 %vm25002_vm15, %v5593_v45  ;;  %v4113_v27 = vadd.f32 %v25003_v21, %v3679_v16  ;;  %v4548_v61 = vadd.f32 %v25006_v29, %v25005_v63  ;;  %v25007_v35 = vld [vmem:[#allocation21_spill] sm:$0xff]  ;;  %v25009_v52 = vld [vmem:[#allocation83_spill] sm:$0xff]  ;;  %v4979_v19 = vadd.f32 %v4864_v14, %v4545_v25  ;;  %v25010_v42 = vld [vmem:[#allocation106_spill] sm:$0xff]  ;;  %v16489_v32 = vpop.f32.mrf.mxu1 }
 0x320   : > { %vm25008_vm13 = vnez %v25007_v35  ;;  %v5454_v7 = vadd.f32 %v21004_v34, %v5411_v0  ;;  %v5414_v55 = vadd.f32 %v25009_v52, %v4980_v53  ;;  %v4115_v16 = vadd.f32 %v25010_v42, %v3681_v56  ;;  %v25011_v39 = vld [vmem:[#allocation111_spill] sm:$0xff]  ;;  %v25012_v40 = vld [vmem:[#allocation114_spill] sm:$0xff]  ;;  %vm25013_vm12 = vmmov %vm24985_vm0 }
 0x321   : > { %v5524_v38 = vsel %vm25008_vm13, %v5488_v20, 0.0  ;;  %v3683_v15 = vadd.f32 %v25011_v39, %v3249_v4  ;;  %v3685_v59 = vadd.f32 %v25012_v40, %v3251_v58  ;;  %v5491_v50 = vmax.f32 %v5455_v30, 0.0  ;;  %v5638_v45 = vld [vmem:[#allocation3 + $0x51] sm:$0xff]  ;;  %v5639_v33 = vld [vmem:[#allocation3 + $0x59] sm:$0xff]  ;;  %vm25014_vm15 = vmmov %vm24985_vm0  ;;  %v4874_v14 = vpop.f32.mrf.mxu1 }
 0x322   : > { %5560 = vst.msk [vmem:[#allocation3 + $0x73] sm:$0xff] %vm25013_vm12, %v5524_v38  ;;  %v5594_v57 = vld [vmem:[#allocation3 + $0x50] sm:$0xff]  ;;  %v5490_v20 = vmax.f32 %v5454_v7, 0.0  ;;  %v5457_v18 = vadd.f32 %v21004_v34, %v5414_v55  ;;  %v5413_v25 = vadd.f32 %v20988_v26, %v4979_v19  ;;  %v4982_v0 = vadd.f32 %v16489_v32, %v4548_v61  ;;  %16615 = vmatprep.mubr.msk.f32.mxu1 %vm25014_vm15, %v5638_v45  ;;  %v5595_v4 = vld [vmem:[#allocation3 + $0x58] sm:$0xff]  ;;  %v25015_v58 = vld [vmem:[#allocation154_spill] sm:$0xff] }
 0x323   : > { %16685 = vmatprep.mubr.msk.f32.mxu0 %vm24985_vm0, %v5594_v57  ;;  %v3253_v53 = vadd.f32 %v25015_v58, %v21019_v24  ;;  %v5527_v44 = vsel %vm19027_vm10, %v5491_v50, 0.0  ;;  %vm25017_vm12 = vmmov %vm24985_vm0  ;;  %v25019_v56 = vld [vmem:[#allocation143_spill] sm:$0xff]  ;;  %v25021_v63 = vld [vmem:[#allocation144_spill] sm:$0xff]  ;;  %v16492_v32 = vpop.f32.mrf.mxu1 }
 0x324   : > { %16616 = vmatmul.mubr.msk.f32.gmra.mxu1 %vm25017_vm12, %v5639_v33  ;;  %vm25018_vm13 = vmmov %vm24985_vm0  ;;  %v4547_v30 = vadd.f32 %v25019_v56, %v4113_v27  ;;  %v25020_v26 = vld [vmem:[#allocation103_spill] sm:$0xff]  ;;  %v5493_v7 = vmax.f32 %v5457_v18, 0.0  ;;  %v5456_v24 = vadd.f32 %v21004_v34, %v5413_v25  ;;  %v5416_v52 = vadd.f32 %v21022_v22, %v4982_v0  ;;  %v5640_v55 = vld [vmem:[#allocation3 + $0x61] sm:$0xff]  ;;  %v21228_v27 = vpop.f32.mrf.mxu0 }
 0x325   : > { %16686 = vmatmul.mubr.msk.f32.gmra.mxu0 %vm25018_vm13, %v5595_v4  ;;  %v4550_v29 = vadd.f32 %v25021_v63, %v25020_v26  ;;  %vm25022_vm15 = vmmov %vm24985_vm0  ;;  %v25023_v61 = vld [vmem:[#allocation23_spill] sm:$0xff]  ;;  %v5596_v19 = vld [vmem:[#allocation3 + $0x60] sm:$0xff]  ;;  %16618 = vmatprep.mubr.msk.f32.mxu1 %vm25017_vm12, %v5640_v55 }
 0x326   : > { %5563 = vst.msk [vmem:[#allocation3 + $0x8b] sm:$0xff] %vm25022_vm15, %v5527_v44  ;;  %vm25024_vm0 = vnez %v25023_v61  ;;  %v5641_v42 = vld [vmem:[#allocation3 + $0x69] sm:$0xff]  ;;  %v25025_v39 = vld [vmem:[#allocation169_spill] sm:$0xff]  ;;  %vm25026_vm13 = vmmov %vm25017_vm12  ;;  %v4981_v50 = vadd.f32 %v4874_v14, %v4547_v30  ;;  %v5492_v18 = vmax.f32 %v5456_v24, 0.0  ;;  %v5459_v25 = vadd.f32 %v21004_v34, %v5416_v52  ;;  %v4884_v44 = vpop.f32.mrf.mxu1  ;;  %v21249_v55 = vpop.f32.mrf.mxu0 }
 0x327   : > { %v5526_v38 = vsel %vm25024_vm0, %v5490_v20, 0.0  ;;  %v4117_v40 = vadd.f32 %v25025_v39, %v3683_v15  ;;  %vm25027_vm15 = vmmov %vm25017_vm12  ;;  %v5597_v45 = vld [vmem:[#allocation3 + $0x68] sm:$0xff]  ;;  %v25029_v20 = vld [vmem:[#allocation9_spill] sm:$0xff]  ;;  %v4984_v15 = vadd.f32 %v16492_v32, %v4550_v29 }
 0x328   : > { %5562 = vst.msk [vmem:[#allocation3 + $0x83] sm:$0xff] %vm25026_vm13, %v5526_v38  ;;  %16688 = vmatprep.mubr.msk.f32.mxu0 %vm25027_vm15, %v5596_v19  ;;  %v25028_v57 = vld [vmem:[#allocation146_spill] sm:$0xff]  ;;  %vm25030_vm0 = vnez %v25029_v20  ;;  %v25031_v0 = vld [vmem:[#allocation157_spill] sm:$0xff]  ;;  %vm25032_vm13 = vmmov %vm25017_vm12  ;;  %v5415_v58 = vadd.f32 %v21039_v54, %v4981_v50  ;;  %16619 = vmatmul.mubr.msk.f32.gmra.mxu1 %vm25017_vm12, %v5641_v42  ;;  %v5495_v63 = vmax.f32 %v5459_v25, 0.0  ;;  %v16495_v42 = vpop.f32.mrf.mxu1 }
 0x329   : > { %v4549_v33 = vadd.f32 %v25028_v57, %v4115_v16  ;;  %v5529_v22 = vsel %vm25030_vm0, %v5493_v7, 0.0  ;;  %v3255_v4 = vadd.f32 %v25031_v0, %v21029_v47  ;;  %vm25033_vm15 = vmmov %vm25017_vm12  ;;  %v25034_v16 = vld [vmem:[#allocation168_spill] sm:$0xff]  ;;  %v25035_v56 = vld [vmem:[#allocation147_spill] sm:$0xff]  ;;  %v5418_v29 = vadd.f32 %v21060_v2, %v4984_v15 }
 0x32a   : > { %5565 = vst.msk [vmem:[#allocation3 + $0x9b] sm:$0xff] %vm25032_vm13, %v5529_v22  ;;  %16689 = vmatmul.mubr.msk.f32.gmra.mxu0 %vm25033_vm15, %v5597_v45  ;;  %v4552_v30 = vadd.f32 %v25035_v56, %v25034_v16  ;;  %v25036_v14 = vld [vmem:[#allocation7_spill] sm:$0xff]  ;;  %v5643_v24 = vld [vmem:[#allocation3 + $0x79] sm:$0xff]  ;;  %vm25039_vm13 = vmmov %vm25017_vm12  ;;  %v5458_v19 = vadd.f32 %v21004_v34, %v5415_v58 }
 0x32b   : > { %vm25037_vm0 = vnez %v25036_v14  ;;  %v4983_v38 = vadd.f32 %v4884_v44, %v4549_v33  ;;  %v5642_v47 = vld [vmem:[#allocation3 + $0x71] sm:$0xff]  ;;  %vm25040_vm15 = vmmov %vm25017_vm12  ;;  %v25041_v50 = vld [vmem:[#allocation149_spill] sm:$0xff]  ;;  %v5461_v57 = vadd.f32 %v21004_v34, %v5418_v29 }
 0x32c   : > { %v5528_v26 = vsel %vm25037_vm0, %v5492_v18, 0.0  ;;  %v5598_v7 = vld [vmem:[#allocation3 + $0x70] sm:$0xff]  ;;  %16621 = vmatprep.mubr.msk.f32.mxu1 %vm25017_vm12, %v5642_v47  ;;  %v5599_v39 = vld [vmem:[#allocation3 + $0x78] sm:$0xff]  ;;  %v4551_v2 = vadd.f32 %v25041_v50, %v4117_v40  ;;  %v25042_v32 = vld [vmem:[#allocation5_spill] sm:$0xff]  ;;  %v4986_v33 = vadd.f32 %v16495_v42, %v4552_v30  ;;  %v5494_v44 = vmax.f32 %v5458_v19, 0.0  ;;  %v4894_v40 = vpop.f32.mrf.mxu1 }
 0x32d   : > { %v25038_v52 = vld [vmem:[#allocation171_spill] sm:$0xff]  ;;  %5564 = vst.msk [vmem:[#allocation3 + $0x93] sm:$0xff] %vm25039_vm13, %v5528_v26  ;;  %16691 = vmatprep.mubr.msk.f32.mxu0 %vm25040_vm15, %v5598_v7  ;;  %vm25043_vm0 = vnez %v25042_v32  ;;  %v25044_v22 = vld [vmem:[#allocation160_spill] sm:$0xff]  ;;  %v25045_v25 = vld [vmem:[#allocation117_spill] sm:$0xff]  ;;  %16622 = vmatmul.mubr.msk.f32.gmra.mxu1 %vm25017_vm12, %v5643_v24  ;;  %v5497_v16 = vmax.f32 %v5461_v57, 0.0 }
 0x32e   : > { %v4119_v54 = vadd.f32 %v25038_v52, %v3685_v59  ;;  %v5531_v45 = vsel %vm25043_vm0, %v5495_v63, 0.0  ;;  %v5417_v59 = vadd.f32 %v21084_v60, %v4983_v38  ;;  %v3257_v18 = vadd.f32 %v25044_v22, %v21032_v6  ;;  %v25046_v0 = vld [vmem:[#allocation120_spill] sm:$0xff]  ;;  %vm25047_vm13 = vmmov %vm25017_vm12  ;;  %v25052_v7 = vld [vmem:[#allocation170_spill] sm:$0xff]  ;;  %v16498_v19 = vpop.f32.mrf.mxu1 }
 0x32f   : > { %v3687_v15 = vadd.f32 %v25045_v25, %v3253_v53  ;;  %v3689_v58 = vadd.f32 %v25046_v0, %v3255_v4  ;;  %5567 = vst.msk [vmem:[#allocation3 + $0xab] sm:$0xff] %vm25047_vm13, %v5531_v45  ;;  %vm25048_vm15 = vmmov %vm25017_vm12  ;;  %v5420_v60 = vadd.f32 %v21107_v8, %v4986_v33  ;;  %v4985_v30 = vadd.f32 %v4894_v40, %v4551_v2  ;;  %v5644_v26 = vld [vmem:[#allocation3 + $0x81] sm:$0xff]  ;;  %v5645_v63 = vld [vmem:[#allocation3 + $0x89] sm:$0xff]  ;;  %v21270_v4 = vpop.f32.mrf.mxu0 }
 0x330   : > { %16692 = vmatmul.mubr.msk.f32.gmra.mxu0 %vm25048_vm15, %v5599_v39  ;;  %v5460_v56 = vadd.f32 %v21004_v34, %v5417_v59  ;;  %v5600_v6 = vld [vmem:[#allocation3 + $0x80] sm:$0xff]  ;;  %v25050_v38 = vld [vmem:[#allocation24_spill] sm:$0xff]  ;;  %v25053_v24 = vld [vmem:[#allocation150_spill] sm:$0xff]  ;;  %16624 = vmatprep.mubr.msk.f32.mxu1 %vm25017_vm12, %v5644_v26  ;;  %v5533_v2 = vsel %vm19202_vm1, %v5497_v16, 0.0 }
 0x331   : > { %v25049_v53 = vld [vmem:[#allocation173_spill] sm:$0xff]  ;;  %vm25051_vm13 = vnez %v25050_v38  ;;  %v4554_v52 = vadd.f32 %v25053_v24, %v25052_v7  ;;  %vm25054_vm15 = vmmov %vm25017_vm12  ;;  %v5601_v8 = vld [vmem:[#allocation3 + $0x88] sm:$0xff]  ;;  %v5463_v57 = vadd.f32 %v21004_v34, %v5420_v60  ;;  %v5419_v59 = vadd.f32 %v21130_v5, %v4985_v30 }
 0x332   : > { %v4121_v29 = vadd.f32 %v25049_v53, %v3687_v15  ;;  %v5530_v47 = vsel %vm25051_vm13, %v5494_v44, 0.0  ;;  %16694 = vmatprep.mubr.msk.f32.mxu0 %vm25054_vm15, %v5600_v6  ;;  %v25055_v42 = vld [vmem:[#allocation152_spill] sm:$0xff]  ;;  %vm25056_vm0 = vmmov %vm25017_vm12  ;;  %v5496_v45 = vmax.f32 %v5460_v56, 0.0  ;;  %v25058_v33 = vld [vmem:[#allocation123_spill] sm:$0xff] }
 0x333   : > { %v4553_v39 = vadd.f32 %v25055_v42, %v4119_v54  ;;  %5566 = vst.msk [vmem:[#allocation3 + $0xa3] sm:$0xff] %vm25056_vm0, %v5530_v47  ;;  %v3691_v22 = vadd.f32 %v25058_v33, %v3257_v18  ;;  %vm25059_vm13 = vmmov %vm25056_vm0  ;;  %v4988_v25 = vadd.f32 %v16498_v19, %v4554_v52  ;;  %v4904_v54 = vpop.f32.mrf.mxu1  ;;  %v25062_v15 = vld [vmem:[#allocation172_spill] sm:$0xff]  ;;  %v25063_v0 = vld [vmem:[#allocation153_spill] sm:$0xff]  ;;  %v5499_v56 = vmax.f32 %v5463_v57, 0.0 }
 0x334   : > { %5569 = vst.msk [vmem:[#allocation3 + $0xbb] sm:$0xff] %vm25059_vm13, %v5533_v2  ;;  %vm25060_vm12 = vmmov %vm25056_vm0  ;;  %v4556_v44 = vadd.f32 %v25063_v0, %v25062_v15  ;;  %v5532_v16 = vsel %vm19240_vm14, %v5496_v45, 0.0  ;;  %v5462_v60 = vadd.f32 %v21004_v34, %v5419_v59  ;;  %v5646_v30 = vld [vmem:[#allocation3 + $0x91] sm:$0xff]  ;;  %v5647_v26 = vld [vmem:[#allocation3 + $0x99] sm:$0xff] }
 0x335   : > { %16625 = vmatmul.mubr.msk.f32.gmra.mxu1 %vm25060_vm12, %v5645_v63  ;;  %vm25061_vm15 = vmmov %vm25056_vm0  ;;  %v4987_v5 = vadd.f32 %v4904_v54, %v4553_v39  ;;  %v5602_v18 = vld [vmem:[#allocation3 + $0x90] sm:$0xff]  ;;  %v21295_v63 = vpop.f32.mrf.mxu0  ;;  %5568 = vst.msk [vmem:[#allocation3 + $0xb3] sm:$0xff] %vm25056_vm0, %v5532_v16  ;;  %v5422_v47 = vadd.f32 %v21153_v46, %v4988_v25  ;;  %v16501_v7 = vpop.f32.mrf.mxu1  ;;  %v5603_v24 = vld [vmem:[#allocation3 + $0x98] sm:$0xff]  ;;  %v5535_v42 = vsel %vm19267_vm5, %v5499_v56, 0.0 }
 0x336   : > { %16695 = vmatmul.mubr.msk.f32.gmra.mxu0 %vm25061_vm15, %v5601_v8  ;;  %v25065_v6 = vld [vmem:[#allocation163_spill] sm:$0xff]  ;;  %vm25066_vm13 = vmmov %vm25056_vm0  ;;  %v5498_v39 = vmax.f32 %v5462_v60, 0.0  ;;  %v4990_v2 = vadd.f32 %v16501_v7, %v4556_v44  ;;  %v25070_v45 = vld [vmem:[#allocation77_spill] sm:$0xff] }
 0x337   : > { %v3259_v53 = vadd.f32 %v25065_v6, %v21080_v43  ;;  %16627 = vmatprep.mubr.msk.f32.mxu1 %vm25066_vm13, %v5646_v30  ;;  %vm25067_vm12 = vmmov %vm25056_vm0  ;;  %v25068_v52 = vld [vmem:[#allocation155_spill] sm:$0xff]  ;;  %v5421_v43 = vadd.f32 %v21181_v62, %v4987_v5  ;;  %v4123_v57 = vadd.f32 %v25070_v45, %v3689_v58  ;;  %v5465_v46 = vadd.f32 %v21004_v34, %v5422_v47  ;;  %v4914_v59 = vpop.f32.mrf.mxu1  ;;  %v25073_v33 = vld [vmem:[#allocation42_spill] sm:$0xff]  ;;  %v21319_v5 = vpop.f32.mrf.mxu0 }
 0x338   : > { %16697 = vmatprep.mubr.msk.f32.mxu0 %vm25067_vm12, %v5602_v18  ;;  %v4555_v19 = vadd.f32 %v25068_v52, %v4121_v29  ;;  %vm25071_vm15 = vmmov %vm25056_vm0  ;;  %v25074_v29 = vld [vmem:[#allocation156_spill] sm:$0xff]  ;;  %v5424_v0 = vadd.f32 %v21206_v41, %v4990_v2  ;;  %v25079_v30 = vld [vmem:[#allocation126_spill] sm:$0xff] }
 0x339   : > { %5571 = vst.msk [vmem:[#allocation3 + $0xcb] sm:$0xff] %vm25071_vm15, %v5535_v42  ;;  %16628 = vmatmul.mubr.msk.f32.gmra.mxu1 %vm25056_vm0, %v5647_v26  ;;  %vm25072_vm13 = vmmov %vm25056_vm0  ;;  %v4558_v25 = vadd.f32 %v25074_v29, %v25073_v33  ;;  %v25075_v54 = vld [vmem:[#allocation28_spill] sm:$0xff]  ;;  %v5464_v62 = vadd.f32 %v21004_v34, %v5421_v43  ;;  %v3693_v18 = vadd.f32 %v25079_v30, %v3259_v53  ;;  %v5501_v26 = vmax.f32 %v5465_v46, 0.0  ;;  %v16504_v6 = vpop.f32.mrf.mxu1  ;;  %v25087_v2 = vld [vmem:[#allocation158_spill] sm:$0xff] }
 0x33a   : > { %16698 = vmatmul.mubr.msk.f32.gmra.mxu0 %vm25072_vm13, %v5603_v24  ;;  %vm25076_vm12 = vnez %v25075_v54  ;;  %v4989_v58 = vadd.f32 %v4914_v59, %v4555_v19  ;;  %v25077_v44 = vld [vmem:[#allocation76_spill] sm:$0xff]  ;;  %vm25080_vm15 = vmmov %vm25056_vm0  ;;  %v5648_v47 = vld [vmem:[#allocation3 + $0xa1] sm:$0xff]  ;;  %v5467_v41 = vadd.f32 %v21004_v34, %v5424_v0  ;;  %v4557_v45 = vadd.f32 %v25087_v2, %v4123_v57 }
 0x33b   : > { %v5534_v15 = vsel %vm25076_vm12, %v5498_v39, 0.0  ;;  %v2827_v16 = vadd.f32 %v25077_v44, %v21145_v10  ;;  %v25078_v56 = vld [vmem:[#allocation80_spill] sm:$0xff]  ;;  %v5604_v7 = vld [vmem:[#allocation3 + $0xa0] sm:$0xff]  ;;  %v5649_v24 = vld [vmem:[#allocation3 + $0xa9] sm:$0xff]  ;;  %v5500_v52 = vmax.f32 %v5464_v62, 0.0  ;;  %v4992_v42 = vadd.f32 %v16504_v6, %v4558_v25  ;;  %16630 = vmatprep.mubr.msk.f32.mxu1 %vm25056_vm0, %v5648_v47  ;;  %v4924_v46 = vpop.f32.mrf.mxu1 }
 0x33c   : > { %v4125_v60 = vadd.f32 %v25078_v56, %v3691_v22  ;;  %5570 = vst.msk [vmem:[#allocation3 + $0xc3] sm:$0xff] %vm25080_vm15, %v5534_v15  ;;  %v5423_v19 = vadd.f32 %v21228_v27, %v4989_v58  ;;  %vm25081_vm13 = vmmov %vm25056_vm0  ;;  %v5605_v10 = vld [vmem:[#allocation3 + $0xa8] sm:$0xff]  ;;  %v25083_v39 = vld [vmem:[#allocation29_spill] sm:$0xff]  ;;  %v5503_v15 = vmax.f32 %v5467_v41, 0.0  ;;  %v16580_v56 = vpop.f32.mrf.mxu0 }
 0x33d   : > { %16700 = vmatprep.mubr.msk.f32.mxu0 %vm25081_vm13, %v5604_v7  ;;  %v25082_v22 = vld [vmem:[#allocation166_spill] sm:$0xff]  ;;  %vm25084_vm15 = vnez %v25083_v39  ;;  %vm25085_vm12 = vmmov %vm25056_vm0  ;;  %v25088_v59 = vld [vmem:[#allocation43_spill] sm:$0xff]  ;;  %v5426_v0 = vadd.f32 %v21249_v55, %v4992_v42  ;;  %v16507_v6 = vpop.f32.mrf.mxu1 }
 0x33e   : > { %v3261_v53 = vadd.f32 %v25082_v22, %v2827_v16  ;;  %v5537_v43 = vsel %vm25084_vm15, %v5501_v26, 0.0  ;;  %16631 = vmatmul.mubr.msk.f32.gmra.mxu1 %vm25085_vm12, %v5649_v24  ;;  %vm25086_vm5 = vmmov %vm25056_vm0  ;;  %v25089_v27 = vld [vmem:[#allocation159_spill] sm:$0xff]  ;;  %v25091_v29 = vld [vmem:[#allocation30_spill] sm:$0xff]  ;;  %v5466_v62 = vadd.f32 %v21004_v34, %v5423_v19  ;;  %v4991_v26 = vadd.f32 %v4924_v46, %v4557_v45 }
 0x33f   : > { %16701 = vmatmul.mubr.msk.f32.gmra.mxu0 %vm25086_vm5, %v5605_v10  ;;  %v4560_v33 = vadd.f32 %v25089_v27, %v25088_v59  ;;  %vm25090_vm14 = vmmov %vm25056_vm0  ;;  %vm25092_vm0 = vnez %v25091_v29  ;;  %v5650_v58 = vld [vmem:[#allocation3 + $0xb1] sm:$0xff]  ;;  %v5651_v16 = vld [vmem:[#allocation3 + $0xb9] sm:$0xff]  ;;  %v5469_v19 = vadd.f32 %v21004_v34, %v5426_v0  ;;  %v5378_v0 = vpop.f32.mrf.mxu0 }
 0x340   : > { %5573 = vst.msk [vmem:[#allocation3 + $0xdb] sm:$0xff] %vm25090_vm14, %v5537_v43  ;;  %v5536_v25 = vsel %vm25092_vm0, %v5500_v52, 0.0  ;;  %v5606_v44 = vld [vmem:[#allocation3 + $0xb0] sm:$0xff]  ;;  %v25093_v30 = vld [vmem:[#allocation45_spill] sm:$0xff]  ;;  %vm25094_vm12 = vmmov %vm25086_vm5  ;;  %v5502_v41 = vmax.f32 %v5466_v62, 0.0  ;;  %v5425_v22 = vadd.f32 %v21270_v4, %v4991_v26  ;;  %v4934_v43 = vpop.f32.mrf.mxu1 }
 0x341   : > { %v4127_v57 = vadd.f32 %v25093_v30, %v3693_v18  ;;  %5572 = vst.msk [vmem:[#allocation3 + $0xd3] sm:$0xff] %vm25086_vm5, %v5536_v25  ;;  %16633 = vmatprep.mubr.msk.f32.mxu1 %vm25094_vm12, %v5650_v58  ;;  %vm25095_vm14 = vmmov %vm25086_vm5  ;;  %v5607_v47 = vld [vmem:[#allocation3 + $0xb8] sm:$0xff]  ;;  %v25096_v7 = vld [vmem:[#allocation161_spill] sm:$0xff]  ;;  %v4994_v42 = vadd.f32 %v16507_v6, %v4560_v33  ;;  %v5505_v27 = vmax.f32 %v5469_v19, 0.0 }
 0x342   : > { %16703 = vmatprep.mubr.msk.f32.mxu0 %vm25095_vm14, %v5606_v44  ;;  %v4559_v24 = vadd.f32 %v25096_v7, %v4125_v60  ;;  %v25097_v52 = vld [vmem:[#allocation31_spill] sm:$0xff]  ;;  %v25099_v10 = vld [vmem:[#allocation129_spill] sm:$0xff]  ;;  %vm25100_vm0 = vmmov %vm25086_vm5  ;;  %v5538_v59 = vsel %vm19445_vm7, %v5502_v41, 0.0  ;;  %v5468_v58 = vadd.f32 %v21004_v34, %v5425_v22  ;;  %v16510_v44 = vpop.f32.mrf.mxu1  ;;  %v16583_v41 = vpop.f32.mrf.mxu0 }
 0x343   : > { %vm25098_vm13 = vnez %v25097_v52  ;;  %v3695_v18 = vadd.f32 %v25099_v10, %v3261_v53  ;;  %vm25101_vm5 = vmmov %vm25100_vm0  ;;  %v25103_v2 = vld [vmem:[#allocation124_spill] sm:$0xff]  ;;  %v25104_v60 = vld [vmem:[#allocation162_spill] sm:$0xff]  ;;  %v5428_v33 = vadd.f32 %v21295_v63, %v4994_v42  ;;  %5574 = vst.msk [vmem:[#allocation3 + $0xe3] sm:$0xff] %vm25100_vm0, %v5538_v59 }
 0x344   : > { %v5539_v55 = vsel %vm25098_vm13, %v5503_v15, 0.0  ;;  %16634 = vmatmul.mubr.msk.f32.gmra.mxu1 %vm25101_vm5, %v5651_v16  ;;  %vm25102_vm12 = vmmov %vm25100_vm0  ;;  %v4562_v45 = vadd.f32 %v25104_v60, %v25103_v2  ;;  %v4993_v25 = vadd.f32 %v4934_v43, %v4559_v24  ;;  %v5652_v53 = vld [vmem:[#allocation3 + $0xc1] sm:$0xff]  ;;  %v5653_v62 = vld [vmem:[#allocation3 + $0xc9] sm:$0xff]  ;;  %v5504_v24 = vmax.f32 %v5468_v58, 0.0 }
 0x345   : > { %5575 = vst.msk [vmem:[#allocation3 + $0xeb] sm:$0xff] %vm25100_vm0, %v5539_v55  ;;  %16704 = vmatmul.mubr.msk.f32.gmra.mxu0 %vm25102_vm12, %v5607_v47  ;;  %v5608_v15 = vld [vmem:[#allocation3 + $0xc0] sm:$0xff]  ;;  %v4129_v4 = vadd.f32 %v20969_v49, %v3695_v18  ;;  %vm25106_vm14 = vmmov %vm25100_vm0  ;;  %v5609_v16 = vld [vmem:[#allocation3 + $0xc8] sm:$0xff]  ;;  %v5471_v47 = vadd.f32 %v21004_v34, %v5428_v33  ;;  %v4944_v55 = vpop.f32.mrf.mxu1 }
 0x346   : > { %16636 = vmatprep.mubr.msk.f32.mxu1 %vm25106_vm14, %v5652_v53  ;;  %vm25107_vm5 = vmmov %vm25100_vm0  ;;  %v25108_v30 = vld [vmem:[#allocation164_spill] sm:$0xff]  ;;  %v25109_v63 = vld [vmem:[#allocation33_spill] sm:$0xff]  ;;  %v5427_v7 = vadd.f32 %v21319_v5, %v4993_v25  ;;  %v4996_v49 = vadd.f32 %v16510_v44, %v4562_v45  ;;  %v5540_v5 = vsel %vm19512_vm9, %v5504_v24, 0.0 }
 0x347   : > { %16706 = vmatprep.mubr.msk.f32.mxu0 %vm25107_vm5, %v5608_v15  ;;  %v4561_v26 = vadd.f32 %v25108_v30, %v4127_v57  ;;  %vm25110_vm12 = vnez %v25109_v63  ;;  %vm25111_vm7 = vmmov %vm25100_vm0  ;;  %v5507_v19 = vmax.f32 %v5471_v47, 0.0  ;;  %v25114_v60 = vld [vmem:[#allocation47_spill] sm:$0xff]  ;;  %v25115_v45 = vld [vmem:[#allocation165_spill] sm:$0xff] }
 0x348   : > { %v5541_v6 = vsel %vm25110_vm12, %v5505_v27, 0.0  ;;  %16637 = vmatmul.mubr.msk.f32.gmra.mxu1 %vm25100_vm0, %v5653_v62  ;;  %vm25112_vm13 = vmmov %vm25100_vm0  ;;  %v5470_v57 = vadd.f32 %v21004_v34, %v5427_v7  ;;  %v5430_v42 = vadd.f32 %v16580_v56, %v4996_v49  ;;  %v5654_v18 = vld [vmem:[#allocation3 + $0xd1] sm:$0xff]  ;;  %v5655_v43 = vld [vmem:[#allocation3 + $0xd9] sm:$0xff]  ;;  %v4564_v59 = vadd.f32 %v25115_v45, %v25114_v60  ;;  %v16513_v27 = vpop.f32.mrf.mxu1 }
 0x349   : > { %5577 = vst.msk [vmem:[#allocation3 + $0xfb] sm:$0xff] %vm25111_vm7, %v5541_v6  ;;  %16707 = vmatmul.mubr.msk.f32.gmra.mxu0 %vm25112_vm13, %v5609_v16  ;;  %v4995_v10 = vadd.f32 %v4944_v55, %v4561_v26  ;;  %v5610_v22 = vld [vmem:[#allocation3 + $0xd0] sm:$0xff]  ;;  %vm25116_vm7 = vmmov %vm25100_vm0  ;;  %v5611_v33 = vld [vmem:[#allocation3 + $0xd8] sm:$0xff]  ;;  %v5388_v26 = vpop.f32.mrf.mxu0 }
 0x34a   : > { %16639 = vmatprep.mubr.msk.f32.mxu1 %vm25116_vm7, %v5654_v18  ;;  %vm25117_vm13 = vmmov %vm25100_vm0  ;;  %v25118_v25 = vld [vmem:[#allocation167_spill] sm:$0xff]  ;;  %v5506_v62 = vmax.f32 %v5470_v57, 0.0  ;;  %v5473_v58 = vadd.f32 %v21004_v34, %v5430_v42  ;;  %v4998_v16 = vadd.f32 %v16513_v27, %v4564_v59  ;;  %v4954_v30 = vpop.f32.mrf.mxu1  ;;  %v5656_v24 = vld [vmem:[#allocation3 + $0xe1] sm:$0xff] }
 0x34b   : > { %16709 = vmatprep.mubr.msk.f32.mxu0 %vm25117_vm13, %v5610_v22  ;;  %v4563_v53 = vadd.f32 %v25118_v25, %v4129_v4  ;;  %vm25119_vm14 = vmmov %vm25100_vm0  ;;  %v25120_v56 = vld [vmem:[#allocation35_spill] sm:$0xff]  ;;  %v5429_v44 = vadd.f32 %v5378_v0, %v4995_v10  ;;  %v5612_v55 = vld [vmem:[#allocation3 + $0xe0] sm:$0xff] }
 0x34c   : > { %5576 = vst.msk [vmem:[#allocation3 + $0xf3] sm:$0xff] %vm25119_vm14, %v5540_v5  ;;  %vm25121_vm5 = vnez %v25120_v56  ;;  %vm25122_vm9 = vmmov %vm25100_vm0  ;;  %v5542_v4 = vsel %vm19558_vm6, %v5506_v62, 0.0  ;;  %v5509_v47 = vmax.f32 %v5473_v58, 0.0  ;;  %v5432_v0 = vadd.f32 %v16583_v41, %v4998_v16  ;;  %v5613_v57 = vld [vmem:[#allocation3 + $0xe8] sm:$0xff]  ;;  %v25128_v42 = vld [vmem:[#allocation37_spill] sm:$0xff] }
 0x34d   : > { %v5543_v15 = vsel %vm25121_vm5, %v5507_v19, 0.0  ;;  %16640 = vmatmul.mubr.msk.f32.gmra.mxu1 %vm25122_vm9, %v5655_v43  ;;  %vm25123_vm7 = vmmov %vm25100_vm0  ;;  %v5472_v7 = vadd.f32 %v21004_v34, %v5429_v44  ;;  %v4997_v49 = vadd.f32 %v4954_v30, %v4563_v53  ;;  %v5657_v19 = vld [vmem:[#allocation3 + $0xe9] sm:$0xff] }
 0x34e   : > { %5579 = vst.msk [vmem:[#allocation3 + $0x10b] sm:$0xff] %vm25100_vm0, %v5543_v15  ;;  %16710 = vmatmul.mubr.msk.f32.gmra.mxu0 %vm25123_vm7, %v5611_v33  ;;  %vm25125_vm13 = vmmov %vm25100_vm0  ;;  %v5475_v43 = vadd.f32 %v21004_v34, %v5432_v0  ;;  %v25132_v5 = vld [vmem:[#allocation38_spill] sm:$0xff]  ;;  %v25137_v15 = vld [vmem:[#allocation39_spill] sm:$0xff] }
 0x34f   : > { %5578 = vst.msk [vmem:[#allocation3 + $0x103] sm:$0xff] %vm25125_vm13, %v5542_v4  ;;  %vm25126_vm14 = vmmov %vm25100_vm0  ;;  %v5508_v18 = vmax.f32 %v5472_v7, 0.0  ;;  %v5431_v22 = vadd.f32 %v5388_v26, %v4997_v49  ;;  %vm25133_vm13 = vnez %v25132_v5  ;;  %v6814_v0 = vld [vmem:[#allocation3 + $0x1a] sm:$0xff]  ;;  %v7274_v56 = vld [vmem:[#allocation3 + $0xeb] sm:$0xff] }
 0x350   : > { %16642 = vmatprep.mubr.msk.f32.mxu1 %vm25126_vm14, %v5656_v24  ;;  %vm25127_vm9 = vmmov %vm25100_vm0  ;;  %vm25129_vm0 = vnez %v25128_v42  ;;  %v5511_v45 = vmax.f32 %v5475_v43, 0.0  ;;  %v6379_v24 = vld [vmem:[#allocation3 + $0x2] sm:$0xff]  ;;  %v16672_v43 = vpop.f32.mrf.mxu0  ;;  %v8550_v31 = vld [vmem:[#allocation3 + $0x2d] sm:$0xff] }
 0x351   : > { %16712 = vmatprep.mubr.msk.f32.mxu0 %vm25127_vm9, %v5612_v55  ;;  %v5545_v10 = vsel %vm25129_vm0, %v5509_v47, 0.0  ;;  %vm25130_vm6 = vmmov %vm25123_vm7  ;;  %v5544_v41 = vsel %vm25133_vm13, %v5508_v18, 0.0  ;;  %v5474_v60 = vadd.f32 %v21004_v34, %v5431_v22  ;;  %v25141_v34 = vld [vmem:[#allocation40_spill] sm:$0xff]  ;;  %v6815_v18 = vld [vmem:[#allocation3 + $0x22] sm:$0xff]  ;;  %v16602_v22 = vpop.f32.mrf.mxu1 }
 0x352   : > { %5581 = vst.msk [vmem:[#allocation3 + $0x11b] sm:$0xff] %vm25123_vm7, %v5545_v10  ;;  %16643 = vmatmul.mubr.msk.f32.gmra.mxu1 %vm25130_vm6, %v5657_v19  ;;  %vm25131_vm5 = vmmov %vm25130_vm6  ;;  %vm25138_vm6 = vnez %v25137_v15  ;;  %v6813_v55 = vld [vmem:[#allocation3 + $0x12] sm:$0xff]  ;;  %v6380_v19 = vld [vmem:[#allocation3 + $0xa] sm:$0xff]  ;;  %v21730_v42 = vpop.f32.mrf.mxu0 }
 0x353   : > { %16713 = vmatmul.mubr.msk.f32.gmra.mxu0 %vm25131_vm5, %v5613_v57  ;;  %vm25134_vm14 = vmmov %vm25131_vm5  ;;  %v5658_v59 = vld [vmem:[#allocation3 + $0xf1] sm:$0xff]  ;;  %v5659_v33 = vld [vmem:[#allocation3 + $0xf9] sm:$0xff]  ;;  %v5510_v25 = vmax.f32 %v5474_v60, 0.0  ;;  %v5547_v62 = vsel %vm25138_vm6, %v5511_v45, 0.0  ;;  %v21728_v5 = vpop.f32.mrf.mxu1 }
 0x354   : > { %5580 = vst.msk [vmem:[#allocation3 + $0x113] sm:$0xff] %vm25134_vm14, %v5544_v41  ;;  %v5614_v27 = vld [vmem:[#allocation3 + $0xf0] sm:$0xff]  ;;  %vm25135_vm9 = vmmov %vm25131_vm5  ;;  %v5615_v53 = vld [vmem:[#allocation3 + $0xf8] sm:$0xff]  ;;  %vm25142_vm14 = vnez %v25141_v34  ;;  %v21432_v41 = vadd.f32 %v16672_v43, %v16602_v22 }
 0x355   : > { %16645 = vmatprep.mubr.msk.f32.mxu1 %vm25135_vm9, %v5658_v59  ;;  %vm25136_vm7 = vmmov %vm25131_vm5  ;;  %v5546_v58 = vsel %vm25142_vm14, %v5510_v25, 0.0  ;;  %v14108_v57 = vld [vmem:[%s23962_s5 + $0x130] sm:$0xff]  ;;  %v17855_v10 = vld [vmem:[%s23962_s5 + $0x138] sm:$0xff] }
 0x356   : > { %16715 = vmatprep.mubr.msk.f32.mxu0 %vm25136_vm7, %v5614_v27  ;;  %16646 = vmatmul.mubr.msk.f32.gmra.mxu1 %vm25131_vm5, %v5659_v33  ;;  %vm25139_vm13 = vmmov %vm25131_vm5  ;;  %v5660_v44 = vld [vmem:[#allocation3 + $0x101] sm:$0xff]  ;;  %v5661_v30 = vld [vmem:[#allocation3 + $0x109] sm:$0xff] }
 0x357   : > { %16716 = vmatmul.mubr.msk.f32.gmra.mxu0 %vm25139_vm13, %v5615_v53  ;;  %vm25140_vm0 = vmmov %vm25131_vm5  ;;  %v5616_v16 = vld [vmem:[#allocation3 + $0x100] sm:$0xff]  ;;  %v5617_v26 = vld [vmem:[#allocation3 + $0x108] sm:$0xff] }
 0x358   : > { %5583 = vst.msk [vmem:[#allocation3 + $0x12b] sm:$0xff] %vm25140_vm0, %v5547_v62  ;;  %vm25143_vm12 = vmmov %vm25140_vm0  ;;  %v6816_v60 = vld [vmem:[#allocation3 + $0x2a] sm:$0xff]  ;;  %v14107_v45 = vld [vmem:[%s23962_s5 + $0x128] sm:$0xff] }
 0x359   : > { %5582 = vst.msk [vmem:[#allocation3 + $0x123] sm:$0xff] %vm25143_vm12, %v5546_v58  ;;  %vm25144_vm9 = vmmov %vm25140_vm0  ;;  %v14152_v59 = vld [vmem:[%s23962_s5 + $0x170] sm:$0xff]  ;;  %v6817_v27 = vld [vmem:[#allocation3 + $0x32] sm:$0xff] }
 0x35a   : > { %16648 = vmatprep.mubr.msk.f32.mxu1 %vm25144_vm9, %v5660_v44  ;;  %vm25145_vm7 = vmmov %vm25140_vm0  ;;  %v6818_v33 = vld [vmem:[#allocation3 + $0x3a] sm:$0xff]  ;;  %v6819_v53 = vld [vmem:[#allocation3 + $0x42] sm:$0xff] }
 0x35b   : > { %16718 = vmatprep.mubr.msk.f32.mxu0 %vm25145_vm7, %v5616_v16  ;;  %vm25146_vm6 = vmmov %vm25140_vm0  ;;  %v5662_v4 = vld [vmem:[#allocation3 + $0x111] sm:$0xff]  ;;  %v5663_v7 = vld [vmem:[#allocation3 + $0x119] sm:$0xff] }
 0x35c   : > { %16649 = vmatmul.mubr.msk.f32.gmra.mxu1 %vm25146_vm6, %v5661_v30  ;;  %vm25147_vm5 = vmmov %vm25140_vm0  ;;  %v5618_v47 = vld [vmem:[#allocation3 + $0x110] sm:$0xff]  ;;  %v5619_v49 = vld [vmem:[#allocation3 + $0x118] sm:$0xff] }
 0x35d   : > { %16719 = vmatmul.mubr.msk.f32.gmra.mxu0 %vm25147_vm5, %v5617_v26  ;;  %16651 = vmatprep.mubr.msk.f32.mxu1 %vm25140_vm0, %v5662_v4  ;;  %vm25148_vm13 = vmmov %vm25140_vm0  ;;  %v14151_v25 = vld [vmem:[%s23962_s5 + $0x168] sm:$0xff]  ;;  %v6820_v62 = vld [vmem:[#allocation3 + $0x4a] sm:$0xff] }
 0x35e   : > { %16721 = vmatprep.mubr.msk.f32.mxu0 %vm25148_vm13, %v5618_v47  ;;  %vm25149_vm14 = vmmov %vm25140_vm0  ;;  %v14105_v58 = vld [vmem:[%s23962_s5 + $0x118] sm:$0xff]  ;;  %v14150_v44 = vld [vmem:[%s23962_s5 + $0x160] sm:$0xff] }
 0x35f   : > { %vm25150_vm12 = vmmov %vm25140_vm0  ;;  %v6821_v16 = vld [vmem:[#allocation3 + $0x52] sm:$0xff]  ;;  %v6822_v30 = vld [vmem:[#allocation3 + $0x5a] sm:$0xff] }
 0x360   : > { %16652 = vmatmul.mubr.msk.f32.gmra.mxu1 %vm25149_vm14, %v5663_v7  ;;  %vm25151_vm9 = vmmov %vm25140_vm0  ;;  %v14104_v26 = vld [vmem:[%s23962_s5 + $0x110] sm:$0xff]  ;;  %v14149_v4 = vld [vmem:[%s23962_s5 + $0x158] sm:$0xff] }
 0x361   : > { %16722 = vmatmul.mubr.msk.f32.gmra.mxu0 %vm25150_vm12, %v5619_v49  ;;  %vm25152_vm7 = vmmov %vm25140_vm0  ;;  %v6823_v47 = vld [vmem:[#allocation3 + $0x62] sm:$0xff]  ;;  %v6824_v7 = vld [vmem:[#allocation3 + $0x6a] sm:$0xff] }
 0x362   : > { %16810 = vmatprep.mubr.msk.f32.mxu0 %vm25151_vm9, %v6813_v55  ;;  %16740 = vmatprep.mubr.msk.f32.mxu1 %vm25152_vm7, %v6379_v24  ;;  %vm25153_vm6 = vmmov %vm25140_vm0  ;;  %v14103_v49 = vld [vmem:[%s23962_s5 + $0x108] sm:$0xff]  ;;  %v14148_v24 = vld [vmem:[%s23962_s5 + $0x150] sm:$0xff] }
 0x363   : > { %vm25154_vm5 = vmmov %vm25140_vm0  ;;  %v14146_v22 = vld [vmem:[%s23962_s5 + $0x140] sm:$0xff]  ;;  %v21501_v43 = vld [vmem:[%s23962_s5 + $0x1b8] sm:$0xff] }
 0x364   : > { %16741 = vmatmul.mubr.msk.f32.vlgmr.msra.gmra.mxu1 %vm25153_vm6, %v6380_v19  ;;  %vm25155_vm14 = vmmov %vm25140_vm0  ;;  %v6826_v19 = vld [vmem:[#allocation3 + $0x7a] sm:$0xff]  ;;  %v21726_v15 = vld [vmem:[#allocation3 + $0xe4] sm:$0xff] }
 0x365   : > { %16811 = vmatmul.mubr.msk.f32.vlgmr.msra.gmra.mxu0 %vm25154_vm5, %v6814_v0  ;;  %16865 = vmatpush3.msra.mxu1 %v17855_v10  ;;  %vm25156_vm13 = vmmov %vm25140_vm0  ;;  %v6827_v10 = vld [vmem:[#allocation3 + $0x82] sm:$0xff]  ;;  %v21735_v2 = vld [vmem:[#allocation3 + $0xec] sm:$0xff] }
 0x366   : > { %16743 = vmatprep.mubr.msk.f32.mxu1 %vm25155_vm14, %v6813_v55  ;;  %16813 = vmatprep.mubr.msk.f32.mxu0 %vm25140_vm0, %v6815_v18  ;;  %vm25157_vm12 = vmmov %vm25140_vm0  ;;  %v6825_v55 = vld [vmem:[#allocation3 + $0x72] sm:$0xff]  ;;  %v21721_v34 = vld [vmem:[#allocation3 + $0xdc] sm:$0xff] }
 0x367   : > { %16866 = vmatprep.subr.mxu1 %v14108_v57  ;;  %16935 = vmatpush3.msra.mxu0 %v21098_v28  ;;  %vm25158_vm9 = vmmov %vm25140_vm0  ;;  %v14106_v28 = vld [vmem:[%s23962_s5 + $0x120] sm:$0xff]  ;;  %v21749_v54 = vld [vmem:[#allocation3 + $0xfc] sm:$0xff] }
 0x368   : > { %16867 = vmatpush3.msra.mxu1 %v14108_v57  ;;  %vm25159_vm7 = vmmov %vm25140_vm0  ;;  %16936 = vmatprep.subr.mxu0 %v14152_v59  ;;  %v14147_v57 = vld [vmem:[%s23962_s5 + $0x148] sm:$0xff]  ;;  %v21756_v8 = vld [vmem:[#allocation3 + $0x104] sm:$0xff] }
 0x369   : > { %16744 = vmatmul.mubr.msk.f32.gmra.mxu1 %vm25156_vm13, %v6814_v0  ;;  %16814 = vmatmul.mubr.msk.f32.gmra.mxu0 %vm25157_vm12, %v6816_v60  ;;  %vm25160_vm6 = vmmov %vm25140_vm0  ;;  %v14102_v0 = vld [vmem:[%s23962_s5 + $0x100] sm:$0xff]  ;;  %v21777_v61 = vld [vmem:[#allocation3 + $0x11c] sm:$0xff] }
 0x36a   : > { %16746 = vmatprep.mubr.msk.f32.mxu1 %vm25158_vm9, %v6815_v18  ;;  %16816 = vmatprep.mubr.msk.f32.mxu0 %vm25159_vm7, %v6817_v27  ;;  %vm25161_vm5 = vmmov %vm25140_vm0  ;;  %v6828_v18 = vld [vmem:[#allocation3 + $0x8a] sm:$0xff]  ;;  %v7275_v63 = vld [vmem:[#allocation3 + $0xf3] sm:$0xff] }
 0x36b   : > { %16868 = vmatprep.subr.mxu1 %v14107_v45  ;;  %16937 = vmatpush3.msra.mxu0 %v14152_v59  ;;  %vm25162_vm14 = vmmov %vm25140_vm0  ;;  %v21511_v59 = vld [vmem:[%s23962_s5 + $0x1f8] sm:$0xff]  ;;  %v21742_v46 = vld [vmem:[#allocation3 + $0xf4] sm:$0xff] }
 0x36c   : > { %16869 = vmatpush3.msra.mxu1 %v14107_v45  ;;  %16938 = vmatprep.subr.mxu0 %v14151_v25  ;;  %vm25163_vm13 = vmmov %vm25140_vm0  ;;  %v6830_v45 = vld [vmem:[#allocation3 + $0x9a] sm:$0xff]  ;;  %v21763_v38 = vld [vmem:[#allocation3 + $0x10c] sm:$0xff] }
 0x36d   : > { %16747 = vmatmul.mubr.msk.f32.gmra.mxu1 %vm25160_vm6, %v6816_v60  ;;  %16817 = vmatmul.mubr.msk.f32.gmra.mxu0 %vm25161_vm5, %v6818_v33  ;;  %vm25164_vm12 = vmmov %vm25140_vm0  ;;  %v6829_v60 = vld [vmem:[#allocation3 + $0x92] sm:$0xff]  ;;  %v21784_v21 = vld [vmem:[#allocation3 + $0x124] sm:$0xff] }
 0x36e   : > { %16749 = vmatprep.mubr.msk.f32.mxu1 %vm25162_vm14, %v6817_v27  ;;  %16819 = vmatprep.mubr.msk.f32.mxu0 %vm25140_vm0, %v6819_v53  ;;  %vm25165_vm9 = vmmov %vm25140_vm0  ;;  %v6831_v27 = vld [vmem:[#allocation3 + $0xa2] sm:$0xff]  ;;  %v21770_v32 = vld [vmem:[#allocation3 + $0x114] sm:$0xff] }
 0x36f   : > { %16870 = vmatprep.subr.mxu1 %v14106_v28  ;;  %16939 = vmatpush3.msra.mxu0 %v14151_v25  ;;  %vm25166_vm7 = vmmov %vm25140_vm0  ;;  %v6834_v25 = vld [vmem:[#allocation3 + $0xba] sm:$0xff]  ;;  %v7282_v48 = vld [vmem:[#allocation3 + $0x12b] sm:$0xff] }
 0x370   : > { %16871 = vmatpush3.msra.mxu1 %v14106_v28  ;;  %16940 = vmatprep.subr.mxu0 %v14150_v44  ;;  %vm25167_vm6 = vmmov %vm25140_vm0  ;;  %v6833_v28 = vld [vmem:[#allocation3 + $0xb2] sm:$0xff]  ;;  %v8549_v11 = vld [vmem:[#allocation3 + $0x25] sm:$0xff] }
 0x371   : > { %16750 = vmatmul.mubr.msk.f32.gmra.mxu1 %vm25163_vm13, %v6818_v33  ;;  %16820 = vmatmul.mubr.msk.f32.gmra.mxu0 %vm25164_vm12, %v6820_v62  ;;  %vm25168_vm5 = vmmov %vm25140_vm0  ;;  %v6832_v33 = vld [vmem:[#allocation3 + $0xaa] sm:$0xff] }
 0x372   : > { %16752 = vmatprep.mubr.msk.f32.mxu1 %vm25165_vm9, %v6819_v53  ;;  %16822 = vmatprep.mubr.msk.f32.mxu0 %vm25166_vm7, %v6821_v16  ;;  %vm25169_vm14 = vmmov %vm25140_vm0  ;;  %v6835_v53 = vld [vmem:[#allocation3 + $0xc2] sm:$0xff] }
 0x373   : > { %16872 = vmatprep.subr.mxu1 %v14105_v58  ;;  %16941 = vmatpush3.msra.mxu0 %v14150_v44  ;;  %vm25170_vm13 = vmmov %vm25140_vm0  ;;  %v6838_v44 = vld [vmem:[#allocation3 + $0xda] sm:$0xff] }
 0x374   : > { %16873 = vmatpush3.msra.mxu1 %v14105_v58  ;;  %16942 = vmatprep.subr.mxu0 %v14149_v4  ;;  %vm25171_vm12 = vmmov %vm25140_vm0  ;;  %v6837_v58 = vld [vmem:[#allocation3 + $0xd2] sm:$0xff] }
 0x375   : > { %16753 = vmatmul.mubr.msk.f32.gmra.mxu1 %vm25167_vm6, %v6820_v62  ;;  %16823 = vmatmul.mubr.msk.f32.gmra.mxu0 %vm25168_vm5, %v6822_v30  ;;  %vm25172_vm9 = vmmov %vm25140_vm0  ;;  %v6836_v62 = vld [vmem:[#allocation3 + $0xca] sm:$0xff] }
 0x376   : > { %16755 = vmatprep.mubr.msk.f32.mxu1 %vm25169_vm14, %v6821_v16  ;;  %16825 = vmatprep.mubr.msk.f32.mxu0 %vm25140_vm0, %v6823_v47  ;;  %vm25173_vm7 = vmmov %vm25140_vm0  ;;  %v6839_v16 = vld [vmem:[#allocation3 + $0xe2] sm:$0xff] }
 0x377   : > { %16874 = vmatprep.subr.mxu1 %v14104_v26  ;;  %16943 = vmatpush3.msra.mxu0 %v14149_v4  ;;  %vm25174_vm6 = vmmov %vm25140_vm0  ;;  %v6842_v4 = vld [vmem:[#allocation3 + $0xfa] sm:$0xff] }
 0x378   : > { %16875 = vmatpush3.msra.mxu1 %v14104_v26  ;;  %16944 = vmatprep.subr.mxu0 %v14148_v24  ;;  %vm25175_vm5 = vmmov %vm25140_vm0  ;;  %v6841_v26 = vld [vmem:[#allocation3 + $0xf2] sm:$0xff] }
 0x379   : > { %16756 = vmatmul.mubr.msk.f32.gmra.mxu1 %vm25170_vm13, %v6822_v30  ;;  %16826 = vmatmul.mubr.msk.f32.gmra.mxu0 %vm25171_vm12, %v6824_v7  ;;  %vm25176_vm14 = vmmov %vm25140_vm0  ;;  %v6840_v30 = vld [vmem:[#allocation3 + $0xea] sm:$0xff] }
 0x37a   : > { %16758 = vmatprep.mubr.msk.f32.mxu1 %vm25172_vm9, %v6823_v47  ;;  %16828 = vmatprep.mubr.msk.f32.mxu0 %vm25173_vm7, %v6825_v55  ;;  %vm25177_vm13 = vmmov %vm25140_vm0  ;;  %v6843_v47 = vld [vmem:[#allocation3 + $0x102] sm:$0xff] }
 0x37b   : > { %16876 = vmatprep.subr.mxu1 %v14103_v49  ;;  %16945 = vmatpush3.msra.mxu0 %v14148_v24  ;;  %vm25178_vm12 = vmmov %vm25140_vm0  ;;  %v6846_v24 = vld [vmem:[#allocation3 + $0x11a] sm:$0xff] }
 0x37c   : > { %16877 = vmatpush3.msra.mxu1 %v14103_v49  ;;  %16946 = vmatprep.subr.mxu0 %v14147_v57  ;;  %vm25179_vm9 = vmmov %vm25140_vm0  ;;  %v6845_v49 = vld [vmem:[#allocation3 + $0x112] sm:$0xff] }
 0x37d   : > { %16759 = vmatmul.mubr.msk.f32.gmra.mxu1 %vm25174_vm6, %v6824_v7  ;;  %16829 = vmatmul.mubr.msk.f32.gmra.mxu0 %vm25175_vm5, %v6826_v19  ;;  %vm25180_vm7 = vmmov %vm25140_vm0  ;;  %v6844_v7 = vld [vmem:[#allocation3 + $0x10a] sm:$0xff] }
 0x37e   : > { %16761 = vmatprep.mubr.msk.f32.mxu1 %vm25176_vm14, %v6825_v55  ;;  %16831 = vmatprep.mubr.msk.f32.mxu0 %vm25140_vm0, %v6827_v10  ;;  %vm25181_vm6 = vmmov %vm25140_vm0  ;;  %v6847_v55 = vld [vmem:[#allocation3 + $0x122] sm:$0xff] }
 0x37f   : > { %16878 = vmatprep.subr.mxu1 %v14102_v0  ;;  %16947 = vmatpush3.msra.mxu0 %v14147_v57  ;;  %vm25182_vm5 = vmmov %vm25140_vm0  ;;  %v7681_v57 = vld [vmem:[#allocation3 + $0x14] sm:$0xff] }
 0x380   : > { %16879 = vmatpush3.msra.mxu1 %v14102_v0  ;;  %16948 = vmatprep.subr.mxu0 %v14146_v22  ;;  %vm25183_vm14 = vmmov %vm25140_vm0  ;;  %v7247_v0 = vld [vmem:[#allocation3 + $0x13] sm:$0xff] }
 0x381   : > { %16762 = vmatmul.mubr.msk.f32.gmra.mxu1 %vm25177_vm13, %v6826_v19  ;;  %16832 = vmatmul.mubr.msk.f32.gmra.mxu0 %vm25178_vm12, %v6828_v18  ;;  %vm25184_vm13 = vmmov %vm25140_vm0  ;;  %v6848_v19 = vld [vmem:[#allocation3 + $0x12a] sm:$0xff] }
 0x382   : > { %16764 = vmatprep.mubr.msk.f32.mxu1 %vm25179_vm9, %v6827_v10  ;;  %16834 = vmatprep.mubr.msk.f32.mxu0 %vm25180_vm7, %v6829_v60  ;;  %vm25185_vm12 = vmmov %vm25140_vm0  ;;  %v7248_v10 = vld [vmem:[#allocation3 + $0x1b] sm:$0xff] }
 0x383   : > { %17004 = vmatprep.subr.mxu1 %v21501_v43  ;;  %16949 = vmatpush3.msra.mxu0 %v14146_v22  ;;  %vm25186_vm9 = vmmov %vm25140_vm0  ;;  %v14196_v22 = vld [vmem:[%s23962_s5 + $0x1b0] sm:$0xff] }
 0x384   : > { %17074 = vmatprep.subr.mxu0 %v21511_v59  ;;  %vm25187_vm7 = vmmov %vm25140_vm0 }
 0x385   : > { %16765 = vmatmul.mubr.msk.f32.gmra.mxu1 %vm25181_vm6, %v6828_v18  ;;  %16835 = vmatmul.mubr.msk.f32.gmra.mxu0 %vm25182_vm5, %v6830_v45  ;;  %vm25188_vm6 = vmmov %vm25140_vm0  ;;  %v7682_v18 = vld [vmem:[#allocation3 + $0x1c] sm:$0xff] }
 0x386   : > { %16767 = vmatprep.mubr.msk.f32.mxu1 %vm25183_vm14, %v6829_v60  ;;  %16837 = vmatprep.mubr.msk.f32.mxu0 %vm25140_vm0, %v6831_v27  ;;  %vm25189_vm5 = vmmov %vm25140_vm0  ;;  %v7249_v60 = vld [vmem:[#allocation3 + $0x23] sm:$0xff] }
 0x387   : > { %vm25190_vm14 = vmmov %vm25140_vm0 }
 0x388   : > { %vm25191_vm15 = vmmov %vm25140_vm0 }
 0x389   : > { %16768 = vmatmul.mubr.msk.f32.gmra.mxu1 %vm25184_vm13, %v6830_v45  ;;  %16838 = vmatmul.mubr.msk.f32.gmra.mxu0 %vm25185_vm12, %v6832_v33  ;;  %vm25192_vm13 = vmmov %vm25140_vm0  ;;  %v21561_v45 = vld [vmem:[#allocation3 + $0x24] sm:$0xff] }
 0x38a   : > { %16770 = vmatprep.mubr.msk.f32.mxu1 %vm25186_vm9, %v6831_v27  ;;  %16840 = vmatprep.mubr.msk.f32.mxu0 %vm25187_vm7, %v6833_v28  ;;  %vm25193_vm12 = vmmov %vm25140_vm0  ;;  %v7250_v27 = vld [vmem:[#allocation3 + $0x2b] sm:$0xff] }
 0x38b   : > { %vm25194_vm9 = vmmov %vm25140_vm0 }
 0x38c   : > { %vm25195_vm7 = vmmov %vm25140_vm0 }
 0x38d   : > { %16771 = vmatmul.mubr.msk.f32.gmra.mxu1 %vm25188_vm6, %v6832_v33  ;;  %16841 = vmatmul.mubr.msk.f32.gmra.mxu0 %vm25189_vm5, %v6834_v25  ;;  %vm25196_vm6 = vmmov %vm25140_vm0  ;;  %v21565_v33 = vld [vmem:[#allocation3 + $0x2c] sm:$0xff] }
 0x38e   : > { %16773 = vmatprep.mubr.msk.f32.mxu1 %vm25190_vm14, %v6833_v28  ;;  %16843 = vmatprep.mubr.msk.f32.mxu0 %vm25140_vm0, %v6835_v53  ;;  %vm25197_vm5 = vmmov %vm25140_vm0  ;;  %v14195_v28 = vld [vmem:[%s23962_s5 + $0x1a8] sm:$0xff] }
 0x38f   : > { %vm25198_vm14 = vmmov %vm25140_vm0 }
 0x391   : > { %16774 = vmatmul.mubr.msk.f32.gmra.mxu1 %vm25191_vm15, %v6834_v25  ;;  %16844 = vmatmul.mubr.msk.f32.gmra.mxu0 %vm25192_vm13, %v6836_v62  ;;  %vm25199_vm15 = vmmov %vm25140_vm0  ;;  %v7251_v25 = vld [vmem:[#allocation3 + $0x33] sm:$0xff] }
 0x392   : > { %16776 = vmatprep.mubr.msk.f32.mxu1 %vm25193_vm12, %v6835_v53  ;;  %16846 = vmatprep.mubr.msk.f32.mxu0 %vm25194_vm9, %v6837_v58  ;;  %vm25200_vm13 = vmmov %vm25140_vm0  ;;  %v21577_v53 = vld [vmem:[#allocation3 + $0x34] sm:$0xff] }
 0x393   : > { %vm25201_vm12 = vmmov %vm25140_vm0 }
 0x394   : > { %vm25202_vm9 = vmmov %vm25140_vm0 }
 0x395   : > { %16777 = vmatmul.mubr.msk.f32.gmra.mxu1 %vm25195_vm7, %v6836_v62  ;;  %16847 = vmatmul.mubr.msk.f32.gmra.mxu0 %vm25196_vm6, %v6838_v44  ;;  %vm25203_vm7 = vmmov %vm25140_vm0  ;;  %v7252_v62 = vld [vmem:[#allocation3 + $0x3b] sm:$0xff] }
 0x396   : > { %16779 = vmatprep.mubr.msk.f32.mxu1 %vm25197_vm5, %v6837_v58  ;;  %16849 = vmatprep.mubr.msk.f32.mxu0 %vm25198_vm14, %v6839_v16  ;;  %vm25204_vm6 = vmmov %vm25140_vm0  ;;  %v14194_v58 = vld [vmem:[%s23962_s5 + $0x1a0] sm:$0xff] }
 0x397   : > { %vm25205_vm5 = vmmov %vm25140_vm0 }
 0x398   : > { %vm25206_vm14 = vmmov %vm25140_vm0 }
 0x399   : > { %16780 = vmatmul.mubr.msk.f32.gmra.mxu1 %vm25140_vm0, %v6838_v44  ;;  %16850 = vmatmul.mubr.msk.f32.gmra.mxu0 %vm25199_vm15, %v6840_v30  ;;  %vm25207_vm15 = vmmov %vm25140_vm0  ;;  %v14239_v44 = vld [vmem:[%s23962_s5 + $0x1e8] sm:$0xff] }
 0x39a   : > { %16782 = vmatprep.mubr.msk.f32.mxu1 %vm25200_vm13, %v6839_v16  ;;  %16852 = vmatprep.mubr.msk.f32.mxu0 %vm25201_vm12, %v6841_v26  ;;  %vm25208_vm13 = vmmov %vm25140_vm0  ;;  %v7253_v16 = vld [vmem:[#allocation3 + $0x43] sm:$0xff] }
 0x39b   : > { %vm25209_vm12 = vmmov %vm25140_vm0 }
 0x39d   : > { %16783 = vmatmul.mubr.msk.f32.gmra.mxu1 %vm25202_vm9, %v6840_v30  ;;  %16853 = vmatmul.mubr.msk.f32.gmra.mxu0 %vm25203_vm7, %v6842_v4  ;;  %vm25210_vm9 = vmmov %vm25140_vm0  ;;  %v21593_v30 = vld [vmem:[#allocation3 + $0x44] sm:$0xff] }
 0x39e   : > { %16785 = vmatprep.mubr.msk.f32.mxu1 %vm25204_vm6, %v6841_v26  ;;  %16855 = vmatprep.mubr.msk.f32.mxu0 %vm25205_vm5, %v6843_v47  ;;  %vm25211_vm7 = vmmov %vm25140_vm0  ;;  %v7254_v26 = vld [vmem:[#allocation3 + $0x4b] sm:$0xff] }
 0x39f   : > { %vm25212_vm6 = vmmov %vm25140_vm0 }
 0x3a0   : > { %vm25213_vm5 = vmmov %vm25140_vm0 }
 0x3a1   : > { %16786 = vmatmul.mubr.msk.f32.gmra.mxu1 %vm25206_vm14, %v6842_v4  ;;  %16856 = vmatmul.mubr.msk.f32.gmra.mxu0 %vm25140_vm0, %v6844_v7  ;;  %vm25214_vm14 = vmmov %vm25140_vm0  ;;  %v21598_v4 = vld [vmem:[#allocation3 + $0x4c] sm:$0xff] }
 0x3a2   : > { %16788 = vmatprep.mubr.msk.f32.mxu1 %vm25207_vm15, %v6843_v47  ;;  %16858 = vmatprep.mubr.msk.f32.mxu0 %vm25208_vm13, %v6845_v49  ;;  %vm25215_vm15 = vmmov %vm25140_vm0  ;;  %v14193_v47 = vld [vmem:[%s23962_s5 + $0x198] sm:$0xff] }
 0x3a3   : > { %vm25216_vm13 = vmmov %vm25140_vm0 }
 0x3a5   : > { %16789 = vmatmul.mubr.msk.f32.gmra.mxu1 %vm25209_vm12, %v6844_v7  ;;  %16859 = vmatmul.mubr.msk.f32.gmra.mxu0 %vm25210_vm9, %v6846_v24  ;;  %vm25217_vm12 = vmmov %vm25140_vm0  ;;  %v14238_v7 = vld [vmem:[%s23962_s5 + $0x1e0] sm:$0xff] }
 0x3a6   : > { %16791 = vmatprep.mubr.msk.f32.mxu1 %vm25211_vm7, %v6845_v49  ;;  %16861 = vmatprep.mubr.msk.f32.mxu0 %vm25212_vm6, %v6847_v55  ;;  %vm25218_vm9 = vmmov %vm25140_vm0  ;;  %v7255_v49 = vld [vmem:[#allocation3 + $0x53] sm:$0xff]  ;;  %v7256_v55 = vld [vmem:[#allocation3 + $0x5b] sm:$0xff] }
 0x3a7   : > { %vm25219_vm7 = vmmov %vm25140_vm0 }
 0x3a8   : > { %vm25220_vm6 = vmmov %vm25140_vm0 }
 0x3a9   : > { %16792 = vmatmul.mubr.msk.f32.gmra.mxu1 %vm25213_vm5, %v6846_v24  ;;  %16862 = vmatmul.mubr.msk.f32.gmra.mxu0 %vm25214_vm14, %v6848_v19  ;;  %vm25221_vm5 = vmmov %vm25140_vm0  ;;  %v21609_v24 = vld [vmem:[#allocation3 + $0x54] sm:$0xff]  ;;  %v21614_v19 = vld [vmem:[#allocation3 + $0x5c] sm:$0xff] }
 0x3aa   : > { %16880 = vmatprep.mubr.msk.f32.mxu1 %vm25140_vm0, %v7247_v0  ;;  %16950 = vmatprep.mubr.msk.f32.mxu0 %vm25215_vm15, %v7681_v57  ;;  %vm25222_vm14 = vmmov %vm25140_vm0  ;;  %v14192_v0 = vld [vmem:[%s23962_s5 + $0x190] sm:$0xff]  ;;  %v14237_v57 = vld [vmem:[%s23962_s5 + $0x1d8] sm:$0xff] }
 0x3ab   : > { %vm25223_vm15 = vmmov %vm25140_vm0 }
 0x3ad   : > { %16881 = vmatmul.mubr.msk.f32.vlgmr.msra.gmra.mxu1 %vm25216_vm13, %v7248_v10  ;;  %16951 = vmatmul.mubr.msk.f32.vlgmr.msra.gmra.mxu0 %vm25217_vm12, %v7682_v18  ;;  %vm25224_vm13 = vmmov %vm25140_vm0  ;;  %v7257_v10 = vld [vmem:[#allocation3 + $0x63] sm:$0xff] }
 0x3ae   : > { %17005 = vmatpush3.msra.mxu1 %v21501_v43  ;;  %16883 = vmatprep.mubr.msk.f32.mxu1 %vm25218_vm9, %v7249_v60  ;;  %v14240_v43 = vld [vmem:[%s23962_s5 + $0x1f0] sm:$0xff]  ;;  %vm25225_vm12 = vmmov %vm25140_vm0  ;;  %v21630_v60 = vld [vmem:[#allocation3 + $0x6c] sm:$0xff] }
 0x3af   : > { %16953 = vmatprep.mubr.msk.f32.mxu0 %vm25219_vm7, %v21561_v45  ;;  %17006 = vmatprep.subr.mxu1 %v14196_v22  ;;  %vm25226_vm9 = vmmov %vm25140_vm0  ;;  %v21625_v18 = vld [vmem:[#allocation3 + $0x64] sm:$0xff] }
 0x3b0   : > { %17007 = vmatpush3.msra.mxu1 %v14196_v22  ;;  %17075 = vmatpush3.msra.mxu0 %v21511_v59  ;;  %v21582_v59 = vld [vmem:[#allocation3 + $0x3c] sm:$0xff]  ;;  %vm25227_vm7 = vmmov %vm25140_vm0  ;;  %v7258_v22 = vld [vmem:[#allocation3 + $0x6b] sm:$0xff] }
 0x3b1   : > { %16884 = vmatmul.mubr.msk.f32.gmra.mxu1 %vm25220_vm6, %v7250_v27  ;;  %16954 = vmatmul.mubr.msk.f32.gmra.mxu0 %vm25221_vm5, %v21565_v33  ;;  %vm25228_vm6 = vmmov %vm25140_vm0  ;;  %v14191_v27 = vld [vmem:[%s23962_s5 + $0x188] sm:$0xff] }
 0x3b2   : > { %16886 = vmatprep.mubr.msk.f32.mxu1 %vm25222_vm14, %v7251_v25  ;;  %16956 = vmatprep.mubr.msk.f32.mxu0 %vm25140_vm0, %v21577_v53  ;;  %vm25229_vm5 = vmmov %vm25140_vm0  ;;  %v21641_v25 = vld [vmem:[#allocation3 + $0x74] sm:$0xff] }
 0x3b3   : > { %17008 = vmatprep.subr.mxu1 %v14195_v28  ;;  %17076 = vmatprep.subr.mxu0 %v14240_v43  ;;  %vm25230_vm14 = vmmov %vm25140_vm0 }
 0x3b4   : > { %17009 = vmatpush3.msra.mxu1 %v14195_v28  ;;  %17077 = vmatpush3.msra.mxu0 %v14240_v43  ;;  %v14236_v28 = vld [vmem:[%s23962_s5 + $0x1d0] sm:$0xff]  ;;  %v7259_v43 = vld [vmem:[#allocation3 + $0x73] sm:$0xff] }
 0x3b5   : > { %16887 = vmatmul.mubr.msk.f32.gmra.mxu1 %vm25223_vm15, %v7252_v62  ;;  %16957 = vmatmul.mubr.msk.f32.gmra.mxu0 %vm25224_vm13, %v21582_v59  ;;  %vm25231_vm15 = vmmov %vm25140_vm0  ;;  %v7260_v62 = vld [vmem:[#allocation3 + $0x7b] sm:$0xff] }
 0x3b6   : > { %16889 = vmatprep.mubr.msk.f32.mxu1 %vm25225_vm12, %v7253_v16  ;;  %16959 = vmatprep.mubr.msk.f32.mxu0 %vm25226_vm9, %v21593_v30  ;;  %vm25232_vm13 = vmmov %vm25140_vm0  ;;  %v14235_v16 = vld [vmem:[%s23962_s5 + $0x1c8] sm:$0xff] }
 0x3b7   : > { %17010 = vmatprep.subr.mxu1 %v14194_v58  ;;  %17078 = vmatprep.subr.mxu0 %v14239_v44  ;;  %vm25233_vm12 = vmmov %vm25140_vm0 }
 0x3b8   : > { %17011 = vmatpush3.msra.mxu1 %v14194_v58  ;;  %17079 = vmatpush3.msra.mxu0 %v14239_v44  ;;  %vm25234_vm9 = vmmov %vm25140_vm0  ;;  %v21646_v58 = vld [vmem:[#allocation3 + $0x7c] sm:$0xff]  ;;  %v14190_v44 = vld [vmem:[%s23962_s5 + $0x180] sm:$0xff] }
 0x3b9   : > { %16890 = vmatmul.mubr.msk.f32.gmra.mxu1 %vm25227_vm7, %v7254_v26  ;;  %16960 = vmatmul.mubr.msk.f32.gmra.mxu0 %vm25228_vm6, %v21598_v4  ;;  %vm25235_vm7 = vmmov %vm25140_vm0  ;;  %v7261_v26 = vld [vmem:[#allocation3 + $0x83] sm:$0xff] }
 0x3ba   : > { %16892 = vmatprep.mubr.msk.f32.mxu1 %vm25229_vm5, %v7255_v49  ;;  %16962 = vmatprep.mubr.msk.f32.mxu0 %vm25230_vm14, %v21609_v24  ;;  %vm25236_vm6 = vmmov %vm25140_vm0  ;;  %v21662_v49 = vld [vmem:[#allocation3 + $0x8c] sm:$0xff] }
 0x3bb   : > { %17012 = vmatprep.subr.mxu1 %v14193_v47  ;;  %17080 = vmatprep.subr.mxu0 %v14238_v7  ;;  %vm25237_vm5 = vmmov %vm25140_vm0 }
 0x3bc   : > { %17013 = vmatpush3.msra.mxu1 %v14193_v47  ;;  %17081 = vmatpush3.msra.mxu0 %v14238_v7  ;;  %vm25238_vm14 = vmmov %vm25140_vm0  ;;  %v21657_v47 = vld [vmem:[#allocation3 + $0x84] sm:$0xff] }
 0x3bd   : > { %16893 = vmatmul.mubr.msk.f32.gmra.mxu1 %vm25140_vm0, %v7256_v55  ;;  %16963 = vmatmul.mubr.msk.f32.gmra.mxu0 %vm25231_vm15, %v21614_v19  ;;  %vm25239_vm15 = vmmov %vm25140_vm0  ;;  %v7262_v7 = vld [vmem:[#allocation3 + $0x8b] sm:$0xff] }
 0x3be   : > { %16895 = vmatprep.mubr.msk.f32.mxu1 %vm25232_vm13, %v7257_v10  ;;  %16965 = vmatprep.mubr.msk.f32.mxu0 %vm25233_vm12, %v21625_v18  ;;  %vm25240_vm13 = vmmov %vm25140_vm0  ;;  %v14234_v55 = vld [vmem:[%s23962_s5 + $0x1c0] sm:$0xff] }
 0x3bf   : > { %17014 = vmatprep.subr.mxu1 %v14192_v0  ;;  %17082 = vmatprep.subr.mxu0 %v14237_v57  ;;  %vm25241_vm12 = vmmov %vm25140_vm0  ;;  %v21675_v10 = vld [vmem:[#allocation3 + $0x94] sm:$0xff] }
 0x3c0   : > { %17015 = vmatpush3.msra.mxu1 %v14192_v0  ;;  %17083 = vmatpush3.msra.mxu0 %v14237_v57  ;;  %v21670_v0 = vld [vmem:[%s23962_s5 + $0x238] sm:$0xff]  ;;  %v7263_v57 = vld [vmem:[#allocation3 + $0x93] sm:$0xff] }
 0x3c1   : > { %16896 = vmatmul.mubr.msk.f32.gmra.mxu1 %vm25234_vm9, %v7258_v22  ;;  %16966 = vmatmul.mubr.msk.f32.gmra.mxu0 %vm25235_vm7, %v21630_v60  ;;  %vm25242_vm9 = vmmov %vm25140_vm0  ;;  %v7264_v22 = vld [vmem:[#allocation3 + $0x9b] sm:$0xff] }
 0x3c2   : > { %16898 = vmatprep.mubr.msk.f32.mxu1 %vm25236_vm6, %v7259_v43  ;;  %16968 = vmatprep.mubr.msk.f32.mxu0 %vm25237_vm5, %v21641_v25  ;;  %vm25243_vm7 = vmmov %vm25140_vm0  ;;  %v21686_v43 = vld [vmem:[#allocation3 + $0xa4] sm:$0xff] }
 0x3c3   : > { %17016 = vmatprep.subr.mxu1 %v14191_v27  ;;  %17084 = vmatprep.subr.mxu0 %v14236_v28  ;;  %vm25244_vm6 = vmmov %vm25140_vm0 }
 0x3c4   : > { %17017 = vmatpush3.msra.mxu1 %v14191_v27  ;;  %17085 = vmatpush3.msra.mxu0 %v14236_v28  ;;  %v21681_v27 = vld [vmem:[#allocation3 + $0x9c] sm:$0xff]  ;;  %vm25245_vm5 = vmmov %vm25140_vm0 }
 0x3c5   : > { %16899 = vmatmul.mubr.msk.f32.gmra.mxu1 %vm25238_vm14, %v7260_v62  ;;  %16969 = vmatmul.mubr.msk.f32.gmra.mxu0 %vm25140_vm0, %v21646_v58  ;;  %vm25246_vm14 = vmmov %vm25140_vm0  ;;  %v7265_v28 = vld [vmem:[#allocation3 + $0xa3] sm:$0xff]  ;;  %v7266_v62 = vld [vmem:[#allocation3 + $0xab] sm:$0xff] }
 0x3c6   : > { %16901 = vmatprep.mubr.msk.f32.mxu1 %vm25239_vm15, %v7261_v26  ;;  %16971 = vmatprep.mubr.msk.f32.mxu0 %vm25240_vm13, %v21657_v47  ;;  %vm25247_vm15 = vmmov %vm25140_vm0  ;;  %v21696_v26 = vld [vmem:[#allocation3 + $0xb4] sm:$0xff] }
 0x3c7   : > { %17018 = vmatprep.subr.mxu1 %v14190_v44  ;;  %17086 = vmatprep.subr.mxu0 %v14235_v16  ;;  %vm25248_vm13 = vmmov %vm25140_vm0 }
 0x3c8   : > { %17019 = vmatpush3.msra.mxu1 %v14190_v44  ;;  %17087 = vmatpush3.msra.mxu0 %v14235_v16  ;;  %v21691_v44 = vld [vmem:[#allocation3 + $0xac] sm:$0xff] }
 0x3c9   : > { %16902 = vmatmul.mubr.msk.f32.gmra.mxu1 %vm25241_vm12, %v7262_v7  ;;  %16972 = vmatmul.mubr.msk.f32.gmra.mxu0 %vm25242_vm9, %v21662_v49  ;;  %vm25249_vm12 = vmmov %vm25140_vm0  ;;  %v7267_v16 = vld [vmem:[#allocation3 + $0xb3] sm:$0xff]  ;;  %v7268_v7 = vld [vmem:[#allocation3 + $0xbb] sm:$0xff] }
 0x3ca   : > { %16904 = vmatprep.mubr.msk.f32.mxu1 %vm25243_vm7, %v7263_v57  ;;  %16974 = vmatprep.mubr.msk.f32.mxu0 %vm25244_vm6, %v21675_v10  ;;  %vm25250_vm9 = vmmov %vm25140_vm0  ;;  %v7269_v57 = vld [vmem:[#allocation3 + $0xc3] sm:$0xff] }
 0x3cb   : > { %17088 = vmatprep.subr.mxu0 %v14234_v55  ;;  %17144 = vmatprep.subr.mxu1 %v21670_v0  ;;  %vm25251_vm7 = vmmov %vm25140_vm0 }
 0x3cc   : > { %17089 = vmatpush3.msra.mxu0 %v14234_v55  ;;  %v21701_v55 = vld [vmem:[#allocation3 + $0xbc] sm:$0xff]  ;;  %vm25252_vm6 = vmmov %vm25140_vm0  ;;  %v16675_v6 = vpop.f32.mrf.mxu0 }
 0x3cd   : > { %16905 = vmatmul.mubr.msk.f32.gmra.mxu1 %vm25245_vm5, %v7264_v22  ;;  %16975 = vmatmul.mubr.msk.f32.gmra.mxu0 %vm25246_vm14, %v21681_v27  ;;  %vm25253_vm5 = vmmov %vm25140_vm0  ;;  %v21706_v22 = vld [vmem:[#allocation3 + $0xc4] sm:$0xff] }
 0x3ce   : > { %16907 = vmatprep.mubr.msk.f32.mxu1 %vm25140_vm0, %v7265_v28  ;;  %16977 = vmatprep.mubr.msk.f32.mxu0 %vm25247_vm15, %v21686_v43  ;;  %vm25254_vm14 = vmmov %vm25140_vm0  ;;  %v7270_v28 = vld [vmem:[#allocation3 + $0xcb] sm:$0xff]  ;;  %v6210_v52 = vpop.f32.mrf.mxu0 }
 0x3cf   : > { %vm25255_vm15 = vmmov %vm25140_vm0 }
 0x3d1   : > { %16908 = vmatmul.mubr.msk.f32.gmra.mxu1 %vm25248_vm13, %v7266_v62  ;;  %16978 = vmatmul.mubr.msk.f32.gmra.mxu0 %vm25249_vm12, %v21691_v44  ;;  %v21711_v62 = vld [vmem:[#allocation3 + $0xcc] sm:$0xff]  ;;  %vm25256_vm13 = vmmov %vm25140_vm0 }
 0x3d2   : > { %16910 = vmatprep.mubr.msk.f32.mxu1 %vm25250_vm9, %v7267_v16  ;;  %16980 = vmatprep.mubr.msk.f32.mxu0 %vm25251_vm7, %v21696_v26  ;;  %v7271_v16 = vld [vmem:[#allocation3 + $0xd3] sm:$0xff]  ;;  %vm25257_vm12 = vmmov %vm25140_vm0 }
 0x3d3   : > { %vm25258_vm9 = vmmov %vm25140_vm0 }
 0x3d4   : > { %vm25259_vm7 = vmmov %vm25140_vm0 }
 0x3d5   : > { %16911 = vmatmul.mubr.msk.f32.gmra.mxu1 %vm25252_vm6, %v7268_v7  ;;  %16981 = vmatmul.mubr.msk.f32.gmra.mxu0 %vm25253_vm5, %v21701_v55  ;;  %v21716_v7 = vld [vmem:[#allocation3 + $0xd4] sm:$0xff]  ;;  %vm25260_vm6 = vmmov %vm25140_vm0 }
 0x3d6   : > { %16913 = vmatprep.mubr.msk.f32.mxu1 %vm25254_vm14, %v7269_v57  ;;  %16983 = vmatprep.mubr.msk.f32.mxu0 %vm25140_vm0, %v21706_v22  ;;  %v7272_v57 = vld [vmem:[#allocation3 + $0xdb] sm:$0xff]  ;;  %vm25261_vm5 = vmmov %vm25140_vm0 }
 0x3d7   : > { %vm25262_vm14 = vmmov %vm25140_vm0 }
 0x3d9   : > { %16914 = vmatmul.mubr.msk.f32.gmra.mxu1 %vm25255_vm15, %v7270_v28  ;;  %16984 = vmatmul.mubr.msk.f32.gmra.mxu0 %vm25256_vm13, %v21711_v62  ;;  %v7273_v28 = vld [vmem:[#allocation3 + $0xe3] sm:$0xff]  ;;  %vm25263_vm15 = vmmov %vm25140_vm0 }
 0x3da   : > { %16916 = vmatprep.mubr.msk.f32.mxu1 %vm25257_vm12, %v7271_v16  ;;  %16986 = vmatprep.mubr.msk.f32.mxu0 %vm25258_vm9, %v21716_v7  ;;  %v16605_v16 = vpop.f32.mrf.mxu1  ;;  %vm25264_vm13 = vmmov %vm25140_vm0 }
 0x3db   : > { %vm25265_vm12 = vmmov %vm25140_vm0 }
 0x3dc   : > { %vm25266_vm9 = vmmov %vm25140_vm0 }
 0x3dd   : > { %16917 = vmatmul.mubr.msk.f32.gmra.mxu1 %vm25259_vm7, %v7272_v57  ;;  %16987 = vmatmul.mubr.msk.f32.gmra.mxu0 %vm25260_vm6, %v21721_v34  ;;  %v21737_v57 = vadd.f32 %v16675_v6, %v16605_v16  ;;  %v16678_v6 = vpop.f32.mrf.mxu0  ;;  %v7276_v16 = vld [vmem:[#allocation3 + $0xfb] sm:$0xff]  ;;  %vm25267_vm7 = vmmov %vm25140_vm0 }
 0x3de   : > { %16919 = vmatprep.mubr.msk.f32.mxu1 %vm25261_vm5, %v7273_v28  ;;  %16989 = vmatprep.mubr.msk.f32.mxu0 %vm25262_vm14, %v21726_v15  ;;  %v5857_v28 = vpop.f32.mrf.mxu1  ;;  %vm25268_vm6 = vmmov %vm25140_vm0 }
 0x3df   : > { %v21747_v29 = vadd.f32 %v6210_v52, %v5857_v28  ;;  %vm25269_vm5 = vmmov %vm25140_vm0  ;;  %v6220_v28 = vpop.f32.mrf.mxu0 }
 0x3e0   : > { %v16608_v39 = vpop.f32.mrf.mxu1  ;;  %vm25270_vm14 = vmmov %vm25140_vm0 }
 0x3e1   : > { %16920 = vmatmul.mubr.msk.f32.gmra.mxu1 %vm25140_vm0, %v7274_v56  ;;  %16990 = vmatmul.mubr.msk.f32.gmra.mxu0 %vm25263_vm15, %v21735_v2  ;;  %v21751_v56 = vadd.f32 %v16678_v6, %v16608_v39  ;;  %v16681_v39 = vpop.f32.mrf.mxu0  ;;  %v7278_v6 = vld [vmem:[#allocation3 + $0x10b] sm:$0xff]  ;;  %vm25271_vm15 = vmmov %vm25140_vm0 }
 0x3e2   : > { %16922 = vmatprep.mubr.msk.f32.mxu1 %vm25264_vm13, %v7275_v63  ;;  %16992 = vmatprep.mubr.msk.f32.mxu0 %vm25265_vm12, %v21742_v46  ;;  %v7277_v63 = vld [vmem:[#allocation3 + $0x103] sm:$0xff]  ;;  %v5867_v52 = vpop.f32.mrf.mxu1  ;;  %vm25272_vm13 = vmmov %vm25140_vm0 }
 0x3e3   : > { %v21761_v40 = vadd.f32 %v6220_v28, %v5867_v52  ;;  %v6230_v28 = vpop.f32.mrf.mxu0  ;;  %vm25273_vm12 = vmmov %vm25140_vm0 }
 0x3e4   : > { %v16611_v50 = vpop.f32.mrf.mxu1 }
 0x3e5   : > { %16923 = vmatmul.mubr.msk.f32.gmra.mxu1 %vm25266_vm9, %v7276_v16  ;;  %16993 = vmatmul.mubr.msk.f32.gmra.mxu0 %vm25267_vm7, %v21749_v54  ;;  %v21765_v16 = vadd.f32 %v16681_v39, %v16611_v50  ;;  %v16684_v50 = vpop.f32.mrf.mxu0  ;;  %v7280_v39 = vld [vmem:[#allocation3 + $0x11b] sm:$0xff]  ;;  %vm25274_vm9 = vmmov %vm25140_vm0 }
 0x3e6   : > { %16925 = vmatprep.mubr.msk.f32.mxu1 %vm25268_vm6, %v7277_v63  ;;  %16995 = vmatprep.mubr.msk.f32.mxu0 %vm25269_vm5, %v21756_v8  ;;  %v7279_v63 = vld [vmem:[#allocation3 + $0x113] sm:$0xff]  ;;  %v5877_v52 = vpop.f32.mrf.mxu1  ;;  %vm25275_vm7 = vmmov %vm25140_vm0 }
 0x3e7   : > { %v21775_v14 = vadd.f32 %v6230_v28, %v5877_v52  ;;  %vm25276_vm6 = vmmov %vm25140_vm0  ;;  %v6240_v28 = vpop.f32.mrf.mxu0 }
 0x3e8   : > { %v16614_v20 = vpop.f32.mrf.mxu1  ;;  %vm25277_vm5 = vmmov %vm25140_vm0 }
 0x3e9   : > { %16926 = vmatmul.mubr.msk.f32.gmra.mxu1 %vm25270_vm14, %v7278_v6  ;;  %16996 = vmatmul.mubr.msk.f32.gmra.mxu0 %vm25140_vm0, %v21763_v38  ;;  %v21779_v6 = vadd.f32 %v16684_v50, %v16614_v20  ;;  %v21791_v20 = vld [vmem:[#allocation3 + $0x12c] sm:$0xff]  ;;  %vm25278_vm14 = vmmov %vm25140_vm0 }
 0x3ea   : > { %16928 = vmatprep.mubr.msk.f32.mxu1 %vm25271_vm15, %v7279_v63  ;;  %16998 = vmatprep.mubr.msk.f32.mxu0 %vm25272_vm13, %v21770_v32  ;;  %v7281_v63 = vld [vmem:[#allocation3 + $0x123] sm:$0xff]  ;;  %v5887_v52 = vpop.f32.mrf.mxu1  ;;  %vm25279_vm15 = vmmov %vm25140_vm0 }
 0x3eb   : > { %v21789_v35 = vadd.f32 %v6240_v28, %v5887_v52  ;;  %vm25280_vm13 = vmmov %vm25140_vm0 }
 0x3ec   : > { %v16617_v50 = vpop.f32.mrf.mxu1 }
 0x3ed   : > { %16929 = vmatmul.mubr.msk.f32.gmra.mxu1 %vm25273_vm12, %v7280_v39  ;;  %16999 = vmatmul.mubr.msk.f32.gmra.mxu0 %vm25274_vm9, %v21777_v61  ;;  %v16687_v39 = vpop.f32.mrf.mxu0  ;;  %vm25281_vm12 = vmmov %vm25140_vm0 }
 0x3ee   : > { %16931 = vmatprep.mubr.msk.f32.mxu1 %vm25275_vm7, %v7281_v63  ;;  %17001 = vmatprep.mubr.msk.f32.mxu0 %vm25276_vm6, %v21784_v21  ;;  %v21796_v3 = vadd.f32 %v16687_v39, %v16617_v50  ;;  %v5897_v63 = vpop.f32.mrf.mxu1  ;;  %vm25282_vm9 = vmmov %vm25140_vm0 }
 0x3ef   : > { %v6250_v52 = vpop.f32.mrf.mxu0  ;;  %vm25283_vm7 = vmmov %vm25140_vm0 }
 0x3f0   : > { %v21801_v28 = vadd.f32 %v6250_v52, %v5897_v63  ;;  %v16620_v51 = vpop.f32.mrf.mxu1  ;;  %v8552_v52 = vld [vmem:[#allocation3 + $0x3d] sm:$0xff]  ;;  %vm25284_vm6 = vmmov %vm25140_vm0 }
 0x3f1   : > { %16932 = vmatmul.mubr.msk.f32.gmra.mxu1 %vm25277_vm5, %v7282_v48  ;;  %17002 = vmatmul.mubr.msk.f32.gmra.mxu0 %vm25278_vm14, %v21791_v20  ;;  %v14284_v48 = vld [vmem:[%s23962_s5 + $0x230] sm:$0xff]  ;;  %v16690_v12 = vpop.f32.mrf.mxu0  ;;  %vm25285_vm5 = vmmov %vm25140_vm0 }
 0x3f2   : > { %17020 = vmatprep.mubr.msk.f32.mxu1 %vm25140_vm0, %v21561_v45  ;;  %17090 = vmatprep.mubr.msk.f32.mxu0 %vm25279_vm15, %v8549_v11  ;;  %v21809_v50 = vadd.f32 %v16690_v12, %v16620_v51  ;;  %v8551_v11 = vld [vmem:[#allocation3 + $0x35] sm:$0xff]  ;;  %v5907_v45 = vpop.f32.mrf.mxu1  ;;  %vm25286_vm14 = vmmov %vm25140_vm0 }
 0x3f3   : > { %v6260_v39 = vpop.f32.mrf.mxu0  ;;  %v14283_v12 = vld [vmem:[%s23962_s5 + $0x228] sm:$0xff]  ;;  %vm25287_vm15 = vmmov %vm25140_vm0 }
 0x3f4   : > { %v21815_v63 = vadd.f32 %v6260_v39, %v5907_v45  ;;  %v16623_v51 = vpop.f32.mrf.mxu1  ;;  %v8554_v45 = vld [vmem:[#allocation3 + $0x4d] sm:$0xff] }
 0x3f5   : > { %17021 = vmatmul.mubr.msk.f32.vlgmr.msra.gmra.mxu1 %vm25280_vm13, %v21565_v33  ;;  %17091 = vmatmul.mubr.msk.f32.vlgmr.msra.gmra.mxu0 %vm25281_vm12, %v8550_v31  ;;  %v16693_v31 = vpop.f32.mrf.mxu0  ;;  %v8553_v33 = vld [vmem:[#allocation3 + $0x45] sm:$0xff]  ;;  %vm25288_vm13 = vmmov %vm25140_vm0 }
 0x3f6   : > { %17145 = vmatpush3.msra.mxu1 %v21670_v0  ;;  %17023 = vmatprep.mubr.msk.f32.mxu1 %vm25282_vm9, %v21577_v53  ;;  %v21823_v53 = vadd.f32 %v16693_v31, %v16623_v51  ;;  %v5917_v0 = vpop.f32.mrf.mxu1  ;;  %vm25289_vm12 = vmmov %vm25140_vm0 }
 0x3f7   : > { %17093 = vmatprep.mubr.msk.f32.mxu0 %vm25283_vm7, %v8551_v11  ;;  %17146 = vmatprep.subr.mxu1 %v14284_v48  ;;  %vm25290_vm9 = vmmov %vm25140_vm0 }
 0x3f8   : > { %17147 = vmatpush3.msra.mxu1 %v14284_v48  ;;  %v6270_v48 = vpop.f32.mrf.mxu0  ;;  %v16626_v39 = vpop.f32.mrf.mxu1  ;;  %vm25291_vm7 = vmmov %vm25140_vm0 }
 0x3f9   : > { %17024 = vmatmul.mubr.msk.f32.gmra.mxu1 %vm25284_vm6, %v21582_v59  ;;  %17094 = vmatmul.mubr.msk.f32.gmra.mxu0 %vm25285_vm5, %v8552_v52  ;;  %v21828_v11 = vadd.f32 %v6270_v48, %v5917_v0  ;;  %v14282_v59 = vld [vmem:[%s23962_s5 + $0x220] sm:$0xff]  ;;  %v8556_v0 = vld [vmem:[#allocation3 + $0x5d] sm:$0xff]  ;;  %vm25292_vm6 = vmmov %vm25140_vm0 }
 0x3fa   : > { %17026 = vmatprep.mubr.msk.f32.mxu1 %vm25286_vm14, %v21593_v30  ;;  %17096 = vmatprep.mubr.msk.f32.mxu0 %vm25140_vm0, %v8553_v33  ;;  %v16696_v52 = vpop.f32.mrf.mxu0  ;;  %v8555_v30 = vld [vmem:[#allocation3 + $0x55] sm:$0xff]  ;;  %vm25293_vm5 = vmmov %vm25140_vm0 }
 0x3fb   : > { %17148 = vmatprep.subr.mxu1 %v14283_v12  ;;  %v21836_v51 = vadd.f32 %v16696_v52, %v16626_v39  ;;  %vm25294_vm14 = vmmov %vm25140_vm0 }
 0x3fc   : > { %17149 = vmatpush3.msra.mxu1 %v14283_v12  ;;  %v5927_v12 = vpop.f32.mrf.mxu1  ;;  %v6280_v31 = vpop.f32.mrf.mxu0 }
 0x3fd   : > { %17027 = vmatmul.mubr.msk.f32.gmra.mxu1 %vm25287_vm15, %v21598_v4  ;;  %17097 = vmatmul.mubr.msk.f32.gmra.mxu0 %vm25288_vm13, %v8554_v45  ;;  %v21841_v33 = vadd.f32 %v6280_v31, %v5927_v12  ;;  %v14281_v4 = vld [vmem:[%s23962_s5 + $0x218] sm:$0xff]  ;;  %vm25295_vm15 = vmmov %vm25140_vm0 }
 0x3fe   : > { %17029 = vmatprep.mubr.msk.f32.mxu1 %vm25289_vm12, %v21609_v24  ;;  %17099 = vmatprep.mubr.msk.f32.mxu0 %vm25290_vm9, %v8555_v30  ;;  %v16629_v48 = vpop.f32.mrf.mxu1  ;;  %v16699_v45 = vpop.f32.mrf.mxu0  ;;  %v8557_v24 = vld [vmem:[#allocation3 + $0x65] sm:$0xff]  ;;  %v8558_v12 = vld [vmem:[#allocation3 + $0x6d] sm:$0xff]  ;;  %vm25296_vm13 = vmmov %vm25140_vm0 }
 0x3ff   : > { %17150 = vmatprep.subr.mxu1 %v14282_v59  ;;  %v21849_v39 = vadd.f32 %v16699_v45, %v16629_v48  ;;  %vm25297_vm12 = vmmov %vm25140_vm0 }
 0x400   : > { %17151 = vmatpush3.msra.mxu1 %v14282_v59  ;;  %v5937_v59 = vpop.f32.mrf.mxu1  ;;  %v6290_v52 = vpop.f32.mrf.mxu0  ;;  %vm25298_vm9 = vmmov %vm25140_vm0 }
 0x401   : > { %17030 = vmatmul.mubr.msk.f32.gmra.mxu1 %vm25291_vm7, %v21614_v19  ;;  %17100 = vmatmul.mubr.msk.f32.gmra.mxu0 %vm25292_vm6, %v8556_v0  ;;  %v21854_v30 = vadd.f32 %v6290_v52, %v5937_v59  ;;  %v14280_v19 = vld [vmem:[%s23962_s5 + $0x210] sm:$0xff]  ;;  %vm25299_vm7 = vmmov %vm25140_vm0 }
 0x402   : > { %17032 = vmatprep.mubr.msk.f32.mxu1 %vm25293_vm5, %v21625_v18  ;;  %17102 = vmatprep.mubr.msk.f32.mxu0 %vm25294_vm14, %v8557_v24  ;;  %v16632_v31 = vpop.f32.mrf.mxu1  ;;  %v16702_v0 = vpop.f32.mrf.mxu0  ;;  %v8559_v18 = vld [vmem:[#allocation3 + $0x75] sm:$0xff]  ;;  %v8560_v59 = vld [vmem:[#allocation3 + $0x7d] sm:$0xff]  ;;  %vm25300_vm6 = vmmov %vm25140_vm0 }
 0x403   : > { %17152 = vmatprep.subr.mxu1 %v14281_v4  ;;  %v21862_v48 = vadd.f32 %v16702_v0, %v16632_v31  ;;  %vm25301_vm5 = vmmov %vm25140_vm0 }
 0x404   : > { %17153 = vmatpush3.msra.mxu1 %v14281_v4  ;;  %v5947_v4 = vpop.f32.mrf.mxu1  ;;  %v6300_v45 = vpop.f32.mrf.mxu0  ;;  %vm25302_vm14 = vmmov %vm25140_vm0 }
 0x405   : > { %17033 = vmatmul.mubr.msk.f32.gmra.mxu1 %vm25140_vm0, %v21630_v60  ;;  %17103 = vmatmul.mubr.msk.f32.gmra.mxu0 %vm25295_vm15, %v8558_v12  ;;  %v21867_v24 = vadd.f32 %v6300_v45, %v5947_v4  ;;  %v14279_v60 = vld [vmem:[%s23962_s5 + $0x208] sm:$0xff]  ;;  %v8562_v4 = vld [vmem:[#allocation3 + $0x8d] sm:$0xff]  ;;  %vm25303_vm15 = vmmov %vm25140_vm0 }
 0x406   : > { %17035 = vmatprep.mubr.msk.f32.mxu1 %vm25296_vm13, %v21641_v25  ;;  %17105 = vmatprep.mubr.msk.f32.mxu0 %vm25297_vm12, %v8559_v18  ;;  %v16635_v52 = vpop.f32.mrf.mxu1  ;;  %v16705_v12 = vpop.f32.mrf.mxu0  ;;  %v8561_v25 = vld [vmem:[#allocation3 + $0x85] sm:$0xff]  ;;  %vm25304_vm13 = vmmov %vm25140_vm0 }
 0x407   : > { %17154 = vmatprep.subr.mxu1 %v14280_v19  ;;  %v21875_v31 = vadd.f32 %v16705_v12, %v16635_v52  ;;  %vm25305_vm12 = vmmov %vm25140_vm0 }
 0x408   : > { %17155 = vmatpush3.msra.mxu1 %v14280_v19  ;;  %v5957_v19 = vpop.f32.mrf.mxu1  ;;  %v6310_v0 = vpop.f32.mrf.mxu0 }
 0x409   : > { %17036 = vmatmul.mubr.msk.f32.gmra.mxu1 %vm25298_vm9, %v21646_v58  ;;  %17106 = vmatmul.mubr.msk.f32.gmra.mxu0 %vm25299_vm7, %v8560_v59  ;;  %v21880_v18 = vadd.f32 %v6310_v0, %v5957_v19  ;;  %v14278_v58 = vld [vmem:[%s23962_s5 + $0x200] sm:$0xff]  ;;  %v8564_v19 = vld [vmem:[#allocation3 + $0x9d] sm:$0xff]  ;;  %vm25306_vm9 = vmmov %vm25140_vm0 }
 0x40a   : > { %17038 = vmatprep.mubr.msk.f32.mxu1 %vm25300_vm6, %v21657_v47  ;;  %17108 = vmatprep.mubr.msk.f32.mxu0 %vm25301_vm5, %v8561_v25  ;;  %v16638_v45 = vpop.f32.mrf.mxu1  ;;  %v16708_v59 = vpop.f32.mrf.mxu0  ;;  %v8563_v47 = vld [vmem:[#allocation3 + $0x95] sm:$0xff]  ;;  %vm25307_vm7 = vmmov %vm25140_vm0 }
 0x40b   : > { %17156 = vmatprep.subr.mxu1 %v14279_v60  ;;  %v21888_v52 = vadd.f32 %v16708_v59, %v16638_v45  ;;  %vm25308_vm6 = vmmov %vm25140_vm0 }
 0x40c   : > { %17157 = vmatpush3.msra.mxu1 %v14279_v60  ;;  %v5967_v60 = vpop.f32.mrf.mxu1  ;;  %v6320_v12 = vpop.f32.mrf.mxu0  ;;  %vm25309_vm5 = vmmov %vm25140_vm0 }
 0x40d   : > { %17039 = vmatmul.mubr.msk.f32.gmra.mxu1 %vm25302_vm14, %v21662_v49  ;;  %17109 = vmatmul.mubr.msk.f32.gmra.mxu0 %vm25140_vm0, %v8562_v4  ;;  %v21893_v25 = vadd.f32 %v6320_v12, %v5967_v60  ;;  %v8565_v49 = vld [vmem:[#allocation3 + $0xa5] sm:$0xff]  ;;  %vm25310_vm14 = vmmov %vm25140_vm0 }
 0x40e   : > { %17041 = vmatprep.mubr.msk.f32.mxu1 %vm25303_vm15, %v21675_v10  ;;  %17111 = vmatprep.mubr.msk.f32.mxu0 %vm25304_vm13, %v8563_v47  ;;  %v16641_v0 = vpop.f32.mrf.mxu1  ;;  %v16711_v9 = vpop.f32.mrf.mxu0  ;;  %vm25311_vm15 = vmmov %vm25140_vm0 }
 0x40f   : > { %17158 = vmatprep.subr.mxu1 %v14278_v58  ;;  %v21898_v4 = vadd.f32 %v16711_v9, %v16641_v0  ;;  %v8568_v0 = vld [vmem:[#allocation3 + $0xbd] sm:$0xff]  ;;  %vm25312_vm13 = vmmov %vm25140_vm0 }
 0x410   : > { %17159 = vmatpush3.msra.mxu1 %v14278_v58  ;;  %v5977_v10 = vpop.f32.mrf.mxu1  ;;  %v6330_v45 = vpop.f32.mrf.mxu0  ;;  %v8566_v58 = vld [vmem:[#allocation3 + $0xad] sm:$0xff] }
 0x411   : > { %17042 = vmatmul.mubr.msk.f32.gmra.mxu1 %vm25305_vm12, %v21681_v27  ;;  %17112 = vmatmul.mubr.msk.f32.gmra.mxu0 %vm25306_vm9, %v8564_v19  ;;  %v21903_v59 = vadd.f32 %v6330_v45, %v5977_v10  ;;  %v8567_v27 = vld [vmem:[#allocation3 + $0xb5] sm:$0xff]  ;;  %vm25313_vm12 = vmmov %vm25140_vm0 }
 0x412   : > { %17044 = vmatprep.mubr.msk.f32.mxu1 %vm25307_vm7, %v21686_v43  ;;  %17114 = vmatprep.mubr.msk.f32.mxu0 %vm25308_vm6, %v8565_v49  ;;  %v16644_v47 = vpop.f32.mrf.mxu1  ;;  %vm25314_vm9 = vmmov %vm25140_vm0 }
 0x413   : > { %v16714_v60 = vpop.f32.mrf.mxu0  ;;  %vm25315_vm7 = vmmov %vm25140_vm0 }
 0x414   : > { %v21908_v9 = vadd.f32 %v16714_v60, %v16644_v47  ;;  %v5987_v43 = vpop.f32.mrf.mxu1  ;;  %v8570_v60 = vld [vmem:[#allocation3 + $0xcd] sm:$0xff]  ;;  %vm25316_vm6 = vmmov %vm25140_vm0 }
 0x415   : > { %17045 = vmatmul.mubr.msk.f32.gmra.mxu1 %vm25309_vm5, %v21691_v44  ;;  %17115 = vmatmul.mubr.msk.f32.gmra.mxu0 %vm25310_vm14, %v8566_v58  ;;  %v6340_v12 = vpop.f32.mrf.mxu0  ;;  %v8569_v44 = vld [vmem:[#allocation3 + $0xc5] sm:$0xff]  ;;  %vm25317_vm5 = vmmov %vm25140_vm0 }
 0x416   : > { %17047 = vmatprep.mubr.msk.f32.mxu1 %vm25140_vm0, %v21696_v26  ;;  %17117 = vmatprep.mubr.msk.f32.mxu0 %vm25311_vm15, %v8567_v27  ;;  %v21913_v19 = vadd.f32 %v6340_v12, %v5987_v43  ;;  %v16647_v49 = vpop.f32.mrf.mxu1  ;;  %vm25318_vm14 = vmmov %vm25140_vm0 }
 0x417   : > { %v16717_v10 = vpop.f32.mrf.mxu0  ;;  %vm25319_vm15 = vmmov %vm25140_vm0 }
 0x418   : > { %v21918_v45 = vadd.f32 %v16717_v10, %v16647_v49  ;;  %v5997_v26 = vpop.f32.mrf.mxu1  ;;  %v8572_v49 = vld [vmem:[#allocation3 + $0xdd] sm:$0xff] }
 0x419   : > { %17048 = vmatmul.mubr.msk.f32.gmra.mxu1 %vm25312_vm13, %v21701_v55  ;;  %17118 = vmatmul.mubr.msk.f32.gmra.mxu0 %vm25313_vm12, %v8568_v0  ;;  %v6350_v58 = vpop.f32.mrf.mxu0  ;;  %v8571_v55 = vld [vmem:[#allocation3 + $0xd5] sm:$0xff]  ;;  %vm25320_vm13 = vmmov %vm25140_vm0 }
 0x41a   : > { %17050 = vmatprep.mubr.msk.f32.mxu1 %vm25314_vm9, %v21706_v22  ;;  %17120 = vmatprep.mubr.msk.f32.mxu0 %vm25315_vm7, %v8569_v44  ;;  %v21923_v47 = vadd.f32 %v6350_v58, %v5997_v26  ;;  %vm25321_vm12 = vmmov %vm25140_vm0 }
 0x41b   : > { %vm25322_vm9 = vmmov %vm25140_vm0 }
 0x41c   : > { %v16650_v27 = vpop.f32.mrf.mxu1  ;;  %vm25325_vm7 = vmmov %vm25140_vm0 }
 0x41d   : > { %v16720_v43 = vpop.f32.mrf.mxu0  ;;  %17051 = vmatmul.mubr.msk.f32.gmra.mxu1 %vm25316_vm6, %v21711_v62  ;;  %17121 = vmatmul.mubr.msk.f32.gmra.mxu0 %vm25317_vm5, %v8570_v60  ;;  %v8573_v62 = vld [vmem:[#allocation3 + $0xe5] sm:$0xff]  ;;  %v8574_v60 = vld [vmem:[#allocation3 + $0xed] sm:$0xff]  ;;  %vm25326_vm6 = vmmov %vm25140_vm0 }
 0x41e   : > { %v21928_v12 = vadd.f32 %v16720_v43, %v16650_v27  ;;  %17053 = vmatprep.mubr.msk.f32.mxu1 %vm25318_vm14, %v21716_v7  ;;  %17123 = vmatprep.mubr.msk.f32.mxu0 %vm25140_vm0, %v8571_v55  ;;  %v21933_v22 = vpop.f32.mrf.mxu1  ;;  %vm25327_vm5 = vmmov %vm25140_vm0 }
 0x41f   : > { %v21935_v0 = vpop.f32.mrf.mxu0  ;;  %vm25328_vm14 = vmmov %vm25140_vm0 }
 0x420   : > { %v16653_v10 = vpop.f32.mrf.mxu1 }
 0x421   : > { %v16723_v44 = vpop.f32.mrf.mxu0  ;;  %17054 = vmatmul.mubr.msk.f32.gmra.mxu1 %vm25319_vm15, %v21721_v34  ;;  %17124 = vmatmul.mubr.msk.f32.gmra.mxu0 %vm25320_vm13, %v8572_v49  ;;  %v8575_v34 = vld [vmem:[#allocation3 + $0xf5] sm:$0xff]  ;;  %vm25329_vm15 = vmmov %vm25140_vm0 }
 0x422   : > { %v21940_v26 = vadd.f32 %v16723_v44, %v16653_v10  ;;  %17056 = vmatprep.mubr.msk.f32.mxu1 %vm25321_vm12, %v21726_v15  ;;  %17126 = vmatprep.mubr.msk.f32.mxu0 %vm25322_vm9, %v8573_v62  ;;  %v21945_v7 = vpop.f32.mrf.mxu1  ;;  %v8576_v44 = vld [vmem:[#allocation3 + $0xfd] sm:$0xff]  ;;  %vm25330_vm13 = vmmov %vm25140_vm0 }
 0x423   : > { %25323 = vst [vmem:[#allocation86_spill] sm:$0xff] %v21945_v7  ;;  %v21947_v58 = vpop.f32.mrf.mxu0  ;;  %vm25331_vm12 = vmmov %vm25140_vm0  ;;  %v8989_v7 = vld [vmem:[#allocation3 + $0x56] sm:$0xff] }
 0x424   : > { %25324 = vst [vmem:[#allocation44_spill] sm:$0xff] %v21947_v58  ;;  %v16742_v27 = vpop.f32.mrf.mxu1  ;;  %vm25332_vm9 = vmmov %vm25140_vm0 }
 0x425   : > { %v16812_v43 = vpop.f32.mrf.mxu0  ;;  %17057 = vmatmul.mubr.msk.f32.gmra.mxu1 %vm25325_vm7, %v21735_v2  ;;  %17127 = vmatmul.mubr.msk.f32.gmra.mxu0 %vm25326_vm6, %v8574_v60  ;;  %v6778_v55 = vadd.f32 %v16742_v27, %v21432_v41  ;;  %v8577_v2 = vld [vmem:[#allocation3 + $0x105] sm:$0xff]  ;;  %vm25333_vm7 = vmmov %vm25140_vm0 }
 0x426   : > { %17059 = vmatprep.mubr.msk.f32.mxu1 %vm25327_vm5, %v21742_v46  ;;  %17129 = vmatprep.mubr.msk.f32.mxu0 %vm25328_vm14, %v8575_v34  ;;  %v21956_v15 = vpop.f32.mrf.mxu1  ;;  %v8578_v34 = vld [vmem:[#allocation3 + $0x10d] sm:$0xff]  ;;  %vm25334_vm6 = vmmov %vm25140_vm0 }
 0x427   : > { %v21958_v49 = vpop.f32.mrf.mxu0  ;;  %v21960_v10 = vadd.f32 %v16812_v43, %v6778_v55  ;;  %vm25335_vm5 = vmmov %vm25140_vm0 }
 0x428   : > { %vm25336_vm14 = vmmov %vm25140_vm0 }
 0x429   : > { %v16745_v62 = vpop.f32.mrf.mxu1  ;;  %v16815_v58 = vpop.f32.mrf.mxu0  ;;  %17060 = vmatmul.mubr.msk.f32.gmra.mxu1 %vm25140_vm0, %v21749_v54  ;;  %17130 = vmatmul.mubr.msk.f32.gmra.mxu0 %vm25329_vm15, %v8576_v44  ;;  %vm25337_vm15 = vmmov %vm25140_vm0 }
 0x42a   : > { %v6780_v41 = vadd.f32 %v16745_v62, %v21737_v57  ;;  %17062 = vmatprep.mubr.msk.f32.mxu1 %vm25330_vm13, %v21756_v8  ;;  %17132 = vmatprep.mubr.msk.f32.mxu0 %vm25331_vm12, %v8577_v2  ;;  %v8579_v57 = vld [vmem:[#allocation3 + $0x115] sm:$0xff]  ;;  %v8580_v2 = vld [vmem:[#allocation3 + $0x11d] sm:$0xff]  ;;  %vm25338_vm13 = vmmov %vm25140_vm0 }
 0x42b   : > { %v6608_v46 = vpop.f32.mrf.mxu1  ;;  %v21969_v60 = vpop.f32.mrf.mxu0  ;;  %vm25339_vm12 = vmmov %vm25140_vm0 }
 0x42c   : > { %v21971_v27 = vadd.f32 %v16815_v58, %v6780_v41  ;;  %v21974_v43 = vadd.f32 %v6608_v46, %v21747_v29 }
 0x42d   : > { %v16748_v54 = vpop.f32.mrf.mxu1  ;;  %v16818_v55 = vpop.f32.mrf.mxu0  ;;  %17063 = vmatmul.mubr.msk.f32.gmra.mxu1 %vm25332_vm9, %v21763_v38  ;;  %17133 = vmatmul.mubr.msk.f32.gmra.mxu0 %vm25333_vm7, %v8578_v34  ;;  %vm25340_vm9 = vmmov %vm25140_vm0 }
 0x42e   : > { %v6782_v8 = vadd.f32 %v16748_v54, %v21751_v56  ;;  %17065 = vmatprep.mubr.msk.f32.mxu1 %vm25334_vm6, %v21770_v32  ;;  %17135 = vmatprep.mubr.msk.f32.mxu0 %vm25335_vm5, %v8579_v57  ;;  %v8581_v56 = vld [vmem:[#allocation3 + $0x125] sm:$0xff]  ;;  %v8583_v54 = vld [vmem:[#allocation3 + $0x135] sm:$0xff]  ;;  %vm25341_vm7 = vmmov %vm25140_vm0 }
 0x42f   : > { %v6618_v58 = vpop.f32.mrf.mxu1  ;;  %v21983_v44 = vpop.f32.mrf.mxu0  ;;  %vm25342_vm6 = vmmov %vm25140_vm0 }
 0x430   : > { %v21985_v29 = vadd.f32 %v16818_v55, %v6782_v8  ;;  %v21988_v62 = vadd.f32 %v6618_v58, %v21761_v40  ;;  %v8149_v40 = vld [vmem:[#allocation3 + $0x134] sm:$0xff]  ;;  %vm25343_vm5 = vmmov %vm25140_vm0 }
 0x431   : > { %v16751_v38 = vpop.f32.mrf.mxu1  ;;  %v16821_v41 = vpop.f32.mrf.mxu0  ;;  %17066 = vmatmul.mubr.msk.f32.gmra.mxu1 %vm25336_vm14, %v21777_v61  ;;  %17136 = vmatmul.mubr.msk.f32.gmra.mxu0 %vm25140_vm0, %v8580_v2  ;;  %v8582_v61 = vld [vmem:[#allocation3 + $0x12d] sm:$0xff]  ;;  %v8584_v2 = vld [vmem:[#allocation3 + $0x13d] sm:$0xff]  ;;  %vm25344_vm14 = vmmov %vm25140_vm0 }
 0x432   : > { %v6784_v32 = vadd.f32 %v16751_v38, %v21765_v16  ;;  %17068 = vmatprep.mubr.msk.f32.mxu1 %vm25337_vm15, %v21784_v21  ;;  %17138 = vmatprep.mubr.msk.f32.mxu0 %vm25338_vm13, %v8581_v56  ;;  %v8150_v16 = vld [vmem:[#allocation3 + $0x13c] sm:$0xff]  ;;  %vm25345_vm15 = vmmov %vm25140_vm0 }
 0x433   : > { %v6628_v46 = vpop.f32.mrf.mxu1  ;;  %v21997_v34 = vpop.f32.mrf.mxu0  ;;  %vm25346_vm13 = vmmov %vm25140_vm0 }
 0x434   : > { %v21999_v55 = vadd.f32 %v16821_v41, %v6784_v32  ;;  %v22002_v57 = vadd.f32 %v6628_v46, %v21775_v14  ;;  %v8983_v46 = vld [vmem:[#allocation3 + $0x26] sm:$0xff] }
 0x435   : > { %v16754_v8 = vpop.f32.mrf.mxu1  ;;  %v16824_v58 = vpop.f32.mrf.mxu0  ;;  %17069 = vmatmul.mubr.msk.f32.gmra.mxu1 %vm25339_vm12, %v21791_v20  ;;  %17139 = vmatmul.mubr.msk.f32.gmra.mxu0 %vm25340_vm9, %v8582_v61  ;;  %vm25349_vm12 = vmmov %vm25140_vm0 }
 0x436   : > { %v6786_v21 = vadd.f32 %v16754_v8, %v21779_v6  ;;  %17071 = vmatprep.mubr.msk.f32.mxu1 %vm25341_vm7, %v8149_v40  ;;  %17141 = vmatprep.mubr.msk.f32.mxu0 %vm25342_vm6, %v8583_v54  ;;  %vm25350_vm9 = vmmov %vm25140_vm0 }
 0x437   : > { %v6638_v38 = vpop.f32.mrf.mxu1  ;;  %v22010_v41 = vpop.f32.mrf.mxu0  ;;  %vm25353_vm7 = vmmov %vm25140_vm0 }
 0x438   : > { %v22012_v14 = vadd.f32 %v16824_v58, %v6786_v21  ;;  %v22015_v56 = vadd.f32 %v6638_v38, %v21789_v35  ;;  %v8984_v35 = vld [vmem:[#allocation3 + $0x2e] sm:$0xff]  ;;  %vm25354_vm6 = vmmov %vm25140_vm0 }
 0x439   : > { %v16757_v32 = vpop.f32.mrf.mxu1  ;;  %v16827_v20 = vpop.f32.mrf.mxu0  ;;  %17072 = vmatmul.mubr.msk.f32.gmra.mxu1 %vm25343_vm5, %v8150_v16  ;;  %17142 = vmatmul.mubr.msk.f32.gmra.mxu0 %vm25344_vm14, %v8584_v2  ;;  %v8985_v16 = vld [vmem:[#allocation3 + $0x36] sm:$0xff]  ;;  %vm25357_vm5 = vmmov %vm25140_vm0 }
 0x43a   : > { %v6788_v6 = vadd.f32 %v16757_v32, %v21796_v3  ;;  %17160 = vmatprep.mubr.msk.f32.mxu1 %vm25140_vm0, %v8983_v46  ;;  %vm25358_vm14 = vmmov %vm25140_vm0 }
 0x43b   : > { %v6648_v40 = vpop.f32.mrf.mxu1  ;;  %v22021_v54 = vpop.f32.mrf.mxu0 }
 0x43c   : > { %v22023_v61 = vadd.f32 %v16827_v20, %v6788_v6  ;;  %v22026_v8 = vadd.f32 %v6648_v40, %v21801_v28  ;;  %v8986_v28 = vld [vmem:[#allocation3 + $0x3e] sm:$0xff]  ;;  %v8987_v40 = vld [vmem:[#allocation3 + $0x46] sm:$0xff] }
 0x43d   : > { %v16760_v58 = vpop.f32.mrf.mxu1  ;;  %v16830_v21 = vpop.f32.mrf.mxu0  ;;  %17161 = vmatmul.mubr.msk.f32.vlgmr.msra.gmra.mxu1 %vm25345_vm15, %v8984_v35  ;;  %vm25361_vm15 = vmmov %vm25140_vm0 }
 0x43e   : > { %v6790_v2 = vadd.f32 %v16760_v58, %v21809_v50  ;;  %17163 = vmatprep.mubr.msk.f32.mxu1 %vm25346_vm13, %v8985_v16  ;;  %vm25364_vm13 = vmmov %vm25140_vm0 }
 0x43f   : > { %v6658_v3 = vpop.f32.mrf.mxu1  ;;  %v22031_v38 = vpop.f32.mrf.mxu0 }
 0x440   : > { %25347 = vst [vmem:[#allocation49_spill] sm:$0xff] %v22031_v38  ;;  %v22033_v32 = vadd.f32 %v16830_v21, %v6790_v2  ;;  %v22036_v20 = vadd.f32 %v6658_v3, %v21815_v63  ;;  %v8988_v63 = vld [vmem:[#allocation3 + $0x4e] sm:$0xff] }
 0x441   : > { %v16763_v46 = vpop.f32.mrf.mxu1  ;;  %v16833_v6 = vpop.f32.mrf.mxu0  ;;  %17164 = vmatmul.mubr.msk.f32.gmra.mxu1 %vm25349_vm12, %v8986_v28  ;;  %vm25365_vm12 = vmmov %vm25140_vm0  ;;  %v14399_v38 = vld [vmem:[%s23964_s7 + $0x40] sm:$0xff] }
 0x442   : > { %25348 = vst [vmem:[#allocation89_spill] sm:$0xff] %v22036_v20  ;;  %v6792_v35 = vadd.f32 %v16763_v46, %v21823_v53  ;;  %17166 = vmatprep.mubr.msk.f32.mxu1 %vm25350_vm9, %v8987_v40  ;;  %v14326_v53 = vld [vmem:[%s23964_s7 + $0x38] sm:$0xff]  ;;  %vm25368_vm9 = vmmov %vm25140_vm0 }
 0x443   : > { %v6668_v50 = vpop.f32.mrf.mxu1  ;;  %v22041_v58 = vpop.f32.mrf.mxu0  ;;  %17214 = vmatprep.subr.mxu0 %v14326_v53 }
 0x444   : > { %25351 = vst [vmem:[#allocation51_spill] sm:$0xff] %v22041_v58  ;;  %v22043_v16 = vadd.f32 %v16833_v6, %v6792_v35  ;;  %v22046_v21 = vadd.f32 %v6668_v50, %v21828_v11  ;;  %v8990_v35 = vld [vmem:[#allocation3 + $0x5e] sm:$0xff]  ;;  %17215 = vmatpush3.msra.mxu0 %v14326_v53 }
 0x445   : > { %v16766_v2 = vpop.f32.mrf.mxu1  ;;  %v16836_v3 = vpop.f32.mrf.mxu0  ;;  %17167 = vmatmul.mubr.msk.f32.gmra.mxu1 %vm25353_vm7, %v8988_v63  ;;  %vm25369_vm7 = vmmov %vm25140_vm0 }
 0x446   : > { %25352 = vst [vmem:[#allocation92_spill] sm:$0xff] %v22046_v21  ;;  %v6794_v28 = vadd.f32 %v16766_v2, %v21836_v51  ;;  %17169 = vmatprep.mubr.msk.f32.mxu1 %vm25354_vm6, %v8989_v7  ;;  %v8991_v51 = vld [vmem:[#allocation3 + $0x66] sm:$0xff]  ;;  %vm25372_vm6 = vmmov %vm25140_vm0 }
 0x447   : > { %v6678_v46 = vpop.f32.mrf.mxu1  ;;  %v22054_v6 = vpop.f32.mrf.mxu0 }
 0x448   : > { %25355 = vst [vmem:[#allocation53_spill] sm:$0xff] %v22054_v6  ;;  %v22056_v11 = vadd.f32 %v16836_v3, %v6794_v28  ;;  %v22059_v40 = vadd.f32 %v6678_v46, %v21841_v33  ;;  %v8992_v33 = vld [vmem:[#allocation3 + $0x6e] sm:$0xff]  ;;  %v8993_v46 = vld [vmem:[#allocation3 + $0x76] sm:$0xff] }
 0x449   : > { %v16769_v50 = vpop.f32.mrf.mxu1  ;;  %v16839_v63 = vpop.f32.mrf.mxu0  ;;  %17170 = vmatmul.mubr.msk.f32.gmra.mxu1 %vm25357_vm5, %v8990_v35  ;;  %vm25373_vm5 = vmmov %vm25140_vm0 }
 0x44a   : > { %25356 = vst [vmem:[#allocation95_spill] sm:$0xff] %v22059_v40  ;;  %v6796_v7 = vadd.f32 %v16769_v50, %v21849_v39  ;;  %17172 = vmatprep.mubr.msk.f32.mxu1 %vm25358_vm14, %v8991_v51  ;;  %vm25376_vm14 = vmmov %vm25140_vm0 }
 0x44b   : > { %v6688_v2 = vpop.f32.mrf.mxu1  ;;  %v22064_v13 = vpop.f32.mrf.mxu0 }
 0x44c   : > { %25359 = vst [vmem:[#allocation55_spill] sm:$0xff] %v22064_v13  ;;  %v22066_v6 = vadd.f32 %v16839_v63, %v6796_v7  ;;  %v22069_v3 = vadd.f32 %v6688_v2, %v21854_v30  ;;  %v8994_v30 = vld [vmem:[#allocation3 + $0x7e] sm:$0xff]  ;;  %v8995_v13 = vld [vmem:[#allocation3 + $0x86] sm:$0xff] }
 0x44d   : > { %v16772_v28 = vpop.f32.mrf.mxu1  ;;  %v16842_v53 = vpop.f32.mrf.mxu0  ;;  %17173 = vmatmul.mubr.msk.f32.gmra.mxu1 %vm25140_vm0, %v8992_v33 }
 0x44e   : > { %25360 = vst [vmem:[#allocation98_spill] sm:$0xff] %v22069_v3  ;;  %v6798_v35 = vadd.f32 %v16772_v28, %v21862_v48  ;;  %17175 = vmatprep.mubr.msk.f32.mxu1 %vm25361_vm15, %v8993_v46  ;;  %vm25379_vm15 = vmmov %vm25140_vm0 }
 0x44f   : > { %v6698_v39 = vpop.f32.mrf.mxu1  ;;  %v22074_v50 = vpop.f32.mrf.mxu0 }
 0x450   : > { %25362 = vst [vmem:[#allocation78_spill] sm:$0xff] %v22074_v50  ;;  %v22076_v51 = vadd.f32 %v16842_v53, %v6798_v35  ;;  %v22079_v63 = vadd.f32 %v6698_v39, %v21867_v24  ;;  %v8996_v24 = vld [vmem:[#allocation3 + $0x8e] sm:$0xff]  ;;  %v8997_v50 = vld [vmem:[#allocation3 + $0x96] sm:$0xff] }
 0x451   : > { %v16775_v7 = vpop.f32.mrf.mxu1  ;;  %v16845_v2 = vpop.f32.mrf.mxu0  ;;  %17176 = vmatmul.mubr.msk.f32.gmra.mxu1 %vm25364_vm13, %v8994_v30  ;;  %vm25380_vm13 = vmmov %vm25140_vm0 }
 0x452   : > { %25363 = vst [vmem:[#allocation127_spill] sm:$0xff] %v22079_v63  ;;  %v6800_v33 = vadd.f32 %v16775_v7, %v21875_v31  ;;  %17178 = vmatprep.mubr.msk.f32.mxu1 %vm25365_vm12, %v8995_v13  ;;  %vm25383_vm12 = vmmov %vm25140_vm0 }
 0x453   : > { %v6708_v48 = vpop.f32.mrf.mxu1  ;;  %v22084_v28 = vpop.f32.mrf.mxu0 }
 0x454   : > { %25366 = vst [vmem:[#allocation57_spill] sm:$0xff] %v22084_v28  ;;  %v22086_v46 = vadd.f32 %v16845_v2, %v6800_v33  ;;  %v22089_v53 = vadd.f32 %v6708_v48, %v21880_v18  ;;  %v8998_v18 = vld [vmem:[#allocation3 + $0x9e] sm:$0xff] }
 0x455   : > { %v16778_v35 = vpop.f32.mrf.mxu1  ;;  %v16848_v39 = vpop.f32.mrf.mxu0  ;;  %17179 = vmatmul.mubr.msk.f32.gmra.mxu1 %vm25368_vm9, %v8996_v24  ;;  %v14325_v33 = vld [vmem:[%s23964_s7 + $0x30] sm:$0xff]  ;;  %vm25384_vm9 = vmmov %vm25140_vm0 }
 0x456   : > { %25367 = vst [vmem:[#allocation101_spill] sm:$0xff] %v22089_v53  ;;  %v6802_v30 = vadd.f32 %v16778_v35, %v21888_v52  ;;  %17181 = vmatprep.mubr.msk.f32.mxu1 %vm25369_vm7, %v8997_v50  ;;  %v8999_v52 = vld [vmem:[#allocation3 + $0xa6] sm:$0xff]  ;;  %17216 = vmatprep.subr.mxu0 %v14325_v33  ;;  %vm25387_vm7 = vmmov %vm25140_vm0  ;;  %v25400_v53 = vmov 0.0  }
 0x457   : > { %v6718_v31 = vpop.f32.mrf.mxu1  ;;  %v22094_v13 = vpop.f32.mrf.mxu0  ;;  %17217 = vmatpush3.msra.mxu0 %v14325_v33 }
 0x458   : > { %25370 = vst [vmem:[#allocation46_spill] sm:$0xff] %v22094_v13  ;;  %v22096_v7 = vadd.f32 %v16848_v39, %v6802_v30  ;;  %v22099_v2 = vadd.f32 %v6718_v31, %v21893_v25  ;;  %v9000_v31 = vld [vmem:[#allocation3 + $0xae] sm:$0xff] }
 0x459   : > { %v16781_v48 = vpop.f32.mrf.mxu1  ;;  %v16851_v24 = vpop.f32.mrf.mxu0  ;;  %17182 = vmatmul.mubr.msk.f32.gmra.mxu1 %vm25372_vm6, %v8998_v18  ;;  %v9001_v18 = vld [vmem:[#allocation3 + $0xb6] sm:$0xff]  ;;  %vm25388_vm6 = vmmov %vm25140_vm0 }
 0x45a   : > { %25371 = vst [vmem:[#allocation59_spill] sm:$0xff] %v22099_v2  ;;  %v6804_v50 = vadd.f32 %v16781_v48, %v21898_v4  ;;  %17184 = vmatprep.mubr.msk.f32.mxu1 %vm25373_vm5, %v8999_v52  ;;  %vm25391_vm5 = vmmov %vm25140_vm0 }
 0x45b   : > { %v6728_v35 = vpop.f32.mrf.mxu1  ;;  %v22107_v39 = vpop.f32.mrf.mxu0 }
 0x45c   : > { %25374 = vst [vmem:[#allocation104_spill] sm:$0xff] %v22107_v39  ;;  %v22109_v25 = vadd.f32 %v16851_v24, %v6804_v50  ;;  %v22112_v30 = vadd.f32 %v6728_v35, %v21903_v59  ;;  %v9002_v59 = vld [vmem:[#allocation3 + $0xbe] sm:$0xff]  ;;  %v9003_v35 = vld [vmem:[#allocation3 + $0xc6] sm:$0xff] }
 0x45d   : > { %v16784_v13 = vpop.f32.mrf.mxu1  ;;  %v16854_v2 = vpop.f32.mrf.mxu0  ;;  %17185 = vmatmul.mubr.msk.f32.gmra.mxu1 %vm25376_vm14, %v9000_v31  ;;  %vm25392_vm14 = vmmov %vm25140_vm0 }
 0x45e   : > { %25375 = vst [vmem:[#allocation48_spill] sm:$0xff] %v22112_v30  ;;  %v6806_v28 = vadd.f32 %v16784_v13, %v21908_v9  ;;  %17187 = vmatprep.mubr.msk.f32.mxu1 %vm25140_vm0, %v9001_v18 }
 0x45f   : > { %v6738_v4 = vpop.f32.mrf.mxu1  ;;  %v22117_v33 = vpop.f32.mrf.mxu0 }
 0x460   : > { %25377 = vst [vmem:[#allocation50_spill] sm:$0xff] %v22117_v33  ;;  %v22119_v48 = vadd.f32 %v16854_v2, %v6806_v28  ;;  %v22122_v24 = vadd.f32 %v6738_v4, %v21913_v19  ;;  %v9004_v19 = vld [vmem:[#allocation3 + $0xce] sm:$0xff]  ;;  %v9005_v33 = vld [vmem:[#allocation3 + $0xd6] sm:$0xff] }
 0x461   : > { %v16787_v52 = vpop.f32.mrf.mxu1  ;;  %v16857_v50 = vpop.f32.mrf.mxu0  ;;  %17188 = vmatmul.mubr.msk.f32.gmra.mxu1 %vm25379_vm15, %v9002_v59  ;;  %v6361_v59 = vadd.f32 %v21935_v0, %v21933_v22  ;;  %vm25393_vm15 = vmmov %vm25140_vm0 }
 0x462   : > { %25378 = vst [vmem:[#allocation52_spill] sm:$0xff] %v22122_v24  ;;  %v6808_v31 = vadd.f32 %v16787_v52, %v21918_v45  ;;  %17190 = vmatprep.mubr.msk.f32.mxu1 %vm25380_vm13, %v9003_v35  ;;  %vm25394_vm13 = vmmov %vm25140_vm0 }
 0x463   : > { %v6748_v9 = vpop.f32.mrf.mxu1  ;;  %v22127_v13 = vpop.f32.mrf.mxu0 }
 0x464   : > { %25381 = vst [vmem:[#allocation54_spill] sm:$0xff] %v22127_v13  ;;  %v22129_v18 = vadd.f32 %v16857_v50, %v6808_v31  ;;  %v22132_v28 = vadd.f32 %v6748_v9, %v21923_v47  ;;  %v9006_v31 = vld [vmem:[#allocation3 + $0xde] sm:$0xff] }
 0x465   : > { %v16790_v2 = vpop.f32.mrf.mxu1  ;;  %v16860_v4 = vpop.f32.mrf.mxu0  ;;  %17191 = vmatmul.mubr.msk.f32.gmra.mxu1 %vm25383_vm12, %v9004_v19  ;;  %v9007_v19 = vld [vmem:[#allocation3 + $0xe6] sm:$0xff]  ;;  %vm25395_vm12 = vmmov %vm25140_vm0 }
 0x466   : > { %25382 = vst [vmem:[#allocation61_spill] sm:$0xff] %v22132_v28  ;;  %v6810_v45 = vadd.f32 %v16790_v2, %v21928_v12  ;;  %17193 = vmatprep.mubr.msk.f32.mxu1 %vm25384_vm9, %v9005_v33  ;;  %v14324_v12 = vld [vmem:[%s23964_s7 + $0x28] sm:$0xff]  ;;  %v9008_v2 = vld [vmem:[#allocation3 + $0xee] sm:$0xff]  ;;  %vm25396_vm9 = vmmov %vm25140_vm0 }
 0x467   : > { %v6758_v52 = vpop.f32.mrf.mxu1  ;;  %v22139_v35 = vpop.f32.mrf.mxu0  ;;  %17218 = vmatprep.subr.mxu0 %v14324_v12 }
 0x468   : > { %25385 = vst [vmem:[#allocation107_spill] sm:$0xff] %v22139_v35  ;;  %v22141_v50 = vadd.f32 %v16860_v4, %v6810_v45  ;;  %v22143_v47 = vadd.f32 %v6758_v52, %v6361_v59  ;;  %17219 = vmatpush3.msra.mxu0 %v14324_v12  ;;  %v9011_v12 = vld [vmem:[#allocation3 + $0x106] sm:$0xff] }
 0x469   : > { %v16793_v9 = vpop.f32.mrf.mxu1  ;;  %v16863_v13 = vpop.f32.mrf.mxu0  ;;  %17194 = vmatmul.mubr.msk.f32.gmra.mxu1 %vm25387_vm7, %v9006_v31  ;;  %vm25397_vm7 = vmmov %vm25140_vm0 }
 0x46a   : > { %25386 = vst [vmem:[#allocation56_spill] sm:$0xff] %v22143_v47  ;;  %v6812_v28 = vadd.f32 %v16793_v9, %v21940_v26  ;;  %17196 = vmatprep.mubr.msk.f32.mxu1 %vm25388_vm6, %v9007_v19  ;;  %v9009_v26 = vld [vmem:[#allocation3 + $0xf6] sm:$0xff]  ;;  %v9010_v19 = vld [vmem:[#allocation3 + $0xfe] sm:$0xff]  ;;  %vm25398_vm6 = vmmov %vm25140_vm0 }
 0x46b   : > { %v22151_v22 = vpop.f32.mrf.mxu1  ;;  %v22153_v0 = vpop.f32.mrf.mxu0 }
 0x46c   : > { %25389 = vst [vmem:[#allocation81_spill] sm:$0xff] %v22151_v22  ;;  %25390 = vst [vmem:[#allocation63_spill] sm:$0xff] %v22153_v0  ;;  %v22155_v33 = vadd.f32 %v16863_v13, %v6812_v28 }
 0x46d   : > { %v16882_v4 = vpop.f32.mrf.mxu1  ;;  %v16952_v59 = vpop.f32.mrf.mxu0  ;;  %17197 = vmatmul.mubr.msk.f32.gmra.mxu1 %vm25391_vm5, %v9008_v2  ;;  %vm25399_vm5 = vmmov %vm25140_vm0 }
 0x46e   : > { %v7646_v45 = vadd.f32 %v16882_v4, %v21960_v10  ;;  %17199 = vmatprep.mubr.msk.f32.mxu1 %vm25392_vm14, %v9009_v26  ;;  %v9012_v26 = vld [vmem:[#allocation3 + $0x10e] sm:$0xff]  ;;  %vm350_vm14 = vcmask 261120  }
 0x46f   : > { %v22160_v52 = vpop.f32.mrf.mxu1  ;;  %v22162_v31 = vpop.f32.mrf.mxu0  ;;  %351 = vst.msk [vmem:[#allocation4] sm:$0xff] %vm350_vm14, %v25400_v53  ;;  %352 = vst.msk [vmem:[#allocation4 + $0x8] sm:$0xff] %vm350_vm14, %v25400_v53 }
 0x470   : > { %v22164_v9 = vadd.f32 %v16952_v59, %v7646_v45  ;;  %v9013_v45 = vld [vmem:[#allocation3 + $0x116] sm:$0xff]  ;;  %355 = vst.msk [vmem:[#allocation4 + $0x133] sm:$0xff] %vm350_vm14, %v25400_v53  ;;  %356 = vst.msk [vmem:[#allocation4 + $0x13b] sm:$0xff] %vm350_vm14, %v25400_v53 }
 0x471   : > { %v16885_v13 = vpop.f32.mrf.mxu1  ;;  %v16955_v28 = vpop.f32.mrf.mxu0  ;;  %17200 = vmatmul.mubr.msk.f32.gmra.mxu1 %vm25140_vm0, %v9010_v19  ;;  %357 = vst.msk [vmem:[#allocation4 + $0x143] sm:$0xff] %vm350_vm14, %v25400_v53 }
 0x472   : > { %v7648_v0 = vadd.f32 %v16885_v13, %v21971_v27  ;;  %17202 = vmatprep.mubr.msk.f32.mxu1 %vm25393_vm15, %v9011_v12  ;;  %v9014_v12 = vld [vmem:[#allocation3 + $0x11e] sm:$0xff]  ;;  %vm353_vm15 = vcmask 256000  }
 0x473   : > { %v22169_v2 = vpop.f32.mrf.mxu1  ;;  %v22171_v10 = vpop.f32.mrf.mxu0  ;;  %354 = vst.msk [vmem:[#allocation4 + $0x10] sm:$0x7] %vm353_vm15, %v25400_v53 }
 0x474   : > { %v22173_v4 = vadd.f32 %v16955_v28, %v7648_v0  ;;  %v9015_v28 = vld [vmem:[#allocation3 + $0x126] sm:$0xff] }
 0x475   : > { %v16888_v22 = vpop.f32.mrf.mxu1  ;;  %v16958_v59 = vpop.f32.mrf.mxu0  ;;  %17203 = vmatmul.mubr.msk.f32.gmra.mxu1 %vm25394_vm13, %v9012_v26 }
 0x476   : > { %v7650_v35 = vadd.f32 %v16888_v22, %v21985_v29  ;;  %17205 = vmatprep.mubr.msk.f32.mxu1 %vm25395_vm12, %v9013_v45  ;;  %v14323_v29 = vld [vmem:[%s23964_s7 + $0x20] sm:$0xff] }
 0x477   : > { %v22178_v19 = vpop.f32.mrf.mxu1  ;;  %v22180_v27 = vpop.f32.mrf.mxu0  ;;  %17220 = vmatprep.subr.mxu0 %v14323_v29  ;;  %v9016_v45 = vld [vmem:[#allocation3 + $0x12e] sm:$0xff] }
 0x478   : > { %v22182_v13 = vadd.f32 %v16958_v59, %v7650_v35  ;;  %v9017_v35 = vld [vmem:[#allocation3 + $0x136] sm:$0xff]  ;;  %17221 = vmatpush3.msra.mxu0 %v14323_v29 }
 0x479   : > { %v16891_v47 = vpop.f32.mrf.mxu1  ;;  %v16961_v0 = vpop.f32.mrf.mxu0  ;;  %17206 = vmatmul.mubr.msk.f32.gmra.mxu1 %vm25396_vm9, %v9014_v12  ;;  %v9568_v1 = vld [vmem:[#allocation4] sm:$0xff] }
 0x47a   : > { %v7652_v24 = vadd.f32 %v16891_v47, %v21999_v55  ;;  %17208 = vmatprep.mubr.msk.f32.mxu1 %vm25397_vm7, %v9015_v28  ;;  %v9018_v47 = vld [vmem:[#allocation3 + $0x13e] sm:$0xff] }
 0x47b   : > { %v22190_v22 = vpop.f32.mrf.mxu1  ;;  %v22192_v26 = vpop.f32.mrf.mxu0 }
 0x47c   : > { %v22194_v59 = vadd.f32 %v16961_v0, %v7652_v24 }
 0x47d   : > { %v16894_v12 = vpop.f32.mrf.mxu1  ;;  %v16964_v39 = vpop.f32.mrf.mxu0  ;;  %17209 = vmatmul.mubr.msk.f32.gmra.mxu1 %vm25398_vm6, %v9016_v45 }
 0x47e   : > { %v7654_v55 = vadd.f32 %v16894_v12, %v22012_v14  ;;  %17211 = vmatprep.mubr.msk.f32.mxu1 %vm25399_vm5, %v9017_v35 }
 0x47f   : > { %v22199_v28 = vpop.f32.mrf.mxu1  ;;  %v22201_v30 = vpop.f32.mrf.mxu0 }
 0x480   : > { %v22213_v14 = vadd.f32 %v16964_v39, %v7654_v55 }
 0x481   : > { %v16897_v24 = vpop.f32.mrf.mxu1  ;;  %v16967_v0 = vpop.f32.mrf.mxu0  ;;  %17212 = vmatmul.mubr.msk.f32.gmra.mxu1 %vm25140_vm0, %v9018_v47 }
 0x482   : > { %v7656_v29 = vadd.f32 %v16897_v24, %v22023_v61  ;;  %v9607_v61 = vld [vmem:[%s23964_s7 + $0x18] sm:$0xff]  ;;  %17284 = vmatprep.mubr.msk.f32.mxu1 %vm350_vm14, %v9568_v1 }
 0x483   : > { %v22217_v35 = vpop.f32.mrf.mxu1  ;;  %v22219_v45 = vpop.f32.mrf.mxu0  ;;  %17276 = vmatprep.subr.mxu1 %v9607_v61 }
 0x484   : > { %25401 = vst [vmem:[#allocation110_spill] sm:$0xff] %v22219_v45  ;;  %v22221_v12 = vadd.f32 %v16967_v0, %v7656_v29  ;;  %17277 = vmatpush3.msra.mxu1 %v9607_v61 }
 0x485   : > { %v16900_v63 = vpop.f32.mrf.mxu1  ;;  %v16970_v3 = vpop.f32.mrf.mxu0 }
 0x486   : > { %v7658_v40 = vadd.f32 %v16900_v63, %v22033_v32  ;;  %v9606_v32 = vld [vmem:[%s23964_s7 + $0x10] sm:$0xff] }
 0x487   : > { %v22224_v58 = vpop.f32.mrf.mxu1  ;;  %v22226_v39 = vpop.f32.mrf.mxu0  ;;  %17278 = vmatprep.subr.mxu1 %v9606_v32 }
 0x488   : > { %25402 = vst [vmem:[#allocation65_spill] sm:$0xff] %v22224_v58  ;;  %25403 = vst [vmem:[#allocation113_spill] sm:$0xff] %v22226_v39  ;;  %v22228_v55 = vadd.f32 %v16970_v3, %v7658_v40  ;;  %17279 = vmatpush3.msra.mxu1 %v9606_v32  ;;  %v9608_v39 = vld [vmem:[#allocation4 + $0x1] sm:$0xff] }
 0x489   : > { %v16903_v21 = vpop.f32.mrf.mxu1  ;;  %v16973_v47 = vpop.f32.mrf.mxu0  ;;  %17222 = vmatprep.mubr.msk.f32.mxu0 %vm350_vm14, %v9608_v39 }
 0x48a   : > { %v7660_v24 = vadd.f32 %v16903_v21, %v22043_v16  ;;  %v9605_v16 = vld [vmem:[%s23964_s7 + $0x8] sm:$0xff] }
 0x48b   : > { %v22234_v0 = vpop.f32.mrf.mxu1  ;;  %v22236_v29 = vpop.f32.mrf.mxu0  ;;  %17280 = vmatprep.subr.mxu1 %v9605_v16 }
 0x48c   : > { %25404 = vst [vmem:[#allocation67_spill] sm:$0xff] %v22234_v0  ;;  %25405 = vst [vmem:[#allocation116_spill] sm:$0xff] %v22236_v29  ;;  %v22241_v40 = vadd.f32 %v16973_v47, %v7660_v24  ;;  %17281 = vmatpush3.msra.mxu1 %v9605_v16  ;;  %v9604_v47 = vld [vmem:[%s23964_s7] sm:$0xff] }
 0x48d   : > { %v16906_v3 = vpop.f32.mrf.mxu1  ;;  %v16976_v63 = vpop.f32.mrf.mxu0  ;;  %17282 = vmatprep.subr.mxu1 %v9604_v47 }
 0x48e   : > { %v7662_v21 = vadd.f32 %v16906_v3, %v22056_v11  ;;  %17283 = vmatpush3.msra.mxu1 %v9604_v47  ;;  %v9569_v11 = vld [vmem:[#allocation4 + $0x8] sm:$0xff] }
 0x48f   : > { %v22247_v0 = vpop.f32.mrf.mxu1  ;;  %v22249_v61 = vpop.f32.mrf.mxu0  ;;  %17285 = vmatmul.mubr.msk.f32.vlgmr.msra.gmra.mxu1 %vm350_vm14, %v9569_v11  ;;  %v9609_v11 = vld [vmem:[#allocation4 + $0x9] sm:$0xff] }
 0x490   : > { %25406 = vst [vmem:[#allocation58_spill] sm:$0xff] %v22247_v0  ;;  %25407 = vst [vmem:[#allocation60_spill] sm:$0xff] %v22249_v61  ;;  %v22254_v24 = vadd.f32 %v16976_v63, %v7662_v21  ;;  %v14402_v21 = vld [vmem:[%s23964_s7 + $0x58] sm:$0xff]  ;;  %17223 = vmatmul.mubr.msk.f32.vlgmr.msra.gmra.mxu0 %vm350_vm14, %v9609_v11 }
 0x491   : > { %v16909_v32 = vpop.f32.mrf.mxu1  ;;  %v16979_v29 = vpop.f32.mrf.mxu0  ;;  %17338 = vmatprep.subr.mxu0 %v14402_v21 }
 0x492   : > { %v7664_v3 = vadd.f32 %v16909_v32, %v22066_v6  ;;  %17339 = vmatpush3.msra.mxu0 %v14402_v21 }
 0x493   : > { %v22260_v16 = vpop.f32.mrf.mxu1  ;;  %v22262_v63 = vpop.f32.mrf.mxu0 }
 0x494   : > { %25408 = vst [vmem:[#allocation69_spill] sm:$0xff] %v22260_v16  ;;  %25409 = vst [vmem:[#allocation119_spill] sm:$0xff] %v22262_v63  ;;  %v22268_v47 = vadd.f32 %v16979_v29, %v7664_v3 }
 0x495   : > { %v16912_v6 = vpop.f32.mrf.mxu1  ;;  %v16982_v32 = vpop.f32.mrf.mxu0 }
 0x496   : > { %v7666_v39 = vadd.f32 %v16912_v6, %v22076_v51 }
 0x497   : > { %v22271_v1 = vpop.f32.mrf.mxu1  ;;  %v22273_v53 = vpop.f32.mrf.mxu0 }
 0x498   : > { %25410 = vst [vmem:[#allocation71_spill] sm:$0xff] %v22271_v1  ;;  %25411 = vst [vmem:[#allocation122_spill] sm:$0xff] %v22273_v53  ;;  %v22275_v16 = vadd.f32 %v16982_v32, %v7666_v39 }
 0x499   : > { %v16915_v63 = vpop.f32.mrf.mxu1  ;;  %v16985_v61 = vpop.f32.mrf.mxu0 }
 0x49a   : > { %v7668_v0 = vadd.f32 %v16915_v63, %v22086_v46 }
 0x49b   : > { %v22279_v29 = vpop.f32.mrf.mxu1  ;;  %v22281_v3 = vpop.f32.mrf.mxu0 }
 0x49c   : > { %25412 = vst [vmem:[#allocation84_spill] sm:$0xff] %v22279_v29  ;;  %25413 = vst [vmem:[#allocation62_spill] sm:$0xff] %v22281_v3  ;;  %v22283_v58 = vadd.f32 %v16985_v61, %v7668_v0 }
 0x49d   : > { %v16918_v51 = vpop.f32.mrf.mxu1  ;;  %v16988_v6 = vpop.f32.mrf.mxu0 }
 0x49e   : > { %v7670_v53 = vadd.f32 %v16918_v51, %v22096_v7  ;;  %v14401_v7 = vld [vmem:[%s23964_s7 + $0x50] sm:$0xff] }
 0x49f   : > { %v22286_v32 = vpop.f32.mrf.mxu1  ;;  %v22288_v39 = vpop.f32.mrf.mxu0  ;;  %17340 = vmatprep.subr.mxu0 %v14401_v7 }
 0x4a0   : > { %25414 = vst [vmem:[#allocation130_spill] sm:$0xff] %v22286_v32  ;;  %25415 = vst [vmem:[#allocation64_spill] sm:$0xff] %v22288_v39  ;;  %v22290_v1 = vadd.f32 %v16988_v6, %v7670_v53  ;;  %17341 = vmatpush3.msra.mxu0 %v14401_v7 }
 0x4a1   : > { %v16921_v46 = vpop.f32.mrf.mxu1  ;;  %v16991_v63 = vpop.f32.mrf.mxu0 }
 0x4a2   : > { %v7672_v11 = vadd.f32 %v16921_v46, %v22109_v25 }
 0x4a3   : > { %v22293_v29 = vpop.f32.mrf.mxu1  ;;  %v22295_v3 = vpop.f32.mrf.mxu0 }
 0x4a4   : > { %25416 = vst [vmem:[#allocation66_spill] sm:$0xff] %v22293_v29  ;;  %25417 = vst [vmem:[#allocation68_spill] sm:$0xff] %v22295_v3  ;;  %v22297_v0 = vadd.f32 %v16991_v63, %v7672_v11 }
 0x4a5   : > { %v16924_v61 = vpop.f32.mrf.mxu1  ;;  %v16994_v21 = vpop.f32.mrf.mxu0 }
 0x4a6   : > { %v7674_v51 = vadd.f32 %v16924_v61, %v22119_v48 }
 0x4a7   : > { %v22303_v53 = vpop.f32.mrf.mxu1  ;;  %v22305_v6 = vpop.f32.mrf.mxu0 }
 0x4a8   : > { %25418 = vst [vmem:[#allocation131_spill] sm:$0xff] %v22303_v53  ;;  %25419 = vst [vmem:[#allocation70_spill] sm:$0xff] %v22305_v6  ;;  %v22307_v25 = vadd.f32 %v16994_v21, %v7674_v51 }
 0x4a9   : > { %v16927_v46 = vpop.f32.mrf.mxu1  ;;  %v16997_v3 = vpop.f32.mrf.mxu0 }
 0x4aa   : > { %v7676_v63 = vadd.f32 %v16927_v46, %v22129_v18 }
 0x4ab   : > { %v22310_v11 = vpop.f32.mrf.mxu1  ;;  %v22312_v29 = vpop.f32.mrf.mxu0 }
 0x4ac   : > { %25420 = vst [vmem:[#allocation72_spill] sm:$0xff] %v22310_v11  ;;  %25421 = vst [vmem:[#allocation87_spill] sm:$0xff] %v22312_v29  ;;  %v22314_v39 = vadd.f32 %v16997_v3, %v7676_v63 }
 0x4ad   : > { %v16930_v32 = vpop.f32.mrf.mxu1  ;;  %v17000_v48 = vpop.f32.mrf.mxu0 }
 0x4ae   : > { %v7678_v61 = vadd.f32 %v16930_v32, %v22141_v50 }
 0x4af   : > { %v22317_v53 = vpop.f32.mrf.mxu1  ;;  %v22319_v6 = vpop.f32.mrf.mxu0 }
 0x4b0   : > { %25422 = vst [vmem:[#allocation132_spill] sm:$0xff] %v22317_v53  ;;  %25423 = vst [vmem:[#allocation6_spill] sm:$0xff] %v22319_v6  ;;  %v22321_v21 = vadd.f32 %v17000_v48, %v7678_v61  ;;  %v14400_v48 = vld [vmem:[%s23964_s7 + $0x48] sm:$0xff] }
 0x4b1   : > { %v16933_v7 = vpop.f32.mrf.mxu1  ;;  %v17003_v51 = vpop.f32.mrf.mxu0  ;;  %17342 = vmatprep.subr.mxu0 %v14400_v48 }
 0x4b2   : > { %v7680_v18 = vadd.f32 %v16933_v7, %v22155_v33  ;;  %17343 = vmatpush3.msra.mxu0 %v14400_v48 }
 0x4b3   : > { %v22324_v46 = vpop.f32.mrf.mxu1  ;;  %v22326_v11 = vpop.f32.mrf.mxu0  ;;  %17344 = vmatprep.subr.mxu0 %v14399_v38 }
 0x4b4   : > { %25424 = vst [vmem:[#allocation73_spill] sm:$0xff] %v22324_v46  ;;  %25425 = vst [vmem:[#allocation125_spill] sm:$0xff] %v22326_v11  ;;  %v22328_v3 = vadd.f32 %v17003_v51, %v7680_v18  ;;  %17345 = vmatpush3.msra.mxu0 %v14399_v38 }
 0x4b5   : > { %v17022_v63 = vpop.f32.mrf.mxu1  ;;  %v22330_v29 = vpop.f32.mrf.mxu0 }
 0x4b6   : > { %v22333_v50 = vadd.f32 %v17022_v63, %v22164_v9 }
 0x4b7   : > { %v22335_v32 = vpop.f32.mrf.mxu1  ;;  %v22340_v61 = vpop.f32.mrf.mxu0 }
 0x4b9   : > { %v17025_v33 = vpop.f32.mrf.mxu1  ;;  %v22347_v18 = vpop.f32.mrf.mxu0 }
 0x4ba   : > { %v22343_v7 = vadd.f32 %v17025_v33, %v22173_v4 }
 0x4bb   : > { %v22345_v51 = vpop.f32.mrf.mxu1  ;;  %v22354_v46 = vpop.f32.mrf.mxu0 }
 0x4bd   : > { %v17028_v9 = vpop.f32.mrf.mxu1  ;;  %v22361_v4 = vpop.f32.mrf.mxu0 }
 0x4be   : > { %v22350_v63 = vadd.f32 %v17028_v9, %v22182_v13 }
 0x4bf   : > { %v22352_v11 = vpop.f32.mrf.mxu1  ;;  %v22368_v13 = vpop.f32.mrf.mxu0 }
 0x4c1   : > { %v17031_v6 = vpop.f32.mrf.mxu1  ;;  %v22378_v20 = vpop.f32.mrf.mxu0 }
 0x4c2   : > { %v22357_v53 = vadd.f32 %v17031_v6, %v22194_v59  ;;  %25430 = vst [vmem:[#allocation134_spill] sm:$0xff] %v22378_v20 }
 0x4c3   : > { %v22359_v48 = vpop.f32.mrf.mxu1  ;;  %v22391_v38 = vpop.f32.mrf.mxu0 }
 0x4c4   : > { %25433 = vst [vmem:[#allocation99_spill] sm:$0xff] %v22391_v38 }
 0x4c5   : > { %v17034_v33 = vpop.f32.mrf.mxu1 }
 0x4c6   : > { %v22364_v45 = vadd.f32 %v17034_v33, %v22213_v14  ;;  %v14442_v14 = vld [vmem:[%s23964_s7 + $0x78] sm:$0xff]  ;;  %v14441_v33 = vld [vmem:[%s23964_s7 + $0x70] sm:$0xff] }
 0x4c7   : > { %v22366_v36 = vpop.f32.mrf.mxu1  ;;  %17400 = vmatprep.subr.mxu1 %v14442_v14 }
 0x4c8   : > { %25426 = vst [vmem:[#allocation90_spill] sm:$0xff] %v22364_v45  ;;  %25427 = vst [vmem:[#allocation8_spill] sm:$0xff] %v22366_v36  ;;  %17401 = vmatpush3.msra.mxu1 %v14442_v14 }
 0x4c9   : > { %v17037_v9 = vpop.f32.mrf.mxu1  ;;  %17402 = vmatprep.subr.mxu1 %v14441_v33 }
 0x4ca   : > { %v22374_v59 = vadd.f32 %v17037_v9, %v22221_v12  ;;  %17403 = vmatpush3.msra.mxu1 %v14441_v33  ;;  %v14440_v9 = vld [vmem:[%s23964_s7 + $0x68] sm:$0xff]  ;;  %v22407_v33 = vpop.f32.mrf.mxu0 }
 0x4cb   : > { %v22376_v6 = vpop.f32.mrf.mxu1  ;;  %17404 = vmatprep.subr.mxu1 %v14440_v9 }
 0x4cc   : > { %25428 = vst [vmem:[#allocation93_spill] sm:$0xff] %v22374_v59  ;;  %25429 = vst [vmem:[#allocation133_spill] sm:$0xff] %v22376_v6  ;;  %v14439_v6 = vld [vmem:[%s23964_s7 + $0x60] sm:$0xff]  ;;  %17405 = vmatpush3.msra.mxu1 %v14440_v9  ;;  %v22414_v17 = vpop.f32.mrf.mxu0 }
 0x4cd   : > { %v17040_v45 = vpop.f32.mrf.mxu1  ;;  %17406 = vmatprep.subr.mxu1 %v14439_v6 }
 0x4ce   : > { %v22387_v36 = vadd.f32 %v17040_v45, %v22228_v55  ;;  %v14482_v45 = vld [vmem:[%s23964_s7 + $0x98] sm:$0xff]  ;;  %17407 = vmatpush3.msra.mxu1 %v14439_v6  ;;  %v22421_v9 = vpop.f32.mrf.mxu0 }
 0x4cf   : > { %v22389_v12 = vpop.f32.mrf.mxu1  ;;  %17462 = vmatprep.subr.mxu0 %v14482_v45 }
 0x4d0   : > { %25431 = vst [vmem:[#allocation74_spill] sm:$0xff] %v22387_v36  ;;  %25432 = vst [vmem:[#allocation96_spill] sm:$0xff] %v22389_v12 }
 0x4d1   : > { %v17043_v59 = vpop.f32.mrf.mxu1 }
 0x4d2   : > { %v22403_v55 = vadd.f32 %v17043_v59, %v22241_v40 }
 0x4d3   : > { %v22405_v14 = vpop.f32.mrf.mxu1 }
 0x4d4   : > { %25434 = vst [vmem:[#allocation135_spill] sm:$0xff] %v22403_v55 }
 0x4d5   : > { %v17046_v36 = vpop.f32.mrf.mxu1 }
 0x4d6   : > { %v22410_v12 = vadd.f32 %v17046_v36, %v22254_v24  ;;  %v22428_v36 = vpop.f32.mrf.mxu0 }
 0x4d7   : > { %v22412_v38 = vpop.f32.mrf.mxu1 }
 0x4d8   : > { %25435 = vst [vmem:[#allocation100_spill] sm:$0xff] %v22410_v12  ;;  %25436 = vst [vmem:[#allocation79_spill] sm:$0xff] %v22412_v38 }
 0x4d9   : > { %v17049_v20 = vpop.f32.mrf.mxu1 }
 0x4da   : > { %v22417_v40 = vadd.f32 %v17049_v20, %v22268_v47  ;;  %v22435_v20 = vpop.f32.mrf.mxu0 }
 0x4db   : > { %v22419_v59 = vpop.f32.mrf.mxu1 }
 0x4dc   : > { %25437 = vst [vmem:[#allocation136_spill] sm:$0xff] %v22417_v40  ;;  %25438 = vst [vmem:[#allocation109_spill] sm:$0xff] %v22419_v59 }
 0x4dd   : > { %v17052_v45 = vpop.f32.mrf.mxu1 }
 0x4de   : > { %v22424_v55 = vadd.f32 %v17052_v45, %v22275_v16  ;;  %v22442_v16 = vpop.f32.mrf.mxu0 }
 0x4df   : > { %v22426_v6 = vpop.f32.mrf.mxu1 }
 0x4e0   : > { %25439 = vst [vmem:[#allocation85_spill] sm:$0xff] %v22424_v55  ;;  %25440 = vst [vmem:[#allocation137_spill] sm:$0xff] %v22426_v6 }
 0x4e1   : > { %v17055_v24 = vpop.f32.mrf.mxu1 }
 0x4e2   : > { %v22431_v12 = vadd.f32 %v17055_v24, %v22283_v58  ;;  %v6201_v58 = vadd.f32 %v21730_v42, %v21728_v5  ;;  %v22451_v24 = vpop.f32.mrf.mxu0 }
 0x4e3   : > { %v22433_v38 = vpop.f32.mrf.mxu1 }
 0x4e4   : > { %25441 = vst [vmem:[#allocation112_spill] sm:$0xff] %v22431_v12  ;;  %25442 = vst [vmem:[#allocation75_spill] sm:$0xff] %v22433_v38  ;;  %v6777_v38 = vadd.f32 %v21956_v15, %v6201_v58 }
 0x4e5   : > { %v17058_v47 = vpop.f32.mrf.mxu1 }
 0x4e6   : > { %v22438_v40 = vadd.f32 %v17058_v47, %v22290_v1 }
 0x4e7   : > { %v22440_v59 = vpop.f32.mrf.mxu1 }
 0x4e8   : > { %25443 = vst [vmem:[#allocation128_spill] sm:$0xff] %v22438_v40  ;;  %25444 = vst [vmem:[#allocation102_spill] sm:$0xff] %v22440_v59  ;;  %v22459_v40 = vpop.f32.mrf.mxu0 }
 0x4e9   : > { %v17061_v45 = vpop.f32.mrf.mxu1 }
 0x4ea   : > { %v22445_v55 = vadd.f32 %v17061_v45, %v22297_v0  ;;  %v7211_v0 = vadd.f32 %v21958_v49, %v6777_v38  ;;  %v22468_v5 = vpop.f32.mrf.mxu0 }
 0x4eb   : > { %v22447_v6 = vpop.f32.mrf.mxu1 }
 0x4ec   : > { %25445 = vst [vmem:[#allocation105_spill] sm:$0xff] %v22445_v55  ;;  %v7645_v42 = vadd.f32 %v22160_v52, %v7211_v0  ;;  %v22479_v38 = vpop.f32.mrf.mxu0  ;;  %v7215_v52 = vadd.f32 %v21983_v44, %v21988_v62  ;;  %v7217_v44 = vadd.f32 %v21997_v34, %v22002_v57 }
 0x4ed   : > { %v17064_v12 = vpop.f32.mrf.mxu1 }
 0x4ee   : > { %v22455_v1 = vadd.f32 %v17064_v12, %v22307_v25  ;;  %v7213_v25 = vadd.f32 %v21969_v60, %v21974_v43  ;;  %v8079_v49 = vadd.f32 %v22162_v31, %v7645_v42  ;;  %v7649_v60 = vadd.f32 %v22178_v19, %v7215_v52 }
 0x4ef   : > { %v22457_v47 = vpop.f32.mrf.mxu1  ;;  %v8948_v31 = vadd.f32 %v22330_v29, %v22333_v50  ;;  %v7651_v29 = vadd.f32 %v22190_v22, %v7217_v44 }
 0x4f0   : > { %v8513_v0 = vadd.f32 %v22335_v32, %v8079_v49  ;;  %v7219_v49 = vadd.f32 %v22010_v41, %v22015_v56 }
 0x4f1   : > { %v17067_v59 = vpop.f32.mrf.mxu1 }
 0x4f2   : > { %v22463_v45 = vadd.f32 %v17067_v59, %v22314_v39  ;;  %v7647_v39 = vadd.f32 %v22169_v2, %v7213_v25  ;;  %v22493_v2 = vpop.f32.mrf.mxu0  ;;  %v8947_v19 = vadd.f32 %v22340_v61, %v8513_v0 }
 0x4f3   : > { %v22465_v55 = vpop.f32.mrf.mxu1 }
 0x4f4   : > { %25446 = vst [vmem:[#allocation115_spill] sm:$0xff] %v22463_v45  ;;  %v22508_v34 = vpop.f32.mrf.mxu0 }
 0x4f5   : > { %v17070_v15 = vpop.f32.mrf.mxu1 }
 0x4f6   : > { %v22473_v12 = vadd.f32 %v17070_v15, %v22321_v21  ;;  %v8081_v21 = vadd.f32 %v22171_v10, %v7647_v39  ;;  %v8083_v10 = vadd.f32 %v22180_v27, %v7649_v60  ;;  %v8950_v15 = vadd.f32 %v22347_v18, %v22343_v7  ;;  %v22520_v60 = vpop.f32.mrf.mxu0 }
 0x4f7   : > { %v22475_v58 = vpop.f32.mrf.mxu1  ;;  %v7653_v7 = vadd.f32 %v22199_v28, %v7219_v49  ;;  %v8952_v18 = vadd.f32 %v22361_v4, %v22350_v63 }
 0x4f8   : > { %v8515_v32 = vadd.f32 %v22345_v51, %v8081_v21  ;;  %v8517_v61 = vadd.f32 %v22352_v11, %v8083_v10  ;;  %v7221_v21 = vadd.f32 %v22021_v54, %v22026_v8  ;;  %v25447_v54 = vld [vmem:[#allocation134_spill] sm:$0xff] }
 0x4f9   : > { %v17073_v59 = vpop.f32.mrf.mxu1  ;;  %v8954_v8 = vadd.f32 %v25447_v54, %v22357_v53  ;;  %v25464_v54 = vld [vmem:[#allocation13_spill] sm:$0xff] }
 0x4fa   : > { %v22485_v45 = vadd.f32 %v17073_v59, %v22328_v3  ;;  %v22500_v3 = vld [vmem:[%s23963_s6] ss:$0 sm:$0xff]  ;;  %v8949_v39 = vadd.f32 %v22354_v46, %v8515_v32  ;;  %v8085_v59 = vadd.f32 %v22192_v26, %v7651_v29  ;;  %v8951_v26 = vadd.f32 %v22368_v13, %v8517_v61  ;;  %v22538_v13 = vpop.f32.mrf.mxu0  ;;  %v25448_v32 = vld [vmem:[#allocation10_spill] sm:$0xff] }
 0x4fb   : > { %v22488_v43 = vpop.f32.mrf.mxu1  ;;  %v25454_v61 = vld [vmem:[#allocation11_spill] sm:$0xff]  ;;  %vm25465_vm12 = vnez %v25464_v54 }
 0x4fc   : > { %v8519_v28 = vadd.f32 %v22359_v48, %v8085_v59 }
 0x4fd   : > { %v17162_v62 = vpop.f32.mrf.mxu1 }
 0x4fe   : > { %v9382_v42 = vadd.f32 %v17162_v62, %v8948_v31  ;;  %v8087_v62 = vadd.f32 %v22201_v30, %v7653_v7  ;;  %v25457_v7 = vld [vmem:[#allocation65_spill] sm:$0xff] }
 0x4ff   : > { %v9202_v50 = vpop.f32.mrf.mxu1 }
 0x500   : > { %v9425_v57 = vadd.f32 %v22500_v3, %v9382_v42  ;;  %v9381_v25 = vadd.f32 %v9202_v50, %v8947_v19  ;;  %v7655_v19 = vadd.f32 %v22217_v35, %v7221_v21  ;;  %v25450_v50 = vld [vmem:[#allocation89_spill] sm:$0xff] }
 0x501   : > { %v17165_v51 = vpop.f32.mrf.mxu1 }
 0x502   : > { %v9461_v27 = vmax.f32 %v9425_v57, 0.0  ;;  %v9424_v22 = vadd.f32 %v22500_v3, %v9381_v25  ;;  %v9384_v52 = vadd.f32 %v17165_v51, %v8950_v15  ;;  %v25451_v15 = vld [vmem:[#allocation49_spill] sm:$0xff]  ;;  %v25452_v57 = vld [vmem:[#allocation99_spill] sm:$0xff]  ;;  %v25453_v25 = vld [vmem:[#allocation8_spill] sm:$0xff] }
 0x503   : > { %v9212_v0 = vpop.f32.mrf.mxu1  ;;  %v7223_v30 = vadd.f32 %v25451_v15, %v25450_v50  ;;  %v8953_v35 = vadd.f32 %v25452_v57, %v8519_v28  ;;  %v8521_v49 = vadd.f32 %v25453_v25, %v8087_v62  ;;  %v25463_v62 = vld [vmem:[#allocation133_spill] sm:$0xff] }
 0x504   : > { %v9497_v41 = vsel %vm24920_vm11, %v9461_v27, 0.0  ;;  %v9460_v56 = vmax.f32 %v9424_v22, 0.0  ;;  %v9427_v11 = vadd.f32 %v22500_v3, %v9384_v52  ;;  %v9383_v46 = vadd.f32 %v9212_v0, %v8949_v39  ;;  %v25456_v52 = vld [vmem:[#allocation110_spill] sm:$0xff]  ;;  %v25466_v50 = vld [vmem:[#allocation113_spill] sm:$0xff] }
 0x505   : > { %9533 = vst.msk [vmem:[#allocation4 + $0x1b] sm:$0xff] %vm350_vm14, %v9497_v41  ;;  %v17168_v63 = vpop.f32.mrf.mxu1  ;;  %vm25449_vm11 = vnez %v25448_v32  ;;  %v8089_v59 = vadd.f32 %v25456_v52, %v7655_v19  ;;  %v25458_v0 = vld [vmem:[#allocation90_spill] sm:$0xff]  ;;  %v25472_v52 = vld [vmem:[#allocation53_spill] sm:$0xff] }
 0x506   : > { %v9496_v4 = vsel %vm24926_vm4, %v9460_v56, 0.0  ;;  %v9463_v31 = vmax.f32 %v9427_v11, 0.0  ;;  %v9426_v23 = vadd.f32 %v22500_v3, %v9383_v46  ;;  %v9386_v44 = vadd.f32 %v17168_v63, %v8952_v18  ;;  %v22556_v11 = vpop.f32.mrf.mxu0  ;;  %v25459_v46 = vld [vmem:[#allocation12_spill] sm:$0xff] }
 0x507   : > { %9532 = vst.msk [vmem:[#allocation4 + $0x13] sm:$0xff] %vm350_vm14, %v9496_v4  ;;  %v9222_v48 = vpop.f32.mrf.mxu1  ;;  %vm25455_vm4 = vnez %v25454_v61  ;;  %v7657_v18 = vadd.f32 %v25457_v7, %v7223_v30  ;;  %v8956_v41 = vadd.f32 %v22407_v33, %v25458_v0  ;;  %vm25460_vm13 = vnez %v25459_v46  ;;  %v25461_v4 = vld [vmem:[#allocation92_spill] sm:$0xff]  ;;  %v25467_v30 = vld [vmem:[#allocation67_spill] sm:$0xff]  ;;  %v25469_v61 = vld [vmem:[#allocation14_spill] sm:$0xff] }
 0x508   : > { %v9499_v37 = vsel %vm25449_vm11, %v9463_v31, 0.0  ;;  %v9462_v42 = vmax.f32 %v9426_v23, 0.0  ;;  %v9429_v10 = vadd.f32 %v22500_v3, %v9386_v44  ;;  %v9385_v29 = vadd.f32 %v9222_v48, %v8951_v26  ;;  %v25462_v31 = vld [vmem:[#allocation51_spill] sm:$0xff] }
 0x509   : > { %9535 = vst.msk [vmem:[#allocation4 + $0x2b] sm:$0xff] %vm350_vm14, %v9499_v37  ;;  %v17171_v53 = vpop.f32.mrf.mxu1  ;;  %v7225_v23 = vadd.f32 %v25462_v31, %v25461_v4  ;;  %v8955_v44 = vadd.f32 %v22414_v17, %v8521_v49  ;;  %v8523_v19 = vadd.f32 %v25463_v62, %v8089_v59  ;;  %v8091_v15 = vadd.f32 %v25466_v50, %v7657_v18  ;;  %v25468_v17 = vld [vmem:[#allocation93_spill] sm:$0xff]  ;;  %v25473_v18 = vld [vmem:[#allocation96_spill] sm:$0xff]  ;;  %v25477_v62 = vld [vmem:[#allocation58_spill] sm:$0xff] }
 0x50a   : > { %v9498_v51 = vsel %vm25455_vm4, %v9462_v42, 0.0  ;;  %v9465_v39 = vmax.f32 %v9429_v10, 0.0  ;;  %v9428_v27 = vadd.f32 %v22500_v3, %v9385_v29  ;;  %v9388_v22 = vadd.f32 %v17171_v53, %v8954_v8  ;;  %v22576_v53 = vpop.f32.mrf.mxu0  ;;  %v25481_v50 = vld [vmem:[#allocation98_spill] sm:$0xff] }
 0x50b   : > { %9534 = vst.msk [vmem:[#allocation4 + $0x23] sm:$0xff] %vm350_vm14, %v9498_v51  ;;  %v9232_v56 = vpop.f32.mrf.mxu1  ;;  %v7659_v57 = vadd.f32 %v25467_v30, %v7225_v23  ;;  %vm25470_vm9 = vnez %v25469_v61  ;;  %v8957_v7 = vadd.f32 %v22428_v36, %v8523_v19  ;;  %v8525_v0 = vadd.f32 %v25473_v18, %v8091_v15  ;;  %v25476_v23 = vld [vmem:[#allocation116_spill] sm:$0xff]  ;;  %v25478_v36 = vld [vmem:[#allocation74_spill] sm:$0xff]  ;;  %v25482_v15 = vld [vmem:[#allocation55_spill] sm:$0xff] }
 0x50c   : > { %v9501_v21 = vsel %vm25460_vm13, %v9465_v39, 0.0  ;;  %v9464_v26 = vmax.f32 %v9428_v27, 0.0  ;;  %v9431_v28 = vadd.f32 %v22500_v3, %v9388_v22  ;;  %v9387_v63 = vadd.f32 %v9232_v56, %v8953_v35  ;;  %v25474_v56 = vld [vmem:[#allocation15_spill] sm:$0xff] }
 0x50d   : > { %9537 = vst.msk [vmem:[#allocation4 + $0x3b] sm:$0xff] %vm350_vm14, %v9501_v21  ;;  %v17174_v33 = vpop.f32.mrf.mxu1  ;;  %v8958_v35 = vadd.f32 %v22421_v9, %v25468_v17  ;;  %v25471_v9 = vld [vmem:[#allocation95_spill] sm:$0xff]  ;;  %vm25475_vm7 = vnez %v25474_v56  ;;  %v8960_v19 = vadd.f32 %v22435_v20, %v25478_v36  ;;  %v22608_v20 = vld [vmem:[%s23964_s7 + $0xb8] sm:$0xff]  ;;  %v7229_v30 = vadd.f32 %v25482_v15, %v25481_v50 }
 0x50e   : > { %v9500_v8 = vsel %vm25465_vm12, %v9464_v26, 0.0  ;;  %v9467_v48 = vmax.f32 %v9431_v28, 0.0  ;;  %v9430_v32 = vadd.f32 %v22500_v3, %v9387_v63  ;;  %v9390_v37 = vadd.f32 %v17174_v33, %v8956_v41  ;;  %v9610_v42 = vld [vmem:[#allocation4 + $0x11] sm:$0xff]  ;;  %v9611_v29 = vld [vmem:[#allocation4 + $0x19] sm:$0xff]  ;;  %17524 = vmatprep.subr.mxu1 %v22608_v20 }
 0x50f   : > { %v9570_v10 = vld [vmem:[#allocation4 + $0x10] sm:$0xff]  ;;  %9536 = vst.msk [vmem:[#allocation4 + $0x33] sm:$0xff] %vm350_vm14, %v9500_v8  ;;  %v9242_v25 = vpop.f32.mrf.mxu1  ;;  %17225 = vmatprep.mubr.msk.f32.mxu0 %vm350_vm14, %v9610_v42  ;;  %v9571_v49 = vld [vmem:[#allocation4 + $0x18] sm:$0xff]  ;;  %v7227_v59 = vadd.f32 %v25472_v52, %v25471_v9  ;;  %v25485_v52 = vld [vmem:[#allocation60_spill] sm:$0xff] }
 0x510   : > { %17287 = vmatprep.mubr.msk.f32.mxu1 %vm350_vm14, %v9570_v10  ;;  %v9503_v51 = vsel %vm25470_vm9, %v9467_v48, 0.0  ;;  %v9466_v39 = vmax.f32 %v9430_v32, 0.0  ;;  %v9433_v27 = vadd.f32 %v22500_v3, %v9390_v37  ;;  %v9389_v22 = vadd.f32 %v9242_v25, %v8955_v44  ;;  %17226 = vmatmul.mubr.msk.f32.gmra.mxu0 %vm350_vm14, %v9611_v29  ;;  %v22598_v48 = vpop.f32.mrf.mxu0  ;;  %v25479_v32 = vld [vmem:[#allocation16_spill] sm:$0xff]  ;;  %v25483_v25 = vld [vmem:[#allocation17_spill] sm:$0xff]  ;;  %v25494_v15 = vld [vmem:[#allocation71_spill] sm:$0xff] }
 0x511   : > { %17288 = vmatmul.mubr.msk.f32.gmra.mxu1 %vm350_vm14, %v9571_v49  ;;  %9539 = vst.msk [vmem:[#allocation4 + $0x4b] sm:$0xff] %vm350_vm14, %v9503_v51  ;;  %v17177_v41 = vpop.f32.mrf.mxu1  ;;  %v8093_v44 = vadd.f32 %v25476_v23, %v7659_v57  ;;  %v7661_v33 = vadd.f32 %v25477_v62, %v7227_v59  ;;  %vm25480_vm6 = vnez %v25479_v32  ;;  %v8959_v57 = vadd.f32 %v22442_v16, %v8525_v0  ;;  %v25486_v16 = vld [vmem:[#allocation69_spill] sm:$0xff] }
 0x512   : > { %v9502_v46 = vsel %vm25475_vm7, %v9466_v39, 0.0  ;;  %v9469_v21 = vmax.f32 %v9433_v27, 0.0  ;;  %v9432_v26 = vadd.f32 %v22500_v3, %v9389_v22  ;;  %v9392_v28 = vadd.f32 %v17177_v41, %v8958_v35  ;;  %v9612_v63 = vld [vmem:[#allocation4 + $0x21] sm:$0xff]  ;;  %v9613_v31 = vld [vmem:[#allocation4 + $0x29] sm:$0xff]  ;;  %v22626_v56 = vpop.f32.mrf.mxu0 }
 0x513   : > { %v9572_v4 = vld [vmem:[#allocation4 + $0x20] sm:$0xff]  ;;  %9538 = vst.msk [vmem:[#allocation4 + $0x43] sm:$0xff] %vm350_vm14, %v9502_v46  ;;  %v9252_v54 = vpop.f32.mrf.mxu1  ;;  %17228 = vmatprep.mubr.msk.f32.mxu0 %vm350_vm14, %v9612_v63  ;;  %v9573_v8 = vld [vmem:[#allocation4 + $0x28] sm:$0xff]  ;;  %v8527_v17 = vadd.f32 %v22405_v14, %v8093_v44  ;;  %vm25484_vm5 = vnez %v25483_v25  ;;  %v8095_v59 = vadd.f32 %v25485_v52, %v7661_v33 }
 0x514   : > { %17290 = vmatprep.mubr.msk.f32.mxu1 %vm350_vm14, %v9572_v4  ;;  %v9505_v37 = vsel %vm25480_vm6, %v9469_v21, 0.0  ;;  %v9468_v42 = vmax.f32 %v9432_v26, 0.0  ;;  %v9435_v10 = vadd.f32 %v22500_v3, %v9392_v28  ;;  %v9391_v29 = vadd.f32 %v9252_v54, %v8957_v7  ;;  %17229 = vmatmul.mubr.msk.f32.gmra.mxu0 %vm350_vm14, %v9613_v31  ;;  %v25487_v14 = vld [vmem:[#allocation135_spill] sm:$0xff]  ;;  %v25490_v4 = vld [vmem:[#allocation78_spill] sm:$0xff]  ;;  %v22648_v25 = vpop.f32.mrf.mxu0 }
 0x515   : > { %17291 = vmatmul.mubr.msk.f32.gmra.mxu1 %vm350_vm14, %v9573_v8  ;;  %9541 = vst.msk [vmem:[#allocation4 + $0x5b] sm:$0xff] %vm350_vm14, %v9505_v37  ;;  %v17180_v35 = vpop.f32.mrf.mxu1  ;;  %v7663_v7 = vadd.f32 %v25486_v16, %v7229_v30  ;;  %v8962_v18 = vadd.f32 %v22451_v24, %v25487_v14  ;;  %v25489_v24 = vld [vmem:[#allocation127_spill] sm:$0xff]  ;;  %v8961_v23 = vadd.f32 %v22459_v40, %v8527_v17  ;;  %v25495_v40 = vld [vmem:[#allocation100_spill] sm:$0xff]  ;;  %v25500_v14 = vld [vmem:[#allocation21_spill] sm:$0xff] }
 0x516   : > { %v9504_v49 = vsel %vm25484_vm5, %v9468_v42, 0.0  ;;  %v9471_v61 = vmax.f32 %v9435_v10, 0.0  ;;  %v9434_v51 = vadd.f32 %v22500_v3, %v9391_v29  ;;  %v9394_v39 = vadd.f32 %v17180_v35, %v8960_v19  ;;  %v9614_v27 = vld [vmem:[#allocation4 + $0x31] sm:$0xff]  ;;  %v9615_v9 = vld [vmem:[#allocation4 + $0x39] sm:$0xff] }
 0x517   : > { %v9574_v22 = vld [vmem:[#allocation4 + $0x30] sm:$0xff]  ;;  %9540 = vst.msk [vmem:[#allocation4 + $0x53] sm:$0xff] %vm350_vm14, %v9504_v49  ;;  %v9262_v0 = vpop.f32.mrf.mxu1  ;;  %17231 = vmatprep.mubr.msk.f32.mxu0 %vm350_vm14, %v9614_v27  ;;  %v9575_v41 = vld [vmem:[#allocation4 + $0x38] sm:$0xff]  ;;  %v7231_v31 = vadd.f32 %v25490_v4, %v25489_v24  ;;  %v25491_v44 = vld [vmem:[#allocation79_spill] sm:$0xff] }
 0x518   : > { %17293 = vmatprep.mubr.msk.f32.mxu1 %vm350_vm14, %v9574_v22  ;;  %v9507_v21 = vsel %vm24983_vm3, %v9471_v61, 0.0  ;;  %v9470_v26 = vmax.f32 %v9434_v51, 0.0  ;;  %v9437_v28 = vadd.f32 %v22500_v3, %v9394_v39  ;;  %v9393_v63 = vadd.f32 %v9262_v0, %v8959_v57  ;;  %17232 = vmatmul.mubr.msk.f32.gmra.mxu0 %vm350_vm14, %v9615_v9  ;;  %v25493_v29 = vld [vmem:[#allocation119_spill] sm:$0xff]  ;;  %v25498_v22 = vld [vmem:[#allocation57_spill] sm:$0xff]  ;;  %v25503_v4 = vld [vmem:[#allocation84_spill] sm:$0xff] }
 0x519   : > { %17294 = vmatmul.mubr.msk.f32.gmra.mxu1 %vm350_vm14, %v9575_v41  ;;  %v8529_v62 = vadd.f32 %v25491_v44, %v8095_v59  ;;  %9543 = vst.msk [vmem:[#allocation4 + $0x6b] sm:$0xff] %vm350_vm14, %v9507_v21  ;;  %v17183_v33 = vpop.f32.mrf.mxu1  ;;  %v8097_v50 = vadd.f32 %v25493_v29, %v7663_v7  ;;  %v7665_v30 = vadd.f32 %v25494_v15, %v7231_v31  ;;  %v25499_v59 = vld [vmem:[#allocation109_spill] sm:$0xff] }
 0x51a   : > { %v9506_v19 = vsel %vm24993_vm8, %v9470_v26, 0.0  ;;  %v9473_v54 = vmax.f32 %v9437_v28, 0.0  ;;  %v9436_v8 = vadd.f32 %v22500_v3, %v9393_v63  ;;  %v9396_v32 = vadd.f32 %v17183_v33, %v8962_v18  ;;  %v9616_v37 = vld [vmem:[#allocation4 + $0x41] sm:$0xff]  ;;  %v9617_v10 = vld [vmem:[#allocation4 + $0x49] sm:$0xff]  ;;  %v25502_v63 = vld [vmem:[#allocation122_spill] sm:$0xff]  ;;  %v22670_v33 = vpop.f32.mrf.mxu0 }
 0x51b   : > { %v9576_v42 = vld [vmem:[#allocation4 + $0x40] sm:$0xff]  ;;  %v8964_v57 = vadd.f32 %v22468_v5, %v25495_v40  ;;  %9542 = vst.msk [vmem:[#allocation4 + $0x63] sm:$0xff] %vm350_vm14, %v9506_v19  ;;  %v9272_v17 = vpop.f32.mrf.mxu1  ;;  %17234 = vmatprep.mubr.msk.f32.mxu0 %vm350_vm14, %v9616_v37  ;;  %v9577_v35 = vld [vmem:[#allocation4 + $0x48] sm:$0xff]  ;;  %v25497_v5 = vld [vmem:[#allocation101_spill] sm:$0xff]  ;;  %v8963_v52 = vadd.f32 %v22479_v38, %v8529_v62  ;;  %v8531_v16 = vadd.f32 %v25499_v59, %v8097_v50 }
 0x51c   : > { %17296 = vmatprep.mubr.msk.f32.mxu1 %vm350_vm14, %v9576_v42  ;;  %v9509_v61 = vsel %vm18977_vm2, %v9473_v54, 0.0  ;;  %v9472_v51 = vmax.f32 %v9436_v8, 0.0  ;;  %v9439_v39 = vadd.f32 %v22500_v3, %v9396_v32  ;;  %v9395_v27 = vadd.f32 %v9272_v17, %v8961_v23  ;;  %17235 = vmatmul.mubr.msk.f32.gmra.mxu0 %vm350_vm14, %v9617_v10  ;;  %v25504_v38 = vld [vmem:[#allocation136_spill] sm:$0xff]  ;;  %v25507_v37 = vld [vmem:[#allocation46_spill] sm:$0xff]  ;;  %v25508_v29 = vld [vmem:[#allocation137_spill] sm:$0xff] }
 0x51d   : > { %17297 = vmatmul.mubr.msk.f32.gmra.mxu1 %vm350_vm14, %v9577_v35  ;;  %v7233_v9 = vadd.f32 %v25498_v22, %v25497_v5  ;;  %9545 = vst.msk [vmem:[#allocation4 + $0x7b] sm:$0xff] %vm350_vm14, %v9509_v61  ;;  %v17186_v7 = vpop.f32.mrf.mxu1  ;;  %vm25501_vm2 = vnez %v25500_v14  ;;  %v8099_v24 = vadd.f32 %v25502_v63, %v7665_v30  ;;  %v8966_v23 = vadd.f32 %v22493_v2, %v25504_v38  ;;  %v25506_v2 = vld [vmem:[#allocation59_spill] sm:$0xff]  ;;  %v25512_v5 = vld [vmem:[#allocation130_spill] sm:$0xff] }
 0x51e   : > { %v9508_v18 = vsel %vm25501_vm2, %v9472_v51, 0.0  ;;  %v9475_v0 = vmax.f32 %v9439_v39, 0.0  ;;  %v9438_v41 = vadd.f32 %v22500_v3, %v9395_v27  ;;  %v9398_v46 = vadd.f32 %v17186_v7, %v8964_v57  ;;  %v9618_v21 = vld [vmem:[#allocation4 + $0x51] sm:$0xff]  ;;  %v9619_v28 = vld [vmem:[#allocation4 + $0x59] sm:$0xff] }
 0x51f   : > { %v9578_v26 = vld [vmem:[#allocation4 + $0x50] sm:$0xff]  ;;  %v7667_v31 = vadd.f32 %v25503_v4, %v7233_v9  ;;  %9544 = vst.msk [vmem:[#allocation4 + $0x73] sm:$0xff] %vm350_vm14, %v9508_v18  ;;  %v9282_v44 = vpop.f32.mrf.mxu1  ;;  %17237 = vmatprep.mubr.msk.f32.mxu0 %vm350_vm14, %v9618_v21  ;;  %v9579_v62 = vld [vmem:[#allocation4 + $0x58] sm:$0xff]  ;;  %v7235_v42 = vadd.f32 %v25507_v37, %v25506_v2  ;;  %v8965_v10 = vadd.f32 %v22508_v34, %v8531_v16  ;;  %v25509_v30 = vld [vmem:[#allocation23_spill] sm:$0xff]  ;;  %v22692_v16 = vpop.f32.mrf.mxu0 }
 0x520   : > { %17299 = vmatprep.mubr.msk.f32.mxu1 %vm350_vm14, %v9578_v26  ;;  %v9511_v19 = vsel %vm19027_vm10, %v9475_v0, 0.0  ;;  %v9474_v54 = vmax.f32 %v9438_v41, 0.0  ;;  %v9441_v8 = vadd.f32 %v22500_v3, %v9398_v46  ;;  %v9397_v32 = vadd.f32 %v9282_v44, %v8963_v52  ;;  %17238 = vmatmul.mubr.msk.f32.gmra.mxu0 %vm350_vm14, %v9619_v28  ;;  %v25511_v39 = vld [vmem:[#allocation62_spill] sm:$0xff]  ;;  %v25513_v34 = vld [vmem:[#allocation85_spill] sm:$0xff]  ;;  %v25517_v46 = vld [vmem:[#allocation104_spill] sm:$0xff] }
 0x521   : > { %17300 = vmatmul.mubr.msk.f32.gmra.mxu1 %vm350_vm14, %v9579_v62  ;;  %v8533_v50 = vadd.f32 %v25508_v29, %v8099_v24  ;;  %9547 = vst.msk [vmem:[#allocation4 + $0x8b] sm:$0xff] %vm350_vm14, %v9511_v19  ;;  %v17189_v15 = vpop.f32.mrf.mxu1  ;;  %vm25510_vm10 = vnez %v25509_v30  ;;  %v8101_v27 = vadd.f32 %v25511_v39, %v7667_v31  ;;  %v7669_v22 = vadd.f32 %v25512_v5, %v7235_v42  ;;  %v25514_v7 = vld [vmem:[#allocation9_spill] sm:$0xff]  ;;  %v25518_v28 = vld [vmem:[#allocation75_spill] sm:$0xff]  ;;  %v22714_v29 = vpop.f32.mrf.mxu0 }
 0x522   : > { %v9510_v40 = vsel %vm25510_vm10, %v9474_v54, 0.0  ;;  %v9477_v57 = vmax.f32 %v9441_v8, 0.0  ;;  %v9440_v17 = vadd.f32 %v22500_v3, %v9397_v32  ;;  %v9400_v35 = vadd.f32 %v17189_v15, %v8966_v23  ;;  %v9620_v49 = vld [vmem:[#allocation4 + $0x61] sm:$0xff]  ;;  %v9621_v51 = vld [vmem:[#allocation4 + $0x69] sm:$0xff]  ;;  %v25522_v32 = vld [vmem:[#allocation66_spill] sm:$0xff] }
 0x523   : > { %v9580_v61 = vld [vmem:[#allocation4 + $0x60] sm:$0xff]  ;;  %v8968_v9 = vadd.f32 %v22520_v60, %v25513_v34  ;;  %9546 = vst.msk [vmem:[#allocation4 + $0x83] sm:$0xff] %vm350_vm14, %v9510_v40  ;;  %v9292_v52 = vpop.f32.mrf.mxu1  ;;  %17240 = vmatprep.mubr.msk.f32.mxu0 %vm350_vm14, %v9620_v49  ;;  %v9581_v59 = vld [vmem:[#allocation4 + $0x68] sm:$0xff]  ;;  %vm25515_vm3 = vnez %v25514_v7  ;;  %v8967_v26 = vadd.f32 %v22538_v13, %v8533_v50  ;;  %v8535_v63 = vadd.f32 %v25518_v28, %v8101_v27  ;;  %v25524_v50 = vld [vmem:[#allocation5_spill] sm:$0xff] }
 0x524   : > { %17302 = vmatprep.mubr.msk.f32.mxu1 %vm350_vm14, %v9580_v61  ;;  %v9513_v14 = vsel %vm25515_vm3, %v9477_v57, 0.0  ;;  %v9476_v18 = vmax.f32 %v9440_v17, 0.0  ;;  %v9443_v0 = vadd.f32 %v22500_v3, %v9400_v35  ;;  %v9399_v41 = vadd.f32 %v9292_v52, %v8965_v10  ;;  %17241 = vmatmul.mubr.msk.f32.gmra.mxu0 %vm350_vm14, %v9621_v51  ;;  %v25516_v60 = vld [vmem:[#allocation48_spill] sm:$0xff]  ;;  %v25519_v4 = vld [vmem:[#allocation7_spill] sm:$0xff]  ;;  %v25527_v17 = vld [vmem:[#allocation50_spill] sm:$0xff] }
 0x525   : > { %17303 = vmatmul.mubr.msk.f32.gmra.mxu1 %vm350_vm14, %v9581_v59  ;;  %v7237_v21 = vadd.f32 %v25517_v46, %v25516_v60  ;;  %9549 = vst.msk [vmem:[#allocation4 + $0x9b] sm:$0xff] %vm350_vm14, %v9513_v14  ;;  %v17192_v24 = vpop.f32.mrf.mxu1  ;;  %vm25520_vm8 = vnez %v25519_v4  ;;  %v25521_v54 = vld [vmem:[#allocation64_spill] sm:$0xff]  ;;  %vm25525_vm0 = vnez %v25524_v50  ;;  %v8969_v49 = vadd.f32 %v22576_v53, %v8535_v63  ;;  %v25528_v61 = vld [vmem:[#allocation102_spill] sm:$0xff] }
 0x526   : > { %v9512_v31 = vsel %vm25520_vm8, %v9476_v18, 0.0  ;;  %v9479_v38 = vmax.f32 %v9443_v0, 0.0  ;;  %v9442_v23 = vadd.f32 %v22500_v3, %v9399_v41  ;;  %v9402_v44 = vadd.f32 %v17192_v24, %v8968_v9  ;;  %v9622_v62 = vld [vmem:[#allocation4 + $0x71] sm:$0xff]  ;;  %v9623_v19 = vld [vmem:[#allocation4 + $0x79] sm:$0xff]  ;;  %v25523_v13 = vld [vmem:[#allocation112_spill] sm:$0xff] }
 0x527   : > { %v9582_v36 = vld [vmem:[#allocation4 + $0x70] sm:$0xff]  ;;  %v8103_v8 = vadd.f32 %v25521_v54, %v7669_v22  ;;  %v7671_v2 = vadd.f32 %v25522_v32, %v7237_v21  ;;  %v8970_v37 = vadd.f32 %v22556_v11, %v25523_v13  ;;  %9548 = vst.msk [vmem:[#allocation4 + $0x93] sm:$0xff] %vm350_vm14, %v9512_v31  ;;  %v9302_v42 = vpop.f32.mrf.mxu1  ;;  %17243 = vmatprep.mubr.msk.f32.mxu0 %vm350_vm14, %v9622_v62  ;;  %v9583_v10 = vld [vmem:[#allocation4 + $0x78] sm:$0xff]  ;;  %v25526_v11 = vld [vmem:[#allocation52_spill] sm:$0xff] }
 0x528   : > { %17305 = vmatprep.mubr.msk.f32.mxu1 %vm350_vm14, %v9582_v36  ;;  %v9515_v15 = vsel %vm25525_vm0, %v9479_v38, 0.0  ;;  %v9478_v30 = vmax.f32 %v9442_v23, 0.0  ;;  %v9445_v40 = vadd.f32 %v22500_v3, %v9402_v44  ;;  %v9401_v57 = vadd.f32 %v9302_v42, %v8967_v26  ;;  %17244 = vmatmul.mubr.msk.f32.gmra.mxu0 %vm350_vm14, %v9623_v19  ;;  %v25529_v27 = vld [vmem:[#allocation24_spill] sm:$0xff]  ;;  %v25532_v0 = vld [vmem:[#allocation131_spill] sm:$0xff]  ;;  %v22736_v26 = vpop.f32.mrf.mxu0  ;;  %v25537_v44 = vld [vmem:[#allocation61_spill] sm:$0xff] }
 0x529   : > { %17306 = vmatmul.mubr.msk.f32.gmra.mxu1 %vm350_vm14, %v9583_v10  ;;  %v7239_v35 = vadd.f32 %v25527_v17, %v25526_v11  ;;  %v8537_v51 = vadd.f32 %v25528_v61, %v8103_v8  ;;  %9551 = vst.msk [vmem:[#allocation4 + $0xab] sm:$0xff] %vm350_vm14, %v9515_v15  ;;  %v17195_v39 = vpop.f32.mrf.mxu1  ;;  %vm25530_vm15 = vnez %v25529_v27  ;;  %v25531_v14 = vld [vmem:[#allocation68_spill] sm:$0xff]  ;;  %v25538_v62 = vld [vmem:[#allocation54_spill] sm:$0xff]  ;;  %v25544_v61 = vld [vmem:[#allocation27_spill] sm:$0xff] }
 0x52a   : > { %v9514_v5 = vsel %vm25530_vm15, %v9478_v30, 0.0  ;;  %v9481_v22 = vmax.f32 %v9445_v40, 0.0  ;;  %v9444_v34 = vadd.f32 %v22500_v3, %v9401_v57  ;;  %v9404_v9 = vadd.f32 %v17195_v39, %v8970_v37  ;;  %v9624_v52 = vld [vmem:[#allocation4 + $0x81] sm:$0xff]  ;;  %v9625_v7 = vld [vmem:[#allocation4 + $0x89] sm:$0xff]  ;;  %v25539_v32 = vld [vmem:[#allocation26_spill] sm:$0xff] }
 0x52b   : > { %v9584_v59 = vld [vmem:[#allocation4 + $0x80] sm:$0xff]  ;;  %v8105_v18 = vadd.f32 %v25531_v14, %v7671_v2  ;;  %v7673_v41 = vadd.f32 %v25532_v0, %v7239_v35  ;;  %v25533_v53 = vld [vmem:[#allocation128_spill] sm:$0xff]  ;;  %9550 = vst.msk [vmem:[#allocation4 + $0xa3] sm:$0xff] %vm350_vm14, %v9514_v5  ;;  %v9312_v46 = vpop.f32.mrf.mxu1  ;;  %17246 = vmatprep.mubr.msk.f32.mxu0 %vm350_vm14, %v9624_v52  ;;  %v7241_v36 = vadd.f32 %v25538_v62, %v25537_v44  ;;  %v25541_v30 = vld [vmem:[#allocation70_spill] sm:$0xff] }
 0x52c   : > { %v8972_v60 = vadd.f32 %v22598_v48, %v25533_v53  ;;  %17308 = vmatprep.mubr.msk.f32.mxu1 %vm350_vm14, %v9584_v59  ;;  %v9585_v21 = vld [vmem:[#allocation4 + $0x88] sm:$0xff]  ;;  %v9517_v63 = vsel %vm19202_vm1, %v9481_v22, 0.0  ;;  %v9480_v24 = vmax.f32 %v9444_v34, 0.0  ;;  %v9447_v4 = vadd.f32 %v22500_v3, %v9404_v9  ;;  %17247 = vmatmul.mubr.msk.f32.gmra.mxu0 %vm350_vm14, %v9625_v7  ;;  %v25535_v48 = vld [vmem:[#allocation86_spill] sm:$0xff]  ;;  %v25547_v22 = vld [vmem:[#allocation107_spill] sm:$0xff] }
 0x52d   : > { %v9403_v31 = vadd.f32 %v9312_v46, %v8969_v49  ;;  %17309 = vmatmul.mubr.msk.f32.gmra.mxu1 %vm350_vm14, %v9585_v21  ;;  %v25536_v38 = vld [vmem:[#allocation44_spill] sm:$0xff]  ;;  %v8971_v19 = vadd.f32 %v22626_v56, %v8537_v51  ;;  %v8539_v54 = vadd.f32 %v22447_v6, %v8105_v18  ;;  %9553 = vst.msk [vmem:[#allocation4 + $0xbb] sm:$0xff] %vm350_vm14, %v9517_v63  ;;  %v17198_v8 = vpop.f32.mrf.mxu1  ;;  %v25543_v56 = vld [vmem:[#allocation105_spill] sm:$0xff]  ;;  %v8918_v49 = vpop.f32.mrf.mxu0  ;;  %v25551_v63 = vld [vmem:[#allocation87_spill] sm:$0xff] }
 0x52e   : > { %v6371_v23 = vadd.f32 %v25536_v38, %v25535_v48  ;;  %vm25540_vm1 = vnez %v25539_v32  ;;  %v9483_v13 = vmax.f32 %v9447_v4, 0.0  ;;  %v9406_v42 = vadd.f32 %v17198_v8, %v8972_v60  ;;  %v9626_v10 = vld [vmem:[#allocation4 + $0x91] sm:$0xff]  ;;  %v9627_v15 = vld [vmem:[#allocation4 + $0x99] sm:$0xff]  ;;  %v25542_v57 = vld [vmem:[#allocation72_spill] sm:$0xff] }
 0x52f   : > { %v9516_v2 = vsel %vm25540_vm1, %v9480_v24, 0.0  ;;  %v9446_v37 = vadd.f32 %v22500_v3, %v9403_v31  ;;  %v9586_v50 = vld [vmem:[#allocation4 + $0x90] sm:$0xff]  ;;  %v8107_v40 = vadd.f32 %v25541_v30, %v7673_v41  ;;  %v7675_v11 = vadd.f32 %v25542_v57, %v7241_v36  ;;  %v9322_v17 = vpop.f32.mrf.mxu1  ;;  %17249 = vmatprep.mubr.msk.f32.mxu0 %vm350_vm14, %v9626_v10  ;;  %v9587_v35 = vld [vmem:[#allocation4 + $0x98] sm:$0xff]  ;;  %v25549_v18 = vld [vmem:[#allocation28_spill] sm:$0xff]  ;;  %v17140_v38 = vpop.f32.mrf.mxu0 }
 0x530   : > { %v8974_v6 = vadd.f32 %v22648_v25, %v25543_v56  ;;  %9552 = vst.msk [vmem:[#allocation4 + $0xb3] sm:$0xff] %vm350_vm14, %v9516_v2  ;;  %17311 = vmatprep.mubr.msk.f32.mxu1 %vm350_vm14, %v9586_v50  ;;  %vm25545_vm11 = vnez %v25544_v61  ;;  %v9449_v27 = vadd.f32 %v22500_v3, %v9406_v42  ;;  %v9405_v5 = vadd.f32 %v9322_v17, %v8971_v19  ;;  %v25546_v25 = vld [vmem:[#allocation56_spill] sm:$0xff]  ;;  %v25548_v9 = vld [vmem:[#allocation81_spill] sm:$0xff]  ;;  %v25556_v2 = vld [vmem:[#allocation30_spill] sm:$0xff] }
 0x531   : > { %v9519_v51 = vsel %vm25545_vm11, %v9483_v13, 0.0  ;;  %v9482_v39 = vmax.f32 %v9446_v37, 0.0  ;;  %17250 = vmatmul.mubr.msk.f32.gmra.mxu0 %vm350_vm14, %v9627_v15  ;;  %17312 = vmatmul.mubr.msk.f32.gmra.mxu1 %vm350_vm14, %v9587_v35  ;;  %v7243_v34 = vadd.f32 %v25547_v22, %v25546_v25  ;;  %v6811_v52 = vadd.f32 %v25548_v9, %v6371_v23  ;;  %v17201_v14 = vpop.f32.mrf.mxu1  ;;  %v25552_v4 = vld [vmem:[#allocation132_spill] sm:$0xff]  ;;  %v25553_v23 = vld [vmem:[#allocation29_spill] sm:$0xff]  ;;  %v8928_v35 = vpop.f32.mrf.mxu0  ;;  %v25561_v61 = vld [vmem:[#allocation31_spill] sm:$0xff] }
 0x532   : > { %v8973_v59 = vadd.f32 %v22670_v33, %v8539_v54  ;;  %v8541_v7 = vadd.f32 %v22457_v47, %v8107_v40  ;;  %9555 = vst.msk [vmem:[#allocation4 + $0xcb] sm:$0xff] %vm350_vm14, %v9519_v51  ;;  %vm25550_vm4 = vnez %v25549_v18  ;;  %v9485_v41 = vmax.f32 %v9449_v27, 0.0  ;;  %v9628_v46 = vld [vmem:[#allocation4 + $0xa1] sm:$0xff]  ;;  %v9629_v28 = vld [vmem:[#allocation4 + $0xa9] sm:$0xff]  ;;  %v25558_v40 = vld [vmem:[#allocation6_spill] sm:$0xff] }
 0x533   : > { %v9518_v0 = vsel %vm25550_vm4, %v9482_v39, 0.0  ;;  %v9448_v53 = vadd.f32 %v22500_v3, %v9405_v5  ;;  %v9408_v60 = vadd.f32 %v17201_v14, %v8974_v6  ;;  %v9588_v21 = vld [vmem:[#allocation4 + $0xa0] sm:$0xff]  ;;  %v8109_v24 = vadd.f32 %v25551_v63, %v7675_v11  ;;  %v9332_v33 = vpop.f32.mrf.mxu1  ;;  %17252 = vmatprep.mubr.msk.f32.mxu0 %vm350_vm14, %v9628_v46  ;;  %v9589_v48 = vld [vmem:[#allocation4 + $0xa8] sm:$0xff]  ;;  %v25559_v11 = vld [vmem:[#allocation73_spill] sm:$0xff] }
 0x534   : > { %v7677_v31 = vadd.f32 %v25552_v4, %v7243_v34  ;;  %v8976_v47 = vadd.f32 %v22692_v16, %v22455_v1  ;;  %9554 = vst.msk [vmem:[#allocation4 + $0xc3] sm:$0xff] %vm350_vm14, %v9518_v0  ;;  %17314 = vmatprep.mubr.msk.f32.mxu1 %vm350_vm14, %v9588_v21  ;;  %vm25554_vm13 = vnez %v25553_v23  ;;  %v9407_v19 = vadd.f32 %v9332_v33, %v8973_v59  ;;  %v25555_v1 = vld [vmem:[#allocation63_spill] sm:$0xff]  ;;  %v17143_v34 = vpop.f32.mrf.mxu0  ;;  %v25563_v9 = vld [vmem:[#allocation32_spill] sm:$0xff]  ;;  %v25566_v21 = vld [vmem:[#allocation33_spill] sm:$0xff] }
 0x535   : > { %v9521_v44 = vsel %vm25554_vm13, %v9485_v41, 0.0  ;;  %v9484_v62 = vmax.f32 %v9448_v53, 0.0  ;;  %v9451_v36 = vadd.f32 %v22500_v3, %v9408_v60  ;;  %17253 = vmatmul.mubr.msk.f32.gmra.mxu0 %vm350_vm14, %v9629_v28  ;;  %17315 = vmatmul.mubr.msk.f32.gmra.mxu1 %vm350_vm14, %v9589_v48  ;;  %v7245_v16 = vadd.f32 %v25555_v1, %v6811_v52  ;;  %v17204_v32 = vpop.f32.mrf.mxu1  ;;  %v25565_v53 = vld [vmem:[#allocation125_spill] sm:$0xff]  ;;  %v25568_v48 = vld [vmem:[#allocation34_spill] sm:$0xff] }
 0x536   : > { %v8975_v54 = vadd.f32 %v22714_v29, %v8541_v7  ;;  %v8543_v8 = vadd.f32 %v22465_v55, %v8109_v24  ;;  %9557 = vst.msk [vmem:[#allocation4 + $0xdb] sm:$0xff] %vm350_vm14, %v9521_v44  ;;  %vm25557_vm12 = vnez %v25556_v2  ;;  %v9450_v42 = vadd.f32 %v22500_v3, %v9407_v19  ;;  %v25560_v29 = vld [vmem:[#allocation115_spill] sm:$0xff]  ;;  %v8938_v33 = vpop.f32.mrf.mxu0 }
 0x537   : > { %v9520_v13 = vsel %vm25557_vm12, %v9484_v62, 0.0  ;;  %v9487_v37 = vmax.f32 %v9451_v36, 0.0  ;;  %v9410_v10 = vadd.f32 %v17204_v32, %v8976_v47  ;;  %v9630_v50 = vld [vmem:[#allocation4 + $0xb1] sm:$0xff]  ;;  %v9631_v30 = vld [vmem:[#allocation4 + $0xb9] sm:$0xff]  ;;  %v8111_v57 = vadd.f32 %v25558_v40, %v7677_v31  ;;  %v9342_v6 = vpop.f32.mrf.mxu1 }
 0x538   : > { %v9590_v15 = vld [vmem:[#allocation4 + $0xb0] sm:$0xff]  ;;  %v7679_v56 = vadd.f32 %v25559_v11, %v7245_v16  ;;  %v8978_v55 = vadd.f32 %v22736_v26, %v25560_v29  ;;  %9556 = vst.msk [vmem:[#allocation4 + $0xd3] sm:$0xff] %vm350_vm14, %v9520_v13  ;;  %17255 = vmatprep.mubr.msk.f32.mxu0 %vm350_vm14, %v9630_v50  ;;  %v9591_v17 = vld [vmem:[#allocation4 + $0xb8] sm:$0xff]  ;;  %vm25562_vm9 = vnez %v25561_v61  ;;  %v9486_v39 = vmax.f32 %v9450_v42, 0.0 }
 0x539   : > { %17317 = vmatprep.mubr.msk.f32.mxu1 %vm350_vm14, %v9590_v15  ;;  %v9523_v51 = vsel %vm25562_vm9, %v9487_v37, 0.0  ;;  %v9453_v27 = vadd.f32 %v22500_v3, %v9410_v10  ;;  %v9409_v5 = vadd.f32 %v9342_v6, %v8975_v54  ;;  %17256 = vmatmul.mubr.msk.f32.gmra.mxu0 %vm350_vm14, %v9631_v30  ;;  %v8977_v26 = vadd.f32 %v8918_v49, %v8543_v8  ;;  %v17207_v22 = vpop.f32.mrf.mxu1  ;;  %v25570_v8 = vld [vmem:[#allocation35_spill] sm:$0xff]  ;;  %v25572_v10 = vld [vmem:[#allocation36_spill] sm:$0xff]  ;;  %v25574_v6 = vld [vmem:[#allocation37_spill] sm:$0xff] }
 0x53a   : > { %17318 = vmatmul.mubr.msk.f32.gmra.mxu1 %vm350_vm14, %v9591_v17  ;;  %v8545_v25 = vadd.f32 %v22475_v58, %v8111_v57  ;;  %9559 = vst.msk [vmem:[#allocation4 + $0xeb] sm:$0xff] %vm350_vm14, %v9523_v51  ;;  %vm25564_vm7 = vnez %v25563_v9  ;;  %v9412_v14 = vadd.f32 %v17207_v22, %v8978_v55  ;;  %v8113_v60 = vadd.f32 %v25565_v53, %v7679_v56 }
 0x53b   : > { %v9522_v52 = vsel %vm25564_vm7, %v9486_v39, 0.0  ;;  %v9489_v59 = vmax.f32 %v9453_v27, 0.0  ;;  %v9452_v7 = vadd.f32 %v22500_v3, %v9409_v5  ;;  %v9632_v18 = vld [vmem:[#allocation4 + $0xc1] sm:$0xff]  ;;  %v9633_v41 = vld [vmem:[#allocation4 + $0xc9] sm:$0xff]  ;;  %v8980_v49 = vadd.f32 %v17140_v38, %v22473_v12  ;;  %v9352_v58 = vpop.f32.mrf.mxu1  ;;  %v25576_v39 = vld [vmem:[#allocation38_spill] sm:$0xff] }
 0x53c   : > { %v9592_v0 = vld [vmem:[#allocation4 + $0xc0] sm:$0xff]  ;;  %9558 = vst.msk [vmem:[#allocation4 + $0xe3] sm:$0xff] %vm350_vm14, %v9522_v52  ;;  %17258 = vmatprep.mubr.msk.f32.mxu0 %vm350_vm14, %v9632_v18  ;;  %v9593_v46 = vld [vmem:[#allocation4 + $0xc8] sm:$0xff]  ;;  %vm25567_vm6 = vnez %v25566_v21  ;;  %v9455_v24 = vadd.f32 %v22500_v3, %v9412_v14  ;;  %v9411_v4 = vadd.f32 %v9352_v58, %v8977_v26  ;;  %v8979_v12 = vadd.f32 %v8928_v35, %v8545_v25 }
 0x53d   : > { %17320 = vmatprep.mubr.msk.f32.mxu1 %vm350_vm14, %v9592_v0  ;;  %v9525_v28 = vsel %vm25567_vm6, %v9489_v59, 0.0  ;;  %v9488_v63 = vmax.f32 %v9452_v7, 0.0  ;;  %17259 = vmatmul.mubr.msk.f32.gmra.mxu0 %vm350_vm14, %v9633_v41  ;;  %v8547_v31 = vadd.f32 %v22488_v43, %v8113_v60  ;;  %v17210_v47 = vpop.f32.mrf.mxu1  ;;  %vm25569_vm5 = vnez %v25568_v48  ;;  %v25578_v52 = vld [vmem:[#allocation39_spill] sm:$0xff]  ;;  %v14521_v48 = vld [vmem:[%s23964_s7 + $0xb0] sm:$0xff] }
 0x53e   : > { %17321 = vmatmul.mubr.msk.f32.gmra.mxu1 %vm350_vm14, %v9593_v46  ;;  %9561 = vst.msk [vmem:[#allocation4 + $0xfb] sm:$0xff] %vm350_vm14, %v9525_v28  ;;  %v9491_v23 = vmax.f32 %v9455_v24, 0.0  ;;  %v9454_v44 = vadd.f32 %v22500_v3, %v9411_v4  ;;  %v9414_v62 = vadd.f32 %v17210_v47, %v8980_v49  ;;  %v8982_v16 = vadd.f32 %v17143_v34, %v22485_v45  ;;  %v10355_v60 = vld [vmem:[#allocation4 + $0x2] sm:$0xff]  ;;  %v10785_v28 = vld [vmem:[#allocation4 + $0x12] sm:$0xff]  ;;  %v10786_v24 = vld [vmem:[#allocation4 + $0x1a] sm:$0xff] }
 0x53f   : > { %v9524_v38 = vsel %vm25569_vm5, %v9488_v63, 0.0  ;;  %v9634_v36 = vld [vmem:[#allocation4 + $0xd1] sm:$0xff]  ;;  %v9635_v1 = vld [vmem:[#allocation4 + $0xd9] sm:$0xff]  ;;  %v9362_v54 = vpop.f32.mrf.mxu1  ;;  %vm25571_vm2 = vnez %v25570_v8  ;;  %v8981_v45 = vadd.f32 %v8938_v33, %v8547_v31  ;;  %vm25573_vm10 = vnez %v25572_v10  ;;  %v10787_v31 = vld [vmem:[#allocation4 + $0x22] sm:$0xff] }
 0x540   : > { %v9594_v19 = vld [vmem:[#allocation4 + $0xd0] sm:$0xff]  ;;  %9560 = vst.msk [vmem:[#allocation4 + $0xf3] sm:$0xff] %vm350_vm14, %v9524_v38  ;;  %17261 = vmatprep.mubr.msk.f32.mxu0 %vm350_vm14, %v9634_v36  ;;  %v9595_v43 = vld [vmem:[#allocation4 + $0xd8] sm:$0xff]  ;;  %v9527_v32 = vsel %vm25571_vm2, %v9491_v23, 0.0  ;;  %v9490_v2 = vmax.f32 %v9454_v44, 0.0  ;;  %v9457_v13 = vadd.f32 %v22500_v3, %v9414_v62  ;;  %v9413_v37 = vadd.f32 %v9362_v54, %v8979_v12  ;;  %v14480_v33 = vld [vmem:[%s23964_s7 + $0x88] sm:$0xff] }
 0x541   : > { %17323 = vmatprep.mubr.msk.f32.mxu1 %vm350_vm14, %v9594_v19  ;;  %17262 = vmatmul.mubr.msk.f32.gmra.mxu0 %vm350_vm14, %v9635_v1  ;;  %9563 = vst.msk [vmem:[#allocation4 + $0x10b] sm:$0xff] %vm350_vm14, %v9527_v32  ;;  %v17213_v42 = vpop.f32.mrf.mxu1  ;;  %vm25575_vm3 = vnez %v25574_v6  ;;  %vm25577_vm8 = vnez %v25576_v39  ;;  %vm25579_vm0 = vnez %v25578_v52  ;;  %v10356_v63 = vld [vmem:[#allocation4 + $0xa] sm:$0xff]  ;;  %v17856_v12 = vld [vmem:[%s23964_s7 + $0x98] sm:$0xff]  ;;  %v10791_v1 = vld [vmem:[#allocation4 + $0x42] sm:$0xff] }
 0x542   : > { %17324 = vmatmul.mubr.msk.f32.gmra.mxu1 %vm350_vm14, %v9595_v43  ;;  %v9526_v50 = vsel %vm25573_vm10, %v9490_v2, 0.0  ;;  %v9493_v15 = vmax.f32 %v9457_v13, 0.0  ;;  %v9456_v30 = vadd.f32 %v22500_v3, %v9413_v37  ;;  %v9416_v40 = vadd.f32 %v17213_v42, %v8982_v16  ;;  %v14481_v4 = vld [vmem:[%s23964_s7 + $0x90] sm:$0xff]  ;;  %v10790_v62 = vld [vmem:[#allocation4 + $0x3a] sm:$0xff]  ;;  %v14520_v36 = vld [vmem:[%s23964_s7 + $0xa8] sm:$0xff] }
 0x543   : > { %v9636_v57 = vld [vmem:[#allocation4 + $0xe1] sm:$0xff]  ;;  %v9637_v56 = vld [vmem:[#allocation4 + $0xe9] sm:$0xff]  ;;  %9562 = vst.msk [vmem:[#allocation4 + $0x103] sm:$0xff] %vm350_vm14, %v9526_v50  ;;  %v9372_v29 = vpop.f32.mrf.mxu1  ;;  %v10789_v38 = vld [vmem:[#allocation4 + $0x32] sm:$0xff] }
 0x544   : > { %v9596_v11 = vld [vmem:[#allocation4 + $0xe0] sm:$0xff]  ;;  %17264 = vmatprep.mubr.msk.f32.mxu0 %vm350_vm14, %v9636_v57  ;;  %v9597_v55 = vld [vmem:[#allocation4 + $0xe8] sm:$0xff]  ;;  %v9529_v17 = vsel %vm25575_vm3, %v9493_v15, 0.0  ;;  %v9492_v35 = vmax.f32 %v9456_v30, 0.0  ;;  %v9459_v61 = vadd.f32 %v22500_v3, %v9416_v40  ;;  %v9415_v51 = vadd.f32 %v9372_v29, %v8981_v45  ;;  %v22910_v43 = vld [vmem:[%s23964_s7 + $0xd8] sm:$0xff] }
 0x545   : > { %17326 = vmatprep.mubr.msk.f32.mxu1 %vm350_vm14, %v9596_v11  ;;  %17265 = vmatmul.mubr.msk.f32.gmra.mxu0 %vm350_vm14, %v9637_v56  ;;  %9565 = vst.msk [vmem:[#allocation4 + $0x11b] sm:$0xff] %vm350_vm14, %v9529_v17  ;;  %v10788_v47 = vld [vmem:[#allocation4 + $0x2a] sm:$0xff]  ;;  %v14519_v54 = vld [vmem:[%s23964_s7 + $0xa0] sm:$0xff]  ;;  %v10793_v8 = vld [vmem:[#allocation4 + $0x52] sm:$0xff] }
 0x546   : > { %17327 = vmatmul.mubr.msk.f32.gmra.mxu1 %vm350_vm14, %v9597_v55  ;;  %v9528_v27 = vsel %vm25577_vm8, %v9492_v35, 0.0  ;;  %v9495_v5 = vmax.f32 %v9459_v61, 0.0  ;;  %v9458_v26 = vadd.f32 %v22500_v3, %v9415_v51  ;;  %v25580_v3 = vld [vmem:[#allocation40_spill] sm:$0xff]  ;;  %v10794_v32 = vld [vmem:[#allocation4 + $0x5a] sm:$0xff]  ;;  %v10797_v45 = vld [vmem:[#allocation4 + $0x72] sm:$0xff] }
 0x547   : > { %v9638_v25 = vld [vmem:[#allocation4 + $0xf1] sm:$0xff]  ;;  %v9639_v34 = vld [vmem:[#allocation4 + $0xf9] sm:$0xff]  ;;  %9564 = vst.msk [vmem:[#allocation4 + $0x113] sm:$0xff] %vm350_vm14, %v9528_v27  ;;  %vm25581_vm15 = vnez %v25580_v3  ;;  %v10795_v13 = vld [vmem:[#allocation4 + $0x62] sm:$0xff] }
 0x548   : > { %v9598_v22 = vld [vmem:[#allocation4 + $0xf0] sm:$0xff]  ;;  %17267 = vmatprep.mubr.msk.f32.mxu0 %vm350_vm14, %v9638_v25  ;;  %v9599_v9 = vld [vmem:[#allocation4 + $0xf8] sm:$0xff]  ;;  %v9531_v59 = vsel %vm25579_vm0, %v9495_v5, 0.0  ;;  %v9494_v7 = vmax.f32 %v9458_v26, 0.0  ;;  %v10799_v10 = vld [vmem:[#allocation4 + $0x82] sm:$0xff] }
 0x549   : > { %17329 = vmatprep.mubr.msk.f32.mxu1 %vm350_vm14, %v9598_v22  ;;  %17268 = vmatmul.mubr.msk.f32.gmra.mxu0 %vm350_vm14, %v9639_v34  ;;  %9567 = vst.msk [vmem:[#allocation4 + $0x12b] sm:$0xff] %vm350_vm14, %v9531_v59  ;;  %v10792_v16 = vld [vmem:[#allocation4 + $0x4a] sm:$0xff]  ;;  %v22920_v2 = vld [vmem:[%s23964_s7 + $0xf8] sm:$0xff]  ;;  %v10803_v40 = vld [vmem:[#allocation4 + $0xa2] sm:$0xff] }
 0x54a   : > { %17330 = vmatmul.mubr.msk.f32.gmra.mxu1 %vm350_vm14, %v9599_v9  ;;  %v9530_v14 = vsel %vm25581_vm15, %v9494_v7, 0.0  ;;  %v9640_v18 = vld [vmem:[#allocation4 + $0x101] sm:$0xff]  ;;  %v9641_v41 = vld [vmem:[#allocation4 + $0x109] sm:$0xff]  ;;  %v10801_v15 = vld [vmem:[#allocation4 + $0x92] sm:$0xff] }
 0x54b   : > { %v9600_v0 = vld [vmem:[#allocation4 + $0x100] sm:$0xff]  ;;  %9566 = vst.msk [vmem:[#allocation4 + $0x123] sm:$0xff] %vm350_vm14, %v9530_v14  ;;  %17270 = vmatprep.mubr.msk.f32.mxu0 %vm350_vm14, %v9640_v18  ;;  %v9601_v53 = vld [vmem:[#allocation4 + $0x108] sm:$0xff]  ;;  %v10805_v11 = vld [vmem:[#allocation4 + $0xb2] sm:$0xff] }
 0x54c   : > { %17332 = vmatprep.mubr.msk.f32.mxu1 %vm350_vm14, %v9600_v0  ;;  %v10796_v37 = vld [vmem:[#allocation4 + $0x6a] sm:$0xff]  ;;  %v10798_v42 = vld [vmem:[#allocation4 + $0x7a] sm:$0xff]  ;;  %v10807_v29 = vld [vmem:[#allocation4 + $0xc2] sm:$0xff] }
 0x54d   : > { %17271 = vmatmul.mubr.msk.f32.gmra.mxu0 %vm350_vm14, %v9641_v41  ;;  %v10800_v50 = vld [vmem:[#allocation4 + $0x8a] sm:$0xff]  ;;  %v10802_v30 = vld [vmem:[#allocation4 + $0x9a] sm:$0xff]  ;;  %v10809_v6 = vld [vmem:[#allocation4 + $0xd2] sm:$0xff] }
 0x54e   : > { %17333 = vmatmul.mubr.msk.f32.gmra.mxu1 %vm350_vm14, %v9601_v53  ;;  %v9642_v49 = vld [vmem:[#allocation4 + $0x111] sm:$0xff]  ;;  %v9643_v46 = vld [vmem:[#allocation4 + $0x119] sm:$0xff]  ;;  %v10811_v35 = vld [vmem:[#allocation4 + $0xe2] sm:$0xff] }
 0x54f   : > { %v9602_v58 = vld [vmem:[#allocation4 + $0x110] sm:$0xff]  ;;  %17273 = vmatprep.mubr.msk.f32.mxu0 %vm350_vm14, %v9642_v49  ;;  %v9603_v21 = vld [vmem:[#allocation4 + $0x118] sm:$0xff]  ;;  %v17286_v44 = vpop.f32.mrf.mxu1  ;;  %v10815_v27 = vld [vmem:[#allocation4 + $0x102] sm:$0xff] }
 0x550   : > { %17335 = vmatprep.mubr.msk.f32.mxu1 %vm350_vm14, %v9602_v58  ;;  %v17224_v23 = vpop.f32.mrf.mxu0  ;;  %v10804_v57 = vld [vmem:[#allocation4 + $0xaa] sm:$0xff]  ;;  %v10806_v56 = vld [vmem:[#allocation4 + $0xba] sm:$0xff]  ;;  %v10813_v51 = vld [vmem:[#allocation4 + $0xf2] sm:$0xff] }
 0x551   : > { %17274 = vmatmul.mubr.msk.f32.gmra.mxu0 %vm350_vm14, %v9643_v46  ;;  %v22898_v19 = vadd.f32 %v17286_v44, %v17224_v23  ;;  %v10808_v55 = vld [vmem:[#allocation4 + $0xca] sm:$0xff]  ;;  %v10810_v17 = vld [vmem:[#allocation4 + $0xda] sm:$0xff]  ;;  %v10817_v26 = vld [vmem:[#allocation4 + $0x112] sm:$0xff] }
 0x552   : > { %17336 = vmatmul.mubr.msk.f32.gmra.mxu1 %vm350_vm14, %v9603_v21  ;;  %17346 = vmatprep.mubr.msk.f32.mxu0 %vm350_vm14, %v10355_v60  ;;  %v10812_v61 = vld [vmem:[#allocation4 + $0xea] sm:$0xff]  ;;  %v10814_v39 = vld [vmem:[#allocation4 + $0xfa] sm:$0xff]  ;;  %v10819_v22 = vld [vmem:[#allocation4 + $0x122] sm:$0xff] }
 0x553   : > { %17408 = vmatprep.mubr.msk.f32.mxu1 %vm350_vm14, %v10785_v28  ;;  %v10816_v5 = vld [vmem:[#allocation4 + $0x10a] sm:$0xff]  ;;  %v10818_v25 = vld [vmem:[#allocation4 + $0x11a] sm:$0xff] }
 0x554   : > { %v10820_v34 = vld [vmem:[#allocation4 + $0x12a] sm:$0xff]  ;;  %v11215_v9 = vld [vmem:[#allocation4 + $0x13] sm:$0xff]  ;;  %v11216_v59 = vld [vmem:[#allocation4 + $0x1b] sm:$0xff] }
 0x555   : > { %17347 = vmatmul.mubr.msk.f32.vlgmr.msra.gmra.mxu0 %vm350_vm14, %v10356_v63  ;;  %v11645_v52 = vld [vmem:[#allocation4 + $0x14] sm:$0xff]  ;;  %v11646_v7 = vld [vmem:[#allocation4 + $0x1c] sm:$0xff]  ;;  %v22986_v18 = vld [vmem:[#allocation4 + $0x24] sm:$0xff] }
 0x556   : > { %17409 = vmatmul.mubr.msk.f32.vlgmr.msra.gmra.mxu1 %vm350_vm14, %v10786_v24  ;;  %17463 = vmatpush3.msra.mxu0 %v17856_v12  ;;  %v14561_v3 = vld [vmem:[%s23964_s7 + $0xd0] sm:$0xff]  ;;  %v11217_v14 = vld [vmem:[#allocation4 + $0x23] sm:$0xff]  ;;  %v11220_v46 = vld [vmem:[#allocation4 + $0x3b] sm:$0xff] }
 0x557   : > { %17349 = vmatprep.mubr.msk.f32.mxu0 %vm350_vm14, %v10785_v28  ;;  %17411 = vmatprep.mubr.msk.f32.mxu1 %vm350_vm14, %v10787_v31  ;;  %v11218_v0 = vld [vmem:[#allocation4 + $0x2b] sm:$0xff]  ;;  %v11219_v49 = vld [vmem:[#allocation4 + $0x33] sm:$0xff]  ;;  %v23007_v21 = vld [vmem:[#allocation4 + $0x3c] sm:$0xff] }
 0x558   : > { %17464 = vmatprep.subr.mxu0 %v14481_v4  ;;  %17525 = vmatpush3.msra.mxu1 %v22608_v20  ;;  %v14479_v20 = vld [vmem:[%s23964_s7 + $0x80] sm:$0xff]  ;;  %v22990_v41 = vld [vmem:[#allocation4 + $0x2c] sm:$0xff]  ;;  %v23002_v58 = vld [vmem:[#allocation4 + $0x34] sm:$0xff] }
 0x559   : > { %17465 = vmatpush3.msra.mxu0 %v14481_v4  ;;  %17526 = vmatprep.subr.mxu1 %v14521_v48  ;;  %v14560_v53 = vld [vmem:[%s23964_s7 + $0xc8] sm:$0xff]  ;;  %v14601_v60 = vld [vmem:[%s23964_s7 + $0xf0] sm:$0xff]  ;;  %v14559_v28 = vld [vmem:[%s23964_s7 + $0xc0] sm:$0xff] }
 0x55a   : > { %17350 = vmatmul.mubr.msk.f32.gmra.mxu0 %vm350_vm14, %v10786_v24  ;;  %17412 = vmatmul.mubr.msk.f32.gmra.mxu1 %vm350_vm14, %v10788_v47  ;;  %v14600_v63 = vld [vmem:[%s23964_s7 + $0xe8] sm:$0xff]  ;;  %v11224_v23 = vld [vmem:[#allocation4 + $0x5b] sm:$0xff] }
 0x55b   : > { %17352 = vmatprep.mubr.msk.f32.mxu0 %vm350_vm14, %v10787_v31  ;;  %17414 = vmatprep.mubr.msk.f32.mxu1 %vm350_vm14, %v10789_v38  ;;  %v11221_v24 = vld [vmem:[#allocation4 + $0x43] sm:$0xff]  ;;  %v11222_v12 = vld [vmem:[#allocation4 + $0x4b] sm:$0xff] }
 0x55c   : > { %17466 = vmatprep.subr.mxu0 %v14480_v33  ;;  %17527 = vmatpush3.msra.mxu1 %v14521_v48  ;;  %v23018_v4 = vld [vmem:[#allocation4 + $0x44] sm:$0xff]  ;;  %v23023_v31 = vld [vmem:[#allocation4 + $0x4c] sm:$0xff]  ;;  %v23042_v44 = vld [vmem:[#allocation4 + $0x5c] sm:$0xff] }
 0x55d   : > { %17467 = vmatpush3.msra.mxu0 %v14480_v33  ;;  %17528 = vmatprep.subr.mxu1 %v14520_v36  ;;  %v23031_v33 = vld [vmem:[%s23964_s7 + $0x118] sm:$0xff] }
 0x55e   : > { %17353 = vmatmul.mubr.msk.f32.gmra.mxu0 %vm350_vm14, %v10788_v47  ;;  %17415 = vmatmul.mubr.msk.f32.gmra.mxu1 %vm350_vm14, %v10790_v62  ;;  %v14599_v47 = vld [vmem:[%s23964_s7 + $0xe0] sm:$0xff]  ;;  %v11223_v48 = vld [vmem:[#allocation4 + $0x53] sm:$0xff] }
 0x55f   : > { %17355 = vmatprep.mubr.msk.f32.mxu0 %vm350_vm14, %v10789_v38  ;;  %17417 = vmatprep.mubr.msk.f32.mxu1 %vm350_vm14, %v10791_v1  ;;  %v23036_v38 = vld [vmem:[#allocation4 + $0x54] sm:$0xff] }
 0x560   : > { %17468 = vmatprep.subr.mxu0 %v14479_v20  ;;  %17529 = vmatpush3.msra.mxu1 %v14520_v36  ;;  %v11226_v36 = vld [vmem:[#allocation4 + $0x6b] sm:$0xff] }
 0x561   : > { %17469 = vmatpush3.msra.mxu0 %v14479_v20  ;;  %17530 = vmatprep.subr.mxu1 %v14519_v54  ;;  %v23047_v20 = vld [vmem:[#allocation4 + $0x64] sm:$0xff] }
 0x562   : > { %17356 = vmatmul.mubr.msk.f32.gmra.mxu0 %vm350_vm14, %v10790_v62  ;;  %17418 = vmatmul.mubr.msk.f32.gmra.mxu1 %vm350_vm14, %v10792_v16  ;;  %v11225_v62 = vld [vmem:[#allocation4 + $0x63] sm:$0xff] }
 0x563   : > { %17358 = vmatprep.mubr.msk.f32.mxu0 %vm350_vm14, %v10791_v1  ;;  %17420 = vmatprep.mubr.msk.f32.mxu1 %vm350_vm14, %v10793_v8  ;;  %v23052_v1 = vld [vmem:[#allocation4 + $0x6c] sm:$0xff] }
 0x564   : > { %17586 = vmatprep.subr.mxu0 %v22910_v43  ;;  %17531 = vmatpush3.msra.mxu1 %v14519_v54  ;;  %v23057_v54 = vld [vmem:[#allocation4 + $0x74] sm:$0xff] }
 0x565   : > { %17648 = vmatprep.subr.mxu1 %v22920_v2 }
 0x566   : > { %17359 = vmatmul.mubr.msk.f32.gmra.mxu0 %vm350_vm14, %v10792_v16  ;;  %17421 = vmatmul.mubr.msk.f32.gmra.mxu1 %vm350_vm14, %v10794_v32  ;;  %v11227_v16 = vld [vmem:[#allocation4 + $0x73] sm:$0xff] }
 0x567   : > { %17361 = vmatprep.mubr.msk.f32.mxu0 %vm350_vm14, %v10793_v8  ;;  %17423 = vmatprep.mubr.msk.f32.mxu1 %vm350_vm14, %v10795_v13  ;;  %v23062_v8 = vld [vmem:[#allocation4 + $0x7c] sm:$0xff] }
 0x56a   : > { %17362 = vmatmul.mubr.msk.f32.gmra.mxu0 %vm350_vm14, %v10794_v32  ;;  %17424 = vmatmul.mubr.msk.f32.gmra.mxu1 %vm350_vm14, %v10796_v37  ;;  %v11229_v32 = vld [vmem:[#allocation4 + $0x83] sm:$0xff] }
 0x56b   : > { %17364 = vmatprep.mubr.msk.f32.mxu0 %vm350_vm14, %v10795_v13  ;;  %17426 = vmatprep.mubr.msk.f32.mxu1 %vm350_vm14, %v10797_v45  ;;  %v11230_v13 = vld [vmem:[#allocation4 + $0x8b] sm:$0xff] }
 0x56e   : > { %17365 = vmatmul.mubr.msk.f32.gmra.mxu0 %vm350_vm14, %v10796_v37  ;;  %17427 = vmatmul.mubr.msk.f32.gmra.mxu1 %vm350_vm14, %v10798_v42  ;;  %v23072_v37 = vld [vmem:[#allocation4 + $0x8c] sm:$0xff] }
 0x56f   : > { %17367 = vmatprep.mubr.msk.f32.mxu0 %vm350_vm14, %v10797_v45  ;;  %17429 = vmatprep.mubr.msk.f32.mxu1 %vm350_vm14, %v10799_v10  ;;  %v11231_v45 = vld [vmem:[#allocation4 + $0x93] sm:$0xff] }
 0x572   : > { %17368 = vmatmul.mubr.msk.f32.gmra.mxu0 %vm350_vm14, %v10798_v42  ;;  %17430 = vmatmul.mubr.msk.f32.gmra.mxu1 %vm350_vm14, %v10800_v50  ;;  %v23077_v42 = vld [vmem:[#allocation4 + $0x94] sm:$0xff] }
 0x573   : > { %17370 = vmatprep.mubr.msk.f32.mxu0 %vm350_vm14, %v10799_v10  ;;  %17432 = vmatprep.mubr.msk.f32.mxu1 %vm350_vm14, %v10801_v15  ;;  %v11232_v10 = vld [vmem:[#allocation4 + $0x9b] sm:$0xff] }
 0x576   : > { %17371 = vmatmul.mubr.msk.f32.gmra.mxu0 %vm350_vm14, %v10800_v50  ;;  %17433 = vmatmul.mubr.msk.f32.gmra.mxu1 %vm350_vm14, %v10802_v30  ;;  %v23082_v50 = vld [vmem:[#allocation4 + $0x9c] sm:$0xff] }
 0x577   : > { %17373 = vmatprep.mubr.msk.f32.mxu0 %vm350_vm14, %v10801_v15  ;;  %17435 = vmatprep.mubr.msk.f32.mxu1 %vm350_vm14, %v10803_v40  ;;  %v11233_v15 = vld [vmem:[#allocation4 + $0xa3] sm:$0xff] }
 0x57a   : > { %17374 = vmatmul.mubr.msk.f32.gmra.mxu0 %vm350_vm14, %v10802_v30  ;;  %17436 = vmatmul.mubr.msk.f32.gmra.mxu1 %vm350_vm14, %v10804_v57  ;;  %v23087_v30 = vld [vmem:[#allocation4 + $0xa4] sm:$0xff] }
 0x57b   : > { %17376 = vmatprep.mubr.msk.f32.mxu0 %vm350_vm14, %v10803_v40  ;;  %17438 = vmatprep.mubr.msk.f32.mxu1 %vm350_vm14, %v10805_v11  ;;  %v11234_v40 = vld [vmem:[#allocation4 + $0xab] sm:$0xff] }
 0x57e   : > { %17377 = vmatmul.mubr.msk.f32.gmra.mxu0 %vm350_vm14, %v10804_v57  ;;  %17439 = vmatmul.mubr.msk.f32.gmra.mxu1 %vm350_vm14, %v10806_v56  ;;  %v23092_v57 = vld [vmem:[#allocation4 + $0xac] sm:$0xff] }
 0x57f   : > { %17379 = vmatprep.mubr.msk.f32.mxu0 %vm350_vm14, %v10805_v11  ;;  %17441 = vmatprep.mubr.msk.f32.mxu1 %vm350_vm14, %v10807_v29  ;;  %v11235_v11 = vld [vmem:[#allocation4 + $0xb3] sm:$0xff] }
 0x582   : > { %17380 = vmatmul.mubr.msk.f32.gmra.mxu0 %vm350_vm14, %v10806_v56  ;;  %17442 = vmatmul.mubr.msk.f32.gmra.mxu1 %vm350_vm14, %v10808_v55  ;;  %v23097_v56 = vld [vmem:[#allocation4 + $0xb4] sm:$0xff] }
 0x583   : > { %17382 = vmatprep.mubr.msk.f32.mxu0 %vm350_vm14, %v10807_v29  ;;  %17444 = vmatprep.mubr.msk.f32.mxu1 %vm350_vm14, %v10809_v6  ;;  %v11236_v29 = vld [vmem:[#allocation4 + $0xbb] sm:$0xff] }
 0x586   : > { %17383 = vmatmul.mubr.msk.f32.gmra.mxu0 %vm350_vm14, %v10808_v55  ;;  %17445 = vmatmul.mubr.msk.f32.gmra.mxu1 %vm350_vm14, %v10810_v17  ;;  %v23102_v55 = vld [vmem:[#allocation4 + $0xbc] sm:$0xff] }
 0x587   : > { %17385 = vmatprep.mubr.msk.f32.mxu0 %vm350_vm14, %v10809_v6  ;;  %17447 = vmatprep.mubr.msk.f32.mxu1 %vm350_vm14, %v10811_v35  ;;  %v11237_v6 = vld [vmem:[#allocation4 + $0xc3] sm:$0xff] }
 0x58a   : > { %17386 = vmatmul.mubr.msk.f32.gmra.mxu0 %vm350_vm14, %v10810_v17  ;;  %17448 = vmatmul.mubr.msk.f32.gmra.mxu1 %vm350_vm14, %v10812_v61  ;;  %v23107_v17 = vld [vmem:[#allocation4 + $0xc4] sm:$0xff] }
 0x58b   : > { %17388 = vmatprep.mubr.msk.f32.mxu0 %vm350_vm14, %v10811_v35  ;;  %17450 = vmatprep.mubr.msk.f32.mxu1 %vm350_vm14, %v10813_v51  ;;  %v11238_v35 = vld [vmem:[#allocation4 + $0xcb] sm:$0xff] }
 0x58e   : > { %17389 = vmatmul.mubr.msk.f32.gmra.mxu0 %vm350_vm14, %v10812_v61  ;;  %17451 = vmatmul.mubr.msk.f32.gmra.mxu1 %vm350_vm14, %v10814_v39  ;;  %v23112_v61 = vld [vmem:[#allocation4 + $0xcc] sm:$0xff] }
 0x58f   : > { %17391 = vmatprep.mubr.msk.f32.mxu0 %vm350_vm14, %v10813_v51  ;;  %17453 = vmatprep.mubr.msk.f32.mxu1 %vm350_vm14, %v10815_v27  ;;  %v11239_v51 = vld [vmem:[#allocation4 + $0xd3] sm:$0xff] }
 0x592   : > { %17392 = vmatmul.mubr.msk.f32.gmra.mxu0 %vm350_vm14, %v10814_v39  ;;  %17454 = vmatmul.mubr.msk.f32.gmra.mxu1 %vm350_vm14, %v10816_v5  ;;  %v23117_v39 = vld [vmem:[#allocation4 + $0xd4] sm:$0xff] }
 0x593   : > { %17394 = vmatprep.mubr.msk.f32.mxu0 %vm350_vm14, %v10815_v27  ;;  %17456 = vmatprep.mubr.msk.f32.mxu1 %vm350_vm14, %v10817_v26  ;;  %v11240_v27 = vld [vmem:[#allocation4 + $0xdb] sm:$0xff] }
 0x596   : > { %17395 = vmatmul.mubr.msk.f32.gmra.mxu0 %vm350_vm14, %v10816_v5  ;;  %17457 = vmatmul.mubr.msk.f32.gmra.mxu1 %vm350_vm14, %v10818_v25  ;;  %v23122_v5 = vld [vmem:[#allocation4 + $0xdc] sm:$0xff] }
 0x597   : > { %17397 = vmatprep.mubr.msk.f32.mxu0 %vm350_vm14, %v10817_v26  ;;  %17459 = vmatprep.mubr.msk.f32.mxu1 %vm350_vm14, %v10819_v22  ;;  %v11241_v26 = vld [vmem:[#allocation4 + $0xe3] sm:$0xff]  ;;  %v23132_v22 = vpop.f32.mrf.mxu0 }
 0x59a   : > { %17398 = vmatmul.mubr.msk.f32.gmra.mxu0 %vm350_vm14, %v10818_v25  ;;  %17460 = vmatmul.mubr.msk.f32.gmra.mxu1 %vm350_vm14, %v10820_v34  ;;  %v23127_v25 = vld [vmem:[#allocation4 + $0xe4] sm:$0xff]  ;;  %v23134_v34 = vpop.f32.mrf.mxu1 }
 0x59b   : > { %17470 = vmatprep.mubr.msk.f32.mxu0 %vm350_vm14, %v11215_v9  ;;  %17532 = vmatprep.mubr.msk.f32.mxu1 %vm350_vm14, %v11645_v52  ;;  %v11242_v9 = vld [vmem:[#allocation4 + $0xeb] sm:$0xff] }
 0x59c   : > { %v23136_v52 = vld [vmem:[#allocation4 + $0xec] sm:$0xff] }
 0x59e   : > { %17471 = vmatmul.mubr.msk.f32.vlgmr.msra.gmra.mxu0 %vm350_vm14, %v11216_v59  ;;  %17533 = vmatmul.mubr.msk.f32.vlgmr.msra.gmra.mxu1 %vm350_vm14, %v11646_v7 }
 0x59f   : > { %17587 = vmatpush3.msra.mxu0 %v22910_v43  ;;  %17473 = vmatprep.mubr.msk.f32.mxu0 %vm350_vm14, %v11217_v14  ;;  %v11228_v43 = vld [vmem:[#allocation4 + $0x7b] sm:$0xff] }
 0x5a0   : > { %17535 = vmatprep.mubr.msk.f32.mxu1 %vm350_vm14, %v22986_v18  ;;  %17588 = vmatprep.subr.mxu0 %v14561_v3  ;;  %v23141_v14 = vld [vmem:[#allocation4 + $0xf4] sm:$0xff] }
 0x5a1   : > { %17589 = vmatpush3.msra.mxu0 %v14561_v3  ;;  %17649 = vmatpush3.msra.mxu1 %v22920_v2  ;;  %v23067_v2 = vld [vmem:[#allocation4 + $0x84] sm:$0xff]  ;;  %v11243_v3 = vld [vmem:[#allocation4 + $0xf3] sm:$0xff] }
 0x5a2   : > { %17474 = vmatmul.mubr.msk.f32.gmra.mxu0 %vm350_vm14, %v11218_v0  ;;  %17536 = vmatmul.mubr.msk.f32.gmra.mxu1 %vm350_vm14, %v22990_v41 }
 0x5a3   : > { %17476 = vmatprep.mubr.msk.f32.mxu0 %vm350_vm14, %v11219_v49  ;;  %17538 = vmatprep.mubr.msk.f32.mxu1 %vm350_vm14, %v23002_v58 }
 0x5a4   : > { %17590 = vmatprep.subr.mxu0 %v14560_v53  ;;  %17650 = vmatprep.subr.mxu1 %v14601_v60 }
 0x5a5   : > { %17591 = vmatpush3.msra.mxu0 %v14560_v53  ;;  %17651 = vmatpush3.msra.mxu1 %v14601_v60 }
 0x5a6   : > { %17477 = vmatmul.mubr.msk.f32.gmra.mxu0 %vm350_vm14, %v11220_v46  ;;  %17539 = vmatmul.mubr.msk.f32.gmra.mxu1 %vm350_vm14, %v23007_v21  ;;  %v11244_v46 = vld [vmem:[#allocation4 + $0xfb] sm:$0xff] }
 0x5a7   : > { %17479 = vmatprep.mubr.msk.f32.mxu0 %vm350_vm14, %v11221_v24  ;;  %17541 = vmatprep.mubr.msk.f32.mxu1 %vm350_vm14, %v23018_v4 }
 0x5a8   : > { %17592 = vmatprep.subr.mxu0 %v14559_v28  ;;  %17652 = vmatprep.subr.mxu1 %v14600_v63 }
 0x5a9   : > { %17593 = vmatpush3.msra.mxu0 %v14559_v28  ;;  %17653 = vmatpush3.msra.mxu1 %v14600_v63  ;;  %v23150_v28 = vld [vmem:[#allocation4 + $0xfc] sm:$0xff] }
 0x5aa   : > { %17480 = vmatmul.mubr.msk.f32.gmra.mxu0 %vm350_vm14, %v11222_v12  ;;  %17542 = vmatmul.mubr.msk.f32.gmra.mxu1 %vm350_vm14, %v23023_v31  ;;  %v11245_v12 = vld [vmem:[#allocation4 + $0x103] sm:$0xff] }
 0x5ab   : > { %17482 = vmatprep.mubr.msk.f32.mxu0 %vm350_vm14, %v11223_v48  ;;  %17544 = vmatprep.mubr.msk.f32.mxu1 %vm350_vm14, %v23036_v38 }
 0x5ac   : > { %17654 = vmatprep.subr.mxu1 %v14599_v47  ;;  %17710 = vmatprep.subr.mxu0 %v23031_v33 }
 0x5ad   : > { %17655 = vmatpush3.msra.mxu1 %v14599_v47  ;;  %v23155_v47 = vld [vmem:[#allocation4 + $0x104] sm:$0xff] }
 0x5ae   : > { %17483 = vmatmul.mubr.msk.f32.gmra.mxu0 %vm350_vm14, %v11224_v23  ;;  %17545 = vmatmul.mubr.msk.f32.gmra.mxu1 %vm350_vm14, %v23042_v44 }
 0x5af   : > { %17485 = vmatprep.mubr.msk.f32.mxu0 %vm350_vm14, %v11225_v62  ;;  %17547 = vmatprep.mubr.msk.f32.mxu1 %vm350_vm14, %v23047_v20 }
 0x5b2   : > { %17486 = vmatmul.mubr.msk.f32.gmra.mxu0 %vm350_vm14, %v11226_v36  ;;  %17548 = vmatmul.mubr.msk.f32.gmra.mxu1 %vm350_vm14, %v23052_v1 }
 0x5b3   : > { %17488 = vmatprep.mubr.msk.f32.mxu0 %vm350_vm14, %v11227_v16  ;;  %17550 = vmatprep.mubr.msk.f32.mxu1 %vm350_vm14, %v23057_v54  ;;  %v11246_v16 = vld [vmem:[#allocation4 + $0x10b] sm:$0xff] }
 0x5b6   : > { %17489 = vmatmul.mubr.msk.f32.gmra.mxu0 %vm350_vm14, %v11228_v43  ;;  %17551 = vmatmul.mubr.msk.f32.gmra.mxu1 %vm350_vm14, %v23062_v8  ;;  %v23164_v43 = vld [vmem:[#allocation4 + $0x10c] sm:$0xff] }
 0x5b7   : > { %17491 = vmatprep.mubr.msk.f32.mxu0 %vm350_vm14, %v11229_v32  ;;  %17553 = vmatprep.mubr.msk.f32.mxu1 %vm350_vm14, %v23067_v2 }
 0x5ba   : > { %17492 = vmatmul.mubr.msk.f32.gmra.mxu0 %vm350_vm14, %v11230_v13  ;;  %17554 = vmatmul.mubr.msk.f32.gmra.mxu1 %vm350_vm14, %v23072_v37 }
 0x5bb   : > { %17494 = vmatprep.mubr.msk.f32.mxu0 %vm350_vm14, %v11231_v45  ;;  %17556 = vmatprep.mubr.msk.f32.mxu1 %vm350_vm14, %v23077_v42  ;;  %v11247_v45 = vld [vmem:[#allocation4 + $0x113] sm:$0xff] }
 0x5be   : > { %17495 = vmatmul.mubr.msk.f32.gmra.mxu0 %vm350_vm14, %v11232_v10  ;;  %17557 = vmatmul.mubr.msk.f32.gmra.mxu1 %vm350_vm14, %v23082_v50  ;;  %v23169_v10 = vld [vmem:[#allocation4 + $0x114] sm:$0xff] }
 0x5bf   : > { %17497 = vmatprep.mubr.msk.f32.mxu0 %vm350_vm14, %v11233_v15  ;;  %17559 = vmatprep.mubr.msk.f32.mxu1 %vm350_vm14, %v23087_v30 }
 0x5c2   : > { %17498 = vmatmul.mubr.msk.f32.gmra.mxu0 %vm350_vm14, %v11234_v40  ;;  %17560 = vmatmul.mubr.msk.f32.gmra.mxu1 %vm350_vm14, %v23092_v57 }
 0x5c3   : > { %17500 = vmatprep.mubr.msk.f32.mxu0 %vm350_vm14, %v11235_v11  ;;  %17562 = vmatprep.mubr.msk.f32.mxu1 %vm350_vm14, %v23097_v56 }
 0x5c6   : > { %17501 = vmatmul.mubr.msk.f32.gmra.mxu0 %vm350_vm14, %v11236_v29  ;;  %17563 = vmatmul.mubr.msk.f32.gmra.mxu1 %vm350_vm14, %v23102_v55 }
 0x5c7   : > { %17503 = vmatprep.mubr.msk.f32.mxu0 %vm350_vm14, %v11237_v6  ;;  %17565 = vmatprep.mubr.msk.f32.mxu1 %vm350_vm14, %v23107_v17  ;;  %v11248_v6 = vld [vmem:[#allocation4 + $0x11b] sm:$0xff] }
 0x5ca   : > { %17504 = vmatmul.mubr.msk.f32.gmra.mxu0 %vm350_vm14, %v11238_v35  ;;  %17566 = vmatmul.mubr.msk.f32.gmra.mxu1 %vm350_vm14, %v23112_v61  ;;  %v23178_v35 = vld [vmem:[#allocation4 + $0x11c] sm:$0xff] }
 0x5cb   : > { %17506 = vmatprep.mubr.msk.f32.mxu0 %vm350_vm14, %v11239_v51  ;;  %17568 = vmatprep.mubr.msk.f32.mxu1 %vm350_vm14, %v23117_v39 }
 0x5ce   : > { %17507 = vmatmul.mubr.msk.f32.gmra.mxu0 %vm350_vm14, %v11240_v27  ;;  %17569 = vmatmul.mubr.msk.f32.gmra.mxu1 %vm350_vm14, %v23122_v5 }
 0x5cf   : > { %17509 = vmatprep.mubr.msk.f32.mxu0 %vm350_vm14, %v11241_v26  ;;  %17571 = vmatprep.mubr.msk.f32.mxu1 %vm350_vm14, %v23127_v25  ;;  %v11249_v26 = vld [vmem:[#allocation4 + $0x123] sm:$0xff] }
 0x5d0   : > { %v17227_v59 = vpop.f32.mrf.mxu0 }
 0x5d1   : > { %v17289_v7 = vpop.f32.mrf.mxu1 }
 0x5d2   : > { %17510 = vmatmul.mubr.msk.f32.gmra.mxu0 %vm350_vm14, %v11242_v9  ;;  %17572 = vmatmul.mubr.msk.f32.gmra.mxu1 %vm350_vm14, %v23136_v52  ;;  %v23143_v0 = vadd.f32 %v17289_v7, %v17227_v59  ;;  %v9833_v53 = vpop.f32.mrf.mxu0  ;;  %v23183_v9 = vld [vmem:[#allocation4 + $0x124] sm:$0xff] }
 0x5d3   : > { %17512 = vmatprep.mubr.msk.f32.mxu0 %vm350_vm14, %v11243_v3  ;;  %17574 = vmatprep.mubr.msk.f32.mxu1 %vm350_vm14, %v23141_v14  ;;  %v10186_v60 = vpop.f32.mrf.mxu1 }
 0x5d4   : > { %v23148_v49 = vadd.f32 %v10186_v60, %v9833_v53  ;;  %v17230_v63 = vpop.f32.mrf.mxu0  ;;  %v11250_v60 = vld [vmem:[#allocation4 + $0x12b] sm:$0xff] }
 0x5d5   : > { %v17292_v24 = vpop.f32.mrf.mxu1 }
 0x5d6   : > { %17513 = vmatmul.mubr.msk.f32.gmra.mxu0 %vm350_vm14, %v11244_v46  ;;  %17575 = vmatmul.mubr.msk.f32.gmra.mxu1 %vm350_vm14, %v23150_v28  ;;  %v23157_v48 = vadd.f32 %v17292_v24, %v17230_v63  ;;  %v9843_v23 = vpop.f32.mrf.mxu0  ;;  %v23192_v46 = vld [vmem:[#allocation4 + $0x12c] sm:$0xff] }
 0x5d7   : > { %17515 = vmatprep.mubr.msk.f32.mxu0 %vm350_vm14, %v11245_v12  ;;  %17577 = vmatprep.mubr.msk.f32.mxu1 %vm350_vm14, %v23155_v47  ;;  %v10196_v62 = vpop.f32.mrf.mxu1  ;;  %v12505_v12 = vld [vmem:[#allocation4 + $0x25] sm:$0xff] }
 0x5d8   : > { %v23162_v36 = vadd.f32 %v10196_v62, %v9843_v23  ;;  %v17233_v32 = vpop.f32.mrf.mxu0 }
 0x5d9   : > { %v17295_v13 = vpop.f32.mrf.mxu1 }
 0x5da   : > { %17516 = vmatmul.mubr.msk.f32.gmra.mxu0 %vm350_vm14, %v11246_v16  ;;  %17578 = vmatmul.mubr.msk.f32.gmra.mxu1 %vm350_vm14, %v23164_v43  ;;  %v23171_v15 = vadd.f32 %v17295_v13, %v17233_v32  ;;  %v9853_v40 = vpop.f32.mrf.mxu0  ;;  %v12506_v13 = vld [vmem:[#allocation4 + $0x2d] sm:$0xff] }
 0x5db   : > { %17518 = vmatprep.mubr.msk.f32.mxu0 %vm350_vm14, %v11247_v45  ;;  %17580 = vmatprep.mubr.msk.f32.mxu1 %vm350_vm14, %v23169_v10  ;;  %v10206_v11 = vpop.f32.mrf.mxu1  ;;  %v14641_v45 = vld [vmem:[%s23964_s7 + $0x110] sm:$0xff] }
 0x5dc   : > { %v23176_v29 = vadd.f32 %v10206_v11, %v9853_v40  ;;  %v17236_v51 = vpop.f32.mrf.mxu0 }
 0x5dd   : > { %v17298_v27 = vpop.f32.mrf.mxu1 }
 0x5de   : > { %17519 = vmatmul.mubr.msk.f32.gmra.mxu0 %vm350_vm14, %v11248_v6  ;;  %17581 = vmatmul.mubr.msk.f32.gmra.mxu1 %vm350_vm14, %v23178_v35  ;;  %v23185_v59 = vadd.f32 %v17298_v27, %v17236_v51  ;;  %v9863_v7 = vpop.f32.mrf.mxu0 }
 0x5df   : > { %17521 = vmatprep.mubr.msk.f32.mxu0 %vm350_vm14, %v11249_v26  ;;  %17583 = vmatprep.mubr.msk.f32.mxu1 %vm350_vm14, %v23183_v9  ;;  %v10216_v3 = vpop.f32.mrf.mxu1 }
 0x5e0   : > { %v23190_v53 = vadd.f32 %v10216_v3, %v9863_v7  ;;  %v17239_v63 = vpop.f32.mrf.mxu0  ;;  %v12508_v7 = vld [vmem:[#allocation4 + $0x3d] sm:$0xff] }
 0x5e1   : > { %v17301_v24 = vpop.f32.mrf.mxu1 }
 0x5e2   : > { %17522 = vmatmul.mubr.msk.f32.gmra.mxu0 %vm350_vm14, %v11250_v60  ;;  %17584 = vmatmul.mubr.msk.f32.gmra.mxu1 %vm350_vm14, %v23192_v46  ;;  %v23197_v23 = vadd.f32 %v17301_v24, %v17239_v63  ;;  %v9873_v62 = vpop.f32.mrf.mxu0 }
 0x5e3   : > { %17594 = vmatprep.mubr.msk.f32.mxu0 %vm350_vm14, %v22986_v18  ;;  %17656 = vmatprep.mubr.msk.f32.mxu1 %vm350_vm14, %v12505_v12  ;;  %v10226_v16 = vpop.f32.mrf.mxu1  ;;  %v12507_v18 = vld [vmem:[#allocation4 + $0x35] sm:$0xff] }
 0x5e4   : > { %v23202_v32 = vadd.f32 %v10226_v16, %v9873_v62  ;;  %v17242_v40 = vpop.f32.mrf.mxu0  ;;  %v12510_v62 = vld [vmem:[#allocation4 + $0x4d] sm:$0xff] }
 0x5e5   : > { %v17304_v11 = vpop.f32.mrf.mxu1 }
 0x5e6   : > { %17595 = vmatmul.mubr.msk.f32.vlgmr.msra.gmra.mxu0 %vm350_vm14, %v22990_v41  ;;  %17657 = vmatmul.mubr.msk.f32.vlgmr.msra.gmra.mxu1 %vm350_vm14, %v12506_v13  ;;  %v23210_v6 = vadd.f32 %v17304_v11, %v17242_v40  ;;  %v9883_v51 = vpop.f32.mrf.mxu0  ;;  %v14640_v41 = vld [vmem:[%s23964_s7 + $0x108] sm:$0xff] }
 0x5e7   : > { %17711 = vmatpush3.msra.mxu0 %v23031_v33  ;;  %17597 = vmatprep.mubr.msk.f32.mxu0 %vm350_vm14, %v23002_v58  ;;  %v10236_v27 = vpop.f32.mrf.mxu1  ;;  %v12509_v58 = vld [vmem:[#allocation4 + $0x45] sm:$0xff] }
 0x5e8   : > { %17659 = vmatprep.mubr.msk.f32.mxu1 %vm350_vm14, %v12507_v18  ;;  %17712 = vmatprep.subr.mxu0 %v14641_v45  ;;  %v23216_v26 = vadd.f32 %v10236_v27, %v9883_v51  ;;  %v17245_v3 = vpop.f32.mrf.mxu0  ;;  %v12512_v51 = vld [vmem:[#allocation4 + $0x5d] sm:$0xff] }
 0x5e9   : > { %17713 = vmatpush3.msra.mxu0 %v14641_v45  ;;  %v17307_v60 = vpop.f32.mrf.mxu1 }
 0x5ea   : > { %17598 = vmatmul.mubr.msk.f32.gmra.mxu0 %vm350_vm14, %v23007_v21  ;;  %17660 = vmatmul.mubr.msk.f32.gmra.mxu1 %vm350_vm14, %v12508_v7  ;;  %v23224_v33 = vadd.f32 %v17307_v60, %v17245_v3  ;;  %v9893_v63 = vpop.f32.mrf.mxu0  ;;  %v14639_v21 = vld [vmem:[%s23964_s7 + $0x100] sm:$0xff] }
 0x5eb   : > { %17600 = vmatprep.mubr.msk.f32.mxu0 %vm350_vm14, %v23018_v4  ;;  %17662 = vmatprep.mubr.msk.f32.mxu1 %vm350_vm14, %v12509_v58  ;;  %v10246_v24 = vpop.f32.mrf.mxu1  ;;  %v12511_v4 = vld [vmem:[#allocation4 + $0x55] sm:$0xff]  ;;  %v12514_v58 = vld [vmem:[#allocation4 + $0x6d] sm:$0xff] }
 0x5ec   : > { %17714 = vmatprep.subr.mxu0 %v14640_v41  ;;  %v23229_v12 = vadd.f32 %v10246_v24, %v9893_v63  ;;  %v17248_v16 = vpop.f32.mrf.mxu0 }
 0x5ed   : > { %17715 = vmatpush3.msra.mxu0 %v14640_v41  ;;  %v17310_v13 = vpop.f32.mrf.mxu1 }
 0x5ee   : > { %17601 = vmatmul.mubr.msk.f32.gmra.mxu0 %vm350_vm14, %v23023_v31  ;;  %17663 = vmatmul.mubr.msk.f32.gmra.mxu1 %vm350_vm14, %v12510_v62  ;;  %v23237_v45 = vadd.f32 %v17310_v13, %v17248_v16  ;;  %v9903_v40 = vpop.f32.mrf.mxu0  ;;  %v12513_v31 = vld [vmem:[#allocation4 + $0x65] sm:$0xff]  ;;  %v12516_v13 = vld [vmem:[#allocation4 + $0x7d] sm:$0xff] }
 0x5ef   : > { %17603 = vmatprep.mubr.msk.f32.mxu0 %vm350_vm14, %v23036_v38  ;;  %17665 = vmatprep.mubr.msk.f32.mxu1 %vm350_vm14, %v12511_v4  ;;  %v10256_v11 = vpop.f32.mrf.mxu1 }
 0x5f0   : > { %17716 = vmatprep.subr.mxu0 %v14639_v21  ;;  %v23242_v18 = vadd.f32 %v10256_v11, %v9903_v40 }
 0x5f1   : > { %17717 = vmatpush3.msra.mxu0 %v14639_v21  ;;  %v17251_v27 = vpop.f32.mrf.mxu0  ;;  %v17313_v7 = vpop.f32.mrf.mxu1 }
 0x5f2   : > { %17604 = vmatmul.mubr.msk.f32.gmra.mxu0 %vm350_vm14, %v23042_v44  ;;  %17666 = vmatmul.mubr.msk.f32.gmra.mxu1 %vm350_vm14, %v12512_v51  ;;  %v23247_v41 = vadd.f32 %v17313_v7, %v17251_v27  ;;  %v12515_v44 = vld [vmem:[#allocation4 + $0x75] sm:$0xff]  ;;  %v12518_v7 = vld [vmem:[#allocation4 + $0x8d] sm:$0xff] }
 0x5f3   : > { %17606 = vmatprep.mubr.msk.f32.mxu0 %vm350_vm14, %v23047_v20  ;;  %17668 = vmatprep.mubr.msk.f32.mxu1 %vm350_vm14, %v12513_v31  ;;  %v9913_v38 = vpop.f32.mrf.mxu0  ;;  %v10266_v3 = vpop.f32.mrf.mxu1 }
 0x5f4   : > { %v23252_v60 = vadd.f32 %v10266_v3, %v9913_v38 }
 0x5f5   : > { %v17254_v63 = vpop.f32.mrf.mxu0  ;;  %v17316_v24 = vpop.f32.mrf.mxu1 }
 0x5f6   : > { %17607 = vmatmul.mubr.msk.f32.gmra.mxu0 %vm350_vm14, %v23052_v1  ;;  %17669 = vmatmul.mubr.msk.f32.gmra.mxu1 %vm350_vm14, %v12514_v58  ;;  %v23257_v62 = vadd.f32 %v17316_v24, %v17254_v63  ;;  %v12517_v1 = vld [vmem:[#allocation4 + $0x85] sm:$0xff]  ;;  %v12520_v24 = vld [vmem:[#allocation4 + $0x9d] sm:$0xff] }
 0x5f7   : > { %17609 = vmatprep.mubr.msk.f32.mxu0 %vm350_vm14, %v23057_v54  ;;  %17671 = vmatprep.mubr.msk.f32.mxu1 %vm350_vm14, %v12515_v44  ;;  %v9923_v20 = vpop.f32.mrf.mxu0  ;;  %v10276_v21 = vpop.f32.mrf.mxu1 }
 0x5f8   : > { %v23262_v16 = vadd.f32 %v10276_v21, %v9923_v20 }
 0x5f9   : > { %v17257_v4 = vpop.f32.mrf.mxu0 }
 0x5fa   : > { %v17319_v40 = vpop.f32.mrf.mxu1  ;;  %17610 = vmatmul.mubr.msk.f32.gmra.mxu0 %vm350_vm14, %v23062_v8  ;;  %17672 = vmatmul.mubr.msk.f32.gmra.mxu1 %vm350_vm14, %v12516_v13  ;;  %v12519_v8 = vld [vmem:[#allocation4 + $0x95] sm:$0xff] }
 0x5fb   : > { %v23267_v11 = vadd.f32 %v17319_v40, %v17257_v4  ;;  %17612 = vmatprep.mubr.msk.f32.mxu0 %vm350_vm14, %v23067_v2  ;;  %17674 = vmatprep.mubr.msk.f32.mxu1 %vm350_vm14, %v12517_v1  ;;  %v9933_v54 = vpop.f32.mrf.mxu0  ;;  %v12522_v40 = vld [vmem:[#allocation4 + $0xad] sm:$0xff] }
 0x5fc   : > { %v10286_v51 = vpop.f32.mrf.mxu1 }
 0x5fd   : > { %v23272_v27 = vadd.f32 %v10286_v51, %v9933_v54  ;;  %v17260_v31 = vpop.f32.mrf.mxu0 }
 0x5fe   : > { %v17322_v38 = vpop.f32.mrf.mxu1  ;;  %17613 = vmatmul.mubr.msk.f32.gmra.mxu0 %vm350_vm14, %v23072_v37  ;;  %17675 = vmatmul.mubr.msk.f32.gmra.mxu1 %vm350_vm14, %v12518_v7  ;;  %v12521_v37 = vld [vmem:[#allocation4 + $0xa5] sm:$0xff] }
 0x5ff   : > { %v23277_v3 = vadd.f32 %v17322_v38, %v17260_v31  ;;  %17615 = vmatprep.mubr.msk.f32.mxu0 %vm350_vm14, %v23077_v42  ;;  %17677 = vmatprep.mubr.msk.f32.mxu1 %vm350_vm14, %v12519_v8  ;;  %v9943_v2 = vpop.f32.mrf.mxu0  ;;  %v12524_v38 = vld [vmem:[#allocation4 + $0xbd] sm:$0xff] }
 0x600   : > { %v10296_v58 = vpop.f32.mrf.mxu1 }
 0x601   : > { %v23282_v63 = vadd.f32 %v10296_v58, %v9943_v2  ;;  %v17263_v44 = vpop.f32.mrf.mxu0 }
 0x602   : > { %v17325_v20 = vpop.f32.mrf.mxu1  ;;  %17616 = vmatmul.mubr.msk.f32.gmra.mxu0 %vm350_vm14, %v23082_v50  ;;  %17678 = vmatmul.mubr.msk.f32.gmra.mxu1 %vm350_vm14, %v12520_v24  ;;  %v12523_v50 = vld [vmem:[#allocation4 + $0xb5] sm:$0xff] }
 0x603   : > { %v23287_v21 = vadd.f32 %v17325_v20, %v17263_v44  ;;  %17618 = vmatprep.mubr.msk.f32.mxu0 %vm350_vm14, %v23087_v30  ;;  %17680 = vmatprep.mubr.msk.f32.mxu1 %vm350_vm14, %v12521_v37  ;;  %v9953_v42 = vpop.f32.mrf.mxu0  ;;  %v12526_v20 = vld [vmem:[#allocation4 + $0xcd] sm:$0xff] }
 0x604   : > { %v10306_v13 = vpop.f32.mrf.mxu1 }
 0x605   : > { %v23292_v4 = vadd.f32 %v10306_v13, %v9953_v42  ;;  %v17266_v1 = vpop.f32.mrf.mxu0 }
 0x606   : > { %v17328_v54 = vpop.f32.mrf.mxu1  ;;  %17619 = vmatmul.mubr.msk.f32.gmra.mxu0 %vm350_vm14, %v23092_v57  ;;  %17681 = vmatmul.mubr.msk.f32.gmra.mxu1 %vm350_vm14, %v12522_v40  ;;  %v12525_v57 = vld [vmem:[#allocation4 + $0xc5] sm:$0xff] }
 0x607   : > { %v23297_v51 = vadd.f32 %v17328_v54, %v17266_v1  ;;  %17621 = vmatprep.mubr.msk.f32.mxu0 %vm350_vm14, %v23097_v56  ;;  %17683 = vmatprep.mubr.msk.f32.mxu1 %vm350_vm14, %v12523_v50  ;;  %v9963_v30 = vpop.f32.mrf.mxu0  ;;  %v12528_v54 = vld [vmem:[#allocation4 + $0xdd] sm:$0xff] }
 0x608   : > { %v10316_v7 = vpop.f32.mrf.mxu1 }
 0x609   : > { %v23302_v31 = vadd.f32 %v10316_v7, %v9963_v30  ;;  %v17269_v8 = vpop.f32.mrf.mxu0 }
 0x60a   : > { %v17331_v2 = vpop.f32.mrf.mxu1  ;;  %17622 = vmatmul.mubr.msk.f32.gmra.mxu0 %vm350_vm14, %v23102_v55  ;;  %17684 = vmatmul.mubr.msk.f32.gmra.mxu1 %vm350_vm14, %v12524_v38  ;;  %v12527_v55 = vld [vmem:[#allocation4 + $0xd5] sm:$0xff] }
 0x60b   : > { %v23307_v58 = vadd.f32 %v17331_v2, %v17269_v8  ;;  %17624 = vmatprep.mubr.msk.f32.mxu0 %vm350_vm14, %v23107_v17  ;;  %17686 = vmatprep.mubr.msk.f32.mxu1 %vm350_vm14, %v12525_v57  ;;  %v9973_v56 = vpop.f32.mrf.mxu0  ;;  %v12530_v2 = vld [vmem:[#allocation4 + $0xed] sm:$0xff] }
 0x60c   : > { %v10326_v24 = vpop.f32.mrf.mxu1 }
 0x60d   : > { %v23312_v44 = vadd.f32 %v10326_v24, %v9973_v56  ;;  %v17272_v37 = vpop.f32.mrf.mxu0  ;;  %v10177_v24 = vadd.f32 %v23134_v34, %v23132_v22  ;;  %v12533_v22 = vld [vmem:[#allocation4 + $0x105] sm:$0xff] }
 0x60e   : > { %v17334_v42 = vpop.f32.mrf.mxu1  ;;  %17625 = vmatmul.mubr.msk.f32.gmra.mxu0 %vm350_vm14, %v23112_v61  ;;  %17687 = vmatmul.mubr.msk.f32.gmra.mxu1 %vm350_vm14, %v12526_v20  ;;  %v12529_v61 = vld [vmem:[#allocation4 + $0xe5] sm:$0xff] }
 0x60f   : > { %v23317_v13 = vadd.f32 %v17334_v42, %v17272_v37  ;;  %17627 = vmatprep.mubr.msk.f32.mxu0 %vm350_vm14, %v23117_v39  ;;  %17689 = vmatprep.mubr.msk.f32.mxu1 %vm350_vm14, %v12527_v55  ;;  %v9983_v17 = vpop.f32.mrf.mxu0 }
 0x610   : > { %v10336_v40 = vpop.f32.mrf.mxu1 }
 0x611   : > { %v23322_v1 = vadd.f32 %v10336_v40, %v9983_v17  ;;  %v17275_v50 = vpop.f32.mrf.mxu0  ;;  %v12532_v17 = vld [vmem:[#allocation4 + $0xfd] sm:$0xff] }
 0x612   : > { %v17337_v30 = vpop.f32.mrf.mxu1  ;;  %17628 = vmatmul.mubr.msk.f32.gmra.mxu0 %vm350_vm14, %v23122_v5  ;;  %17690 = vmatmul.mubr.msk.f32.gmra.mxu1 %vm350_vm14, %v12528_v54  ;;  %v12531_v5 = vld [vmem:[#allocation4 + $0xf5] sm:$0xff] }
 0x613   : > { %v23327_v7 = vadd.f32 %v17337_v30, %v17275_v50  ;;  %17630 = vmatprep.mubr.msk.f32.mxu0 %vm350_vm14, %v23127_v25  ;;  %17692 = vmatprep.mubr.msk.f32.mxu1 %vm350_vm14, %v12529_v61  ;;  %v9993_v39 = vpop.f32.mrf.mxu0  ;;  %v12534_v61 = vld [vmem:[#allocation4 + $0x10d] sm:$0xff] }
 0x614   : > { %v10346_v38 = vpop.f32.mrf.mxu1 }
 0x615   : > { %v23332_v8 = vadd.f32 %v10346_v38, %v9993_v39  ;;  %v17348_v57 = vpop.f32.mrf.mxu0 }
 0x616   : > { %v17410_v56 = vpop.f32.mrf.mxu1  ;;  %17631 = vmatmul.mubr.msk.f32.gmra.mxu0 %vm350_vm14, %v23136_v52  ;;  %17693 = vmatmul.mubr.msk.f32.gmra.mxu1 %vm350_vm14, %v12530_v2  ;;  %v10750_v25 = vadd.f32 %v17348_v57, %v22898_v19 }
 0x617   : > { %17633 = vmatprep.mubr.msk.f32.mxu0 %vm350_vm14, %v23141_v14  ;;  %17695 = vmatprep.mubr.msk.f32.mxu1 %vm350_vm14, %v12531_v5  ;;  %v10570_v20 = vpop.f32.mrf.mxu0  ;;  %v12536_v5 = vld [vmem:[#allocation4 + $0x11d] sm:$0xff] }
 0x618   : > { %v11000_v37 = vpop.f32.mrf.mxu1  ;;  %v23343_v42 = vadd.f32 %v17410_v56, %v10750_v25  ;;  %v10749_v55 = vadd.f32 %v10570_v20, %v10177_v24 }
 0x61a   : > { %v17351_v52 = vpop.f32.mrf.mxu0  ;;  %v17413_v40 = vpop.f32.mrf.mxu1  ;;  %17634 = vmatmul.mubr.msk.f32.gmra.mxu0 %vm350_vm14, %v23150_v28  ;;  %17696 = vmatmul.mubr.msk.f32.gmra.mxu1 %vm350_vm14, %v12532_v17  ;;  %v23348_v19 = vadd.f32 %v11000_v37, %v10749_v55  ;;  %v12109_v37 = vld [vmem:[#allocation4 + $0x134] sm:$0xff] }
 0x61b   : > { %v10752_v34 = vadd.f32 %v17351_v52, %v23143_v0  ;;  %17636 = vmatprep.mubr.msk.f32.mxu0 %vm350_vm14, %v23155_v47  ;;  %17698 = vmatprep.mubr.msk.f32.mxu1 %vm350_vm14, %v12533_v22  ;;  %v12535_v0 = vld [vmem:[#allocation4 + $0x115] sm:$0xff]  ;;  %v12538_v52 = vld [vmem:[#allocation4 + $0x12d] sm:$0xff] }
 0x61c   : > { %v10580_v14 = vpop.f32.mrf.mxu0  ;;  %v11010_v54 = vpop.f32.mrf.mxu1  ;;  %v12539_v55 = vld [vmem:[#allocation4 + $0x135] sm:$0xff] }
 0x61d   : > { %v23354_v50 = vadd.f32 %v17413_v40, %v10752_v34  ;;  %v10751_v30 = vadd.f32 %v10580_v14, %v23148_v49  ;;  %v12110_v34 = vld [vmem:[#allocation4 + $0x13c] sm:$0xff] }
 0x61e   : > { %v17354_v28 = vpop.f32.mrf.mxu0  ;;  %v17416_v39 = vpop.f32.mrf.mxu1  ;;  %17637 = vmatmul.mubr.msk.f32.gmra.mxu0 %vm350_vm14, %v23164_v43  ;;  %17699 = vmatmul.mubr.msk.f32.gmra.mxu1 %vm350_vm14, %v12534_v61  ;;  %v12540_v14 = vld [vmem:[#allocation4 + $0x13d] sm:$0xff] }
 0x61f   : > { %v23360_v38 = vadd.f32 %v11010_v54, %v10751_v30  ;;  %v10754_v47 = vadd.f32 %v17354_v28, %v23157_v48  ;;  %17639 = vmatprep.mubr.msk.f32.mxu0 %vm350_vm14, %v23169_v10  ;;  %17701 = vmatprep.mubr.msk.f32.mxu1 %vm350_vm14, %v12535_v0  ;;  %v12537_v48 = vld [vmem:[#allocation4 + $0x125] sm:$0xff] }
 0x620   : > { %v10590_v2 = vpop.f32.mrf.mxu0  ;;  %v11020_v49 = vpop.f32.mrf.mxu1 }
 0x621   : > { %v23366_v57 = vadd.f32 %v17416_v39, %v10754_v47  ;;  %v10753_v56 = vadd.f32 %v10590_v2, %v23162_v36  ;;  %v12935_v39 = vld [vmem:[#allocation4 + $0x26] sm:$0xff] }
 0x622   : > { %v17357_v43 = vpop.f32.mrf.mxu0  ;;  %v17419_v24 = vpop.f32.mrf.mxu1  ;;  %17640 = vmatmul.mubr.msk.f32.gmra.mxu0 %vm350_vm14, %v23178_v35  ;;  %17702 = vmatmul.mubr.msk.f32.gmra.mxu1 %vm350_vm14, %v12536_v5 }
 0x623   : > { %v23372_v25 = vadd.f32 %v11020_v49, %v10753_v56  ;;  %v10756_v10 = vadd.f32 %v17357_v43, %v23171_v15  ;;  %17642 = vmatprep.mubr.msk.f32.mxu0 %vm350_vm14, %v23183_v9  ;;  %17704 = vmatprep.mubr.msk.f32.mxu1 %vm350_vm14, %v12537_v48 }
 0x624   : > { %v10600_v20 = vpop.f32.mrf.mxu0  ;;  %v11030_v36 = vpop.f32.mrf.mxu1 }
 0x625   : > { %v23378_v17 = vadd.f32 %v17419_v24, %v10756_v10  ;;  %v10755_v35 = vadd.f32 %v10600_v20, %v23176_v29  ;;  %v12937_v24 = vld [vmem:[#allocation4 + $0x36] sm:$0xff] }
 0x626   : > { %v17360_v40 = vpop.f32.mrf.mxu0  ;;  %v17422_v22 = vpop.f32.mrf.mxu1  ;;  %17643 = vmatmul.mubr.msk.f32.gmra.mxu0 %vm350_vm14, %v23192_v46  ;;  %17705 = vmatmul.mubr.msk.f32.gmra.mxu1 %vm350_vm14, %v12538_v52  ;;  %v12939_v52 = vld [vmem:[#allocation4 + $0x46] sm:$0xff] }
 0x627   : > { %v23384_v15 = vadd.f32 %v11030_v36, %v10755_v35  ;;  %v10758_v9 = vadd.f32 %v17360_v40, %v23185_v59  ;;  %17645 = vmatprep.mubr.msk.f32.mxu0 %vm350_vm14, %v12109_v37  ;;  %17707 = vmatprep.mubr.msk.f32.mxu1 %vm350_vm14, %v12539_v55  ;;  %v12938_v55 = vld [vmem:[#allocation4 + $0x3e] sm:$0xff] }
 0x628   : > { %v10610_v54 = vpop.f32.mrf.mxu0  ;;  %v11040_v29 = vpop.f32.mrf.mxu1 }
 0x629   : > { %v23389_v30 = vadd.f32 %v17422_v22, %v10758_v9  ;;  %v10757_v61 = vadd.f32 %v10610_v54, %v23190_v53  ;;  %v12936_v53 = vld [vmem:[#allocation4 + $0x2e] sm:$0xff] }
 0x62a   : > { %v17363_v28 = vpop.f32.mrf.mxu0  ;;  %v17425_v46 = vpop.f32.mrf.mxu1  ;;  %17646 = vmatmul.mubr.msk.f32.gmra.mxu0 %vm350_vm14, %v12110_v34  ;;  %17708 = vmatmul.mubr.msk.f32.gmra.mxu1 %vm350_vm14, %v12540_v14  ;;  %v12940_v54 = vld [vmem:[#allocation4 + $0x4e] sm:$0xff] }
 0x62b   : > { %v23394_v59 = vadd.f32 %v11040_v29, %v10757_v61  ;;  %v10760_v0 = vadd.f32 %v17363_v28, %v23197_v23  ;;  %17718 = vmatprep.mubr.msk.f32.mxu0 %vm350_vm14, %v12935_v39  ;;  %v12941_v61 = vld [vmem:[#allocation4 + $0x56] sm:$0xff] }
 0x62c   : > { %v10620_v47 = vpop.f32.mrf.mxu0  ;;  %v11050_v2 = vpop.f32.mrf.mxu1 }
 0x62d   : > { %v23398_v49 = vadd.f32 %v17425_v46, %v10760_v0  ;;  %v10759_v56 = vadd.f32 %v10620_v47, %v23202_v32 }
 0x62e   : > { %v17366_v5 = vpop.f32.mrf.mxu0  ;;  %v17428_v43 = vpop.f32.mrf.mxu1  ;;  %17719 = vmatmul.mubr.msk.f32.vlgmr.msra.gmra.mxu0 %vm350_vm14, %v12936_v53  ;;  %v12943_v53 = vld [vmem:[#allocation4 + $0x66] sm:$0xff] }
 0x62f   : > { %v23402_v48 = vadd.f32 %v11050_v2, %v10759_v56  ;;  %v10762_v10 = vadd.f32 %v17366_v5, %v23210_v6  ;;  %17721 = vmatprep.mubr.msk.f32.mxu0 %vm350_vm14, %v12937_v24  ;;  %v12942_v2 = vld [vmem:[#allocation4 + $0x5e] sm:$0xff] }
 0x630   : > { %v10630_v23 = vpop.f32.mrf.mxu0  ;;  %v11060_v20 = vpop.f32.mrf.mxu1 }
 0x631   : > { %v23406_v36 = vadd.f32 %v17428_v43, %v10762_v10  ;;  %v10761_v37 = vadd.f32 %v10630_v23, %v23216_v26 }
 0x632   : > { %v17369_v32 = vpop.f32.mrf.mxu0  ;;  %v17431_v35 = vpop.f32.mrf.mxu1  ;;  %17722 = vmatmul.mubr.msk.f32.gmra.mxu0 %vm350_vm14, %v12938_v55  ;;  %v12945_v55 = vld [vmem:[#allocation4 + $0x76] sm:$0xff] }
 0x633   : > { %v23410_v40 = vadd.f32 %v11060_v20, %v10761_v37  ;;  %v10764_v22 = vadd.f32 %v17369_v32, %v23224_v33  ;;  %17724 = vmatprep.mubr.msk.f32.mxu0 %vm350_vm14, %v12939_v52  ;;  %v12944_v20 = vld [vmem:[#allocation4 + $0x6e] sm:$0xff] }
 0x634   : > { %v10640_v6 = vpop.f32.mrf.mxu0  ;;  %v11070_v9 = vpop.f32.mrf.mxu1 }
 0x635   : > { %v23414_v34 = vadd.f32 %v17431_v35, %v10764_v22  ;;  %v10763_v14 = vadd.f32 %v10640_v6, %v23229_v12 }
 0x636   : > { %v17372_v26 = vpop.f32.mrf.mxu0  ;;  %v17434_v29 = vpop.f32.mrf.mxu1  ;;  %17725 = vmatmul.mubr.msk.f32.gmra.mxu0 %vm350_vm14, %v12940_v54  ;;  %v12947_v54 = vld [vmem:[#allocation4 + $0x86] sm:$0xff] }
 0x637   : > { %v23418_v28 = vadd.f32 %v11070_v9, %v10763_v14  ;;  %v10766_v46 = vadd.f32 %v17372_v26, %v23237_v45  ;;  %17727 = vmatprep.mubr.msk.f32.mxu0 %vm350_vm14, %v12941_v61  ;;  %v12946_v9 = vld [vmem:[#allocation4 + $0x7e] sm:$0xff] }
 0x638   : > { %v10650_v33 = vpop.f32.mrf.mxu0  ;;  %v11080_v39 = vpop.f32.mrf.mxu1 }
 0x639   : > { %v23422_v0 = vadd.f32 %v17434_v29, %v10766_v46  ;;  %v10765_v47 = vadd.f32 %v10650_v33, %v23242_v18 }
 0x63a   : > { %v17375_v12 = vpop.f32.mrf.mxu0  ;;  %v17437_v56 = vpop.f32.mrf.mxu1  ;;  %17728 = vmatmul.mubr.msk.f32.gmra.mxu0 %vm350_vm14, %v12942_v2  ;;  %v12949_v2 = vld [vmem:[#allocation4 + $0x96] sm:$0xff] }
 0x63b   : > { %v23426_v5 = vadd.f32 %v11080_v39, %v10765_v47  ;;  %v10768_v43 = vadd.f32 %v17375_v12, %v23247_v41  ;;  %17730 = vmatprep.mubr.msk.f32.mxu0 %vm350_vm14, %v12943_v53  ;;  %v12948_v39 = vld [vmem:[#allocation4 + $0x8e] sm:$0xff] }
 0x63c   : > { %v10660_v45 = vpop.f32.mrf.mxu0  ;;  %v11090_v24 = vpop.f32.mrf.mxu1 }
 0x63d   : > { %v23430_v10 = vadd.f32 %v17437_v56, %v10768_v43  ;;  %v10767_v23 = vadd.f32 %v10660_v45, %v23252_v60 }
 0x63e   : > { %v17378_v18 = vpop.f32.mrf.mxu0  ;;  %v17440_v37 = vpop.f32.mrf.mxu1  ;;  %17731 = vmatmul.mubr.msk.f32.gmra.mxu0 %vm350_vm14, %v12944_v20  ;;  %v12951_v20 = vld [vmem:[#allocation4 + $0xa6] sm:$0xff] }
 0x63f   : > { %v23434_v32 = vadd.f32 %v11090_v24, %v10767_v23  ;;  %v10770_v35 = vadd.f32 %v17378_v18, %v23257_v62  ;;  %17733 = vmatprep.mubr.msk.f32.mxu0 %vm350_vm14, %v12945_v55  ;;  %v12950_v24 = vld [vmem:[#allocation4 + $0x9e] sm:$0xff] }
 0x640   : > { %v10670_v41 = vpop.f32.mrf.mxu0  ;;  %v11100_v52 = vpop.f32.mrf.mxu1 }
 0x641   : > { %v23438_v22 = vadd.f32 %v17440_v37, %v10770_v35  ;;  %v10769_v6 = vadd.f32 %v10670_v41, %v23262_v16 }
 0x642   : > { %v17381_v60 = vpop.f32.mrf.mxu0  ;;  %v17443_v14 = vpop.f32.mrf.mxu1  ;;  %17734 = vmatmul.mubr.msk.f32.gmra.mxu0 %vm350_vm14, %v12946_v9  ;;  %v12953_v9 = vld [vmem:[#allocation4 + $0xb6] sm:$0xff] }
 0x643   : > { %v23442_v26 = vadd.f32 %v11100_v52, %v10769_v6  ;;  %v10772_v29 = vadd.f32 %v17381_v60, %v23267_v11  ;;  %17736 = vmatprep.mubr.msk.f32.mxu0 %vm350_vm14, %v12947_v54  ;;  %v12952_v52 = vld [vmem:[#allocation4 + $0xae] sm:$0xff] }
 0x644   : > { %v10680_v62 = vpop.f32.mrf.mxu0  ;;  %v11110_v61 = vpop.f32.mrf.mxu1 }
 0x645   : > { %v23446_v46 = vadd.f32 %v17443_v14, %v10772_v29  ;;  %v10771_v33 = vadd.f32 %v10680_v62, %v23272_v27 }
 0x646   : > { %v17384_v16 = vpop.f32.mrf.mxu0  ;;  %v17446_v47 = vpop.f32.mrf.mxu1  ;;  %17737 = vmatmul.mubr.msk.f32.gmra.mxu0 %vm350_vm14, %v12948_v39  ;;  %v12955_v39 = vld [vmem:[#allocation4 + $0xc6] sm:$0xff] }
 0x647   : > { %v23450_v12 = vadd.f32 %v11110_v61, %v10771_v33  ;;  %v10774_v56 = vadd.f32 %v17384_v16, %v23277_v3  ;;  %17739 = vmatprep.mubr.msk.f32.mxu0 %vm350_vm14, %v12949_v2  ;;  %v12954_v61 = vld [vmem:[#allocation4 + $0xbe] sm:$0xff] }
 0x648   : > { %v10690_v11 = vpop.f32.mrf.mxu0  ;;  %v11120_v53 = vpop.f32.mrf.mxu1 }
 0x649   : > { %v23454_v43 = vadd.f32 %v17446_v47, %v10774_v56  ;;  %v10773_v45 = vadd.f32 %v10690_v11, %v23282_v63 }
 0x64a   : > { %v17387_v27 = vpop.f32.mrf.mxu0  ;;  %v17449_v23 = vpop.f32.mrf.mxu1  ;;  %17740 = vmatmul.mubr.msk.f32.gmra.mxu0 %vm350_vm14, %v12950_v24  ;;  %v12957_v24 = vld [vmem:[#allocation4 + $0xd6] sm:$0xff] }
 0x64b   : > { %v23458_v18 = vadd.f32 %v11120_v53, %v10773_v45  ;;  %v10776_v37 = vadd.f32 %v17387_v27, %v23287_v21  ;;  %17742 = vmatprep.mubr.msk.f32.mxu0 %vm350_vm14, %v12951_v20  ;;  %v12956_v53 = vld [vmem:[#allocation4 + $0xce] sm:$0xff] }
 0x64c   : > { %v10700_v3 = vpop.f32.mrf.mxu0  ;;  %v11130_v55 = vpop.f32.mrf.mxu1 }
 0x64d   : > { %v23462_v35 = vadd.f32 %v17449_v23, %v10776_v37  ;;  %v10775_v41 = vadd.f32 %v10700_v3, %v23292_v4 }
 0x64e   : > { %v17390_v63 = vpop.f32.mrf.mxu0  ;;  %v17452_v6 = vpop.f32.mrf.mxu1  ;;  %17743 = vmatmul.mubr.msk.f32.gmra.mxu0 %vm350_vm14, %v12952_v52  ;;  %v12959_v52 = vld [vmem:[#allocation4 + $0xe6] sm:$0xff] }
 0x64f   : > { %v23466_v60 = vadd.f32 %v11130_v55, %v10775_v41  ;;  %v10778_v14 = vadd.f32 %v17390_v63, %v23297_v51  ;;  %17745 = vmatprep.mubr.msk.f32.mxu0 %vm350_vm14, %v12953_v9  ;;  %v12958_v55 = vld [vmem:[#allocation4 + $0xde] sm:$0xff] }
 0x650   : > { %v10710_v21 = vpop.f32.mrf.mxu0  ;;  %v11140_v54 = vpop.f32.mrf.mxu1 }
 0x651   : > { %v23470_v29 = vadd.f32 %v17452_v6, %v10778_v14  ;;  %v10777_v62 = vadd.f32 %v10710_v21, %v23302_v31 }
 0x652   : > { %v17393_v4 = vpop.f32.mrf.mxu0  ;;  %v17455_v33 = vpop.f32.mrf.mxu1  ;;  %17746 = vmatmul.mubr.msk.f32.gmra.mxu0 %vm350_vm14, %v12954_v61  ;;  %v12961_v61 = vld [vmem:[#allocation4 + $0xf6] sm:$0xff] }
 0x653   : > { %v23474_v16 = vadd.f32 %v11140_v54, %v10777_v62  ;;  %v10780_v47 = vadd.f32 %v17393_v4, %v23307_v58  ;;  %17748 = vmatprep.mubr.msk.f32.mxu0 %vm350_vm14, %v12955_v39  ;;  %v12960_v54 = vld [vmem:[#allocation4 + $0xee] sm:$0xff] }
 0x654   : > { %v10720_v51 = vpop.f32.mrf.mxu0  ;;  %v11150_v2 = vpop.f32.mrf.mxu1 }
 0x655   : > { %v23478_v56 = vadd.f32 %v17455_v33, %v10780_v47  ;;  %v10779_v11 = vadd.f32 %v10720_v51, %v23312_v44 }
 0x656   : > { %v17396_v31 = vpop.f32.mrf.mxu0  ;;  %v17458_v45 = vpop.f32.mrf.mxu1  ;;  %17749 = vmatmul.mubr.msk.f32.gmra.mxu0 %vm350_vm14, %v12956_v53  ;;  %v12963_v53 = vld [vmem:[#allocation4 + $0x106] sm:$0xff] }
 0x657   : > { %v23482_v27 = vadd.f32 %v11150_v2, %v10779_v11  ;;  %v10782_v23 = vadd.f32 %v17396_v31, %v23317_v13  ;;  %17751 = vmatprep.mubr.msk.f32.mxu0 %vm350_vm14, %v12957_v24  ;;  %v12962_v2 = vld [vmem:[#allocation4 + $0xfe] sm:$0xff] }
 0x658   : > { %v10730_v58 = vpop.f32.mrf.mxu0  ;;  %v11160_v20 = vpop.f32.mrf.mxu1 }
 0x659   : > { %v23486_v37 = vadd.f32 %v17458_v45, %v10782_v23  ;;  %v10781_v3 = vadd.f32 %v10730_v58, %v23322_v1 }
 0x65a   : > { %v17399_v44 = vpop.f32.mrf.mxu0  ;;  %v17461_v41 = vpop.f32.mrf.mxu1  ;;  %17752 = vmatmul.mubr.msk.f32.gmra.mxu0 %vm350_vm14, %v12958_v55  ;;  %v12965_v55 = vld [vmem:[#allocation4 + $0x116] sm:$0xff] }
 0x65b   : > { %v23490_v63 = vadd.f32 %v11160_v20, %v10781_v3  ;;  %v10784_v6 = vadd.f32 %v17399_v44, %v23327_v7  ;;  %17754 = vmatprep.mubr.msk.f32.mxu0 %vm350_vm14, %v12959_v52  ;;  %v12964_v20 = vld [vmem:[#allocation4 + $0x10e] sm:$0xff] }
 0x65c   : > { %v10740_v13 = vpop.f32.mrf.mxu0  ;;  %v11170_v9 = vpop.f32.mrf.mxu1 }
 0x65d   : > { %v23494_v14 = vadd.f32 %v17461_v41, %v10784_v6  ;;  %v10783_v21 = vadd.f32 %v10740_v13, %v23332_v8 }
 0x65e   : > { %v17472_v1 = vpop.f32.mrf.mxu0  ;;  %v17534_v62 = vpop.f32.mrf.mxu1  ;;  %17755 = vmatmul.mubr.msk.f32.gmra.mxu0 %vm350_vm14, %v12960_v54  ;;  %v12967_v54 = vld [vmem:[#allocation4 + $0x126] sm:$0xff] }
 0x65f   : > { %v23498_v4 = vadd.f32 %v11170_v9, %v10783_v21  ;;  %v11610_v33 = vadd.f32 %v17472_v1, %v23343_v42  ;;  %17757 = vmatprep.mubr.msk.f32.mxu0 %vm350_vm14, %v12961_v61  ;;  %v12966_v9 = vld [vmem:[#allocation4 + $0x11e] sm:$0xff] }
 0x660   : > { %v11430_v7 = vpop.f32.mrf.mxu0  ;;  %v11860_v39 = vpop.f32.mrf.mxu1 }
 0x661   : > { %v23502_v47 = vadd.f32 %v17534_v62, %v11610_v33  ;;  %v11609_v51 = vadd.f32 %v11430_v7, %v23348_v19  ;;  %v12969_v33 = vld [vmem:[#allocation4 + $0x136] sm:$0xff] }
 0x662   : > { %v17475_v8 = vpop.f32.mrf.mxu0  ;;  %v17537_v11 = vpop.f32.mrf.mxu1  ;;  %17758 = vmatmul.mubr.msk.f32.gmra.mxu0 %vm350_vm14, %v12962_v2 }
 0x663   : > { %v23506_v31 = vadd.f32 %v11860_v39, %v11609_v51  ;;  %v11612_v45 = vadd.f32 %v17475_v8, %v23354_v50  ;;  %17760 = vmatprep.mubr.msk.f32.mxu0 %vm350_vm14, %v12963_v53 }
 0x664   : > { %v11440_v42 = vpop.f32.mrf.mxu0  ;;  %v11870_v24 = vpop.f32.mrf.mxu1 }
 0x665   : > { %v23510_v23 = vadd.f32 %v17537_v11, %v11612_v45  ;;  %v11611_v58 = vadd.f32 %v11440_v42, %v23360_v38 }
 0x666   : > { %v17478_v19 = vpop.f32.mrf.mxu0  ;;  %v17540_v3 = vpop.f32.mrf.mxu1  ;;  %17761 = vmatmul.mubr.msk.f32.gmra.mxu0 %vm350_vm14, %v12964_v20 }
 0x667   : > { %v23514_v44 = vadd.f32 %v11870_v24, %v11611_v58  ;;  %v11614_v41 = vadd.f32 %v17478_v19, %v23366_v57  ;;  %17763 = vmatprep.mubr.msk.f32.mxu0 %vm350_vm14, %v12965_v55 }
 0x668   : > { %v11450_v50 = vpop.f32.mrf.mxu0  ;;  %v11880_v52 = vpop.f32.mrf.mxu1 }
 0x669   : > { %v23518_v6 = vadd.f32 %v17540_v3, %v11614_v41  ;;  %v11613_v13 = vadd.f32 %v11450_v50, %v23372_v25  ;;  %v12968_v25 = vld [vmem:[#allocation4 + $0x12e] sm:$0xff] }
 0x66a   : > { %v17481_v38 = vpop.f32.mrf.mxu0  ;;  %v17543_v21 = vpop.f32.mrf.mxu1  ;;  %17764 = vmatmul.mubr.msk.f32.gmra.mxu0 %vm350_vm14, %v12966_v9 }
 0x66b   : > { %v23522_v1 = vadd.f32 %v11880_v52, %v11613_v13  ;;  %v11616_v62 = vadd.f32 %v17481_v38, %v23378_v17  ;;  %17766 = vmatprep.mubr.msk.f32.mxu0 %vm350_vm14, %v12967_v54  ;;  %v12970_v17 = vld [vmem:[#allocation4 + $0x13e] sm:$0xff] }
 0x66c   : > { %v11460_v57 = vpop.f32.mrf.mxu0  ;;  %v11890_v61 = vpop.f32.mrf.mxu1 }
 0x66d   : > { %v23526_v7 = vadd.f32 %v17543_v21, %v11616_v62  ;;  %v11615_v39 = vadd.f32 %v11460_v57, %v23384_v15 }
 0x66e   : > { %v17484_v51 = vpop.f32.mrf.mxu0  ;;  %v17546_v2 = vpop.f32.mrf.mxu1  ;;  %17767 = vmatmul.mubr.msk.f32.gmra.mxu0 %vm350_vm14, %v12968_v25 }
 0x66f   : > { %v23530_v8 = vadd.f32 %v11890_v61, %v11615_v39  ;;  %v11618_v11 = vadd.f32 %v17484_v51, %v23389_v30  ;;  %17769 = vmatprep.mubr.msk.f32.mxu0 %vm350_vm14, %v12969_v33 }
 0x670   : > { %v11470_v53 = vpop.f32.mrf.mxu0  ;;  %v11900_v45 = vpop.f32.mrf.mxu1 }
 0x671   : > { %v23534_v42 = vadd.f32 %v17546_v2, %v11618_v11  ;;  %v11617_v24 = vadd.f32 %v11470_v53, %v23394_v59 }
 0x672   : > { %v17487_v58 = vpop.f32.mrf.mxu0  ;;  %v17549_v15 = vpop.f32.mrf.mxu1  ;;  %17770 = vmatmul.mubr.msk.f32.gmra.mxu0 %vm350_vm14, %v12970_v17  ;;  %vm13408_vm14 = vcmask 392192  }
 0x673   : > { %v23538_v20 = vadd.f32 %v11900_v45, %v11617_v24  ;;  %v11620_v19 = vadd.f32 %v17487_v58, %v23398_v49 }
 0x674   : > { %v11480_v3 = vpop.f32.mrf.mxu0  ;;  %v11910_v55 = vpop.f32.mrf.mxu1 }
 0x675   : > { %v23541_v30 = vadd.f32 %v17549_v15, %v11620_v19  ;;  %v11619_v41 = vadd.f32 %v11480_v3, %v23402_v48 }
 0x676   : > { %v17490_v50 = vpop.f32.mrf.mxu0  ;;  %v17552_v52 = vpop.f32.mrf.mxu1 }
 0x677   : > { %v23544_v13 = vadd.f32 %v11910_v55, %v11619_v41  ;;  %v11622_v59 = vadd.f32 %v17490_v50, %v23406_v36 }
 0x678   : > { %v11490_v9 = vpop.f32.mrf.mxu0  ;;  %v11920_v38 = vpop.f32.mrf.mxu1 }
 0x679   : > { %v23547_v21 = vadd.f32 %v17552_v52, %v11622_v59  ;;  %v11621_v54 = vadd.f32 %v11490_v9, %v23410_v40 }
 0x67a   : > { %v17493_v62 = vpop.f32.mrf.mxu0  ;;  %v17555_v49 = vpop.f32.mrf.mxu1 }
 0x67b   : > { %v23550_v57 = vadd.f32 %v11920_v38, %v11621_v54  ;;  %v11624_v61 = vadd.f32 %v17493_v62, %v23414_v34 }
 0x67c   : > { %v11500_v33 = vpop.f32.mrf.mxu0  ;;  %v11930_v48 = vpop.f32.mrf.mxu1 }
 0x67d   : > { %v23553_v39 = vadd.f32 %v17555_v49, %v11624_v61  ;;  %v11623_v25 = vadd.f32 %v11500_v33, %v23418_v28 }
 0x67e   : > { %v17496_v51 = vpop.f32.mrf.mxu0  ;;  %v17558_v36 = vpop.f32.mrf.mxu1 }
 0x67f   : > { %v23556_v2 = vadd.f32 %v11930_v48, %v11623_v25  ;;  %v11626_v11 = vadd.f32 %v17496_v51, %v23422_v0 }
 0x680   : > { %v11510_v17 = vpop.f32.mrf.mxu0  ;;  %v11940_v40 = vpop.f32.mrf.mxu1 }
 0x681   : > { %v23559_v53 = vadd.f32 %v17558_v36, %v11626_v11  ;;  %v11625_v45 = vadd.f32 %v11510_v17, %v23426_v5 }
 0x682   : > { %v17499_v24 = vpop.f32.mrf.mxu0  ;;  %v17561_v34 = vpop.f32.mrf.mxu1 }
 0x683   : > { %v23562_v58 = vadd.f32 %v11940_v40, %v11625_v45  ;;  %v11628_v15 = vadd.f32 %v17499_v24, %v23430_v10 }
 0x684   : > { %v11520_v19 = vpop.f32.mrf.mxu0  ;;  %v11950_v28 = vpop.f32.mrf.mxu1 }
 0x685   : > { %v23565_v3 = vadd.f32 %v17561_v34, %v11628_v15  ;;  %v11627_v55 = vadd.f32 %v11520_v19, %v23434_v32 }
 0x686   : > { %v17502_v41 = vpop.f32.mrf.mxu0  ;;  %v17564_v0 = vpop.f32.mrf.mxu1 }
 0x687   : > { %v23568_v50 = vadd.f32 %v11950_v28, %v11627_v55  ;;  %v11630_v52 = vadd.f32 %v17502_v41, %v23438_v22 }
 0x688   : > { %v11530_v59 = vpop.f32.mrf.mxu0  ;;  %v11960_v5 = vpop.f32.mrf.mxu1 }
 0x689   : > { %v23571_v9 = vadd.f32 %v17564_v0, %v11630_v52  ;;  %v11629_v38 = vadd.f32 %v11530_v59, %v23442_v26 }
 0x68a   : > { %v17505_v54 = vpop.f32.mrf.mxu0  ;;  %v17567_v10 = vpop.f32.mrf.mxu1 }
 0x68b   : > { %v23574_v62 = vadd.f32 %v11960_v5, %v11629_v38  ;;  %v11632_v49 = vadd.f32 %v17505_v54, %v23446_v46 }
 0x68c   : > { %v11540_v61 = vpop.f32.mrf.mxu0  ;;  %v11970_v32 = vpop.f32.mrf.mxu1 }
 0x68d   : > { %v23577_v33 = vadd.f32 %v17567_v10, %v11632_v49  ;;  %v11631_v48 = vadd.f32 %v11540_v61, %v23450_v12 }
 0x68e   : > { %v17508_v25 = vpop.f32.mrf.mxu0  ;;  %v17570_v22 = vpop.f32.mrf.mxu1 }
 0x68f   : > { %v23580_v51 = vadd.f32 %v11970_v32, %v11631_v48  ;;  %v11634_v36 = vadd.f32 %v17508_v25, %v23454_v43 }
 0x690   : > { %v11550_v11 = vpop.f32.mrf.mxu0  ;;  %v11980_v26 = vpop.f32.mrf.mxu1 }
 0x691   : > { %v23583_v17 = vadd.f32 %v17570_v22, %v11634_v36  ;;  %v11633_v40 = vadd.f32 %v11550_v11, %v23458_v18 }
 0x692   : > { %v17511_v45 = vpop.f32.mrf.mxu0  ;;  %v17573_v46 = vpop.f32.mrf.mxu1 }
 0x693   : > { %v23586_v24 = vadd.f32 %v11980_v26, %v11633_v40  ;;  %v11636_v34 = vadd.f32 %v17511_v45, %v23462_v35 }
 0x694   : > { %v11560_v15 = vpop.f32.mrf.mxu0  ;;  %v11990_v12 = vpop.f32.mrf.mxu1 }
 0x695   : > { %v23589_v19 = vadd.f32 %v17573_v46, %v11636_v34  ;;  %v11635_v28 = vadd.f32 %v11560_v15, %v23466_v60 }
 0x696   : > { %v17514_v55 = vpop.f32.mrf.mxu0  ;;  %v17576_v43 = vpop.f32.mrf.mxu1 }
 0x697   : > { %v23592_v41 = vadd.f32 %v11990_v12, %v11635_v28  ;;  %v11638_v0 = vadd.f32 %v17514_v55, %v23470_v29 }
 0x698   : > { %v11570_v52 = vpop.f32.mrf.mxu0  ;;  %v12000_v18 = vpop.f32.mrf.mxu1 }
 0x699   : > { %v23595_v59 = vadd.f32 %v17576_v43, %v11638_v0  ;;  %v11637_v5 = vadd.f32 %v11570_v52, %v23474_v16 }
 0x69a   : > { %v17517_v38 = vpop.f32.mrf.mxu0  ;;  %v17579_v35 = vpop.f32.mrf.mxu1 }
 0x69b   : > { %v23598_v54 = vadd.f32 %v12000_v18, %v11637_v5  ;;  %v11640_v10 = vadd.f32 %v17517_v38, %v23478_v56 }
 0x69c   : > { %v11580_v49 = vpop.f32.mrf.mxu0  ;;  %v12010_v60 = vpop.f32.mrf.mxu1 }
 0x69d   : > { %v23601_v61 = vadd.f32 %v17579_v35, %v11640_v10  ;;  %v11639_v32 = vadd.f32 %v11580_v49, %v23482_v27 }
 0x69e   : > { %v17520_v48 = vpop.f32.mrf.mxu0  ;;  %v17582_v29 = vpop.f32.mrf.mxu1 }
 0x69f   : > { %v23604_v25 = vadd.f32 %v12010_v60, %v11639_v32  ;;  %v11642_v22 = vadd.f32 %v17520_v48, %v23486_v37 }
 0x6a0   : > { %v11590_v36 = vpop.f32.mrf.mxu0  ;;  %v12020_v16 = vpop.f32.mrf.mxu1 }
 0x6a1   : > { %v23607_v11 = vadd.f32 %v17582_v29, %v11642_v22  ;;  %v11641_v26 = vadd.f32 %v11590_v36, %v23490_v63 }
 0x6a2   : > { %v17523_v40 = vpop.f32.mrf.mxu0  ;;  %v17585_v56 = vpop.f32.mrf.mxu1 }
 0x6a3   : > { %v23610_v45 = vadd.f32 %v12020_v16, %v11641_v26  ;;  %v11644_v46 = vadd.f32 %v17523_v40, %v23494_v14 }
 0x6a4   : > { %v11600_v34 = vpop.f32.mrf.mxu0  ;;  %v12030_v27 = vpop.f32.mrf.mxu1 }
 0x6a5   : > { %v23613_v15 = vadd.f32 %v17585_v56, %v11644_v46  ;;  %v11643_v12 = vadd.f32 %v11600_v34, %v23498_v4 }
 0x6a6   : > { %v17596_v28 = vpop.f32.mrf.mxu0  ;;  %v23616_v37 = vpop.f32.mrf.mxu1 }
 0x6a7   : > { %v23618_v55 = vadd.f32 %v12030_v27, %v11643_v12  ;;  %v23621_v43 = vadd.f32 %v17596_v28, %v23502_v47 }
 0x6a8   : > { %v12290_v63 = vpop.f32.mrf.mxu0  ;;  %v23626_v52 = vpop.f32.mrf.mxu1 }
 0x6a9   : > { %v23624_v0 = vadd.f32 %v12290_v63, %v23506_v31 }
 0x6aa   : > { %v17599_v14 = vpop.f32.mrf.mxu0  ;;  %v23634_v38 = vpop.f32.mrf.mxu1 }
 0x6ab   : > { %v23629_v18 = vadd.f32 %v17599_v14, %v23510_v23 }
 0x6ac   : > { %v12300_v5 = vpop.f32.mrf.mxu0  ;;  %v23642_v49 = vpop.f32.mrf.mxu1 }
 0x6ad   : > { %v23632_v4 = vadd.f32 %v12300_v5, %v23514_v44 }
 0x6ae   : > { %v17602_v35 = vpop.f32.mrf.mxu0  ;;  %v23650_v48 = vpop.f32.mrf.mxu1 }
 0x6af   : > { %v23637_v47 = vadd.f32 %v17602_v35, %v23518_v6 }
 0x6b0   : > { %v12310_v10 = vpop.f32.mrf.mxu0  ;;  %v23658_v36 = vpop.f32.mrf.mxu1 }
 0x6b1   : > { %v23640_v31 = vadd.f32 %v12310_v10, %v23522_v1 }
 0x6b2   : > { %v17605_v60 = vpop.f32.mrf.mxu0  ;;  %v23666_v40 = vpop.f32.mrf.mxu1 }
 0x6b3   : > { %v23645_v23 = vadd.f32 %v17605_v60, %v23526_v7 }
 0x6b4   : > { %v12320_v32 = vpop.f32.mrf.mxu0  ;;  %v23674_v34 = vpop.f32.mrf.mxu1 }
 0x6b5   : > { %v23648_v44 = vadd.f32 %v12320_v32, %v23530_v8 }
 0x6b6   : > { %v17608_v29 = vpop.f32.mrf.mxu0  ;;  %v23682_v28 = vpop.f32.mrf.mxu1 }
 0x6b7   : > { %v23653_v6 = vadd.f32 %v17608_v29, %v23534_v42 }
 0x6b8   : > { %v12330_v22 = vpop.f32.mrf.mxu0  ;;  %v23690_v5 = vpop.f32.mrf.mxu1 }
 0x6b9   : > { %v23656_v1 = vadd.f32 %v12330_v22, %v23538_v20 }
 0x6ba   : > { %v17611_v16 = vpop.f32.mrf.mxu0  ;;  %v23698_v60 = vpop.f32.mrf.mxu1 }
 0x6bb   : > { %v23661_v7 = vadd.f32 %v17611_v16, %v23541_v30 }
 0x6bc   : > { %v12340_v26 = vpop.f32.mrf.mxu0  ;;  %v23706_v22 = vpop.f32.mrf.mxu1 }
 0x6bd   : > { %v23664_v8 = vadd.f32 %v12340_v26, %v23544_v13 }
 0x6be   : > { %v17614_v56 = vpop.f32.mrf.mxu0 }
 0x6bf   : > { %v23669_v42 = vadd.f32 %v17614_v56, %v23547_v21  ;;  %v23714_v56 = vpop.f32.mrf.mxu1 }
 0x6c0   : > { %v12350_v46 = vpop.f32.mrf.mxu0 }
 0x6c1   : > { %v23672_v20 = vadd.f32 %v12350_v46, %v23550_v57 }
 0x6c2   : > { %v17617_v27 = vpop.f32.mrf.mxu0 }
 0x6c3   : > { %v23677_v30 = vadd.f32 %v17617_v27, %v23553_v39 }
 0x6c4   : > { %v12360_v12 = vpop.f32.mrf.mxu0 }
 0x6c5   : > { %v23680_v13 = vadd.f32 %v12360_v12, %v23556_v2  ;;  %v23722_v12 = vpop.f32.mrf.mxu1 }
 0x6c6   : > { %v17620_v63 = vpop.f32.mrf.mxu0 }
 0x6c7   : > { %v23685_v21 = vadd.f32 %v17620_v63, %v23559_v53 }
 0x6c8   : > { %v12370_v14 = vpop.f32.mrf.mxu0 }
 0x6c9   : > { %v23688_v57 = vadd.f32 %v12370_v14, %v23562_v58 }
 0x6ca   : > { %v17623_v35 = vpop.f32.mrf.mxu0 }
 0x6cb   : > { %v23693_v39 = vadd.f32 %v17623_v35, %v23565_v3  ;;  %v23730_v35 = vpop.f32.mrf.mxu1 }
 0x6cc   : > { %v12380_v10 = vpop.f32.mrf.mxu0 }
 0x6cd   : > { %v23696_v2 = vadd.f32 %v12380_v10, %v23568_v50 }
 0x6ce   : > { %v17626_v32 = vpop.f32.mrf.mxu0 }
 0x6cf   : > { %v23701_v53 = vadd.f32 %v17626_v32, %v23571_v9 }
 0x6d0   : > { %v12390_v29 = vpop.f32.mrf.mxu0 }
 0x6d1   : > { %v23704_v58 = vadd.f32 %v12390_v29, %v23574_v62  ;;  %v23738_v29 = vpop.f32.mrf.mxu1 }
 0x6d2   : > { %v17629_v16 = vpop.f32.mrf.mxu0 }
 0x6d3   : > { %v23709_v3 = vadd.f32 %v17629_v16, %v23577_v33 }
 0x6d4   : > { %v12400_v26 = vpop.f32.mrf.mxu0 }
 0x6d5   : > { %v23712_v50 = vadd.f32 %v12400_v26, %v23580_v51 }
 0x6d6   : > { %v17632_v46 = vpop.f32.mrf.mxu0 }
 0x6d7   : > { %v23717_v9 = vadd.f32 %v17632_v46, %v23583_v17  ;;  %v23746_v46 = vpop.f32.mrf.mxu1 }
 0x6d8   : > { %v12410_v27 = vpop.f32.mrf.mxu0 }
 0x6d9   : > { %v23720_v62 = vadd.f32 %v12410_v27, %v23586_v24 }
 0x6da   : > { %v17635_v63 = vpop.f32.mrf.mxu0 }
 0x6db   : > { %v23725_v33 = vadd.f32 %v17635_v63, %v23589_v19 }
 0x6dc   : > { %v12420_v14 = vpop.f32.mrf.mxu0 }
 0x6dd   : > { %v23728_v51 = vadd.f32 %v12420_v14, %v23592_v41  ;;  %v23754_v14 = vpop.f32.mrf.mxu1 }
 0x6de   : > { %v17638_v10 = vpop.f32.mrf.mxu0 }
 0x6df   : > { %v23733_v17 = vadd.f32 %v17638_v10, %v23595_v59 }
 0x6e0   : > { %v12430_v32 = vpop.f32.mrf.mxu0 }
 0x6e1   : > { %v23736_v24 = vadd.f32 %v12430_v32, %v23598_v54 }
 0x6e2   : > { %v17641_v16 = vpop.f32.mrf.mxu0 }
 0x6e3   : > { %v23741_v19 = vadd.f32 %v17641_v16, %v23601_v61 }
 0x6e4   : > { %v12440_v26 = vpop.f32.mrf.mxu0 }
 0x6e5   : > { %v23744_v41 = vadd.f32 %v12440_v26, %v23604_v25  ;;  %v12900_v25 = vadd.f32 %v23616_v37, %v23621_v43  ;;  %v23764_v26 = vpop.f32.mrf.mxu1 }
 0x6e6   : > { %v17644_v27 = vpop.f32.mrf.mxu0 }
 0x6e7   : > { %v23749_v59 = vadd.f32 %v17644_v27, %v23607_v11  ;;  %v12899_v27 = vadd.f32 %v23626_v52, %v23624_v0  ;;  %v12901_v52 = vadd.f32 %v23642_v49, %v23632_v4  ;;  %v12903_v4 = vadd.f32 %v23658_v36, %v23640_v31 }
 0x6e8   : > { %v12450_v63 = vpop.f32.mrf.mxu0  ;;  %v12905_v31 = vadd.f32 %v23674_v34, %v23648_v44  ;;  %v12907_v44 = vadd.f32 %v23690_v5, %v23656_v1  ;;  %v12909_v1 = vadd.f32 %v23706_v22, %v23664_v8  ;;  %v12911_v8 = vadd.f32 %v23722_v12, %v23672_v20 }
 0x6e9   : > { %v23752_v54 = vadd.f32 %v12450_v63, %v23610_v45  ;;  %v23769_v45 = vld [vmem:[%s23965_s8] ss:$0 sm:$0xff]  ;;  %v12913_v20 = vadd.f32 %v23738_v29, %v23680_v13  ;;  %v12915_v13 = vadd.f32 %v23754_v14, %v23688_v57 }
 0x6ea   : > { %v17647_v10 = vpop.f32.mrf.mxu0 }
 0x6eb   : > { %v23757_v61 = vadd.f32 %v17647_v10, %v23613_v15  ;;  %v23783_v10 = vpop.f32.mrf.mxu1 }
 0x6ec   : > { %v12460_v32 = vpop.f32.mrf.mxu0  ;;  %v12917_v57 = vadd.f32 %v23783_v10, %v23696_v2 }
 0x6ed   : > { %v23762_v16 = vadd.f32 %v12460_v32, %v23618_v55  ;;  %v12902_v55 = vadd.f32 %v23634_v38, %v23629_v18  ;;  %v12904_v18 = vadd.f32 %v23650_v48, %v23637_v47  ;;  %v12906_v47 = vadd.f32 %v23666_v40, %v23645_v23 }
 0x6ee   : > { %v17720_v11 = vpop.f32.mrf.mxu0  ;;  %v12908_v23 = vadd.f32 %v23682_v28, %v23653_v6  ;;  %v12910_v6 = vadd.f32 %v23698_v60, %v23661_v7  ;;  %v12912_v7 = vadd.f32 %v23714_v56, %v23669_v42  ;;  %v12914_v42 = vadd.f32 %v23730_v35, %v23677_v30 }
 0x6ef   : > { %v13330_v15 = vadd.f32 %v17720_v11, %v12900_v25  ;;  %v12916_v30 = vadd.f32 %v23746_v46, %v23685_v21  ;;  %v12918_v21 = vadd.f32 %v23764_v26, %v23693_v39 }
 0x6f0   : > { %v13150_v37 = vpop.f32.mrf.mxu0 }
 0x6f1   : > { %v13373_v43 = vadd.f32 %v23769_v45, %v13330_v15  ;;  %v13329_v63 = vadd.f32 %v13150_v37, %v12899_v27  ;;  %v23795_v15 = vpop.f32.mrf.mxu1 }
 0x6f2   : > { %v17723_v0 = vpop.f32.mrf.mxu0  ;;  %v12920_v39 = vadd.f32 %v23795_v15, %v23701_v53 }
 0x6f3   : > { %13410 = vst.msk [vmem:[%s23778_s15 + $0x8] sm:$0xff] %vm13408_vm14, %v13373_v43  ;;  %v13372_v32 = vadd.f32 %v23769_v45, %v13329_v63  ;;  %v13332_v25 = vadd.f32 %v17723_v0, %v12902_v55  ;;  %v23807_v0 = vpop.f32.mrf.mxu1 }
 0x6f4   : > { %v13160_v11 = vpop.f32.mrf.mxu0  ;;  %v12919_v2 = vadd.f32 %v23807_v0, %v23704_v58 }
 0x6f5   : > { %13409 = vst.msk [vmem:[%s23778_s15] sm:$0xff] %vm13408_vm14, %v13372_v32  ;;  %v13375_v38 = vadd.f32 %v23769_v45, %v13332_v25  ;;  %v13331_v27 = vadd.f32 %v13160_v11, %v12901_v52 }
 0x6f6   : > { %v17726_v37 = vpop.f32.mrf.mxu0 }
 0x6f7   : > { %13412 = vst.msk [vmem:[%s23778_s15 + $0x18] sm:$0xff] %vm13408_vm14, %v13375_v38  ;;  %v13374_v49 = vadd.f32 %v23769_v45, %v13331_v27  ;;  %v13334_v55 = vadd.f32 %v17726_v37, %v12904_v18  ;;  %v23819_v18 = vpop.f32.mrf.mxu1 }
 0x6f8   : > { %v13170_v43 = vpop.f32.mrf.mxu0  ;;  %v12922_v53 = vadd.f32 %v23819_v18, %v23709_v3 }
 0x6f9   : > { %13411 = vst.msk [vmem:[%s23778_s15 + $0x10] sm:$0xff] %vm13408_vm14, %v13374_v49  ;;  %v13377_v48 = vadd.f32 %v23769_v45, %v13334_v55  ;;  %v13333_v63 = vadd.f32 %v13170_v43, %v12903_v4  ;;  %v23831_v49 = vpop.f32.mrf.mxu1 }
 0x6fa   : > { %v17729_v52 = vpop.f32.mrf.mxu0  ;;  %v12921_v58 = vadd.f32 %v23831_v49, %v23712_v50 }
 0x6fb   : > { %13414 = vst.msk [vmem:[%s23778_s15 + $0x28] sm:$0xff] %vm13408_vm14, %v13377_v48  ;;  %v13376_v36 = vadd.f32 %v23769_v45, %v13333_v63  ;;  %v13336_v32 = vadd.f32 %v17729_v52, %v12906_v47  ;;  %v17694_v63 = vpop.f32.mrf.mxu1 }
 0x6fc   : > { %v13180_v25 = vpop.f32.mrf.mxu0  ;;  %v12924_v3 = vadd.f32 %v17694_v63, %v23717_v9 }
 0x6fd   : > { %13413 = vst.msk [vmem:[%s23778_s15 + $0x20] sm:$0xff] %vm13408_vm14, %v13376_v36  ;;  %v13379_v40 = vadd.f32 %v23769_v45, %v13336_v32  ;;  %v13335_v11 = vadd.f32 %v13180_v25, %v12905_v31  ;;  %v12840_v25 = vpop.f32.mrf.mxu1 }
 0x6fe   : > { %v17732_v38 = vpop.f32.mrf.mxu0 }
 0x6ff   : > { %13416 = vst.msk [vmem:[%s23778_s15 + $0x38] sm:$0xff] %vm13408_vm14, %v13379_v40  ;;  %v13378_v34 = vadd.f32 %v23769_v45, %v13335_v11  ;;  %v13338_v27 = vadd.f32 %v17732_v38, %v12908_v23 }
 0x700   : > { %v13190_v37 = vpop.f32.mrf.mxu0 }
 0x701   : > { %13415 = vst.msk [vmem:[%s23778_s15 + $0x30] sm:$0xff] %vm13408_vm14, %v13378_v34  ;;  %v13381_v28 = vadd.f32 %v23769_v45, %v13338_v27  ;;  %v13337_v4 = vadd.f32 %v13190_v37, %v12907_v44  ;;  %v17697_v44 = vpop.f32.mrf.mxu1 }
 0x702   : > { %v17735_v55 = vpop.f32.mrf.mxu0 }
 0x703   : > { %13418 = vst.msk [vmem:[%s23778_s15 + $0x48] sm:$0xff] %vm13408_vm14, %v13381_v28  ;;  %v13380_v5 = vadd.f32 %v23769_v45, %v13337_v4  ;;  %v13340_v43 = vadd.f32 %v17735_v55, %v12910_v6  ;;  %v12850_v28 = vpop.f32.mrf.mxu1 }
 0x704   : > { %v13200_v47 = vpop.f32.mrf.mxu0 }
 0x705   : > { %13417 = vst.msk [vmem:[%s23778_s15 + $0x40] sm:$0xff] %vm13408_vm14, %v13380_v5  ;;  %v13383_v60 = vadd.f32 %v23769_v45, %v13340_v43  ;;  %v13339_v48 = vadd.f32 %v13200_v47, %v12909_v1  ;;  %v17700_v43 = vpop.f32.mrf.mxu1 }
 0x706   : > { %v17738_v52 = vpop.f32.mrf.mxu0 }
 0x707   : > { %13420 = vst.msk [vmem:[%s23778_s15 + $0x58] sm:$0xff] %vm13408_vm14, %v13383_v60  ;;  %v13382_v22 = vadd.f32 %v23769_v45, %v13339_v48  ;;  %v13342_v31 = vadd.f32 %v17738_v52, %v12912_v7  ;;  %v12860_v52 = vpop.f32.mrf.mxu1 }
 0x708   : > { %v13210_v36 = vpop.f32.mrf.mxu0 }
 0x709   : > { %13419 = vst.msk [vmem:[%s23778_s15 + $0x50] sm:$0xff] %vm13408_vm14, %v13382_v22  ;;  %v13385_v56 = vadd.f32 %v23769_v45, %v13342_v31  ;;  %v13341_v32 = vadd.f32 %v13210_v36, %v12911_v8 }
 0x70a   : > { %v17741_v23 = vpop.f32.mrf.mxu0 }
 0x70b   : > { %13422 = vst.msk [vmem:[%s23778_s15 + $0x68] sm:$0xff] %vm13408_vm14, %v13385_v56  ;;  %v13384_v12 = vadd.f32 %v23769_v45, %v13341_v32  ;;  %v13344_v40 = vadd.f32 %v17741_v23, %v12914_v42  ;;  %v17703_v42 = vpop.f32.mrf.mxu1  ;;  %v12923_v32 = vadd.f32 %v12840_v25, %v23720_v62 }
 0x70c   : > { %v13220_v11 = vpop.f32.mrf.mxu0 }
 0x70d   : > { %13421 = vst.msk [vmem:[%s23778_s15 + $0x60] sm:$0xff] %vm13408_vm14, %v13384_v12  ;;  %v13387_v35 = vadd.f32 %v23769_v45, %v13344_v40  ;;  %v13343_v38 = vadd.f32 %v13220_v11, %v12913_v20  ;;  %v12926_v20 = vadd.f32 %v17697_v44, %v23725_v33  ;;  %v12870_v12 = vpop.f32.mrf.mxu1  ;;  %v12925_v11 = vadd.f32 %v12850_v28, %v23728_v51 }
 0x70e   : > { %v17744_v34 = vpop.f32.mrf.mxu0  ;;  %v12929_v28 = vadd.f32 %v12870_v12, %v23744_v41 }
 0x70f   : > { %13424 = vst.msk [vmem:[%s23778_s15 + $0x78] sm:$0xff] %vm13408_vm14, %v13387_v35  ;;  %v13386_v29 = vadd.f32 %v23769_v45, %v13343_v38  ;;  %v13346_v27 = vadd.f32 %v17744_v34, %v12916_v30  ;;  %v12928_v35 = vadd.f32 %v17700_v43, %v23733_v17  ;;  %v17706_v44 = vpop.f32.mrf.mxu1 }
 0x710   : > { %v13230_v37 = vpop.f32.mrf.mxu0 }
 0x711   : > { %13423 = vst.msk [vmem:[%s23778_s15 + $0x70] sm:$0xff] %vm13408_vm14, %v13386_v29  ;;  %v13389_v46 = vadd.f32 %v23769_v45, %v13346_v27  ;;  %v13345_v6 = vadd.f32 %v13230_v37, %v12915_v13  ;;  %v12927_v13 = vadd.f32 %v12860_v52, %v23736_v24  ;;  %v12930_v37 = vadd.f32 %v17703_v42, %v23741_v19 }
 0x712   : > { %v17747_v4 = vpop.f32.mrf.mxu0  ;;  %v12932_v19 = vadd.f32 %v17706_v44, %v23749_v59 }
 0x713   : > { %13426 = vst.msk [vmem:[%s23778_s15 + $0x88] sm:$0xff] %vm13408_vm14, %v13389_v46  ;;  %v13388_v14 = vadd.f32 %v23769_v45, %v13345_v6  ;;  %v13348_v55 = vadd.f32 %v17747_v4, %v12918_v21  ;;  %v12880_v46 = vpop.f32.mrf.mxu1 }
 0x714   : > { %v13240_v1 = vpop.f32.mrf.mxu0 }
 0x715   : > { %13425 = vst.msk [vmem:[%s23778_s15 + $0x80] sm:$0xff] %vm13408_vm14, %v13388_v14  ;;  %v13391_v26 = vadd.f32 %v23769_v45, %v13348_v55  ;;  %v13347_v5 = vadd.f32 %v13240_v1, %v12917_v57  ;;  %v17709_v57 = vpop.f32.mrf.mxu1 }
 0x716   : > { %v17750_v47 = vpop.f32.mrf.mxu0  ;;  %v12934_v59 = vadd.f32 %v17709_v57, %v23757_v61 }
 0x717   : > { %13428 = vst.msk [vmem:[%s23778_s15 + $0x98] sm:$0xff] %vm13408_vm14, %v13391_v26  ;;  %v13390_v10 = vadd.f32 %v23769_v45, %v13347_v5  ;;  %v13350_v7 = vadd.f32 %v17750_v47, %v12920_v39  ;;  %v12931_v26 = vadd.f32 %v12880_v46, %v23752_v54  ;;  %v12890_v43 = vpop.f32.mrf.mxu1 }
 0x718   : > { %v13250_v60 = vpop.f32.mrf.mxu0  ;;  %v12933_v54 = vadd.f32 %v12890_v43, %v23762_v16 }
 0x719   : > { %13427 = vst.msk [vmem:[%s23778_s15 + $0x90] sm:$0xff] %vm13408_vm14, %v13390_v10  ;;  %v13393_v15 = vadd.f32 %v23769_v45, %v13350_v7  ;;  %v13349_v48 = vadd.f32 %v13250_v60, %v12919_v2 }
 0x71a   : > { %v17753_v8 = vpop.f32.mrf.mxu0 }
 0x71b   : > { %13430 = vst.msk [vmem:[%s23778_s15 + $0xa8] sm:$0xff] %vm13408_vm14, %v13393_v15  ;;  %v13392_v0 = vadd.f32 %v23769_v45, %v13349_v48  ;;  %v13352_v22 = vadd.f32 %v17753_v8, %v12922_v53 }
 0x71c   : > { %v13260_v31 = vpop.f32.mrf.mxu0 }
 0x71d   : > { %13429 = vst.msk [vmem:[%s23778_s15 + $0xa0] sm:$0xff] %vm13408_vm14, %v13392_v0  ;;  %v13395_v18 = vadd.f32 %v23769_v45, %v13352_v22  ;;  %v13351_v36 = vadd.f32 %v13260_v31, %v12921_v58 }
 0x71e   : > { %v17756_v56 = vpop.f32.mrf.mxu0 }
 0x71f   : > { %13432 = vst.msk [vmem:[%s23778_s15 + $0xb8] sm:$0xff] %vm13408_vm14, %v13395_v18  ;;  %v13394_v50 = vadd.f32 %v23769_v45, %v13351_v36  ;;  %v13354_v49 = vadd.f32 %v17756_v56, %v12924_v3 }
 0x720   : > { %v13270_v23 = vpop.f32.mrf.mxu0 }
 0x721   : > { %13431 = vst.msk [vmem:[%s23778_s15 + $0xb0] sm:$0xff] %vm13408_vm14, %v13394_v50  ;;  %v13397_v9 = vadd.f32 %v23769_v45, %v13354_v49  ;;  %v13353_v63 = vadd.f32 %v13270_v23, %v12923_v32 }
 0x722   : > { %v17759_v40 = vpop.f32.mrf.mxu0 }
 0x723   : > { %13434 = vst.msk [vmem:[%s23778_s15 + $0xc8] sm:$0xff] %vm13408_vm14, %v13397_v9  ;;  %v13396_v62 = vadd.f32 %v23769_v45, %v13353_v63  ;;  %v13356_v25 = vadd.f32 %v17759_v40, %v12926_v20 }
 0x724   : > { %v13280_v30 = vpop.f32.mrf.mxu0 }
 0x725   : > { %13433 = vst.msk [vmem:[%s23778_s15 + $0xc0] sm:$0xff] %vm13408_vm14, %v13396_v62  ;;  %v13399_v33 = vadd.f32 %v23769_v45, %v13356_v25  ;;  %v13355_v38 = vadd.f32 %v13280_v30, %v12925_v11 }
 0x726   : > { %v17762_v34 = vpop.f32.mrf.mxu0 }
 0x727   : > { %13436 = vst.msk [vmem:[%s23778_s15 + $0xd8] sm:$0xff] %vm13408_vm14, %v13399_v33  ;;  %v13398_v51 = vadd.f32 %v23769_v45, %v13355_v38  ;;  %v13358_v29 = vadd.f32 %v17762_v34, %v12928_v35 }
 0x728   : > { %v13290_v27 = vpop.f32.mrf.mxu0 }
 0x729   : > { %13435 = vst.msk [vmem:[%s23778_s15 + $0xd0] sm:$0xff] %vm13408_vm14, %v13398_v51  ;;  %v13401_v17 = vadd.f32 %v23769_v45, %v13358_v29  ;;  %v13357_v21 = vadd.f32 %v13290_v27, %v12927_v13 }
 0x72a   : > { %v17765_v6 = vpop.f32.mrf.mxu0 }
 0x72b   : > { %13438 = vst.msk [vmem:[%s23778_s15 + $0xe8] sm:$0xff] %vm13408_vm14, %v13401_v17  ;;  %v13400_v24 = vadd.f32 %v23769_v45, %v13357_v21  ;;  %v13360_v4 = vadd.f32 %v17765_v6, %v12930_v37 }
 0x72c   : > { %v13300_v14 = vpop.f32.mrf.mxu0 }
 0x72d   : > { %13437 = vst.msk [vmem:[%s23778_s15 + $0xe0] sm:$0xff] %vm13408_vm14, %v13400_v24  ;;  %v13403_v55 = vadd.f32 %v23769_v45, %v13360_v4  ;;  %v13359_v1 = vadd.f32 %v13300_v14, %v12929_v28 }
 0x72e   : > { %v17768_v39 = vpop.f32.mrf.mxu0 }
 0x72f   : > { %13440 = vst.msk [vmem:[%s23778_s15 + $0xf8] sm:$0xff] %vm13408_vm14, %v13403_v55  ;;  %v13402_v41 = vadd.f32 %v23769_v45, %v13359_v1  ;;  %v13362_v5 = vadd.f32 %v17768_v39, %v12932_v19 }
 0x730   : > { %v13310_v47 = vpop.f32.mrf.mxu0 }
 0x731   : > { %13439 = vst.msk [vmem:[%s23778_s15 + $0xf0] sm:$0xff] %vm13408_vm14, %v13402_v41  ;;  %v13405_v2 = vadd.f32 %v23769_v45, %v13362_v5  ;;  %v13361_v10 = vadd.f32 %v13310_v47, %v12931_v26 }
 0x732   : > { %v17771_v7 = vpop.f32.mrf.mxu0 }
 0x733   : > { %13442 = vst.msk [vmem:[%s23778_s15 + $0x108] sm:$0xff] %vm13408_vm14, %v13405_v2  ;;  %v13404_v60 = vadd.f32 %v23769_v45, %v13361_v10  ;;  %v13364_v53 = vadd.f32 %v17771_v7, %v12934_v59 }
 0x734   : > { %v13320_v15 = vpop.f32.mrf.mxu0 }
 0x735   : > { %13441 = vst.msk [vmem:[%s23778_s15 + $0x100] sm:$0xff] %vm13408_vm14, %v13404_v60  ;;  %v13407_v48 = vadd.f32 %v23769_v45, %v13364_v53  ;;  %v13363_v52 = vadd.f32 %v13320_v15, %v12933_v54 }
 0x737   : > { %13444 = vst.msk [vmem:[%s23778_s15 + $0x118] sm:$0xff] %vm13408_vm14, %v13407_v48  ;;  %v13406_v61 = vadd.f32 %v23769_v45, %v13363_v52 }
 0x739   : > { %13443 = vst.msk [vmem:[%s23778_s15 + $0x110] sm:$0xff] %vm13408_vm14, %v13406_v61 }
 0x73a PF: > { %s19_s30 = sadd.s32 1, %s17863_s30  }
 0x73b   : > { %p16_p4 = scmp.ge.s32.totalorder %s19_s30, 4  }
 0x73d   :  { %18 = sbr.rel (!%p16_p4) target bundleno = 1 (0x1), region = 110 }

</bundles_post_ra>
